<compile_context>
chip_gen: v6e
topology: v6e:2x2x1
jax: 0.10.0
libtpu: 0.0.40
codegen_flags: <defaults>
</compile_context>

<pallas_src>
import functools
import math

import jax
import jax.numpy as jnp
import numpy as np
from jax.experimental import pallas as pl
from jax.experimental.pallas import tpu as pltpu

LANE = 128


def _rup(n, m):
    return ((n + m - 1) // m) * m


# ----------------------------------------------------------------------------
# Fused block kernel:
#   [conv_first (K-packed, first block only)] -> 4x4/s2 conv -> ReLU ->
#   n_res x residual layer -> ReLU -> [final 3x3 conv (last block only)]
# ----------------------------------------------------------------------------
def _make_block_kernel(*, bc, mi, wp, s0, lw, ho, wo, n_res,
                       first_block, last_block):
    bm = bc * mi

    def kernel(*refs):
        it = iter(refs)
        if first_block:
            pat_ref = next(it)          # (4, bc*mi, Kp)  phase-packed patches
            w0_ref = next(it)           # (Kp, Cp)        first conv (bias in K)
        else:
            ph_ref = next(it)           # (4, bc*mi, Cp)  ready-made phases
        w1_ref = next(it)               # (16, Cp, C2)    4x4 conv taps
        b1_ref = next(it)               # (1, C2)
        w3_ref = next(it)               # (9, C2, R)      residual 3x3 taps
        wr_ref = next(it)               # (R, C2)         residual 1x1
        if last_block:
            wf_ref = next(it)           # (9, C2, CF)     final 3x3 taps
            bf_ref = next(it)           # (1, CF)
        m_ref = next(it)                # (lw, 1)         interior-pixel mask
        o_ref = next(it)
        flat_ref = next(it)             # VMEM scratch (bc*mi, C2)

        mask = m_ref[...]
        c2 = b1_ref.shape[-1]

        # ---- 4x4 / stride-2 conv via 2x2 phase decomposition ----------------
        acc = jnp.zeros((lw, c2), jnp.float32)
        for g in range(4):                                # phase = a*2 + b
            if first_block:
                # first conv: K-packed patches (bias folded into K) + ReLU;
                # zero patch rows stay exactly zero (the conv-1 padding).
                pg = jnp.maximum(
                    jnp.dot(pat_ref[g], w0_ref[...],
                            preferred_element_type=jnp.float32), 0.0)
            else:
                pg = ph_ref[g]
            for t in range(4):                            # tap = qh*2 + qw
                off = (t // 2) * wp + (t % 2)
                acc = acc + jnp.dot(pg[off:off + lw, :], w1_ref[g * 4 + t],
                                    preferred_element_type=jnp.float32)
        acc = jnp.maximum(acc + b1_ref[...], 0.0) * mask  # post-conv ReLU

        # flat padded layout: zero border written once, band written once
        flat_ref[0:s0, :] = jnp.zeros((s0, c2), jnp.float32)
        flat_ref[s0:s0 + lw, :] = acc
        flat_ref[s0 + lw:bm, :] = jnp.zeros((bm - s0 - lw, c2), jnp.float32)

        # ---- residual stack: y <- y + Conv1x1(ReLU(Conv3x3(ReLU(y)))) -------
        rh = w3_ref.shape[-1]
        for _ in range(n_res):
            x = flat_ref[...]
            xr = jnp.maximum(x, 0.0)
            h = jnp.zeros((lw, rh), jnp.float32)
            for k in range(9):
                off = s0 + (k // 3 - 1) * wp + (k % 3 - 1)
                h = h + jnp.dot(xr[off:off + lw, :], w3_ref[k],
                                preferred_element_type=jnp.float32)
            h = jnp.maximum(h, 0.0)
            delta = jnp.dot(h, wr_ref[...],
                            preferred_element_type=jnp.float32) * mask
            flat_ref[s0:s0 + lw, :] = x[s0:s0 + lw, :] + delta  # single store

        # ---- trailing ReLU of the residual stack ----------------------------
        xr = jnp.maximum(flat_ref[...], 0.0)

        if last_block:
            # final 3x3 / stride-1 conv (+bias), fused
            cf = bf_ref.shape[-1]
            fac = jnp.zeros((lw, cf), jnp.float32)
            for k in range(9):
                off = s0 + (k // 3 - 1) * wp + (k % 3 - 1)
                fac = fac + jnp.dot(xr[off:off + lw, :], wf_ref[k],
                                    preferred_element_type=jnp.float32)
            fac = fac + bf_ref[...]
            for b in range(bc):
                for i in range(ho):
                    src = b * mi + i * wp
                    o_ref[b, i * wo:(i + 1) * wo, :] = fac[src:src + wo, :]
        else:
            # dense (post trailing-ReLU) activation for the next block
            for b in range(bc):
                for i in range(ho):
                    src = b * mi + (i + 1) * wp + 1
                    o_ref[b, i * wo:(i + 1) * wo, :] = xr[src:src + wo, :]

    return kernel


# ----------------------------------------------------------------------------
# Wrapper-side layout glue (tiny, one cheap XLA pass each)
# ----------------------------------------------------------------------------
def _phase_pack(y, ho, wo, wp):
    """(N, 2*ho, 2*wo, C) -> (4, N, (ho+2)*wp, C): 2x2 phases of pad(y, 1)."""
    n, c = y.shape[0], y.shape[-1]
    yp = jnp.pad(y, ((0, 0), (1, 3), (1, 3), (0, 0)))
    phs = []
    for a in range(2):
        for b in range(2):
            phs.append(yp[:, a:a + 2 * (ho + 2):2, b:b + 2 * (wo + 2):2, :])
    ph = jnp.stack(phs, axis=0)                      # (4, N, ho+2, wo+2, C)
    ph = jnp.pad(ph, ((0, 0), (0, 0), (0, 0), (0, wp - (wo + 2)), (0, 0)))
    return ph.reshape(4, n, (ho + 2) * wp, c)


def _chunk_phases(ph, bc):
    """(4, N, MI, C) -> (N//bc, 4, bc*MI, C): stack a batch chunk along rows."""
    _, n, mi, c = ph.shape
    ph = ph.reshape(4, n // bc, bc, mi, c).transpose(1, 0, 2, 3, 4)
    return ph.reshape(n // bc, 4, bc * mi, c)


def _first_conv_patches(x, kp):
    """Tiny im2col for the k=4,s=2,p=1 first conv; bias feature appended."""
    n, h, w, cin = x.shape
    h1, w1 = h // 2, w // 2
    xp = jnp.pad(x, ((0, 0), (1, 1), (1, 1), (0, 0)))
    cols = []
    for kh in range(4):
        for kw in range(4):
            cols.append(xp[:, kh:kh + 2 * h1:2, kw:kw + 2 * w1:2, :])
    pat = jnp.stack(cols, axis=3).reshape(n, h1, w1, 16 * cin)
    ones = jnp.ones((n, h1, w1, 1), jnp.float32)
    pat = jnp.concatenate([pat, ones], axis=-1)
    return jnp.pad(pat, ((0, 0), (0, 0), (0, 0), (0, kp - 16 * cin - 1)))


def _band_mask(mi, wp, s0, lw, ho, wo):
    pos = s0 + np.arange(lw)
    p = pos % mi
    r, c = p // wp, p % wp
    m = ((r >= 1) & (r <= ho) & (c >= 1) & (c <= wo)).astype(np.float32)
    return jnp.asarray(m.reshape(lw, 1))


def _pack_first_w(w, b, kp, cout_p):
    _, _, cin, cout = w.shape
    wf = jnp.concatenate([w.reshape(16 * cin, cout), b.reshape(1, cout)], 0)
    return jnp.pad(wf, ((0, kp - 16 * cin - 1), (0, cout_p - cout)))


def _pack_down_w(w, cin_p, cout_p):
    cin, cout = w.shape[2], w.shape[3]
    wq = jnp.pad(w, ((0, 0), (0, 0), (0, cin_p - cin), (0, cout_p - cout)))
    wq = wq.reshape(2, 2, 2, 2, cin_p, cout_p).transpose(1, 3, 0, 2, 4, 5)
    return wq.reshape(16, cin_p, cout_p)      # index = (a*2+b)*4 + qh*2+qw


def _pack_3x3_w(w, cin_p, cout_p):
    cin, cout = w.shape[2], w.shape[3]
    wq = jnp.pad(w, ((0, 0), (0, 0), (0, cin_p - cin), (0, cout_p - cout)))
    return wq.reshape(9, cin_p, cout_p)       # index = kh*3 + kw


# ----------------------------------------------------------------------------
# Parameters & forward pass
# ----------------------------------------------------------------------------
def init_params(key, in_dim, h_dim, n_half, n_res, res_h_dim):
    keys = iter(jax.random.split(key, 8 * (n_half + 2)))

    def conv_w(kh, kw, cin, cout):
        bound = 1.0 / math.sqrt(kh * kw * cin)
        return jax.random.uniform(next(keys), (kh, kw, cin, cout), jnp.float32,
                                  -bound, bound)

    def conv_b(kh, kw, cin, cout):
        bound = 1.0 / math.sqrt(kh * kw * cin)
        return jax.random.uniform(next(keys), (cout,), jnp.float32, -bound, bound)

    c0 = h_dim // 2 ** (n_half - 1)
    params = {
        "first": {"w": conv_w(4, 4, in_dim, c0), "b": conv_b(4, 4, in_dim, c0)},
        "blocks": [],
        "final": {"w": conv_w(3, 3, h_dim, h_dim), "b": conv_b(3, 3, h_dim, h_dim)},
    }
    for i in range(n_half - 1):
        din = h_dim // 2 ** (n_half - i - 1)
        dout = h_dim // 2 ** (n_half - i - 2)
        params["blocks"].append({
            "w": conv_w(4, 4, din, dout),
            "b": conv_b(4, 4, din, dout),
            # shared residual-layer weights (matches ModuleList([layer]*n))
            "res": {"w3": conv_w(3, 3, dout, res_h_dim),
                    "w1": conv_w(1, 1, res_h_dim, dout)},
        })
    return params


def encoder_forward(params, x_nhwc, n_res, *, batch_block=None):
    n, h, w, in_dim = x_nhwc.shape
    n_half = len(params["blocks"]) + 1
    assert n_half >= 2, "TODO(synk): n_half_conv_layers == 1 not implemented"
    assert h % 2 == 0 and w % 2 == 0
    h_dim = params["final"]["w"].shape[3]

    bc = batch_block if batch_block is not None else 8
    bc = max(1, min(bc, n))
    n_pad = _rup(n, bc)
    if n_pad != n:
        x_nhwc = jnp.pad(x_nhwc, ((0, n_pad - n), (0, 0), (0, 0), (0, 0)))

    cur_h, cur_w = h // 2, w // 2            # conv_first output grid
    c_in = params["first"]["w"].shape[3]     # channels entering block 0's conv
    y_dense = None

    for b_idx, blk in enumerate(params["blocks"]):
        first_block = (b_idx == 0)
        last_block = (b_idx == len(params["blocks"]) - 1)
        assert cur_h % 2 == 0 and cur_w % 2 == 0
        ho, wo = cur_h // 2, cur_w // 2
        wp = _rup(wo + 2, 8)                 # sublane-aligned row pitch
        mi = (ho + 2) * wp                   # per-image flat length
        s0 = wp + 1
        band = (ho - 1) * wp + wo
        lw = (bc - 1) * mi + band            # stacked batch band length

        dout = blk["w"].shape[3]
        c2 = _rup(dout, LANE)
        rp = _rup(blk["res"]["w3"].shape[3], LANE)

        if first_block:
            cin_p = _rup(c_in, LANE)
            kp = _rup(16 * in_dim + 1, 64)   # K-packed: 16 taps x cin + bias
            pat = _first_conv_patches(x_nhwc, kp)
            phases = _chunk_phases(_phase_pack(pat, ho, wo, wp), bc)
            w0p = _pack_first_w(params["first"]["w"], params["first"]["b"],
                                kp, cin_p)
        else:
            cin_p = y_dense.shape[-1]
            y4 = y_dense.reshape(n_pad, cur_h, cur_w, cin_p)
            phases = _chunk_phases(_phase_pack(y4, ho, wo, wp), bc)

        w1p = _pack_down_w(blk["w"], cin_p, c2)
        b1p = jnp.pad(blk["b"], (0, c2 - dout)).reshape(1, c2)
        w3p = _pack_3x3_w(blk["res"]["w3"], c2, rp)
        wrp = jnp.pad(blk["res"]["w1"][0, 0],
                      ((0, rp - blk["res"]["w1"].shape[2]),
                       (0, c2 - blk["res"]["w1"].shape[3])))
        mask = _band_mask(mi, wp, s0, lw, ho, wo)

        inputs = [phases]
        in_specs = [pl.BlockSpec((None, 4, bc * mi, phases.shape[-1]),
                                 lambda i: (i, 0, 0, 0))]
        if first_block:
            inputs.append(w0p)
            in_specs.append(pl.BlockSpec(w0p.shape, lambda i: (0, 0)))
        inputs += [w1p, b1p, w3p, wrp]
        in_specs += [pl.BlockSpec(w1p.shape, lambda i: (0, 0, 0)),
                     pl.BlockSpec(b1p.shape, lambda i: (0, 0)),
                     pl.BlockSpec(w3p.shape, lambda i: (0, 0, 0)),
                     pl.BlockSpec(wrp.shape, lambda i: (0, 0))]
        if last_block:
            cfp = _rup(h_dim, LANE)
            wfp = _pack_3x3_w(params["final"]["w"], c2, cfp)
            bfp = jnp.pad(params["final"]["b"], (0, cfp - h_dim)).reshape(1, cfp)
            inputs += [wfp, bfp]
            in_specs += [pl.BlockSpec(wfp.shape, lambda i: (0, 0, 0)),
                         pl.BlockSpec(bfp.shape, lambda i: (0, 0))]
            cout_blk = cfp
        else:
            cout_blk = c2
        inputs.append(mask)
        in_specs.append(pl.BlockSpec(mask.shape, lambda i: (0, 0)))

        kern = _make_block_kernel(bc=bc, mi=mi, wp=wp, s0=s0, lw=lw,
                                  ho=ho, wo=wo, n_res=n_res,
                                  first_block=first_block,
                                  last_block=last_block)
        y_dense = pl.pallas_call(
            kern,
            out_shape=jax.ShapeDtypeStruct((n_pad, ho * wo, cout_blk),
                                           jnp.float32),
            grid=(n_pad // bc,),
            in_specs=in_specs,
            out_specs=pl.BlockSpec((bc, ho * wo, cout_blk),
                                   lambda i: (i, 0, 0)),
            scratch_shapes=[pltpu.VMEM((bc * mi, c2), jnp.float32)],
            compiler_params=pltpu.CompilerParams(
                dimension_semantics=("parallel",)),
        )(*inputs)

        cur_h, cur_w = ho, wo

    out = y_dense.reshape(n_pad, cur_h, cur_w, -1)
    return out[:n, :, :, :h_dim]


# ----------------------------------------------------------------------------
# Pure-JAX reference (for correctness check)
# ----------------------------------------------------------------------------
def _conv_ref(x, w, b, stride, pad):
    y = jax.lax.conv_general_dilated(
        x, w, (stride, stride), [(pad, pad), (pad, pad)],
        dimension_numbers=("NHWC", "HWIO", "NHWC"))
    if b is not None:
        y = y + b
    return y


def encoder_ref(params, x, n_res):
    y = jax.nn.relu(_conv_ref(x, params["first"]["w"], params["first"]["b"], 2, 1))
    for blk in params["blocks"]:
        y = jax.nn.relu(_conv_ref(y, blk["w"], blk["b"], 2, 1))
        for _ in range(n_res):
            h = _conv_ref(jax.nn.relu(y), blk["res"]["w3"], None, 1, 1)
            y = y + _conv_ref(jax.nn.relu(h), blk["res"]["w1"], None, 1, 0)
        y = jax.nn.relu(y)
    return _conv_ref(y, params["final"]["w"], params["final"]["b"], 1, 1)


# ----------------------------------------------------------------------------
if __name__ == "__main__":
    in_dim, h_dim = 3, 32
    n_half_conv_layers, n_res_layers, res_h_dim = 2, 2, 8
    N, H, W = 2, 16, 16

    key = jax.random.PRNGKey(0)
    kx, kparam = jax.random.split(key)
    x_nchw = jax.random.normal(kx, (N, in_dim, H, W), jnp.float32)  # torch layout
    x = jnp.transpose(x_nchw, (0, 2, 3, 1))                         # -> NHWC

    params = init_params(kparam, in_dim, h_dim, n_half_conv_layers,
                         n_res_layers, res_h_dim)

    fwd = jax.jit(functools.partial(encoder_forward, n_res=n_res_layers))
    out = jax.block_until_ready(fwd(params, x))

    ref = encoder_ref(params, x, n_res_layers)
    assert out.shape == (N, H // 2 ** n_half_conv_layers,
                         W // 2 ** n_half_conv_layers, h_dim), out.shape
    err = float(jnp.max(jnp.abs(out - ref)))
    assert jnp.allclose(out, ref, atol=5e-4, rtol=5e-4), f"mismatch vs ref: {err}"

    print("KERNEL_OK")
</pallas_src>

<mosaic_0001>
module attributes {stable_mosaic.version = 11 : i64} {
  func.func @kernel(%arg0: i32, %arg1: memref<1x4x96x64xf32, #tpu.memory_space<vmem>>, %arg2: memref<64x128xf32, #tpu.memory_space<vmem>>, %arg3: memref<16x128x128xf32, #tpu.memory_space<vmem>>, %arg4: memref<1x128xf32, #tpu.memory_space<vmem>>, %arg5: memref<9x128x128xf32, #tpu.memory_space<vmem>>, %arg6: memref<128x128xf32, #tpu.memory_space<vmem>>, %arg7: memref<9x128x128xf32, #tpu.memory_space<vmem>>, %arg8: memref<1x128xf32, #tpu.memory_space<vmem>>, %arg9: memref<76x1xf32, #tpu.memory_space<vmem>>, %arg10: memref<2x16x128xf32, #tpu.memory_space<vmem>>, %arg11: memref<96x128xf32, #tpu.memory_space<vmem>>) attributes {dimension_semantics = [#tpu.dimension_semantics<parallel>], iteration_bounds = array<i64: 1>, scalar_prefetch = 0 : i64, scratch_operands = 1 : i64, tpu.core_type = #tpu.core_type<tc>, window_params = [{transform_indices = @transform_0, window_bounds = array<i64: 1, 4, 96, 64>}, {pipeline_mode = #tpu.pipeline_mode<synchronous>, transform_indices = @transform_1, window_bounds = array<i64: 64, 128>}, {pipeline_mode = #tpu.pipeline_mode<synchronous>, transform_indices = @transform_2, window_bounds = array<i64: 16, 128, 128>}, {pipeline_mode = #tpu.pipeline_mode<synchronous>, transform_indices = @transform_3, window_bounds = array<i64: 1, 128>}, {pipeline_mode = #tpu.pipeline_mode<synchronous>, transform_indices = @transform_4, window_bounds = array<i64: 9, 128, 128>}, {pipeline_mode = #tpu.pipeline_mode<synchronous>, transform_indices = @transform_5, window_bounds = array<i64: 128, 128>}, {pipeline_mode = #tpu.pipeline_mode<synchronous>, transform_indices = @transform_6, window_bounds = array<i64: 9, 128, 128>}, {pipeline_mode = #tpu.pipeline_mode<synchronous>, transform_indices = @transform_7, window_bounds = array<i64: 1, 128>}, {pipeline_mode = #tpu.pipeline_mode<synchronous>, transform_indices = @transform_8, window_bounds = array<i64: 76, 1>}, {transform_indices = @transform_9, window_bounds = array<i64: 2, 16, 128>}]} {
    %c0 = arith.constant 0 : index
    %c0_0 = arith.constant 0 : index
    %0 = vector.load %arg9[%c0, %c0_0] : memref<76x1xf32, #tpu.memory_space<vmem>>, vector<76x1xf32>
    %cst = arith.constant 0.000000e+00 : f32
    %1 = vector.broadcast %cst : f32 to vector<76x128xf32>
    %c0_1 = arith.constant 0 : index
    %c0_2 = arith.constant 0 : index
    %c0_3 = arith.constant 0 : index
    %c0_4 = arith.constant 0 : index
    %2 = vector.load %arg1[%c0_1, %c0_2, %c0_3, %c0_4] : memref<1x4x96x64xf32, #tpu.memory_space<vmem>>, vector<1x1x96x64xf32>
    %3 = vector.shape_cast %2 : vector<1x1x96x64xf32> to vector<96x64xf32>
    %c0_5 = arith.constant 0 : index
    %c0_6 = arith.constant 0 : index
    %4 = vector.load %arg2[%c0_5, %c0_6] : memref<64x128xf32, #tpu.memory_space<vmem>>, vector<64x128xf32>
    %cst_7 = arith.constant dense<0.000000e+00> : vector<96x128xf32>
    %5 = tpu.matmul %3, %4, %cst_7 {dimension_numbers = #tpu.dot_dimension_numbers<[1], [0], [0], [1], [0, 0, 1, 1], [], []>} : vector<96x64xf32>, vector<64x128xf32>, vector<96x128xf32> -> vector<96x128xf32>
    %cst_8 = arith.constant 0.000000e+00 : f32
    %6 = vector.broadcast %cst_8 : f32 to vector<96x128xf32>
    %7 = arith.maximumf %5, %6 : vector<96x128xf32>
    %8 = vector.extract_strided_slice %7 {offsets = [0, 0], sizes = [76, 128], strides = [1, 1]} : vector<96x128xf32> to vector<76x128xf32>
    %c0_9 = arith.constant 0 : index
    %c0_10 = arith.constant 0 : index
    %c0_11 = arith.constant 0 : index
    %9 = vector.load %arg3[%c0_9, %c0_10, %c0_11] : memref<16x128x128xf32, #tpu.memory_space<vmem>>, vector<1x128x128xf32>
    %10 = vector.shape_cast %9 : vector<1x128x128xf32> to vector<128x128xf32>
    %cst_12 = arith.constant dense<0.000000e+00> : vector<76x128xf32>
    %11 = tpu.matmul %8, %10, %cst_12 {dimension_numbers = #tpu.dot_dimension_numbers<[1], [0], [0], [1], [0, 0, 1, 1], [], []>} : vector<76x128xf32>, vector<128x128xf32>, vector<76x128xf32> -> vector<76x128xf32>
    %12 = arith.addf %1, %11 : vector<76x128xf32>
    %13 = vector.extract_strided_slice %7 {offsets = [1, 0], sizes = [76, 128], strides = [1, 1]} : vector<96x128xf32> to vector<76x128xf32>
    %c1 = arith.constant 1 : index
    %c0_13 = arith.constant 0 : index
    %c0_14 = arith.constant 0 : index
    %14 = vector.load %arg3[%c1, %c0_13, %c0_14] : memref<16x128x128xf32, #tpu.memory_space<vmem>>, vector<1x128x128xf32>
    %15 = vector.shape_cast %14 : vector<1x128x128xf32> to vector<128x128xf32>
    %cst_15 = arith.constant dense<0.000000e+00> : vector<76x128xf32>
    %16 = tpu.matmul %13, %15, %cst_15 {dimension_numbers = #tpu.dot_dimension_numbers<[1], [0], [0], [1], [0, 0, 1, 1], [], []>} : vector<76x128xf32>, vector<128x128xf32>, vector<76x128xf32> -> vector<76x128xf32>
    %17 = arith.addf %12, %16 : vector<76x128xf32>
    %18 = vector.extract_strided_slice %7 {offsets = [8, 0], sizes = [76, 128], strides = [1, 1]} : vector<96x128xf32> to vector<76x128xf32>
    %c2 = arith.constant 2 : index
    %c0_16 = arith.constant 0 : index
    %c0_17 = arith.constant 0 : index
    %19 = vector.load %arg3[%c2, %c0_16, %c0_17] : memref<16x128x128xf32, #tpu.memory_space<vmem>>, vector<1x128x128xf32>
    %20 = vector.shape_cast %19 : vector<1x128x128xf32> to vector<128x128xf32>
    %cst_18 = arith.constant dense<0.000000e+00> : vector<76x128xf32>
    %21 = tpu.matmul %18, %20, %cst_18 {dimension_numbers = #tpu.dot_dimension_numbers<[1], [0], [0], [1], [0, 0, 1, 1], [], []>} : vector<76x128xf32>, vector<128x128xf32>, vector<76x128xf32> -> vector<76x128xf32>
    %22 = arith.addf %17, %21 : vector<76x128xf32>
    %23 = vector.extract_strided_slice %7 {offsets = [9, 0], sizes = [76, 128], strides = [1, 1]} : vector<96x128xf32> to vector<76x128xf32>
    %c3 = arith.constant 3 : index
    %c0_19 = arith.constant 0 : index
    %c0_20 = arith.constant 0 : index
    %24 = vector.load %arg3[%c3, %c0_19, %c0_20] : memref<16x128x128xf32, #tpu.memory_space<vmem>>, vector<1x128x128xf32>
    %25 = vector.shape_cast %24 : vector<1x128x128xf32> to vector<128x128xf32>
    %cst_21 = arith.constant dense<0.000000e+00> : vector<76x128xf32>
    %26 = tpu.matmul %23, %25, %cst_21 {dimension_numbers = #tpu.dot_dimension_numbers<[1], [0], [0], [1], [0, 0, 1, 1], [], []>} : vector<76x128xf32>, vector<128x128xf32>, vector<76x128xf32> -> vector<76x128xf32>
    %27 = arith.addf %22, %26 : vector<76x128xf32>
    %c0_22 = arith.constant 0 : index
    %c1_23 = arith.constant 1 : index
    %c0_24 = arith.constant 0 : index
    %c0_25 = arith.constant 0 : index
    %28 = vector.load %arg1[%c0_22, %c1_23, %c0_24, %c0_25] : memref<1x4x96x64xf32, #tpu.memory_space<vmem>>, vector<1x1x96x64xf32>
    %29 = vector.shape_cast %28 : vector<1x1x96x64xf32> to vector<96x64xf32>
    %c0_26 = arith.constant 0 : index
    %c0_27 = arith.constant 0 : index
    %30 = vector.load %arg2[%c0_26, %c0_27] : memref<64x128xf32, #tpu.memory_space<vmem>>, vector<64x128xf32>
    %cst_28 = arith.constant dense<0.000000e+00> : vector<96x128xf32>
    %31 = tpu.matmul %29, %30, %cst_28 {dimension_numbers = #tpu.dot_dimension_numbers<[1], [0], [0], [1], [0, 0, 1, 1], [], []>} : vector<96x64xf32>, vector<64x128xf32>, vector<96x128xf32> -> vector<96x128xf32>
    %cst_29 = arith.constant 0.000000e+00 : f32
    %32 = vector.broadcast %cst_29 : f32 to vector<96x128xf32>
    %33 = arith.maximumf %31, %32 : vector<96x128xf32>
    %34 = vector.extract_strided_slice %33 {offsets = [0, 0], sizes = [76, 128], strides = [1, 1]} : vector<96x128xf32> to vector<76x128xf32>
    %c4 = arith.constant 4 : index
    %c0_30 = arith.constant 0 : index
    %c0_31 = arith.constant 0 : index
    %35 = vector.load %arg3[%c4, %c0_30, %c0_31] : memref<16x128x128xf32, #tpu.memory_space<vmem>>, vector<1x128x128xf32>
    %36 = vector.shape_cast %35 : vector<1x128x128xf32> to vector<128x128xf32>
    %cst_32 = arith.constant dense<0.000000e+00> : vector<76x128xf32>
    %37 = tpu.matmul %34, %36, %cst_32 {dimension_numbers = #tpu.dot_dimension_numbers<[1], [0], [0], [1], [0, 0, 1, 1], [], []>} : vector<76x128xf32>, vector<128x128xf32>, vector<76x128xf32> -> vector<76x128xf32>
    %38 = arith.addf %27, %37 : vector<76x128xf32>
    %39 = vector.extract_strided_slice %33 {offsets = [1, 0], sizes = [76, 128], strides = [1, 1]} : vector<96x128xf32> to vector<76x128xf32>
    %c5 = arith.constant 5 : index
    %c0_33 = arith.constant 0 : index
    %c0_34 = arith.constant 0 : index
    %40 = vector.load %arg3[%c5, %c0_33, %c0_34] : memref<16x128x128xf32, #tpu.memory_space<vmem>>, vector<1x128x128xf32>
    %41 = vector.shape_cast %40 : vector<1x128x128xf32> to vector<128x128xf32>
    %cst_35 = arith.constant dense<0.000000e+00> : vector<76x128xf32>
    %42 = tpu.matmul %39, %41, %cst_35 {dimension_numbers = #tpu.dot_dimension_numbers<[1], [0], [0], [1], [0, 0, 1, 1], [], []>} : vector<76x128xf32>, vector<128x128xf32>, vector<76x128xf32> -> vector<76x128xf32>
    %43 = arith.addf %38, %42 : vector<76x128xf32>
    %44 = vector.extract_strided_slice %33 {offsets = [8, 0], sizes = [76, 128], strides = [1, 1]} : vector<96x128xf32> to vector<76x128xf32>
    %c6 = arith.constant 6 : index
    %c0_36 = arith.constant 0 : index
    %c0_37 = arith.constant 0 : index
    %45 = vector.load %arg3[%c6, %c0_36, %c0_37] : memref<16x128x128xf32, #tpu.memory_space<vmem>>, vector<1x128x128xf32>
    %46 = vector.shape_cast %45 : vector<1x128x128xf32> to vector<128x128xf32>
    %cst_38 = arith.constant dense<0.000000e+00> : vector<76x128xf32>
    %47 = tpu.matmul %44, %46, %cst_38 {dimension_numbers = #tpu.dot_dimension_numbers<[1], [0], [0], [1], [0, 0, 1, 1], [], []>} : vector<76x128xf32>, vector<128x128xf32>, vector<76x128xf32> -> vector<76x128xf32>
    %48 = arith.addf %43, %47 : vector<76x128xf32>
    %49 = vector.extract_strided_slice %33 {offsets = [9, 0], sizes = [76, 128], strides = [1, 1]} : vector<96x128xf32> to vector<76x128xf32>
    %c7 = arith.constant 7 : index
    %c0_39 = arith.constant 0 : index
    %c0_40 = arith.constant 0 : index
    %50 = vector.load %arg3[%c7, %c0_39, %c0_40] : memref<16x128x128xf32, #tpu.memory_space<vmem>>, vector<1x128x128xf32>
    %51 = vector.shape_cast %50 : vector<1x128x128xf32> to vector<128x128xf32>
    %cst_41 = arith.constant dense<0.000000e+00> : vector<76x128xf32>
    %52 = tpu.matmul %49, %51, %cst_41 {dimension_numbers = #tpu.dot_dimension_numbers<[1], [0], [0], [1], [0, 0, 1, 1], [], []>} : vector<76x128xf32>, vector<128x128xf32>, vector<76x128xf32> -> vector<76x128xf32>
    %53 = arith.addf %48, %52 : vector<76x128xf32>
    %c0_42 = arith.constant 0 : index
    %c2_43 = arith.constant 2 : index
    %c0_44 = arith.constant 0 : index
    %c0_45 = arith.constant 0 : index
    %54 = vector.load %arg1[%c0_42, %c2_43, %c0_44, %c0_45] : memref<1x4x96x64xf32, #tpu.memory_space<vmem>>, vector<1x1x96x64xf32>
    %55 = vector.shape_cast %54 : vector<1x1x96x64xf32> to vector<96x64xf32>
    %c0_46 = arith.constant 0 : index
    %c0_47 = arith.constant 0 : index
    %56 = vector.load %arg2[%c0_46, %c0_47] : memref<64x128xf32, #tpu.memory_space<vmem>>, vector<64x128xf32>
    %cst_48 = arith.constant dense<0.000000e+00> : vector<96x128xf32>
    %57 = tpu.matmul %55, %56, %cst_48 {dimension_numbers = #tpu.dot_dimension_numbers<[1], [0], [0], [1], [0, 0, 1, 1], [], []>} : vector<96x64xf32>, vector<64x128xf32>, vector<96x128xf32> -> vector<96x128xf32>
    %cst_49 = arith.constant 0.000000e+00 : f32
    %58 = vector.broadcast %cst_49 : f32 to vector<96x128xf32>
    %59 = arith.maximumf %57, %58 : vector<96x128xf32>
    %60 = vector.extract_strided_slice %59 {offsets = [0, 0], sizes = [76, 128], strides = [1, 1]} : vector<96x128xf32> to vector<76x128xf32>
    %c8 = arith.constant 8 : index
    %c0_50 = arith.constant 0 : index
    %c0_51 = arith.constant 0 : index
    %61 = vector.load %arg3[%c8, %c0_50, %c0_51] : memref<16x128x128xf32, #tpu.memory_space<vmem>>, vector<1x128x128xf32>
    %62 = vector.shape_cast %61 : vector<1x128x128xf32> to vector<128x128xf32>
    %cst_52 = arith.constant dense<0.000000e+00> : vector<76x128xf32>
    %63 = tpu.matmul %60, %62, %cst_52 {dimension_numbers = #tpu.dot_dimension_numbers<[1], [0], [0], [1], [0, 0, 1, 1], [], []>} : vector<76x128xf32>, vector<128x128xf32>, vector<76x128xf32> -> vector<76x128xf32>
    %64 = arith.addf %53, %63 : vector<76x128xf32>
    %65 = vector.extract_strided_slice %59 {offsets = [1, 0], sizes = [76, 128], strides = [1, 1]} : vector<96x128xf32> to vector<76x128xf32>
    %c9 = arith.constant 9 : index
    %c0_53 = arith.constant 0 : index
    %c0_54 = arith.constant 0 : index
    %66 = vector.load %arg3[%c9, %c0_53, %c0_54] : memref<16x128x128xf32, #tpu.memory_space<vmem>>, vector<1x128x128xf32>
    %67 = vector.shape_cast %66 : vector<1x128x128xf32> to vector<128x128xf32>
    %cst_55 = arith.constant dense<0.000000e+00> : vector<76x128xf32>
    %68 = tpu.matmul %65, %67, %cst_55 {dimension_numbers = #tpu.dot_dimension_numbers<[1], [0], [0], [1], [0, 0, 1, 1], [], []>} : vector<76x128xf32>, vector<128x128xf32>, vector<76x128xf32> -> vector<76x128xf32>
    %69 = arith.addf %64, %68 : vector<76x128xf32>
    %70 = vector.extract_strided_slice %59 {offsets = [8, 0], sizes = [76, 128], strides = [1, 1]} : vector<96x128xf32> to vector<76x128xf32>
    %c10 = arith.constant 10 : index
    %c0_56 = arith.constant 0 : index
    %c0_57 = arith.constant 0 : index
    %71 = vector.load %arg3[%c10, %c0_56, %c0_57] : memref<16x128x128xf32, #tpu.memory_space<vmem>>, vector<1x128x128xf32>
    %72 = vector.shape_cast %71 : vector<1x128x128xf32> to vector<128x128xf32>
    %cst_58 = arith.constant dense<0.000000e+00> : vector<76x128xf32>
    %73 = tpu.matmul %70, %72, %cst_58 {dimension_numbers = #tpu.dot_dimension_numbers<[1], [0], [0], [1], [0, 0, 1, 1], [], []>} : vector<76x128xf32>, vector<128x128xf32>, vector<76x128xf32> -> vector<76x128xf32>
    %74 = arith.addf %69, %73 : vector<76x128xf32>
    %75 = vector.extract_strided_slice %59 {offsets = [9, 0], sizes = [76, 128], strides = [1, 1]} : vector<96x128xf32> to vector<76x128xf32>
    %c11 = arith.constant 11 : index
    %c0_59 = arith.constant 0 : index
    %c0_60 = arith.constant 0 : index
    %76 = vector.load %arg3[%c11, %c0_59, %c0_60] : memref<16x128x128xf32, #tpu.memory_space<vmem>>, vector<1x128x128xf32>
    %77 = vector.shape_cast %76 : vector<1x128x128xf32> to vector<128x128xf32>
    %cst_61 = arith.constant dense<0.000000e+00> : vector<76x128xf32>
    %78 = tpu.matmul %75, %77, %cst_61 {dimension_numbers = #tpu.dot_dimension_numbers<[1], [0], [0], [1], [0, 0, 1, 1], [], []>} : vector<76x128xf32>, vector<128x128xf32>, vector<76x128xf32> -> vector<76x128xf32>
    %79 = arith.addf %74, %78 : vector<76x128xf32>
    %c0_62 = arith.constant 0 : index
    %c3_63 = arith.constant 3 : index
    %c0_64 = arith.constant 0 : index
    %c0_65 = arith.constant 0 : index
    %80 = vector.load %arg1[%c0_62, %c3_63, %c0_64, %c0_65] : memref<1x4x96x64xf32, #tpu.memory_space<vmem>>, vector<1x1x96x64xf32>
    %81 = vector.shape_cast %80 : vector<1x1x96x64xf32> to vector<96x64xf32>
    %c0_66 = arith.constant 0 : index
    %c0_67 = arith.constant 0 : index
    %82 = vector.load %arg2[%c0_66, %c0_67] : memref<64x128xf32, #tpu.memory_space<vmem>>, vector<64x128xf32>
    %cst_68 = arith.constant dense<0.000000e+00> : vector<96x128xf32>
    %83 = tpu.matmul %81, %82, %cst_68 {dimension_numbers = #tpu.dot_dimension_numbers<[1], [0], [0], [1], [0, 0, 1, 1], [], []>} : vector<96x64xf32>, vector<64x128xf32>, vector<96x128xf32> -> vector<96x128xf32>
    %cst_69 = arith.constant 0.000000e+00 : f32
    %84 = vector.broadcast %cst_69 : f32 to vector<96x128xf32>
    %85 = arith.maximumf %83, %84 : vector<96x128xf32>
    %86 = vector.extract_strided_slice %85 {offsets = [0, 0], sizes = [76, 128], strides = [1, 1]} : vector<96x128xf32> to vector<76x128xf32>
    %c12 = arith.constant 12 : index
    %c0_70 = arith.constant 0 : index
    %c0_71 = arith.constant 0 : index
    %87 = vector.load %arg3[%c12, %c0_70, %c0_71] : memref<16x128x128xf32, #tpu.memory_space<vmem>>, vector<1x128x128xf32>
    %88 = vector.shape_cast %87 : vector<1x128x128xf32> to vector<128x128xf32>
    %cst_72 = arith.constant dense<0.000000e+00> : vector<76x128xf32>
    %89 = tpu.matmul %86, %88, %cst_72 {dimension_numbers = #tpu.dot_dimension_numbers<[1], [0], [0], [1], [0, 0, 1, 1], [], []>} : vector<76x128xf32>, vector<128x128xf32>, vector<76x128xf32> -> vector<76x128xf32>
    %90 = arith.addf %79, %89 : vector<76x128xf32>
    %91 = vector.extract_strided_slice %85 {offsets = [1, 0], sizes = [76, 128], strides = [1, 1]} : vector<96x128xf32> to vector<76x128xf32>
    %c13 = arith.constant 13 : index
    %c0_73 = arith.constant 0 : index
    %c0_74 = arith.constant 0 : index
    %92 = vector.load %arg3[%c13, %c0_73, %c0_74] : memref<16x128x128xf32, #tpu.memory_space<vmem>>, vector<1x128x128xf32>
    %93 = vector.shape_cast %92 : vector<1x128x128xf32> to vector<128x128xf32>
    %cst_75 = arith.constant dense<0.000000e+00> : vector<76x128xf32>
    %94 = tpu.matmul %91, %93, %cst_75 {dimension_numbers = #tpu.dot_dimension_numbers<[1], [0], [0], [1], [0, 0, 1, 1], [], []>} : vector<76x128xf32>, vector<128x128xf32>, vector<76x128xf32> -> vector<76x128xf32>
    %95 = arith.addf %90, %94 : vector<76x128xf32>
    %96 = vector.extract_strided_slice %85 {offsets = [8, 0], sizes = [76, 128], strides = [1, 1]} : vector<96x128xf32> to vector<76x128xf32>
    %c14 = arith.constant 14 : index
    %c0_76 = arith.constant 0 : index
    %c0_77 = arith.constant 0 : index
    %97 = vector.load %arg3[%c14, %c0_76, %c0_77] : memref<16x128x128xf32, #tpu.memory_space<vmem>>, vector<1x128x128xf32>
    %98 = vector.shape_cast %97 : vector<1x128x128xf32> to vector<128x128xf32>
    %cst_78 = arith.constant dense<0.000000e+00> : vector<76x128xf32>
    %99 = tpu.matmul %96, %98, %cst_78 {dimension_numbers = #tpu.dot_dimension_numbers<[1], [0], [0], [1], [0, 0, 1, 1], [], []>} : vector<76x128xf32>, vector<128x128xf32>, vector<76x128xf32> -> vector<76x128xf32>
    %100 = arith.addf %95, %99 : vector<76x128xf32>
    %101 = vector.extract_strided_slice %85 {offsets = [9, 0], sizes = [76, 128], strides = [1, 1]} : vector<96x128xf32> to vector<76x128xf32>
    %c15 = arith.constant 15 : index
    %c0_79 = arith.constant 0 : index
    %c0_80 = arith.constant 0 : index
    %102 = vector.load %arg3[%c15, %c0_79, %c0_80] : memref<16x128x128xf32, #tpu.memory_space<vmem>>, vector<1x128x128xf32>
    %103 = vector.shape_cast %102 : vector<1x128x128xf32> to vector<128x128xf32>
    %cst_81 = arith.constant dense<0.000000e+00> : vector<76x128xf32>
    %104 = tpu.matmul %101, %103, %cst_81 {dimension_numbers = #tpu.dot_dimension_numbers<[1], [0], [0], [1], [0, 0, 1, 1], [], []>} : vector<76x128xf32>, vector<128x128xf32>, vector<76x128xf32> -> vector<76x128xf32>
    %105 = arith.addf %100, %104 : vector<76x128xf32>
    %c0_82 = arith.constant 0 : index
    %c0_83 = arith.constant 0 : index
    %106 = vector.load %arg4[%c0_82, %c0_83] : memref<1x128xf32, #tpu.memory_space<vmem>>, vector<1x128xf32>
    %107 = vector.broadcast %106 : vector<1x128xf32> to vector<76x128xf32>
    %108 = arith.addf %105, %107 : vector<76x128xf32>
    %cst_84 = arith.constant 0.000000e+00 : f32
    %109 = vector.broadcast %cst_84 : f32 to vector<76x128xf32>
    %110 = arith.maximumf %108, %109 : vector<76x128xf32>
    %111 = vector.broadcast %0 : vector<76x1xf32> to vector<76x128xf32>
    %112 = arith.mulf %110, %111 : vector<76x128xf32>
    %cst_85 = arith.constant 0.000000e+00 : f32
    %113 = vector.broadcast %cst_85 : f32 to vector<9x128xf32>
    %c0_86 = arith.constant 0 : index
    %c0_87 = arith.constant 0 : index
    %114 = vector.load %arg11[%c0_86, %c0_87] : memref<96x128xf32, #tpu.memory_space<vmem>>, vector<9x128xf32>
    tpu.vector_store %arg11[%c0_86, %c0_87], %113 {strides = array<i32>} : memref<96x128xf32, #tpu.memory_space<vmem>>, vector<9x128xf32>,
    %c9_88 = arith.constant 9 : index
    %c0_89 = arith.constant 0 : index
    %115 = vector.load %arg11[%c9_88, %c0_89] : memref<96x128xf32, #tpu.memory_space<vmem>>, vector<76x128xf32>
    tpu.vector_store %arg11[%c9_88, %c0_89], %112 {strides = array<i32>} : memref<96x128xf32, #tpu.memory_space<vmem>>, vector<76x128xf32>,
    %cst_90 = arith.constant 0.000000e+00 : f32
    %116 = vector.broadcast %cst_90 : f32 to vector<11x128xf32>
    %c85 = arith.constant 85 : index
    %c0_91 = arith.constant 0 : index
    %117 = vector.load %arg11[%c85, %c0_91] : memref<96x128xf32, #tpu.memory_space<vmem>>, vector<11x128xf32>
    tpu.vector_store %arg11[%c85, %c0_91], %116 {strides = array<i32>} : memref<96x128xf32, #tpu.memory_space<vmem>>, vector<11x128xf32>,
    %c0_92 = arith.constant 0 : index
    %c0_93 = arith.constant 0 : index
    %118 = vector.load %arg11[%c0_92, %c0_93] : memref<96x128xf32, #tpu.memory_space<vmem>>, vector<96x128xf32>
    %cst_94 = arith.constant 0.000000e+00 : f32
    %119 = vector.broadcast %cst_94 : f32 to vector<96x128xf32>
    %120 = arith.maximumf %118, %119 : vector<96x128xf32>
    %cst_95 = arith.constant 0.000000e+00 : f32
    %121 = vector.broadcast %cst_95 : f32 to vector<76x128xf32>
    %122 = vector.extract_strided_slice %120 {offsets = [0, 0], sizes = [76, 128], strides = [1, 1]} : vector<96x128xf32> to vector<76x128xf32>
    %c0_96 = arith.constant 0 : index
    %c0_97 = arith.constant 0 : index
    %c0_98 = arith.constant 0 : index
    %123 = vector.load %arg5[%c0_96, %c0_97, %c0_98] : memref<9x128x128xf32, #tpu.memory_space<vmem>>, vector<1x128x128xf32>
    %124 = vector.shape_cast %123 : vector<1x128x128xf32> to vector<128x128xf32>
    %cst_99 = arith.constant dense<0.000000e+00> : vector<76x128xf32>
    %125 = tpu.matmul %122, %124, %cst_99 {dimension_numbers = #tpu.dot_dimension_numbers<[1], [0], [0], [1], [0, 0, 1, 1], [], []>} : vector<76x128xf32>, vector<128x128xf32>, vector<76x128xf32> -> vector<76x128xf32>
    %126 = arith.addf %121, %125 : vector<76x128xf32>
    %127 = vector.extract_strided_slice %120 {offsets = [1, 0], sizes = [76, 128], strides = [1, 1]} : vector<96x128xf32> to vector<76x128xf32>
    %c1_100 = arith.constant 1 : index
    %c0_101 = arith.constant 0 : index
    %c0_102 = arith.constant 0 : index
    %128 = vector.load %arg5[%c1_100, %c0_101, %c0_102] : memref<9x128x128xf32, #tpu.memory_space<vmem>>, vector<1x128x128xf32>
    %129 = vector.shape_cast %128 : vector<1x128x128xf32> to vector<128x128xf32>
    %cst_103 = arith.constant dense<0.000000e+00> : vector<76x128xf32>
    %130 = tpu.matmul %127, %129, %cst_103 {dimension_numbers = #tpu.dot_dimension_numbers<[1], [0], [0], [1], [0, 0, 1, 1], [], []>} : vector<76x128xf32>, vector<128x128xf32>, vector<76x128xf32> -> vector<76x128xf32>
    %131 = arith.addf %126, %130 : vector<76x128xf32>
    %132 = vector.extract_strided_slice %120 {offsets = [2, 0], sizes = [76, 128], strides = [1, 1]} : vector<96x128xf32> to vector<76x128xf32>
    %c2_104 = arith.constant 2 : index
    %c0_105 = arith.constant 0 : index
    %c0_106 = arith.constant 0 : index
    %133 = vector.load %arg5[%c2_104, %c0_105, %c0_106] : memref<9x128x128xf32, #tpu.memory_space<vmem>>, vector<1x128x128xf32>
    %134 = vector.shape_cast %133 : vector<1x128x128xf32> to vector<128x128xf32>
    %cst_107 = arith.constant dense<0.000000e+00> : vector<76x128xf32>
    %135 = tpu.matmul %132, %134, %cst_107 {dimension_numbers = #tpu.dot_dimension_numbers<[1], [0], [0], [1], [0, 0, 1, 1], [], []>} : vector<76x128xf32>, vector<128x128xf32>, vector<76x128xf32> -> vector<76x128xf32>
    %136 = arith.addf %131, %135 : vector<76x128xf32>
    %137 = vector.extract_strided_slice %120 {offsets = [8, 0], sizes = [76, 128], strides = [1, 1]} : vector<96x128xf32> to vector<76x128xf32>
    %c3_108 = arith.constant 3 : index
    %c0_109 = arith.constant 0 : index
    %c0_110 = arith.constant 0 : index
    %138 = vector.load %arg5[%c3_108, %c0_109, %c0_110] : memref<9x128x128xf32, #tpu.memory_space<vmem>>, vector<1x128x128xf32>
    %139 = vector.shape_cast %138 : vector<1x128x128xf32> to vector<128x128xf32>
    %cst_111 = arith.constant dense<0.000000e+00> : vector<76x128xf32>
    %140 = tpu.matmul %137, %139, %cst_111 {dimension_numbers = #tpu.dot_dimension_numbers<[1], [0], [0], [1], [0, 0, 1, 1], [], []>} : vector<76x128xf32>, vector<128x128xf32>, vector<76x128xf32> -> vector<76x128xf32>
    %141 = arith.addf %136, %140 : vector<76x128xf32>
    %142 = vector.extract_strided_slice %120 {offsets = [9, 0], sizes = [76, 128], strides = [1, 1]} : vector<96x128xf32> to vector<76x128xf32>
    %c4_112 = arith.constant 4 : index
    %c0_113 = arith.constant 0 : index
    %c0_114 = arith.constant 0 : index
    %143 = vector.load %arg5[%c4_112, %c0_113, %c0_114] : memref<9x128x128xf32, #tpu.memory_space<vmem>>, vector<1x128x128xf32>
    %144 = vector.shape_cast %143 : vector<1x128x128xf32> to vector<128x128xf32>
    %cst_115 = arith.constant dense<0.000000e+00> : vector<76x128xf32>
    %145 = tpu.matmul %142, %144, %cst_115 {dimension_numbers = #tpu.dot_dimension_numbers<[1], [0], [0], [1], [0, 0, 1, 1], [], []>} : vector<76x128xf32>, vector<128x128xf32>, vector<76x128xf32> -> vector<76x128xf32>
    %146 = arith.addf %141, %145 : vector<76x128xf32>
    %147 = vector.extract_strided_slice %120 {offsets = [10, 0], sizes = [76, 128], strides = [1, 1]} : vector<96x128xf32> to vector<76x128xf32>
    %c5_116 = arith.constant 5 : index
    %c0_117 = arith.constant 0 : index
    %c0_118 = arith.constant 0 : index
    %148 = vector.load %arg5[%c5_116, %c0_117, %c0_118] : memref<9x128x128xf32, #tpu.memory_space<vmem>>, vector<1x128x128xf32>
    %149 = vector.shape_cast %148 : vector<1x128x128xf32> to vector<128x128xf32>
    %cst_119 = arith.constant dense<0.000000e+00> : vector<76x128xf32>
    %150 = tpu.matmul %147, %149, %cst_119 {dimension_numbers = #tpu.dot_dimension_numbers<[1], [0], [0], [1], [0, 0, 1, 1], [], []>} : vector<76x128xf32>, vector<128x128xf32>, vector<76x128xf32> -> vector<76x128xf32>
    %151 = arith.addf %146, %150 : vector<76x128xf32>
    %152 = vector.extract_strided_slice %120 {offsets = [16, 0], sizes = [76, 128], strides = [1, 1]} : vector<96x128xf32> to vector<76x128xf32>
    %c6_120 = arith.constant 6 : index
    %c0_121 = arith.constant 0 : index
    %c0_122 = arith.constant 0 : index
    %153 = vector.load %arg5[%c6_120, %c0_121, %c0_122] : memref<9x128x128xf32, #tpu.memory_space<vmem>>, vector<1x128x128xf32>
    %154 = vector.shape_cast %153 : vector<1x128x128xf32> to vector<128x128xf32>
    %cst_123 = arith.constant dense<0.000000e+00> : vector<76x128xf32>
    %155 = tpu.matmul %152, %154, %cst_123 {dimension_numbers = #tpu.dot_dimension_numbers<[1], [0], [0], [1], [0, 0, 1, 1], [], []>} : vector<76x128xf32>, vector<128x128xf32>, vector<76x128xf32> -> vector<76x128xf32>
    %156 = arith.addf %151, %155 : vector<76x128xf32>
    %157 = vector.extract_strided_slice %120 {offsets = [17, 0], sizes = [76, 128], strides = [1, 1]} : vector<96x128xf32> to vector<76x128xf32>
    %c7_124 = arith.constant 7 : index
    %c0_125 = arith.constant 0 : index
    %c0_126 = arith.constant 0 : index
    %158 = vector.load %arg5[%c7_124, %c0_125, %c0_126] : memref<9x128x128xf32, #tpu.memory_space<vmem>>, vector<1x128x128xf32>
    %159 = vector.shape_cast %158 : vector<1x128x128xf32> to vector<128x128xf32>
    %cst_127 = arith.constant dense<0.000000e+00> : vector<76x128xf32>
    %160 = tpu.matmul %157, %159, %cst_127 {dimension_numbers = #tpu.dot_dimension_numbers<[1], [0], [0], [1], [0, 0, 1, 1], [], []>} : vector<76x128xf32>, vector<128x128xf32>, vector<76x128xf32> -> vector<76x128xf32>
    %161 = arith.addf %156, %160 : vector<76x128xf32>
    %162 = vector.extract_strided_slice %120 {offsets = [18, 0], sizes = [76, 128], strides = [1, 1]} : vector<96x128xf32> to vector<76x128xf32>
    %c8_128 = arith.constant 8 : index
    %c0_129 = arith.constant 0 : index
    %c0_130 = arith.constant 0 : index
    %163 = vector.load %arg5[%c8_128, %c0_129, %c0_130] : memref<9x128x128xf32, #tpu.memory_space<vmem>>, vector<1x128x128xf32>
    %164 = vector.shape_cast %163 : vector<1x128x128xf32> to vector<128x128xf32>
    %cst_131 = arith.constant dense<0.000000e+00> : vector<76x128xf32>
    %165 = tpu.matmul %162, %164, %cst_131 {dimension_numbers = #tpu.dot_dimension_numbers<[1], [0], [0], [1], [0, 0, 1, 1], [], []>} : vector<76x128xf32>, vector<128x128xf32>, vector<76x128xf32> -> vector<76x128xf32>
    %166 = arith.addf %161, %165 : vector<76x128xf32>
    %cst_132 = arith.constant 0.000000e+00 : f32
    %167 = vector.broadcast %cst_132 : f32 to vector<76x128xf32>
    %168 = arith.maximumf %166, %167 : vector<76x128xf32>
    %c0_133 = arith.constant 0 : index
    %c0_134 = arith.constant 0 : index
    %169 = vector.load %arg6[%c0_133, %c0_134] : memref<128x128xf32, #tpu.memory_space<vmem>>, vector<128x128xf32>
    %cst_135 = arith.constant dense<0.000000e+00> : vector<76x128xf32>
    %170 = tpu.matmul %168, %169, %cst_135 {dimension_numbers = #tpu.dot_dimension_numbers<[1], [0], [0], [1], [0, 0, 1, 1], [], []>} : vector<76x128xf32>, vector<128x128xf32>, vector<76x128xf32> -> vector<76x128xf32>
    %171 = vector.broadcast %0 : vector<76x1xf32> to vector<76x128xf32>
    %172 = arith.mulf %170, %171 : vector<76x128xf32>
    %173 = vector.extract_strided_slice %118 {offsets = [9, 0], sizes = [76, 128], strides = [1, 1]} : vector<96x128xf32> to vector<76x128xf32>
    %174 = arith.addf %173, %172 : vector<76x128xf32>
    %c9_136 = arith.constant 9 : index
    %c0_137 = arith.constant 0 : index
    %175 = vector.load %arg11[%c9_136, %c0_137] : memref<96x128xf32, #tpu.memory_space<vmem>>, vector<76x128xf32>
    tpu.vector_store %arg11[%c9_136, %c0_137], %174 {strides = array<i32>} : memref<96x128xf32, #tpu.memory_space<vmem>>, vector<76x128xf32>,
    %c0_138 = arith.constant 0 : index
    %c0_139 = arith.constant 0 : index
    %176 = vector.load %arg11[%c0_138, %c0_139] : memref<96x128xf32, #tpu.memory_space<vmem>>, vector<96x128xf32>
    %cst_140 = arith.constant 0.000000e+00 : f32
    %177 = vector.broadcast %cst_140 : f32 to vector<96x128xf32>
    %178 = arith.maximumf %176, %177 : vector<96x128xf32>
    %cst_141 = arith.constant 0.000000e+00 : f32
    %179 = vector.broadcast %cst_141 : f32 to vector<76x128xf32>
    %180 = vector.extract_strided_slice %178 {offsets = [0, 0], sizes = [76, 128], strides = [1, 1]} : vector<96x128xf32> to vector<76x128xf32>
    %c0_142 = arith.constant 0 : index
    %c0_143 = arith.constant 0 : index
    %c0_144 = arith.constant 0 : index
    %181 = vector.load %arg5[%c0_142, %c0_143, %c0_144] : memref<9x128x128xf32, #tpu.memory_space<vmem>>, vector<1x128x128xf32>
    %182 = vector.shape_cast %181 : vector<1x128x128xf32> to vector<128x128xf32>
    %cst_145 = arith.constant dense<0.000000e+00> : vector<76x128xf32>
    %183 = tpu.matmul %180, %182, %cst_145 {dimension_numbers = #tpu.dot_dimension_numbers<[1], [0], [0], [1], [0, 0, 1, 1], [], []>} : vector<76x128xf32>, vector<128x128xf32>, vector<76x128xf32> -> vector<76x128xf32>
    %184 = arith.addf %179, %183 : vector<76x128xf32>
    %185 = vector.extract_strided_slice %178 {offsets = [1, 0], sizes = [76, 128], strides = [1, 1]} : vector<96x128xf32> to vector<76x128xf32>
    %c1_146 = arith.constant 1 : index
    %c0_147 = arith.constant 0 : index
    %c0_148 = arith.constant 0 : index
    %186 = vector.load %arg5[%c1_146, %c0_147, %c0_148] : memref<9x128x128xf32, #tpu.memory_space<vmem>>, vector<1x128x128xf32>
    %187 = vector.shape_cast %186 : vector<1x128x128xf32> to vector<128x128xf32>
    %cst_149 = arith.constant dense<0.000000e+00> : vector<76x128xf32>
    %188 = tpu.matmul %185, %187, %cst_149 {dimension_numbers = #tpu.dot_dimension_numbers<[1], [0], [0], [1], [0, 0, 1, 1], [], []>} : vector<76x128xf32>, vector<128x128xf32>, vector<76x128xf32> -> vector<76x128xf32>
    %189 = arith.addf %184, %188 : vector<76x128xf32>
    %190 = vector.extract_strided_slice %178 {offsets = [2, 0], sizes = [76, 128], strides = [1, 1]} : vector<96x128xf32> to vector<76x128xf32>
    %c2_150 = arith.constant 2 : index
    %c0_151 = arith.constant 0 : index
    %c0_152 = arith.constant 0 : index
    %191 = vector.load %arg5[%c2_150, %c0_151, %c0_152] : memref<9x128x128xf32, #tpu.memory_space<vmem>>, vector<1x128x128xf32>
    %192 = vector.shape_cast %191 : vector<1x128x128xf32> to vector<128x128xf32>
    %cst_153 = arith.constant dense<0.000000e+00> : vector<76x128xf32>
    %193 = tpu.matmul %190, %192, %cst_153 {dimension_numbers = #tpu.dot_dimension_numbers<[1], [0], [0], [1], [0, 0, 1, 1], [], []>} : vector<76x128xf32>, vector<128x128xf32>, vector<76x128xf32> -> vector<76x128xf32>
    %194 = arith.addf %189, %193 : vector<76x128xf32>
    %195 = vector.extract_strided_slice %178 {offsets = [8, 0], sizes = [76, 128], strides = [1, 1]} : vector<96x128xf32> to vector<76x128xf32>
    %c3_154 = arith.constant 3 : index
    %c0_155 = arith.constant 0 : index
    %c0_156 = arith.constant 0 : index
    %196 = vector.load %arg5[%c3_154, %c0_155, %c0_156] : memref<9x128x128xf32, #tpu.memory_space<vmem>>, vector<1x128x128xf32>
    %197 = vector.shape_cast %196 : vector<1x128x128xf32> to vector<128x128xf32>
    %cst_157 = arith.constant dense<0.000000e+00> : vector<76x128xf32>
    %198 = tpu.matmul %195, %197, %cst_157 {dimension_numbers = #tpu.dot_dimension_numbers<[1], [0], [0], [1], [0, 0, 1, 1], [], []>} : vector<76x128xf32>, vector<128x128xf32>, vector<76x128xf32> -> vector<76x128xf32>
    %199 = arith.addf %194, %198 : vector<76x128xf32>
    %200 = vector.extract_strided_slice %178 {offsets = [9, 0], sizes = [76, 128], strides = [1, 1]} : vector<96x128xf32> to vector<76x128xf32>
    %c4_158 = arith.constant 4 : index
    %c0_159 = arith.constant 0 : index
    %c0_160 = arith.constant 0 : index
    %201 = vector.load %arg5[%c4_158, %c0_159, %c0_160] : memref<9x128x128xf32, #tpu.memory_space<vmem>>, vector<1x128x128xf32>
    %202 = vector.shape_cast %201 : vector<1x128x128xf32> to vector<128x128xf32>
    %cst_161 = arith.constant dense<0.000000e+00> : vector<76x128xf32>
    %203 = tpu.matmul %200, %202, %cst_161 {dimension_numbers = #tpu.dot_dimension_numbers<[1], [0], [0], [1], [0, 0, 1, 1], [], []>} : vector<76x128xf32>, vector<128x128xf32>, vector<76x128xf32> -> vector<76x128xf32>
    %204 = arith.addf %199, %203 : vector<76x128xf32>
    %205 = vector.extract_strided_slice %178 {offsets = [10, 0], sizes = [76, 128], strides = [1, 1]} : vector<96x128xf32> to vector<76x128xf32>
    %c5_162 = arith.constant 5 : index
    %c0_163 = arith.constant 0 : index
    %c0_164 = arith.constant 0 : index
    %206 = vector.load %arg5[%c5_162, %c0_163, %c0_164] : memref<9x128x128xf32, #tpu.memory_space<vmem>>, vector<1x128x128xf32>
    %207 = vector.shape_cast %206 : vector<1x128x128xf32> to vector<128x128xf32>
    %cst_165 = arith.constant dense<0.000000e+00> : vector<76x128xf32>
    %208 = tpu.matmul %205, %207, %cst_165 {dimension_numbers = #tpu.dot_dimension_numbers<[1], [0], [0], [1], [0, 0, 1, 1], [], []>} : vector<76x128xf32>, vector<128x128xf32>, vector<76x128xf32> -> vector<76x128xf32>
    %209 = arith.addf %204, %208 : vector<76x128xf32>
    %210 = vector.extract_strided_slice %178 {offsets = [16, 0], sizes = [76, 128], strides = [1, 1]} : vector<96x128xf32> to vector<76x128xf32>
    %c6_166 = arith.constant 6 : index
    %c0_167 = arith.constant 0 : index
    %c0_168 = arith.constant 0 : index
    %211 = vector.load %arg5[%c6_166, %c0_167, %c0_168] : memref<9x128x128xf32, #tpu.memory_space<vmem>>, vector<1x128x128xf32>
    %212 = vector.shape_cast %211 : vector<1x128x128xf32> to vector<128x128xf32>
    %cst_169 = arith.constant dense<0.000000e+00> : vector<76x128xf32>
    %213 = tpu.matmul %210, %212, %cst_169 {dimension_numbers = #tpu.dot_dimension_numbers<[1], [0], [0], [1], [0, 0, 1, 1], [], []>} : vector<76x128xf32>, vector<128x128xf32>, vector<76x128xf32> -> vector<76x128xf32>
    %214 = arith.addf %209, %213 : vector<76x128xf32>
    %215 = vector.extract_strided_slice %178 {offsets = [17, 0], sizes = [76, 128], strides = [1, 1]} : vector<96x128xf32> to vector<76x128xf32>
    %c7_170 = arith.constant 7 : index
    %c0_171 = arith.constant 0 : index
    %c0_172 = arith.constant 0 : index
    %216 = vector.load %arg5[%c7_170, %c0_171, %c0_172] : memref<9x128x128xf32, #tpu.memory_space<vmem>>, vector<1x128x128xf32>
    %217 = vector.shape_cast %216 : vector<1x128x128xf32> to vector<128x128xf32>
    %cst_173 = arith.constant dense<0.000000e+00> : vector<76x128xf32>
    %218 = tpu.matmul %215, %217, %cst_173 {dimension_numbers = #tpu.dot_dimension_numbers<[1], [0], [0], [1], [0, 0, 1, 1], [], []>} : vector<76x128xf32>, vector<128x128xf32>, vector<76x128xf32> -> vector<76x128xf32>
    %219 = arith.addf %214, %218 : vector<76x128xf32>
    %220 = vector.extract_strided_slice %178 {offsets = [18, 0], sizes = [76, 128], strides = [1, 1]} : vector<96x128xf32> to vector<76x128xf32>
    %c8_174 = arith.constant 8 : index
    %c0_175 = arith.constant 0 : index
    %c0_176 = arith.constant 0 : index
    %221 = vector.load %arg5[%c8_174, %c0_175, %c0_176] : memref<9x128x128xf32, #tpu.memory_space<vmem>>, vector<1x128x128xf32>
    %222 = vector.shape_cast %221 : vector<1x128x128xf32> to vector<128x128xf32>
    %cst_177 = arith.constant dense<0.000000e+00> : vector<76x128xf32>
    %223 = tpu.matmul %220, %222, %cst_177 {dimension_numbers = #tpu.dot_dimension_numbers<[1], [0], [0], [1], [0, 0, 1, 1], [], []>} : vector<76x128xf32>, vector<128x128xf32>, vector<76x128xf32> -> vector<76x128xf32>
    %224 = arith.addf %219, %223 : vector<76x128xf32>
    %cst_178 = arith.constant 0.000000e+00 : f32
    %225 = vector.broadcast %cst_178 : f32 to vector<76x128xf32>
    %226 = arith.maximumf %224, %225 : vector<76x128xf32>
    %c0_179 = arith.constant 0 : index
    %c0_180 = arith.constant 0 : index
    %227 = vector.load %arg6[%c0_179, %c0_180] : memref<128x128xf32, #tpu.memory_space<vmem>>, vector<128x128xf32>
    %cst_181 = arith.constant dense<0.000000e+00> : vector<76x128xf32>
    %228 = tpu.matmul %226, %227, %cst_181 {dimension_numbers = #tpu.dot_dimension_numbers<[1], [0], [0], [1], [0, 0, 1, 1], [], []>} : vector<76x128xf32>, vector<128x128xf32>, vector<76x128xf32> -> vector<76x128xf32>
    %229 = vector.broadcast %0 : vector<76x1xf32> to vector<76x128xf32>
    %230 = arith.mulf %228, %229 : vector<76x128xf32>
    %231 = vector.extract_strided_slice %176 {offsets = [9, 0], sizes = [76, 128], strides = [1, 1]} : vector<96x128xf32> to vector<76x128xf32>
    %232 = arith.addf %231, %230 : vector<76x128xf32>
    %c9_182 = arith.constant 9 : index
    %c0_183 = arith.constant 0 : index
    %233 = vector.load %arg11[%c9_182, %c0_183] : memref<96x128xf32, #tpu.memory_space<vmem>>, vector<76x128xf32>
    tpu.vector_store %arg11[%c9_182, %c0_183], %232 {strides = array<i32>} : memref<96x128xf32, #tpu.memory_space<vmem>>, vector<76x128xf32>,
    %c0_184 = arith.constant 0 : index
    %c0_185 = arith.constant 0 : index
    %234 = vector.load %arg11[%c0_184, %c0_185] : memref<96x128xf32, #tpu.memory_space<vmem>>, vector<96x128xf32>
    %cst_186 = arith.constant 0.000000e+00 : f32
    %235 = vector.broadcast %cst_186 : f32 to vector<96x128xf32>
    %236 = arith.maximumf %234, %235 : vector<96x128xf32>
    %cst_187 = arith.constant 0.000000e+00 : f32
    %237 = vector.broadcast %cst_187 : f32 to vector<76x128xf32>
    %238 = vector.extract_strided_slice %236 {offsets = [0, 0], sizes = [76, 128], strides = [1, 1]} : vector<96x128xf32> to vector<76x128xf32>
    %c0_188 = arith.constant 0 : index
    %c0_189 = arith.constant 0 : index
    %c0_190 = arith.constant 0 : index
    %239 = vector.load %arg7[%c0_188, %c0_189, %c0_190] : memref<9x128x128xf32, #tpu.memory_space<vmem>>, vector<1x128x128xf32>
    %240 = vector.shape_cast %239 : vector<1x128x128xf32> to vector<128x128xf32>
    %cst_191 = arith.constant dense<0.000000e+00> : vector<76x128xf32>
    %241 = tpu.matmul %238, %240, %cst_191 {dimension_numbers = #tpu.dot_dimension_numbers<[1], [0], [0], [1], [0, 0, 1, 1], [], []>} : vector<76x128xf32>, vector<128x128xf32>, vector<76x128xf32> -> vector<76x128xf32>
    %242 = arith.addf %237, %241 : vector<76x128xf32>
    %243 = vector.extract_strided_slice %236 {offsets = [1, 0], sizes = [76, 128], strides = [1, 1]} : vector<96x128xf32> to vector<76x128xf32>
    %c1_192 = arith.constant 1 : index
    %c0_193 = arith.constant 0 : index
    %c0_194 = arith.constant 0 : index
    %244 = vector.load %arg7[%c1_192, %c0_193, %c0_194] : memref<9x128x128xf32, #tpu.memory_space<vmem>>, vector<1x128x128xf32>
    %245 = vector.shape_cast %244 : vector<1x128x128xf32> to vector<128x128xf32>
    %cst_195 = arith.constant dense<0.000000e+00> : vector<76x128xf32>
    %246 = tpu.matmul %243, %245, %cst_195 {dimension_numbers = #tpu.dot_dimension_numbers<[1], [0], [0], [1], [0, 0, 1, 1], [], []>} : vector<76x128xf32>, vector<128x128xf32>, vector<76x128xf32> -> vector<76x128xf32>
    %247 = arith.addf %242, %246 : vector<76x128xf32>
    %248 = vector.extract_strided_slice %236 {offsets = [2, 0], sizes = [76, 128], strides = [1, 1]} : vector<96x128xf32> to vector<76x128xf32>
    %c2_196 = arith.constant 2 : index
    %c0_197 = arith.constant 0 : index
    %c0_198 = arith.constant 0 : index
    %249 = vector.load %arg7[%c2_196, %c0_197, %c0_198] : memref<9x128x128xf32, #tpu.memory_space<vmem>>, vector<1x128x128xf32>
    %250 = vector.shape_cast %249 : vector<1x128x128xf32> to vector<128x128xf32>
    %cst_199 = arith.constant dense<0.000000e+00> : vector<76x128xf32>
    %251 = tpu.matmul %248, %250, %cst_199 {dimension_numbers = #tpu.dot_dimension_numbers<[1], [0], [0], [1], [0, 0, 1, 1], [], []>} : vector<76x128xf32>, vector<128x128xf32>, vector<76x128xf32> -> vector<76x128xf32>
    %252 = arith.addf %247, %251 : vector<76x128xf32>
    %253 = vector.extract_strided_slice %236 {offsets = [8, 0], sizes = [76, 128], strides = [1, 1]} : vector<96x128xf32> to vector<76x128xf32>
    %c3_200 = arith.constant 3 : index
    %c0_201 = arith.constant 0 : index
    %c0_202 = arith.constant 0 : index
    %254 = vector.load %arg7[%c3_200, %c0_201, %c0_202] : memref<9x128x128xf32, #tpu.memory_space<vmem>>, vector<1x128x128xf32>
    %255 = vector.shape_cast %254 : vector<1x128x128xf32> to vector<128x128xf32>
    %cst_203 = arith.constant dense<0.000000e+00> : vector<76x128xf32>
    %256 = tpu.matmul %253, %255, %cst_203 {dimension_numbers = #tpu.dot_dimension_numbers<[1], [0], [0], [1], [0, 0, 1, 1], [], []>} : vector<76x128xf32>, vector<128x128xf32>, vector<76x128xf32> -> vector<76x128xf32>
    %257 = arith.addf %252, %256 : vector<76x128xf32>
    %258 = vector.extract_strided_slice %236 {offsets = [9, 0], sizes = [76, 128], strides = [1, 1]} : vector<96x128xf32> to vector<76x128xf32>
    %c4_204 = arith.constant 4 : index
    %c0_205 = arith.constant 0 : index
    %c0_206 = arith.constant 0 : index
    %259 = vector.load %arg7[%c4_204, %c0_205, %c0_206] : memref<9x128x128xf32, #tpu.memory_space<vmem>>, vector<1x128x128xf32>
    %260 = vector.shape_cast %259 : vector<1x128x128xf32> to vector<128x128xf32>
    %cst_207 = arith.constant dense<0.000000e+00> : vector<76x128xf32>
    %261 = tpu.matmul %258, %260, %cst_207 {dimension_numbers = #tpu.dot_dimension_numbers<[1], [0], [0], [1], [0, 0, 1, 1], [], []>} : vector<76x128xf32>, vector<128x128xf32>, vector<76x128xf32> -> vector<76x128xf32>
    %262 = arith.addf %257, %261 : vector<76x128xf32>
    %263 = vector.extract_strided_slice %236 {offsets = [10, 0], sizes = [76, 128], strides = [1, 1]} : vector<96x128xf32> to vector<76x128xf32>
    %c5_208 = arith.constant 5 : index
    %c0_209 = arith.constant 0 : index
    %c0_210 = arith.constant 0 : index
    %264 = vector.load %arg7[%c5_208, %c0_209, %c0_210] : memref<9x128x128xf32, #tpu.memory_space<vmem>>, vector<1x128x128xf32>
    %265 = vector.shape_cast %264 : vector<1x128x128xf32> to vector<128x128xf32>
    %cst_211 = arith.constant dense<0.000000e+00> : vector<76x128xf32>
    %266 = tpu.matmul %263, %265, %cst_211 {dimension_numbers = #tpu.dot_dimension_numbers<[1], [0], [0], [1], [0, 0, 1, 1], [], []>} : vector<76x128xf32>, vector<128x128xf32>, vector<76x128xf32> -> vector<76x128xf32>
    %267 = arith.addf %262, %266 : vector<76x128xf32>
    %268 = vector.extract_strided_slice %236 {offsets = [16, 0], sizes = [76, 128], strides = [1, 1]} : vector<96x128xf32> to vector<76x128xf32>
    %c6_212 = arith.constant 6 : index
    %c0_213 = arith.constant 0 : index
    %c0_214 = arith.constant 0 : index
    %269 = vector.load %arg7[%c6_212, %c0_213, %c0_214] : memref<9x128x128xf32, #tpu.memory_space<vmem>>, vector<1x128x128xf32>
    %270 = vector.shape_cast %269 : vector<1x128x128xf32> to vector<128x128xf32>
    %cst_215 = arith.constant dense<0.000000e+00> : vector<76x128xf32>
    %271 = tpu.matmul %268, %270, %cst_215 {dimension_numbers = #tpu.dot_dimension_numbers<[1], [0], [0], [1], [0, 0, 1, 1], [], []>} : vector<76x128xf32>, vector<128x128xf32>, vector<76x128xf32> -> vector<76x128xf32>
    %272 = arith.addf %267, %271 : vector<76x128xf32>
    %273 = vector.extract_strided_slice %236 {offsets = [17, 0], sizes = [76, 128], strides = [1, 1]} : vector<96x128xf32> to vector<76x128xf32>
    %c7_216 = arith.constant 7 : index
    %c0_217 = arith.constant 0 : index
    %c0_218 = arith.constant 0 : index
    %274 = vector.load %arg7[%c7_216, %c0_217, %c0_218] : memref<9x128x128xf32, #tpu.memory_space<vmem>>, vector<1x128x128xf32>
    %275 = vector.shape_cast %274 : vector<1x128x128xf32> to vector<128x128xf32>
    %cst_219 = arith.constant dense<0.000000e+00> : vector<76x128xf32>
    %276 = tpu.matmul %273, %275, %cst_219 {dimension_numbers = #tpu.dot_dimension_numbers<[1], [0], [0], [1], [0, 0, 1, 1], [], []>} : vector<76x128xf32>, vector<128x128xf32>, vector<76x128xf32> -> vector<76x128xf32>
    %277 = arith.addf %272, %276 : vector<76x128xf32>
    %278 = vector.extract_strided_slice %236 {offsets = [18, 0], sizes = [76, 128], strides = [1, 1]} : vector<96x128xf32> to vector<76x128xf32>
    %c8_220 = arith.constant 8 : index
    %c0_221 = arith.constant 0 : index
    %c0_222 = arith.constant 0 : index
    %279 = vector.load %arg7[%c8_220, %c0_221, %c0_222] : memref<9x128x128xf32, #tpu.memory_space<vmem>>, vector<1x128x128xf32>
    %280 = vector.shape_cast %279 : vector<1x128x128xf32> to vector<128x128xf32>
    %cst_223 = arith.constant dense<0.000000e+00> : vector<76x128xf32>
    %281 = tpu.matmul %278, %280, %cst_223 {dimension_numbers = #tpu.dot_dimension_numbers<[1], [0], [0], [1], [0, 0, 1, 1], [], []>} : vector<76x128xf32>, vector<128x128xf32>, vector<76x128xf32> -> vector<76x128xf32>
    %282 = arith.addf %277, %281 : vector<76x128xf32>
    %c0_224 = arith.constant 0 : index
    %c0_225 = arith.constant 0 : index
    %283 = vector.load %arg8[%c0_224, %c0_225] : memref<1x128xf32, #tpu.memory_space<vmem>>, vector<1x128xf32>
    %284 = vector.broadcast %283 : vector<1x128xf32> to vector<76x128xf32>
    %285 = arith.addf %282, %284 : vector<76x128xf32>
    %286 = vector.extract_strided_slice %285 {offsets = [0, 0], sizes = [4, 128], strides = [1, 1]} : vector<76x128xf32> to vector<4x128xf32>
    %c0_226 = arith.constant 0 : index
    %c0_227 = arith.constant 0 : index
    %c0_228 = arith.constant 0 : index
    %287 = vector.load %arg10[%c0_226, %c0_227, %c0_228] : memref<2x16x128xf32, #tpu.memory_space<vmem>>, vector<1x4x128xf32>
    %288 = vector.shape_cast %287 : vector<1x4x128xf32> to vector<4x128xf32>
    %289 = vector.shape_cast %286 : vector<4x128xf32> to vector<1x4x128xf32>
    tpu.vector_store %arg10[%c0_226, %c0_227, %c0_228], %289 {strides = array<i32>} : memref<2x16x128xf32, #tpu.memory_space<vmem>>, vector<1x4x128xf32>,
    %290 = vector.extract_strided_slice %285 {offsets = [8, 0], sizes = [4, 128], strides = [1, 1]} : vector<76x128xf32> to vector<4x128xf32>
    %c0_229 = arith.constant 0 : index
    %c4_230 = arith.constant 4 : index
    %c0_231 = arith.constant 0 : index
    %291 = vector.load %arg10[%c0_229, %c4_230, %c0_231] : memref<2x16x128xf32, #tpu.memory_space<vmem>>, vector<1x4x128xf32>
    %292 = vector.shape_cast %291 : vector<1x4x128xf32> to vector<4x128xf32>
    %293 = vector.shape_cast %290 : vector<4x128xf32> to vector<1x4x128xf32>
    tpu.vector_store %arg10[%c0_229, %c4_230, %c0_231], %293 {strides = array<i32>} : memref<2x16x128xf32, #tpu.memory_space<vmem>>, vector<1x4x128xf32>,
    %294 = vector.extract_strided_slice %285 {offsets = [16, 0], sizes = [4, 128], strides = [1, 1]} : vector<76x128xf32> to vector<4x128xf32>
    %c0_232 = arith.constant 0 : index
    %c8_233 = arith.constant 8 : index
    %c0_234 = arith.constant 0 : index
    %295 = vector.load %arg10[%c0_232, %c8_233, %c0_234] : memref<2x16x128xf32, #tpu.memory_space<vmem>>, vector<1x4x128xf32>
    %296 = vector.shape_cast %295 : vector<1x4x128xf32> to vector<4x128xf32>
    %297 = vector.shape_cast %294 : vector<4x128xf32> to vector<1x4x128xf32>
    tpu.vector_store %arg10[%c0_232, %c8_233, %c0_234], %297 {strides = array<i32>} : memref<2x16x128xf32, #tpu.memory_space<vmem>>, vector<1x4x128xf32>,
    %298 = vector.extract_strided_slice %285 {offsets = [24, 0], sizes = [4, 128], strides = [1, 1]} : vector<76x128xf32> to vector<4x128xf32>
    %c0_235 = arith.constant 0 : index
    %c12_236 = arith.constant 12 : index
    %c0_237 = arith.constant 0 : index
    %299 = vector.load %arg10[%c0_235, %c12_236, %c0_237] : memref<2x16x128xf32, #tpu.memory_space<vmem>>, vector<1x4x128xf32>
    %300 = vector.shape_cast %299 : vector<1x4x128xf32> to vector<4x128xf32>
    %301 = vector.shape_cast %298 : vector<4x128xf32> to vector<1x4x128xf32>
    tpu.vector_store %arg10[%c0_235, %c12_236, %c0_237], %301 {strides = array<i32>} : memref<2x16x128xf32, #tpu.memory_space<vmem>>, vector<1x4x128xf32>,
    %302 = vector.extract_strided_slice %285 {offsets = [48, 0], sizes = [4, 128], strides = [1, 1]} : vector<76x128xf32> to vector<4x128xf32>
    %c1_238 = arith.constant 1 : index
    %c0_239 = arith.constant 0 : index
    %c0_240 = arith.constant 0 : index
    %303 = vector.load %arg10[%c1_238, %c0_239, %c0_240] : memref<2x16x128xf32, #tpu.memory_space<vmem>>, vector<1x4x128xf32>
    %304 = vector.shape_cast %303 : vector<1x4x128xf32> to vector<4x128xf32>
    %305 = vector.shape_cast %302 : vector<4x128xf32> to vector<1x4x128xf32>
    tpu.vector_store %arg10[%c1_238, %c0_239, %c0_240], %305 {strides = array<i32>} : memref<2x16x128xf32, #tpu.memory_space<vmem>>, vector<1x4x128xf32>,
    %306 = vector.extract_strided_slice %285 {offsets = [56, 0], sizes = [4, 128], strides = [1, 1]} : vector<76x128xf32> to vector<4x128xf32>
    %c1_241 = arith.constant 1 : index
    %c4_242 = arith.constant 4 : index
    %c0_243 = arith.constant 0 : index
    %307 = vector.load %arg10[%c1_241, %c4_242, %c0_243] : memref<2x16x128xf32, #tpu.memory_space<vmem>>, vector<1x4x128xf32>
    %308 = vector.shape_cast %307 : vector<1x4x128xf32> to vector<4x128xf32>
    %309 = vector.shape_cast %306 : vector<4x128xf32> to vector<1x4x128xf32>
    tpu.vector_store %arg10[%c1_241, %c4_242, %c0_243], %309 {strides = array<i32>} : memref<2x16x128xf32, #tpu.memory_space<vmem>>, vector<1x4x128xf32>,
    %310 = vector.extract_strided_slice %285 {offsets = [64, 0], sizes = [4, 128], strides = [1, 1]} : vector<76x128xf32> to vector<4x128xf32>
    %c1_244 = arith.constant 1 : index
    %c8_245 = arith.constant 8 : index
    %c0_246 = arith.constant 0 : index
    %311 = vector.load %arg10[%c1_244, %c8_245, %c0_246] : memref<2x16x128xf32, #tpu.memory_space<vmem>>, vector<1x4x128xf32>
    %312 = vector.shape_cast %311 : vector<1x4x128xf32> to vector<4x128xf32>
    %313 = vector.shape_cast %310 : vector<4x128xf32> to vector<1x4x128xf32>
    tpu.vector_store %arg10[%c1_244, %c8_245, %c0_246], %313 {strides = array<i32>} : memref<2x16x128xf32, #tpu.memory_space<vmem>>, vector<1x4x128xf32>,
    %314 = vector.extract_strided_slice %285 {offsets = [72, 0], sizes = [4, 128], strides = [1, 1]} : vector<76x128xf32> to vector<4x128xf32>
    %c1_247 = arith.constant 1 : index
    %c12_248 = arith.constant 12 : index
    %c0_249 = arith.constant 0 : index
    %315 = vector.load %arg10[%c1_247, %c12_248, %c0_249] : memref<2x16x128xf32, #tpu.memory_space<vmem>>, vector<1x4x128xf32>
    %316 = vector.shape_cast %315 : vector<1x4x128xf32> to vector<4x128xf32>
    %317 = vector.shape_cast %314 : vector<4x128xf32> to vector<1x4x128xf32>
    tpu.vector_store %arg10[%c1_247, %c12_248, %c0_249], %317 {strides = array<i32>} : memref<2x16x128xf32, #tpu.memory_space<vmem>>, vector<1x4x128xf32>,
    return
  }
  func.func @transform_0(%arg0: i32) -> (i32, i32, i32, i32) {
    %c0_i32 = arith.constant 0 : i32
    %c0_i32_0 = arith.constant 0 : i32
    %c0_i32_1 = arith.constant 0 : i32
    %c0_i32_2 = arith.constant 0 : i32
    return %arg0, %c0_i32, %c0_i32_0, %c0_i32_1 : i32, i32, i32, i32
  }
  func.func @transform_1(%arg0: i32) -> (i32, i32) {
    %c0_i32 = arith.constant 0 : i32
    %c0_i32_0 = arith.constant 0 : i32
    %c0_i32_1 = arith.constant 0 : i32
    return %c0_i32, %c0_i32_0 : i32, i32
  }
  func.func @transform_2(%arg0: i32) -> (i32, i32, i32) {
    %c0_i32 = arith.constant 0 : i32
    %c0_i32_0 = arith.constant 0 : i32
    %c0_i32_1 = arith.constant 0 : i32
    %c0_i32_2 = arith.constant 0 : i32
    return %c0_i32, %c0_i32_0, %c0_i32_1 : i32, i32, i32
  }
  func.func @transform_3(%arg0: i32) -> (i32, i32) {
    %c0_i32 = arith.constant 0 : i32
    %c0_i32_0 = arith.constant 0 : i32
    %c0_i32_1 = arith.constant 0 : i32
    return %c0_i32, %c0_i32_0 : i32, i32
  }
  func.func @transform_4(%arg0: i32) -> (i32, i32, i32) {
    %c0_i32 = arith.constant 0 : i32
    %c0_i32_0 = arith.constant 0 : i32
    %c0_i32_1 = arith.constant 0 : i32
    %c0_i32_2 = arith.constant 0 : i32
    return %c0_i32, %c0_i32_0, %c0_i32_1 : i32, i32, i32
  }
  func.func @transform_5(%arg0: i32) -> (i32, i32) {
    %c0_i32 = arith.constant 0 : i32
    %c0_i32_0 = arith.constant 0 : i32
    %c0_i32_1 = arith.constant 0 : i32
    return %c0_i32, %c0_i32_0 : i32, i32
  }
  func.func @transform_6(%arg0: i32) -> (i32, i32, i32) {
    %c0_i32 = arith.constant 0 : i32
    %c0_i32_0 = arith.constant 0 : i32
    %c0_i32_1 = arith.constant 0 : i32
    %c0_i32_2 = arith.constant 0 : i32
    return %c0_i32, %c0_i32_0, %c0_i32_1 : i32, i32, i32
  }
  func.func @transform_7(%arg0: i32) -> (i32, i32) {
    %c0_i32 = arith.constant 0 : i32
    %c0_i32_0 = arith.constant 0 : i32
    %c0_i32_1 = arith.constant 0 : i32
    return %c0_i32, %c0_i32_0 : i32, i32
  }
  func.func @transform_8(%arg0: i32) -> (i32, i32) {
    %c0_i32 = arith.constant 0 : i32
    %c0_i32_0 = arith.constant 0 : i32
    %c0_i32_1 = arith.constant 0 : i32
    return %c0_i32, %c0_i32_0 : i32, i32
  }
  func.func @transform_9(%arg0: i32) -> (i32, i32, i32) {
    %c0_i32 = arith.constant 0 : i32
    %c0_i32_0 = arith.constant 0 : i32
    %c0_i32_1 = arith.constant 0 : i32
    return %arg0, %c0_i32, %c0_i32_0 : i32, i32, i32
  }
}

</mosaic_0001>

<bundles_post_ra>
// kernel: encoder_forward.1
= control target key start
LH: loop header
LB: loop body
LE: loop exit
PB: predicated region body
PF: predicated region fallthrough
CT: control target
= control target key end

     0   :  { %vm63_vm0 = vcmask 523264   ;;  %s16450_s0 = inlined_call_operand.vmem [shape: f32[1,4,96,64], index: 0, kind: input, shape index: {}]   ;;  %s16451_s1 = inlined_call_operand.vmem [shape: f32[64,128], index: 1, kind: input, shape index: {}]   ;;  %s16452_s2 = inlined_call_operand.vmem [shape: f32[16,128,128], index: 2, kind: input, shape index: {}]   ;;  %s16453_s3 = inlined_call_operand.vmem [shape: f32[1,128], index: 3, kind: input, shape index: {}]   ;;  %s16454_s4 = inlined_call_operand.vmem [shape: f32[9,128,128], index: 4, kind: input, shape index: {}]   ;;  %s16455_s5 = inlined_call_operand.vmem [shape: f32[128,128], index: 5, kind: input, shape index: {}]   ;;  %s16456_s6 = inlined_call_operand.vmem [shape: f32[9,128,128], index: 6, kind: input, shape index: {}]   ;;  %s16457_s7 = inlined_call_operand.vmem [shape: f32[1,128], index: 7, kind: input, shape index: {}]   ;;  %s16458_s8 = inlined_call_operand.vmem [shape: f32[76,1], index: 8, kind: input, shape index: {}]   ;;  %s16459_s9 = inlined_call_operand.hbm [shape: f32[2,16,128], index: 9, kind: output, shape index: {}]  }
   0x1   :  { %v12159_v0 = vld [vmem:[%s16451_s1 + $0x38] sm:$0xff]  ;;  %v12164_v1 = vld [vmem:[%s16451_s1 + $0x30] sm:$0xff]  ;;  %v12171_v2 = vld [vmem:[%s16451_s1 + $0x28] sm:$0xff] }
   0x2   :  { %9799 = vmatprep.subr.mxu1 %v12159_v0  ;;  %v43_v3 = vld [vmem:[%s16450_s0] sm:$0xff]  ;;  %v12189_v5 = vld [vmem:[%s16451_s1 + $0x18] sm:$0xff]  ;;  %v249_v7 = vld [vmem:[%s16452_s2 + $0x70] sm:$0xff] }
   0x3   :  { %9800 = vmatpush3.msra.mxu1 %v12159_v0  ;;  %9815 = vmatprep.mubr.msk.f32.mxu1 %vm63_vm0, %v43_v3  ;;  %v12182_v4 = vld [vmem:[%s16451_s1 + $0x20] sm:$0xff]  ;;  %v250_v6 = vld [vmem:[%s16452_s2 + $0x78] sm:$0xff]  ;;  %v12202_v8 = vld [vmem:[%s16451_s1 + $0x10] sm:$0xff] }
   0x4   :  { %9801 = vmatprep.subr.mxu1 %v12164_v1  ;;  %9880 = vmatprep.subr.mxu0 %v250_v6  ;;  %v248_v9 = vld [vmem:[%s16452_s2 + $0x68] sm:$0xff]  ;;  %v247_v11 = vld [vmem:[%s16452_s2 + $0x60] sm:$0xff]  ;;  %v246_v13 = vld [vmem:[%s16452_s2 + $0x58] sm:$0xff] }
   0x5   :  { %9802 = vmatpush3.msra.mxu1 %v12164_v1  ;;  %9881 = vmatpush3.msra.mxu0 %v250_v6  ;;  %v12212_v10 = vld [vmem:[%s16451_s1 + $0x8] sm:$0xff]  ;;  %v12222_v12 = vld [vmem:[%s16451_s1] sm:$0xff]  ;;  %v7866_v15 = vld [vmem:[%s16452_s2 + $0xf8] sm:$0xff] }
   0x6   :  { %9803 = vmatprep.subr.mxu1 %v12171_v2  ;;  %9882 = vmatprep.subr.mxu0 %v249_v7  ;;  %v44_v14 = vld [vmem:[%s16450_s0 + $0x8] sm:$0xff]  ;;  %v45_v16 = vld [vmem:[%s16450_s0 + $0x10] sm:$0xff] }
   0x7   :  { %9804 = vmatpush3.msra.mxu1 %v12171_v2  ;;  %9883 = vmatpush3.msra.mxu0 %v249_v7 }
   0x8   :  { %9805 = vmatprep.subr.mxu1 %v12182_v4  ;;  %9884 = vmatprep.subr.mxu0 %v248_v9 }
   0x9   :  { %9806 = vmatpush3.msra.mxu1 %v12182_v4  ;;  %9885 = vmatpush3.msra.mxu0 %v248_v9 }
   0xa   :  { %9807 = vmatprep.subr.mxu1 %v12189_v5  ;;  %9886 = vmatprep.subr.mxu0 %v247_v11 }
   0xb   :  { %9808 = vmatpush3.msra.mxu1 %v12189_v5  ;;  %9887 = vmatpush3.msra.mxu0 %v247_v11 }
   0xc   :  { %9809 = vmatprep.subr.mxu1 %v12202_v8  ;;  %9888 = vmatprep.subr.mxu0 %v246_v13 }
   0xd   :  { %9810 = vmatpush3.msra.mxu1 %v12202_v8 }
   0xe   :  { %9811 = vmatprep.subr.mxu1 %v12212_v10 }
   0xf   :  { %9812 = vmatpush3.msra.mxu1 %v12212_v10 }
  0x10   :  { %9813 = vmatprep.subr.mxu1 %v12222_v12 }
  0x11   :  { %14 = vsyncpa [#allocation4], 0  ;;  %9814 = vmatpush3.msra.mxu1 %v12222_v12  ;;  %v7865_v17 = vld [vmem:[%s16452_s2 + $0xf0] sm:$0xff]  ;;  %9889 = vmatpush3.msra.mxu0 %v246_v13  ;;  %v46_v19 = vld [vmem:[%s16450_s0 + $0x18] sm:$0xff]  ;;  %vm278_vm1 = vcmask 1046528   ;;  %vm3659_vm2 = vcmask 1045504  }
  0x12   :  { %v245_v18 = vld [vmem:[%s16452_s2 + $0x50] sm:$0xff]  ;;  %9816 = vmatmul.mubr.msk.f32.vlgmr.msra.gmra.mxu1 %vm63_vm0, %v44_v14  ;;  %9833 = vmatprep.subr.mxu1 %v7866_v15  ;;  %v7864_v20 = vld [vmem:[%s16452_s2 + $0xe8] sm:$0xff]  ;;  %v47_v21 = vld [vmem:[%s16450_s0 + $0x20] sm:$0xff]  ;;  %vm4845_vm3 = vcmask 1040384  }
  0x13   :  { %9818 = vmatprep.mubr.msk.f32.mxu1 %vm63_vm0, %v45_v16  ;;  %9834 = vmatpush3.msra.mxu1 %v7866_v15  ;;  %v7863_v22 = vld [vmem:[%s16452_s2 + $0xe0] sm:$0xff]  ;;  %v244_v23 = vld [vmem:[%s16452_s2 + $0x48] sm:$0xff]  ;;  %v7862_v25 = vld [vmem:[%s16452_s2 + $0xd8] sm:$0xff] }
  0x14   :  { %9835 = vmatprep.subr.mxu1 %v7865_v17  ;;  %9890 = vmatprep.subr.mxu0 %v245_v18  ;;  %v48_v24 = vld [vmem:[%s16450_s0 + $0x28] sm:$0xff]  ;;  %v49_v26 = vld [vmem:[%s16450_s0 + $0x30] sm:$0xff]  ;;  %v243_v27 = vld [vmem:[%s16452_s2 + $0x40] sm:$0xff] }
  0x15   :  { %9836 = vmatpush3.msra.mxu1 %v7865_v17  ;;  %9891 = vmatpush3.msra.mxu0 %v245_v18  ;;  %v7861_v28 = vld [vmem:[%s16452_s2 + $0xd0] sm:$0xff]  ;;  %v242_v29 = vld [vmem:[%s16452_s2 + $0x38] sm:$0xff]  ;;  %v51_v31 = vld [vmem:[%s16450_s0 + $0x40] sm:$0xff] }
  0x16   :  { %9819 = vmatmul.mubr.msk.f32.gmra.mxu1 %vm63_vm0, %v46_v19  ;;  %9837 = vmatprep.subr.mxu1 %v7864_v20  ;;  %v50_v30 = vld [vmem:[%s16450_s0 + $0x38] sm:$0xff]  ;;  %v7860_v32 = vld [vmem:[%s16452_s2 + $0xc8] sm:$0xff]  ;;  %v241_v33 = vld [vmem:[%s16452_s2 + $0x30] sm:$0xff] }
  0x17   :  { %9821 = vmatprep.mubr.msk.f32.mxu1 %vm63_vm0, %v47_v21  ;;  %9838 = vmatpush3.msra.mxu1 %v7864_v20  ;;  %v52_v34 = vld [vmem:[%s16450_s0 + $0x48] sm:$0xff]  ;;  %v7859_v35 = vld [vmem:[%s16452_s2 + $0xc0] sm:$0xff]  ;;  %v53_v36 = vld [vmem:[%s16450_s0 + $0x50] sm:$0xff] }
  0x18   :  { %9839 = vmatprep.subr.mxu1 %v7863_v22  ;;  %9892 = vmatprep.subr.mxu0 %v244_v23  ;;  %v240_v37 = vld [vmem:[%s16452_s2 + $0x28] sm:$0xff]  ;;  %v7858_v38 = vld [vmem:[%s16452_s2 + $0xb8] sm:$0xff]  ;;  %v239_v39 = vld [vmem:[%s16452_s2 + $0x20] sm:$0xff] }
  0x19   :  { %9840 = vmatpush3.msra.mxu1 %v7863_v22  ;;  %9893 = vmatpush3.msra.mxu0 %v244_v23  ;;  %v54_v40 = vld [vmem:[%s16450_s0 + $0x58] sm:$0xff]  ;;  %v7857_v42 = vld [vmem:[%s16452_s2 + $0xb0] sm:$0xff]  ;;  %v7856_v44 = vld [vmem:[%s16452_s2 + $0xa8] sm:$0xff] }
  0x1a   :  { %9822 = vmatmul.mubr.msk.f32.gmra.mxu1 %vm63_vm0, %v48_v24  ;;  %9841 = vmatprep.subr.mxu1 %v7862_v25  ;;  %v238_v41 = vld [vmem:[%s16452_s2 + $0x18] sm:$0xff]  ;;  %v237_v43 = vld [vmem:[%s16452_s2 + $0x10] sm:$0xff]  ;;  %v7855_v45 = vld [vmem:[%s16452_s2 + $0xa0] sm:$0xff] }
  0x1b   :  { %9824 = vmatprep.mubr.msk.f32.mxu1 %vm63_vm0, %v49_v26  ;;  %9894 = vmatprep.subr.mxu0 %v243_v27  ;;  %v236_v46 = vld [vmem:[%s16452_s2 + $0x8] sm:$0xff]  ;;  %v7854_v47 = vld [vmem:[%s16452_s2 + $0x98] sm:$0xff]  ;;  %v235_v48 = vld [vmem:[%s16452_s2] sm:$0xff] }
  0x1c   :  { %9842 = vmatpush3.msra.mxu1 %v7862_v25  ;;  %9895 = vmatpush3.msra.mxu0 %v243_v27  ;;  %v7853_v49 = vld [vmem:[%s16452_s2 + $0x90] sm:$0xff]  ;;  %v7898_v50 = vld [vmem:[%s16452_s2 + $0x1f8] sm:$0xff]  ;;  %v7852_v51 = vld [vmem:[%s16452_s2 + $0x88] sm:$0xff] }
  0x1d   :  { %9843 = vmatprep.subr.mxu1 %v7861_v28  ;;  %9896 = vmatprep.subr.mxu0 %v242_v29  ;;  %v7851_v52 = vld [vmem:[%s16452_s2 + $0x80] sm:$0xff]  ;;  %v7882_v53 = vld [vmem:[%s16452_s2 + $0x178] sm:$0xff]  ;;  %v7897_v62 = vld [vmem:[%s16452_s2 + $0x1f0] sm:$0xff] }
  0x1e   :  { %9825 = vmatmul.mubr.msk.f32.gmra.mxu1 %vm63_vm0, %v50_v30  ;;  %9897 = vmatpush3.msra.mxu0 %v242_v29  ;;  %v7896_v7 = vld [vmem:[%s16452_s2 + $0x1e8] sm:$0xff]  ;;  %v7895_v14 = vld [vmem:[%s16452_s2 + $0x1e0] sm:$0xff]  ;;  %v7881_v21 = vld [vmem:[%s16452_s2 + $0x170] sm:$0xff] }
  0x1f   :  { %9827 = vmatprep.mubr.msk.f32.mxu1 %vm63_vm0, %v51_v31  ;;  %9844 = vmatpush3.msra.mxu1 %v7861_v28  ;;  %v7894_v22 = vld [vmem:[%s16452_s2 + $0x1d8] sm:$0xff]  ;;  %v7880_v25 = vld [vmem:[%s16452_s2 + $0x168] sm:$0xff]  ;;  %v7893_v27 = vld [vmem:[%s16452_s2 + $0x1d0] sm:$0xff] }
  0x20   :  { %9845 = vmatprep.subr.mxu1 %v7860_v32  ;;  %9898 = vmatprep.subr.mxu0 %v241_v33 }
  0x21   :  { %9846 = vmatpush3.msra.mxu1 %v7860_v32  ;;  %9899 = vmatpush3.msra.mxu0 %v241_v33  ;;  %v7879_v32 = vld [vmem:[%s16452_s2 + $0x160] sm:$0xff] }
  0x22   :  { %9828 = vmatmul.mubr.msk.f32.gmra.mxu1 %vm63_vm0, %v52_v34  ;;  %9847 = vmatprep.subr.mxu1 %v7859_v35  ;;  %v7892_v34 = vld [vmem:[%s16452_s2 + $0x1c8] sm:$0xff] }
  0x23   :  { %9830 = vmatprep.mubr.msk.f32.mxu1 %vm63_vm0, %v53_v36  ;;  %9900 = vmatprep.subr.mxu0 %v240_v37 }
  0x24   :  { %9848 = vmatpush3.msra.mxu1 %v7859_v35  ;;  %9901 = vmatpush3.msra.mxu0 %v240_v37 }
  0x25   :  { %9849 = vmatprep.subr.mxu1 %v7858_v38  ;;  %9902 = vmatprep.subr.mxu0 %v239_v39 }
  0x26   :  { %9831 = vmatmul.mubr.msk.f32.gmra.mxu1 %vm63_vm0, %v54_v40  ;;  %9903 = vmatpush3.msra.mxu0 %v239_v39  ;;  %v7891_v40 = vld [vmem:[%s16452_s2 + $0x1c0] sm:$0xff] }
  0x27   :  { %9850 = vmatpush3.msra.mxu1 %v7858_v38  ;;  %9904 = vmatprep.subr.mxu0 %v238_v41  ;;  %v7878_v38 = vld [vmem:[%s16452_s2 + $0x158] sm:$0xff] }
  0x28   :  { %9851 = vmatprep.subr.mxu1 %v7857_v42  ;;  %9905 = vmatpush3.msra.mxu0 %v238_v41 }
  0x29   :  { %9852 = vmatpush3.msra.mxu1 %v7857_v42  ;;  %9906 = vmatprep.subr.mxu0 %v237_v43 }
  0x2a   :  { %9853 = vmatprep.subr.mxu1 %v7856_v44  ;;  %9907 = vmatpush3.msra.mxu0 %v237_v43 }
  0x2b   :  { %9854 = vmatpush3.msra.mxu1 %v7856_v44  ;;  %9908 = vmatprep.subr.mxu0 %v236_v46  ;;  %v7877_v44 = vld [vmem:[%s16452_s2 + $0x150] sm:$0xff] }
  0x2c   :  { %9855 = vmatprep.subr.mxu1 %v7855_v45  ;;  %9909 = vmatpush3.msra.mxu0 %v236_v46 }
  0x2d   :  { %9856 = vmatpush3.msra.mxu1 %v7855_v45  ;;  %9910 = vmatprep.subr.mxu0 %v235_v48  ;;  %v7890_v45 = vld [vmem:[%s16452_s2 + $0x1b8] sm:$0xff] }
  0x2e   :  { %9857 = vmatprep.subr.mxu1 %v7854_v47  ;;  %9911 = vmatpush3.msra.mxu0 %v235_v48  ;;  %v7876_v48 = vld [vmem:[%s16452_s2 + $0x148] sm:$0xff] }
  0x2f   :  { %9858 = vmatpush3.msra.mxu1 %v7854_v47  ;;  %9974 = vmatprep.subr.mxu0 %v7898_v50 }
  0x30   :  { %9859 = vmatprep.subr.mxu1 %v7853_v49 }
  0x31   :  { %9860 = vmatpush3.msra.mxu1 %v7853_v49 }
  0x32   :  { %9861 = vmatprep.subr.mxu1 %v7852_v51 }
  0x33   :  { %9862 = vmatpush3.msra.mxu1 %v7852_v51 }
  0x34   :  { %9863 = vmatprep.subr.mxu1 %v7851_v52 }
  0x35   :  { %9864 = vmatpush3.msra.mxu1 %v7851_v52  ;;  %v7888_v52 = vld [vmem:[%s16452_s2 + $0x1a8] sm:$0xff] }
  0x36   :  { %9927 = vmatprep.subr.mxu1 %v7882_v53 }
  0xd2   :  { %v9817_v54 = vpop.f32.mrf.mxu1 }
  0xd3   :  { %v12362_v55 = vmax.f32 %v9817_v54, 0.0 }
  0xd4   :  { %v166_v56 = vpop.f32.mrf.mxu1 }
  0xd5   :  { %v224_v57 = vmax.f32 %v166_v56, 0.0  ;;  %v280_v59 = vrot.slane %v12362_v55, 1  ;;  %v7874_v56 = vld [vmem:[%s16452_s2 + $0x138] sm:$0xff] }
  0xd6   :  { %v9820_v58 = vpop.f32.mrf.mxu1 }
  0xd7   :  { %v12365_v60 = vmax.f32 %v9820_v58, 0.0  ;;  %v279_v61 = vrot.slane %v224_v57, 1  ;;  %9912 = vmatprep.mubr.f32.mxu0 %v224_v57  ;;  %v7887_v57 = vld [vmem:[%s16452_s2 + $0x1a0] sm:$0xff]  ;;  %v7873_v58 = vld [vmem:[%s16452_s2 + $0x130] sm:$0xff] }
  0xd8   :  { %v176_v63 = vpop.f32.mrf.mxu1  ;;  %9913 = vmatmul.mubr.f32.vlgmr.msra.gmra.mxu0 %v12362_v55 }
  0xd9   :  { %v12371_v3 = vmax.f32 %v176_v63, 0.0  ;;  %9975 = vmatpush3.msra.mxu0 %v7898_v50  ;;  %v281_v6 = vsel %vm278_vm1, %v279_v61, %v280_v59  ;;  %v284_v11 = vrot.slane %v12365_v60, 1  ;;  %v7889_v50 = vld [vmem:[%s16452_s2 + $0x1b0] sm:$0xff]  ;;  %v7872_v61 = vld [vmem:[%s16452_s2 + $0x128] sm:$0xff]  ;;  %v7871_v63 = vld [vmem:[%s16452_s2 + $0x120] sm:$0xff] }
  0xda   :  { %9976 = vmatprep.subr.mxu0 %v7897_v62  ;;  %v9823_v9 = vpop.f32.mrf.mxu1  ;;  %9865 = vmatprep.mubr.f32.mxu1 %v281_v6  ;;  %v7870_v6 = vld [vmem:[%s16452_s2 + $0x118] sm:$0xff] }
  0xdb   :  { %v282_v13 = vrot.slane %v12371_v3, 1  ;;  %9977 = vmatpush3.msra.mxu0 %v7897_v62  ;;  %9915 = vmatprep.mubr.f32.mxu0 %v12371_v3  ;;  %v12392_v19 = vmax.f32 %v9823_v9, 0.0  ;;  %v7885_v62 = vld [vmem:[%s16452_s2 + $0x190] sm:$0xff] }
  0xdc   :  { %9978 = vmatprep.subr.mxu0 %v7896_v7  ;;  %v186_v15 = vpop.f32.mrf.mxu1  ;;  %9916 = vmatmul.mubr.f32.gmra.mxu0 %v12365_v60  ;;  %v7869_v9 = vld [vmem:[%s16452_s2 + $0x110] sm:$0xff] }
  0xdd   :  { %v12384_v16 = vmax.f32 %v186_v15, 0.0  ;;  %9979 = vmatpush3.msra.mxu0 %v7896_v7  ;;  %v12387_v17 = vsel %vm278_vm1, %v280_v59, %v282_v13  ;;  %v12390_v18 = vsel %vm278_vm1, %v282_v13, %v284_v11  ;;  %v288_v29 = vrot.slane %v12392_v19, 1  ;;  %v7886_v59 = vld [vmem:[%s16452_s2 + $0x198] sm:$0xff]  ;;  %v7883_v7 = vld [vmem:[%s16452_s2 + $0x180] sm:$0xff] }
  0xde   :  { %9980 = vmatprep.subr.mxu0 %v7895_v14  ;;  %v9826_v20 = vpop.f32.mrf.mxu1  ;;  %9866 = vmatmul.mubr.f32.vlgmr.msra.gmra.mxu1 %v12387_v17 }
  0xdf   :  { %9928 = vmatpush3.msra.mxu1 %v7882_v53  ;;  %9981 = vmatpush3.msra.mxu0 %v7895_v14  ;;  %v286_v23 = vrot.slane %v12384_v16, 1  ;;  %v12417_v31 = vmax.f32 %v9826_v20, 0.0  ;;  %v7875_v53 = vld [vmem:[%s16452_s2 + $0x140] sm:$0xff]  ;;  %v7938_v20 = vld [vmem:[%s16452_s2 + $0x278] sm:$0xff] }
  0xe0   :  { %9868 = vmatprep.mubr.f32.mxu1 %v12390_v18  ;;  %9918 = vmatprep.mubr.f32.mxu0 %v12384_v16  ;;  %v196_v24 = vpop.f32.mrf.mxu1  ;;  %v7867_v14 = vld [vmem:[%s16452_s2 + $0x100] sm:$0xff] }
  0xe1   :  { %9929 = vmatprep.subr.mxu1 %v7881_v21  ;;  %9982 = vmatprep.subr.mxu0 %v7894_v22  ;;  %v12407_v26 = vmax.f32 %v196_v24, 0.0  ;;  %v12413_v28 = vsel %vm278_vm1, %v284_v11, %v286_v23  ;;  %v12431_v37 = vsel %vm278_vm1, %v286_v23, %v288_v29  ;;  %v292_v42 = vrot.slane %v12417_v31, 1  ;;  %v7868_v11 = vld [vmem:[%s16452_s2 + $0x108] sm:$0xff]  ;;  %v7935_v23 = vld [vmem:[%s16452_s2 + $0x260] sm:$0xff]  ;;  %v7954_v24 = vld [vmem:[%s16452_s2 + $0x2f8] sm:$0xff] }
  0xe2   :  { %9919 = vmatmul.mubr.f32.gmra.mxu0 %v12392_v19  ;;  %9930 = vmatpush3.msra.mxu1 %v7881_v21  ;;  %v9829_v30 = vpop.f32.mrf.mxu1  ;;  %v7937_v21 = vld [vmem:[%s16452_s2 + $0x270] sm:$0xff] }
  0xe3   :  { %9983 = vmatpush3.msra.mxu0 %v7894_v22  ;;  %9931 = vmatprep.subr.mxu1 %v7880_v25  ;;  %v290_v33 = vrot.slane %v12407_v26, 1  ;;  %v12444_v43 = vmax.f32 %v9829_v30, 0.0  ;;  %v7936_v22 = vld [vmem:[%s16452_s2 + $0x268] sm:$0xff]  ;;  %v7951_v30 = vld [vmem:[%s16452_s2 + $0x2e0] sm:$0xff] }
  0xe4   :  { %9984 = vmatprep.subr.mxu0 %v7893_v27  ;;  %9869 = vmatmul.mubr.f32.gmra.mxu1 %v12413_v28  ;;  %v206_v35 = vpop.f32.mrf.mxu1 }
  0xe5   :  { %9932 = vmatpush3.msra.mxu1 %v7880_v25  ;;  %9985 = vmatpush3.msra.mxu0 %v7893_v27  ;;  %v12428_v36 = vmax.f32 %v206_v35, 0.0  ;;  %v12441_v41 = vsel %vm278_vm1, %v288_v29, %v290_v33  ;;  %v12457_v47 = vsel %vm278_vm1, %v290_v33, %v292_v42  ;;  %v12463_v49 = vrot.slane %v12444_v43, 1  ;;  %v7934_v25 = vld [vmem:[%s16452_s2 + $0x258] sm:$0xff]  ;;  %v7933_v27 = vld [vmem:[%s16452_s2 + $0x250] sm:$0xff]  ;;  %v7932_v29 = vld [vmem:[%s16452_s2 + $0x248] sm:$0xff] }
  0xe6   :  { %9921 = vmatprep.mubr.f32.mxu0 %v12407_v26  ;;  %9933 = vmatprep.subr.mxu1 %v7879_v32  ;;  %v9832_v39 = vpop.f32.mrf.mxu1  ;;  %v7930_v33 = vld [vmem:[%s16452_s2 + $0x238] sm:$0xff]  ;;  %v7929_v35 = vld [vmem:[%s16452_s2 + $0x230] sm:$0xff] }
  0xe7   :  { %9986 = vmatprep.subr.mxu0 %v7892_v34  ;;  %9922 = vmatmul.mubr.f32.gmra.mxu0 %v12417_v31  ;;  %v294_v46 = vrot.slane %v12428_v36, 1  ;;  %v7927_v39 = vld [vmem:[%s16452_s2 + $0x220] sm:$0xff] }
  0xe8   :  { %9934 = vmatpush3.msra.mxu1 %v7879_v32  ;;  %9987 = vmatpush3.msra.mxu0 %v7892_v34  ;;  %v216_v13 = vpop.f32.mrf.mxu1  ;;  %v7950_v32 = vld [vmem:[%s16452_s2 + $0x2d8] sm:$0xff]  ;;  %v7949_v34 = vld [vmem:[%s16452_s2 + $0x2d0] sm:$0xff] }
  0xe9   :  { %9871 = vmatprep.mubr.f32.mxu1 %v12431_v37  ;;  %9935 = vmatprep.subr.mxu1 %v7878_v38  ;;  %v12470_v51 = vsel %vm278_vm1, %v292_v42, %v294_v46  ;;  %v12483_v54 = vsel %vm278_vm1, %v294_v46, %v12463_v49  ;;  %v234_v15 = vmax.f32 %v216_v13, 0.0  ;;  %v7945_v42 = vld [vmem:[%s16452_s2 + $0x2b0] sm:$0xff]  ;;  %v7943_v46 = vld [vmem:[%s16452_s2 + $0x2a0] sm:$0xff] }
  0xea   :  { %9988 = vmatprep.subr.mxu0 %v7891_v40  ;;  %9872 = vmatmul.mubr.f32.gmra.mxu1 %v12441_v41 }
  0xeb   :  { %9936 = vmatpush3.msra.mxu1 %v7878_v38  ;;  %9989 = vmatpush3.msra.mxu0 %v7891_v40  ;;  %v7947_v38 = vld [vmem:[%s16452_s2 + $0x2c0] sm:$0xff]  ;;  %v7946_v40 = vld [vmem:[%s16452_s2 + $0x2b8] sm:$0xff] }
  0xec   :  { %9924 = vmatprep.mubr.f32.mxu0 %v12428_v36  ;;  %9937 = vmatprep.subr.mxu1 %v7877_v44 }
  0xed   :  { %9990 = vmatprep.subr.mxu0 %v7890_v45  ;;  %9925 = vmatmul.mubr.f32.gmra.mxu0 %v12444_v43 }
  0xee   :  { %9938 = vmatpush3.msra.mxu1 %v7877_v44  ;;  %9991 = vmatpush3.msra.mxu0 %v7890_v45  ;;  %v7944_v44 = vld [vmem:[%s16452_s2 + $0x2a8] sm:$0xff] }
  0xef   :  { %9874 = vmatprep.mubr.f32.mxu1 %v12457_v47  ;;  %9939 = vmatprep.subr.mxu1 %v7876_v48  ;;  %v7924_v45 = vld [vmem:[%s16452_s2 + $0x208] sm:$0xff] }
  0xf0   :  { %9992 = vmatprep.subr.mxu0 %v7889_v50  ;;  %10006 = vmatprep.mubr.f32.mxu0 %v12387_v17  ;;  %v698_v17 = vrot.slane %v234_v15, 1 }
  0xf1   :  { %9875 = vmatmul.mubr.f32.gmra.mxu1 %v12470_v51  ;;  %9993 = vmatpush3.msra.mxu0 %v7889_v50  ;;  %v12701_v50 = vld [vmem:[%s16452_s2 + $0x378] sm:$0xff] }
  0xf2   :  { %9940 = vmatpush3.msra.mxu1 %v7876_v48  ;;  %9994 = vmatprep.subr.mxu0 %v7888_v52  ;;  %v7942_v48 = vld [vmem:[%s16452_s2 + $0x298] sm:$0xff] }
  0xf3   :  { %9941 = vmatprep.subr.mxu1 %v7875_v53  ;;  %9995 = vmatpush3.msra.mxu0 %v7888_v52  ;;  %v7939_v52 = vld [vmem:[%s16452_s2 + $0x280] sm:$0xff] }
  0xf4   :  { %9942 = vmatpush3.msra.mxu1 %v7875_v53  ;;  %9877 = vmatprep.mubr.f32.mxu1 %v12483_v54  ;;  %v12713_v53 = vld [vmem:[%s16452_s2 + $0x3f8] sm:$0xff] }
  0xf5   :  { %9943 = vmatprep.subr.mxu1 %v7874_v56  ;;  %9996 = vmatprep.subr.mxu0 %v7887_v57 }
  0xf6   :  { %9878 = vmatmul.mubr.f32.gmra.mxu1 %v12463_v49  ;;  %9997 = vmatpush3.msra.mxu0 %v7887_v57 }
  0xf7   :  { %9944 = vmatpush3.msra.mxu1 %v7874_v56  ;;  %9959 = vmatprep.mubr.f32.mxu1 %v12362_v55  ;;  %v7884_v55 = vld [vmem:[%s16452_s2 + $0x188] sm:$0xff] }
  0xf8   :  { %9945 = vmatprep.subr.mxu1 %v7873_v58  ;;  %9998 = vmatprep.subr.mxu0 %v7886_v59 }
  0xf9   :  { %9946 = vmatpush3.msra.mxu1 %v7873_v58  ;;  %9999 = vmatpush3.msra.mxu0 %v7886_v59 }
  0xfa   :  { %9947 = vmatprep.subr.mxu1 %v7872_v61  ;;  %10000 = vmatprep.subr.mxu0 %v7885_v62 }
  0xfb   :  { %9948 = vmatpush3.msra.mxu1 %v7872_v61  ;;  %10001 = vmatpush3.msra.mxu0 %v7885_v62 }
  0xfc   :  { %9949 = vmatprep.subr.mxu1 %v7871_v63  ;;  %10002 = vmatprep.subr.mxu0 %v7884_v55 }
  0xfd   :  { %9950 = vmatpush3.msra.mxu1 %v7871_v63  ;;  %10003 = vmatpush3.msra.mxu0 %v7884_v55 }
  0xfe   :  { %9951 = vmatprep.subr.mxu1 %v7870_v6  ;;  %10004 = vmatprep.subr.mxu0 %v7883_v7 }
  0xff   :  { %9952 = vmatpush3.msra.mxu1 %v7870_v6  ;;  %10005 = vmatpush3.msra.mxu0 %v7883_v7 }
 0x100   :  { %9953 = vmatprep.subr.mxu1 %v7869_v9  ;;  %10007 = vmatmul.mubr.f32.vlgmr.msra.gmra.mxu0 %v12390_v18  ;;  %v7909_v18 = vld [vmem:[%s16450_s0 + $0xb0] sm:$0xff] }
 0x101   :  { %9954 = vmatpush3.msra.mxu1 %v7869_v9  ;;  %10009 = vmatprep.mubr.f32.mxu0 %v12413_v28  ;;  %v7952_v28 = vld [vmem:[%s16452_s2 + $0x2e8] sm:$0xff] }
 0x102   :  { %9955 = vmatprep.subr.mxu1 %v7868_v11  ;;  %10055 = vmatprep.subr.mxu0 %v7938_v20 }
 0x103   :  { %9956 = vmatpush3.msra.mxu1 %v7868_v11  ;;  %10056 = vmatpush3.msra.mxu0 %v7938_v20 }
 0x104   :  { %9957 = vmatprep.subr.mxu1 %v7867_v14  ;;  %10010 = vmatmul.mubr.f32.gmra.mxu0 %v12431_v37  ;;  %v7928_v37 = vld [vmem:[%s16452_s2 + $0x228] sm:$0xff] }
 0x105   :  { %9958 = vmatpush3.msra.mxu1 %v7867_v14  ;;  %10012 = vmatprep.mubr.f32.mxu0 %v12441_v41  ;;  %v7926_v41 = vld [vmem:[%s16452_s2 + $0x218] sm:$0xff] }
 0x106   :  { %9960 = vmatmul.mubr.f32.vlgmr.msra.gmra.mxu1 %v12371_v3  ;;  %10021 = vmatprep.subr.mxu1 %v12159_v0  ;;  %v7907_v3 = vld [vmem:[%s16450_s0 + $0xa0] sm:$0xff] }
 0x107   :  { %9962 = vmatprep.mubr.f32.mxu1 %v12365_v60  ;;  %10022 = vmatpush3.msra.mxu1 %v12159_v0  ;;  %v699_v0 = vsel %vm278_vm1, %v12463_v49, %v698_v17  ;;  %v7906_v60 = vld [vmem:[%s16450_s0 + $0x98] sm:$0xff]  ;;  %v7941_v49 = vld [vmem:[%s16452_s2 + $0x290] sm:$0xff] }
 0x108   :  { %10013 = vmatmul.mubr.f32.gmra.mxu0 %v12457_v47  ;;  %10023 = vmatprep.subr.mxu1 %v12164_v1  ;;  %v7923_v47 = vld [vmem:[%s16452_s2 + $0x200] sm:$0xff] }
 0x109   :  { %10015 = vmatprep.mubr.f32.mxu0 %v12470_v51  ;;  %10024 = vmatpush3.msra.mxu1 %v12164_v1  ;;  %v7899_v1 = vld [vmem:[%s16450_s0 + $0x60] sm:$0xff]  ;;  %v7940_v51 = vld [vmem:[%s16452_s2 + $0x288] sm:$0xff] }
 0x10a   :  { %9963 = vmatmul.mubr.f32.gmra.mxu1 %v12384_v16  ;;  %10025 = vmatprep.subr.mxu1 %v12171_v2  ;;  %v7908_v16 = vld [vmem:[%s16450_s0 + $0xa8] sm:$0xff] }
 0x10b   :  { %9965 = vmatprep.mubr.f32.mxu1 %v12392_v19  ;;  %10026 = vmatpush3.msra.mxu1 %v12171_v2  ;;  %v7900_v2 = vld [vmem:[%s16450_s0 + $0x68] sm:$0xff]  ;;  %v7910_v19 = vld [vmem:[%s16450_s0 + $0xb8] sm:$0xff] }
 0x10c   :  { %10016 = vmatmul.mubr.f32.gmra.mxu0 %v12483_v54  ;;  %10027 = vmatprep.subr.mxu1 %v12182_v4 }
 0x10d   :  { %10018 = vmatprep.mubr.f32.mxu0 %v699_v0  ;;  %10028 = vmatpush3.msra.mxu1 %v12182_v4  ;;  %v7901_v4 = vld [vmem:[%s16450_s0 + $0x70] sm:$0xff] }
 0x10e   :  { %9966 = vmatmul.mubr.f32.gmra.mxu1 %v12407_v26  ;;  %10029 = vmatprep.subr.mxu1 %v12189_v5  ;;  %v7953_v26 = vld [vmem:[%s16452_s2 + $0x2f0] sm:$0xff] }
 0x10f   :  { %9968 = vmatprep.mubr.f32.mxu1 %v12417_v31  ;;  %10030 = vmatpush3.msra.mxu1 %v12189_v5  ;;  %v7902_v5 = vld [vmem:[%s16450_s0 + $0x78] sm:$0xff]  ;;  %v7931_v31 = vld [vmem:[%s16452_s2 + $0x240] sm:$0xff] }
 0x110   :  { %10031 = vmatprep.subr.mxu1 %v12202_v8  ;;  %10019 = vmatmul.mubr.f32.gmra.mxu0 %v698_v17 }
 0x111   :  { %10032 = vmatpush3.msra.mxu1 %v12202_v8  ;;  %v7903_v8 = vld [vmem:[%s16450_s0 + $0x80] sm:$0xff]  ;;  %10057 = vmatprep.subr.mxu0 %v7937_v21 }
 0x112   :  { %9969 = vmatmul.mubr.f32.gmra.mxu1 %v12428_v36  ;;  %10033 = vmatprep.subr.mxu1 %v12212_v10  ;;  %v7948_v36 = vld [vmem:[%s16452_s2 + $0x2c8] sm:$0xff] }
 0x113   :  { %9971 = vmatprep.mubr.f32.mxu1 %v12444_v43  ;;  %10034 = vmatpush3.msra.mxu1 %v12212_v10  ;;  %v7904_v10 = vld [vmem:[%s16450_s0 + $0x88] sm:$0xff]  ;;  %v7925_v43 = vld [vmem:[%s16452_s2 + $0x210] sm:$0xff] }
 0x114   :  { %10035 = vmatprep.subr.mxu1 %v12222_v12  ;;  %10058 = vmatpush3.msra.mxu0 %v7937_v21 }
 0x115   :  { %10036 = vmatpush3.msra.mxu1 %v12222_v12  ;;  %v7905_v12 = vld [vmem:[%s16450_s0 + $0x90] sm:$0xff]  ;;  %10059 = vmatprep.subr.mxu0 %v7936_v22 }
 0x116   :  { %9972 = vmatmul.mubr.f32.gmra.mxu1 %v234_v15  ;;  %10060 = vmatpush3.msra.mxu0 %v7936_v22 }
 0x117   :  { %10037 = vmatprep.mubr.msk.f32.mxu1 %vm63_vm0, %v7899_v1  ;;  %10061 = vmatprep.subr.mxu0 %v7935_v23 }
 0x118   :  { %10102 = vmatprep.subr.mxu1 %v7954_v24  ;;  %10062 = vmatpush3.msra.mxu0 %v7935_v23 }
 0x119   :  { %10063 = vmatprep.subr.mxu0 %v7934_v25 }
 0x11a   :  { %10038 = vmatmul.mubr.msk.f32.vlgmr.msra.gmra.mxu1 %vm63_vm0, %v7900_v2  ;;  %10064 = vmatpush3.msra.mxu0 %v7934_v25 }
 0x11b   :  { %10040 = vmatprep.mubr.msk.f32.mxu1 %vm63_vm0, %v7901_v4  ;;  %10103 = vmatpush3.msra.mxu1 %v7954_v24 }
 0x11c   :  { %10104 = vmatprep.subr.mxu1 %v7953_v26  ;;  %10065 = vmatprep.subr.mxu0 %v7933_v27 }
 0x11d   :  { %10105 = vmatpush3.msra.mxu1 %v7953_v26  ;;  %10066 = vmatpush3.msra.mxu0 %v7933_v27 }
 0x11e   :  { %10041 = vmatmul.mubr.msk.f32.gmra.mxu1 %vm63_vm0, %v7902_v5  ;;  %10106 = vmatprep.subr.mxu1 %v7952_v28 }
 0x11f   :  { %10043 = vmatprep.mubr.msk.f32.mxu1 %vm63_vm0, %v7903_v8  ;;  %10107 = vmatpush3.msra.mxu1 %v7952_v28 }
 0x120   :  { %10067 = vmatprep.subr.mxu0 %v7932_v29  ;;  %10108 = vmatprep.subr.mxu1 %v7951_v30 }
 0x121   :  { %10068 = vmatpush3.msra.mxu0 %v7932_v29  ;;  %10109 = vmatpush3.msra.mxu1 %v7951_v30 }
 0x122   :  { %10044 = vmatmul.mubr.msk.f32.gmra.mxu1 %vm63_vm0, %v7904_v10  ;;  %10069 = vmatprep.subr.mxu0 %v7931_v31 }
 0x123   :  { %10046 = vmatprep.mubr.msk.f32.mxu1 %vm63_vm0, %v7905_v12  ;;  %10110 = vmatprep.subr.mxu1 %v7950_v32 }
 0x124   :  { %10070 = vmatpush3.msra.mxu0 %v7931_v31  ;;  %10111 = vmatpush3.msra.mxu1 %v7950_v32 }
 0x125   :  { %10071 = vmatprep.subr.mxu0 %v7930_v33  ;;  %10112 = vmatprep.subr.mxu1 %v7949_v34 }
 0x126   :  { %10047 = vmatmul.mubr.msk.f32.gmra.mxu1 %vm63_vm0, %v7906_v60  ;;  %10072 = vmatpush3.msra.mxu0 %v7930_v33 }
 0x127   :  { %10049 = vmatprep.mubr.msk.f32.mxu1 %vm63_vm0, %v7907_v3  ;;  %10113 = vmatpush3.msra.mxu1 %v7949_v34 }
 0x128   :  { %10073 = vmatprep.subr.mxu0 %v7929_v35  ;;  %10114 = vmatprep.subr.mxu1 %v7948_v36 }
 0x129   :  { %10074 = vmatpush3.msra.mxu0 %v7929_v35  ;;  %10115 = vmatpush3.msra.mxu1 %v7948_v36 }
 0x12a   :  { %10050 = vmatmul.mubr.msk.f32.gmra.mxu1 %vm63_vm0, %v7908_v16  ;;  %10075 = vmatprep.subr.mxu0 %v7928_v37 }
 0x12b   :  { %10052 = vmatprep.mubr.msk.f32.mxu1 %vm63_vm0, %v7909_v18  ;;  %10116 = vmatprep.subr.mxu1 %v7947_v38 }
 0x12c   :  { %10076 = vmatpush3.msra.mxu0 %v7928_v37  ;;  %10117 = vmatpush3.msra.mxu1 %v7947_v38 }
 0x12d   :  { %10077 = vmatprep.subr.mxu0 %v7927_v39  ;;  %10118 = vmatprep.subr.mxu1 %v7946_v40 }
 0x12e   :  { %10053 = vmatmul.mubr.msk.f32.gmra.mxu1 %vm63_vm0, %v7910_v19  ;;  %10078 = vmatpush3.msra.mxu0 %v7927_v39 }
 0x12f   :  { %10119 = vmatpush3.msra.mxu1 %v7946_v40  ;;  %10079 = vmatprep.subr.mxu0 %v7926_v41 }
 0x130   :  { %10120 = vmatprep.subr.mxu1 %v7945_v42  ;;  %10080 = vmatpush3.msra.mxu0 %v7926_v41 }
 0x131   :  { %10121 = vmatpush3.msra.mxu1 %v7945_v42  ;;  %10081 = vmatprep.subr.mxu0 %v7925_v43 }
 0x132   :  { %10122 = vmatprep.subr.mxu1 %v7944_v44  ;;  %10082 = vmatpush3.msra.mxu0 %v7925_v43 }
 0x133   :  { %10123 = vmatpush3.msra.mxu1 %v7944_v44  ;;  %10083 = vmatprep.subr.mxu0 %v7924_v45 }
 0x134   :  { %10124 = vmatprep.subr.mxu1 %v7943_v46  ;;  %10084 = vmatpush3.msra.mxu0 %v7924_v45 }
 0x135   :  { %10125 = vmatpush3.msra.mxu1 %v7943_v46  ;;  %10085 = vmatprep.subr.mxu0 %v7923_v47 }
 0x136   :  { %10126 = vmatprep.subr.mxu1 %v7942_v48  ;;  %10086 = vmatpush3.msra.mxu0 %v7923_v47 }
 0x137   :  { %10127 = vmatpush3.msra.mxu1 %v7942_v48  ;;  %10149 = vmatprep.subr.mxu0 %v12701_v50 }
 0x138   :  { %10128 = vmatprep.subr.mxu1 %v7941_v49 }
 0x139   :  { %10129 = vmatpush3.msra.mxu1 %v7941_v49 }
 0x13a   :  { %10130 = vmatprep.subr.mxu1 %v7940_v51 }
 0x13b   :  { %10131 = vmatpush3.msra.mxu1 %v7940_v51 }
 0x13c   :  { %10132 = vmatprep.subr.mxu1 %v7939_v52 }
 0x13d   :  { %10133 = vmatpush3.msra.mxu1 %v7939_v52  ;;  %v7969_v52 = vld [vmem:[%s16452_s2 + $0x370] sm:$0xff] }
 0x13e   :  { %10196 = vmatprep.subr.mxu1 %v12713_v53 }
 0x198   :  { %v9914_v54 = vpop.f32.mrf.mxu0 }
 0x19a   :  { %v12716_v56 = vpop.f32.mrf.mxu0 }
 0x19c   :  { %v9917_v59 = vpop.f32.mrf.mxu0 }
 0x19e   :  { %v9867_v57 = vpop.f32.mrf.mxu1  ;;  %v12720_v62 = vpop.f32.mrf.mxu0 }
 0x19f   :  { %v495_v58 = vadd.f32 %v9914_v54, %v9867_v57 }
 0x1a0   :  { %v12718_v61 = vpop.f32.mrf.mxu1 }
 0x1a2   :  { %v9920_v7 = vpop.f32.mrf.mxu0 }
 0x1a4   :  { %v9870_v63 = vpop.f32.mrf.mxu1  ;;  %v12724_v11 = vpop.f32.mrf.mxu0 }
 0x1a5   :  { %v505_v55 = vadd.f32 %v9917_v59, %v9870_v63  ;;  %v7968_v63 = vld [vmem:[%s16452_s2 + $0x368] sm:$0xff] }
 0x1a6   :  { %v12722_v6 = vpop.f32.mrf.mxu1 }
 0x1a7   :  { %v9923_v15 = vpop.f32.mrf.mxu0 }
 0x1a9   :  { %v12728_v1 = vpop.f32.mrf.mxu0 }
 0x1aa   :  { %v9873_v9 = vpop.f32.mrf.mxu1 }
 0x1ab   :  { %v515_v13 = vadd.f32 %v9920_v7, %v9873_v9  ;;  %v7967_v9 = vld [vmem:[%s16452_s2 + $0x360] sm:$0xff] }
 0x1ac   :  { %v12726_v14 = vpop.f32.mrf.mxu1 }
 0x1ad   :  { %v9926_v5 = vpop.f32.mrf.mxu0 }
 0x1af   :  { %v12732_v10 = vpop.f32.mrf.mxu0 }
 0x1b1   :  { %v9876_v17 = vpop.f32.mrf.mxu1 }
 0x1b2   :  { %v525_v0 = vadd.f32 %v9923_v15, %v9876_v17 }
 0x1b3   :  { %v12730_v2 = vpop.f32.mrf.mxu1 }
 0x1b6   :  { %v9879_v4 = vpop.f32.mrf.mxu1 }
 0x1b7   :  { %v535_v8 = vadd.f32 %v9926_v5, %v9879_v4  ;;  %v7966_v4 = vld [vmem:[%s16452_s2 + $0x358] sm:$0xff] }
 0x1b8   :  { %v12736_v3 = vpop.f32.mrf.mxu1 }
 0x1c0   :  { %v10008_v12 = vpop.f32.mrf.mxu0 }
 0x1c2   :  { %v12734_v60 = vpop.f32.mrf.mxu0 }
 0x1c4   :  { %v10011_v16 = vpop.f32.mrf.mxu0 }
 0x1c6   :  { %v9961_v18 = vpop.f32.mrf.mxu1  ;;  %v12738_v19 = vpop.f32.mrf.mxu0 }
 0x1c7   :  { %v671_v20 = vadd.f32 %v9961_v18, %v495_v58 }
 0x1c8   :  { %v12740_v21 = vpop.f32.mrf.mxu1  ;;  %v10014_v23 = vpop.f32.mrf.mxu0 }
 0x1c9   :  { %v12742_v22 = vadd.f32 %v10008_v12, %v671_v20  ;;  %v7965_v20 = vld [vmem:[%s16452_s2 + $0x350] sm:$0xff] }
 0x1ca   :  { %v9964_v24 = vpop.f32.mrf.mxu1  ;;  %v12748_v28 = vpop.f32.mrf.mxu0 }
 0x1cb   :  { %v673_v25 = vadd.f32 %v9964_v24, %v505_v55 }
 0x1cc   :  { %v12744_v26 = vpop.f32.mrf.mxu1  ;;  %v10017_v33 = vpop.f32.mrf.mxu0 }
 0x1cd   :  { %v12746_v27 = vadd.f32 %v10011_v16, %v673_v25 }
 0x1ce   :  { %v9967_v29 = vpop.f32.mrf.mxu1  ;;  %v12758_v38 = vpop.f32.mrf.mxu0 }
 0x1cf   :  { %v675_v30 = vadd.f32 %v9967_v29, %v515_v13 }
 0x1d0   :  { %v12750_v31 = vpop.f32.mrf.mxu1  ;;  %v10020_v41 = vpop.f32.mrf.mxu0 }
 0x1d1   :  { %v12752_v32 = vadd.f32 %v10014_v23, %v675_v30 }
 0x1d2   :  { %v9970_v34 = vpop.f32.mrf.mxu1 }
 0x1d3   :  { %v677_v35 = vadd.f32 %v9970_v34, %v525_v0 }
 0x1d4   :  { %v12754_v36 = vpop.f32.mrf.mxu1 }
 0x1d5   :  { %v12756_v37 = vadd.f32 %v10017_v33, %v677_v35  ;;  %v7964_v33 = vld [vmem:[%s16452_s2 + $0x348] sm:$0xff]  ;;  %v7983_v35 = vld [vmem:[%s16452_s2 + $0x3e0] sm:$0xff] }
 0x1d6   :  { %v9973_v39 = vpop.f32.mrf.mxu1 }
 0x1d7   :  { %v679_v40 = vadd.f32 %v9973_v39, %v535_v8  ;;  %v7985_v8 = vld [vmem:[%s16452_s2 + $0x3f0] sm:$0xff] }
 0x1d8   :  { %v12760_v42 = vpop.f32.mrf.mxu1 }
 0x1d9   :  { %v12762_v43 = vadd.f32 %v10020_v41, %v679_v40 }
 0x1da   :  { %v10039_v44 = vpop.f32.mrf.mxu1 }
 0x1db   :  { %v12764_v45 = vmax.f32 %v10039_v44, 0.0  ;;  %v7963_v44 = vld [vmem:[%s16452_s2 + $0x340] sm:$0xff] }
 0x1dc   :  { %v942_v46 = vpop.f32.mrf.mxu1 }
 0x1dd   :  { %v1000_v47 = vmax.f32 %v942_v46, 0.0  ;;  %v1181_v49 = vrot.slane %v12764_v45, 1 }
 0x1de   :  { %v10042_v48 = vpop.f32.mrf.mxu1 }
 0x1df   :  { %v1180_v51 = vrot.slane %v1000_v47, 1  ;;  %10087 = vmatprep.mubr.f32.mxu0 %v1000_v47  ;;  %v12770_v54 = vmax.f32 %v10042_v48, 0.0  ;;  %v7982_v47 = vld [vmem:[%s16452_s2 + $0x3d8] sm:$0xff] }
 0x1e0   :  { %v952_v57 = vpop.f32.mrf.mxu1  ;;  %10088 = vmatmul.mubr.f32.vlgmr.msra.gmra.mxu0 %v12764_v45 }
 0x1e1   :  { %v12773_v58 = vmax.f32 %v952_v57, 0.0  ;;  %10150 = vmatpush3.msra.mxu0 %v12701_v50  ;;  %v1182_v59 = vsel %vm278_vm1, %v1180_v51, %v1181_v49  ;;  %v1185_v50 = vrot.slane %v12770_v54, 1  ;;  %v7981_v57 = vld [vmem:[%s16452_s2 + $0x3d0] sm:$0xff] }
 0x1e2   :  { %10151 = vmatprep.subr.mxu0 %v7969_v52  ;;  %v10045_v55 = vpop.f32.mrf.mxu1  ;;  %10134 = vmatprep.mubr.f32.mxu1 %v1182_v59 }
 0x1e3   :  { %v1183_v7 = vrot.slane %v12773_v58, 1  ;;  %10152 = vmatpush3.msra.mxu0 %v7969_v52  ;;  %10090 = vmatprep.mubr.f32.mxu0 %v12773_v58  ;;  %v12787_v15 = vmax.f32 %v10045_v55, 0.0  ;;  %v7962_v52 = vld [vmem:[%s16452_s2 + $0x338] sm:$0xff]  ;;  %v7961_v55 = vld [vmem:[%s16452_s2 + $0x330] sm:$0xff] }
 0x1e4   :  { %10153 = vmatprep.subr.mxu0 %v7968_v63  ;;  %v962_v13 = vpop.f32.mrf.mxu1  ;;  %10091 = vmatmul.mubr.f32.gmra.mxu0 %v12770_v54 }
 0x1e5   :  { %v12789_v17 = vmax.f32 %v962_v13, 0.0  ;;  %10154 = vmatpush3.msra.mxu0 %v7968_v63  ;;  %v12792_v0 = vsel %vm278_vm1, %v1181_v49, %v1183_v7  ;;  %v12805_v18 = vsel %vm278_vm1, %v1183_v7, %v1185_v50  ;;  %v1189_v25 = vrot.slane %v12787_v15, 1  ;;  %v7960_v13 = vld [vmem:[%s16452_s2 + $0x328] sm:$0xff] }
 0x1e6   :  { %10155 = vmatprep.subr.mxu0 %v7967_v9  ;;  %v10048_v5 = vpop.f32.mrf.mxu1  ;;  %10135 = vmatmul.mubr.f32.vlgmr.msra.gmra.mxu1 %v12792_v0 }
 0x1e7   :  { %10156 = vmatpush3.msra.mxu0 %v7967_v9  ;;  %10197 = vmatpush3.msra.mxu1 %v12713_v53  ;;  %v1187_v12 = vrot.slane %v12789_v17, 1  ;;  %v7984_v53 = vld [vmem:[%s16452_s2 + $0x3e8] sm:$0xff]  ;;  %v12820_v30 = vmax.f32 %v10048_v5, 0.0 }
 0x1e8   :  { %10093 = vmatprep.mubr.f32.mxu0 %v12789_v17  ;;  %10157 = vmatprep.subr.mxu0 %v7966_v4  ;;  %v972_v16 = vpop.f32.mrf.mxu1  ;;  %v7980_v9 = vld [vmem:[%s16452_s2 + $0x3c8] sm:$0xff] }
 0x1e9   :  { %10198 = vmatprep.subr.mxu1 %v7985_v8  ;;  %v12810_v23 = vmax.f32 %v972_v16, 0.0  ;;  %10094 = vmatmul.mubr.f32.gmra.mxu0 %v12787_v15  ;;  %v12817_v24 = vsel %vm278_vm1, %v1185_v50, %v1187_v12  ;;  %v12835_v41 = vsel %vm278_vm1, %v1187_v12, %v1189_v25  ;;  %v1193_v49 = vrot.slane %v12820_v30, 1  ;;  %v7958_v12 = vld [vmem:[%s16452_s2 + $0x318] sm:$0xff]  ;;  %v7977_v16 = vld [vmem:[%s16452_s2 + $0x3b0] sm:$0xff] }
 0x1ea   :  { %10158 = vmatpush3.msra.mxu0 %v7966_v4  ;;  %10199 = vmatpush3.msra.mxu1 %v7985_v8  ;;  %v10051_v29 = vpop.f32.mrf.mxu1  ;;  %v7979_v4 = vld [vmem:[%s16452_s2 + $0x3c0] sm:$0xff] }
 0x1eb   :  { %10137 = vmatprep.mubr.f32.mxu1 %v12805_v18  ;;  %10159 = vmatprep.subr.mxu0 %v7965_v20  ;;  %v1191_v34 = vrot.slane %v12810_v23, 1  ;;  %v12848_v51 = vmax.f32 %v10051_v29, 0.0  ;;  %v7959_v8 = vld [vmem:[%s16452_s2 + $0x320] sm:$0xff] }
 0x1ec   :  { %10200 = vmatprep.subr.mxu1 %v7984_v53  ;;  %10138 = vmatmul.mubr.f32.gmra.mxu1 %v12817_v24  ;;  %v982_v39 = vpop.f32.mrf.mxu1  ;;  %v7975_v29 = vld [vmem:[%s16452_s2 + $0x3a0] sm:$0xff] }
 0x1ed   :  { %10160 = vmatpush3.msra.mxu0 %v7965_v20  ;;  %10201 = vmatpush3.msra.mxu1 %v7984_v53  ;;  %v12832_v40 = vmax.f32 %v982_v39, 0.0  ;;  %v12845_v48 = vsel %vm278_vm1, %v1189_v25, %v1191_v34  ;;  %v12861_v63 = vsel %vm278_vm1, %v1191_v34, %v1193_v49  ;;  %v12867_v7 = vrot.slane %v12848_v51, 1  ;;  %v7957_v20 = vld [vmem:[%s16452_s2 + $0x310] sm:$0xff]  ;;  %v7976_v53 = vld [vmem:[%s16452_s2 + $0x3a8] sm:$0xff]  ;;  %v12932_v39 = vld [vmem:[%s16451_s1 + $0x38] sm:$0xff] }
 0x1ee   :  { %10096 = vmatprep.mubr.f32.mxu0 %v12810_v23  ;;  %10161 = vmatprep.subr.mxu0 %v7964_v33  ;;  %v10054_v46 = vpop.f32.mrf.mxu1  ;;  %v7956_v25 = vld [vmem:[%s16452_s2 + $0x308] sm:$0xff]  ;;  %v7973_v34 = vld [vmem:[%s16452_s2 + $0x390] sm:$0xff] }
 0x1ef   :  { %10202 = vmatprep.subr.mxu1 %v7983_v35  ;;  %10097 = vmatmul.mubr.f32.gmra.mxu0 %v12820_v30  ;;  %v1195_v59 = vrot.slane %v12832_v40, 1 }
 0x1f0   :  { %10162 = vmatpush3.msra.mxu0 %v7964_v33  ;;  %10203 = vmatpush3.msra.mxu1 %v7983_v35  ;;  %v7955_v33 = vld [vmem:[%s16452_s2 + $0x300] sm:$0xff]  ;;  %v7972_v35 = vld [vmem:[%s16452_s2 + $0x388] sm:$0xff]  ;;  %v992_v46 = vpop.f32.mrf.mxu1 }
 0x1f1   :  { %10140 = vmatprep.mubr.f32.mxu1 %v12835_v41  ;;  %10163 = vmatprep.subr.mxu0 %v7963_v44  ;;  %v12874_v50 = vsel %vm278_vm1, %v1193_v49, %v1195_v59  ;;  %v12887_v5 = vsel %vm278_vm1, %v1195_v59, %v12867_v7  ;;  %v7989_v49 = vld [vmem:[%s16450_s0 + $0xd0] sm:$0xff] }
 0x1f2   :  { %10204 = vmatprep.subr.mxu1 %v7982_v47  ;;  %10141 = vmatmul.mubr.f32.gmra.mxu1 %v12845_v48  ;;  %v7993_v59 = vld [vmem:[%s16450_s0 + $0xf0] sm:$0xff] }
 0x1f3   :  { %10164 = vmatpush3.msra.mxu0 %v7963_v44  ;;  %10205 = vmatpush3.msra.mxu1 %v7982_v47  ;;  %v12943_v44 = vld [vmem:[%s16451_s1 + $0x30] sm:$0xff]  ;;  %v7988_v47 = vld [vmem:[%s16450_s0 + $0xc8] sm:$0xff] }
 0x1f4   :  { %10099 = vmatprep.mubr.f32.mxu0 %v12832_v40  ;;  %10165 = vmatprep.subr.mxu0 %v7962_v52 }
 0x1f5   :  { %10206 = vmatprep.subr.mxu1 %v7981_v57  ;;  %10100 = vmatmul.mubr.f32.gmra.mxu0 %v12848_v51 }
 0x1f6   :  { %10166 = vmatpush3.msra.mxu0 %v7962_v52  ;;  %10207 = vmatpush3.msra.mxu1 %v7981_v57  ;;  %v7991_v52 = vld [vmem:[%s16450_s0 + $0xe0] sm:$0xff]  ;;  %v7992_v57 = vld [vmem:[%s16450_s0 + $0xe8] sm:$0xff] }
 0x1f7   :  { %10143 = vmatprep.mubr.f32.mxu1 %v12861_v63  ;;  %10167 = vmatprep.subr.mxu0 %v7961_v55 }
 0x1f8   :  { %10181 = vmatprep.mubr.f32.mxu0 %v12764_v45  ;;  %10208 = vmatprep.subr.mxu1 %v7980_v9  ;;  %v7978_v45 = vld [vmem:[%s16452_s2 + $0x3b8] sm:$0xff] }
 0x1f9   :  { %10144 = vmatmul.mubr.f32.gmra.mxu1 %v12874_v50  ;;  %10168 = vmatpush3.msra.mxu0 %v7961_v55  ;;  %v7995_v55 = vld [vmem:[%s16450_s0 + $0x100] sm:$0xff] }
 0x1fa   :  { %10209 = vmatpush3.msra.mxu1 %v7980_v9  ;;  %10169 = vmatprep.subr.mxu0 %v7960_v13  ;;  %v7997_v9 = vld [vmem:[%s16450_s0 + $0x110] sm:$0xff] }
 0x1fb   :  { %10210 = vmatprep.subr.mxu1 %v7979_v4  ;;  %10170 = vmatpush3.msra.mxu0 %v7960_v13  ;;  %v8026_v13 = vld [vmem:[%s16452_s2 + $0x478] sm:$0xff] }
 0x1fc   :  { %10211 = vmatpush3.msra.mxu1 %v7979_v4  ;;  %10146 = vmatprep.mubr.f32.mxu1 %v12887_v5  ;;  %v8025_v4 = vld [vmem:[%s16452_s2 + $0x470] sm:$0xff] }
 0x1fd   :  { %10171 = vmatprep.subr.mxu0 %v7959_v8  ;;  %10212 = vmatprep.subr.mxu1 %v7978_v45 }
 0x1fe   :  { %10147 = vmatmul.mubr.f32.gmra.mxu1 %v12867_v7  ;;  %10172 = vmatpush3.msra.mxu0 %v7959_v8  ;;  %v8024_v8 = vld [vmem:[%s16452_s2 + $0x468] sm:$0xff] }
 0x1ff   :  { %10213 = vmatpush3.msra.mxu1 %v7978_v45  ;;  %10173 = vmatprep.subr.mxu0 %v7958_v12  ;;  %v8023_v45 = vld [vmem:[%s16452_s2 + $0x460] sm:$0xff] }
 0x200   :  { %10214 = vmatprep.subr.mxu1 %v7977_v16  ;;  %10228 = vmatprep.mubr.f32.mxu1 %v12792_v0  ;;  %v7974_v0 = vld [vmem:[%s16452_s2 + $0x398] sm:$0xff] }
 0x201   :  { %10174 = vmatpush3.msra.mxu0 %v7958_v12  ;;  %10215 = vmatpush3.msra.mxu1 %v7977_v16  ;;  %v8022_v12 = vld [vmem:[%s16452_s2 + $0x458] sm:$0xff]  ;;  %v8041_v16 = vld [vmem:[%s16452_s2 + $0x4f0] sm:$0xff] }
 0x202   :  { %10175 = vmatprep.subr.mxu0 %v7957_v20  ;;  %10216 = vmatprep.subr.mxu1 %v7976_v53 }
 0x203   :  { %10176 = vmatpush3.msra.mxu0 %v7957_v20  ;;  %10217 = vmatpush3.msra.mxu1 %v7976_v53  ;;  %v8021_v20 = vld [vmem:[%s16452_s2 + $0x450] sm:$0xff]  ;;  %v8040_v53 = vld [vmem:[%s16452_s2 + $0x4e8] sm:$0xff] }
 0x204   :  { %10177 = vmatprep.subr.mxu0 %v7956_v25  ;;  %10218 = vmatprep.subr.mxu1 %v7975_v29 }
 0x205   :  { %10178 = vmatpush3.msra.mxu0 %v7956_v25  ;;  %10219 = vmatpush3.msra.mxu1 %v7975_v29  ;;  %v8020_v25 = vld [vmem:[%s16452_s2 + $0x448] sm:$0xff]  ;;  %v8039_v29 = vld [vmem:[%s16452_s2 + $0x4e0] sm:$0xff] }
 0x206   :  { %10179 = vmatprep.subr.mxu0 %v7955_v33  ;;  %10220 = vmatprep.subr.mxu1 %v7974_v0 }
 0x207   :  { %10180 = vmatpush3.msra.mxu0 %v7955_v33  ;;  %10221 = vmatpush3.msra.mxu1 %v7974_v0  ;;  %v8019_v33 = vld [vmem:[%s16452_s2 + $0x440] sm:$0xff]  ;;  %v8038_v0 = vld [vmem:[%s16452_s2 + $0x4d8] sm:$0xff] }
 0x208   :  { %10182 = vmatmul.mubr.f32.vlgmr.msra.gmra.mxu0 %v12773_v58  ;;  %10222 = vmatprep.subr.mxu1 %v7973_v34  ;;  %v7971_v58 = vld [vmem:[%s16452_s2 + $0x380] sm:$0xff] }
 0x209   :  { %10243 = vmatprep.subr.mxu0 %v12932_v39  ;;  %10184 = vmatprep.mubr.f32.mxu0 %v12770_v54  ;;  %v12952_v54 = vld [vmem:[%s16451_s1 + $0x28] sm:$0xff] }
 0x20a   :  { %10223 = vmatpush3.msra.mxu1 %v7973_v34  ;;  %10244 = vmatpush3.msra.mxu0 %v12932_v39  ;;  %v8018_v34 = vld [vmem:[%s16452_s2 + $0x438] sm:$0xff] }
 0x20b   :  { %10224 = vmatprep.subr.mxu1 %v7972_v35  ;;  %10245 = vmatprep.subr.mxu0 %v12943_v44 }
 0x20c   :  { %10225 = vmatpush3.msra.mxu1 %v7972_v35  ;;  %10185 = vmatmul.mubr.f32.gmra.mxu0 %v12789_v17  ;;  %v1010_v17 = vmax.f32 %v992_v46, 0.0  ;;  %v8037_v35 = vld [vmem:[%s16452_s2 + $0x4d0] sm:$0xff]  ;;  %v8036_v46 = vld [vmem:[%s16452_s2 + $0x4c8] sm:$0xff] }
 0x20d   :  { %10226 = vmatprep.subr.mxu1 %v7971_v58  ;;  %10246 = vmatpush3.msra.mxu0 %v12943_v44 }
 0x20e   :  { %10187 = vmatprep.mubr.f32.mxu0 %v12787_v15  ;;  %10227 = vmatpush3.msra.mxu1 %v7971_v58  ;;  %v12962_v15 = vld [vmem:[%s16451_s1 + $0x20] sm:$0xff]  ;;  %v8017_v58 = vld [vmem:[%s16452_s2 + $0x430] sm:$0xff] }
 0x20f   :  { %10247 = vmatprep.subr.mxu0 %v12952_v54  ;;  %10229 = vmatmul.mubr.f32.vlgmr.msra.gmra.mxu1 %v12805_v18  ;;  %v12971_v18 = vld [vmem:[%s16451_s1 + $0x18] sm:$0xff] }
 0x210   :  { %10248 = vmatpush3.msra.mxu0 %v12952_v54  ;;  %10231 = vmatprep.mubr.f32.mxu1 %v12817_v24  ;;  %v1494_v24 = vrot.slane %v1010_v17, 1 }
 0x211   :  { %10188 = vmatmul.mubr.f32.gmra.mxu0 %v12810_v23  ;;  %10249 = vmatprep.subr.mxu0 %v12962_v15  ;;  %v12980_v23 = vld [vmem:[%s16451_s1 + $0x10] sm:$0xff] }
 0x212   :  { %10190 = vmatprep.mubr.f32.mxu0 %v12820_v30  ;;  %10250 = vmatpush3.msra.mxu0 %v12962_v15  ;;  %v12989_v30 = vld [vmem:[%s16451_s1 + $0x8] sm:$0xff] }
 0x213   :  { %10232 = vmatmul.mubr.f32.gmra.mxu1 %v12835_v41  ;;  %10251 = vmatprep.subr.mxu0 %v12971_v18  ;;  %v13000_v41 = vld [vmem:[%s16451_s1] sm:$0xff] }
 0x214   :  { %10234 = vmatprep.mubr.f32.mxu1 %v12845_v48  ;;  %10252 = vmatpush3.msra.mxu0 %v12971_v18  ;;  %v1495_v48 = vsel %vm278_vm1, %v12867_v7, %v1494_v24  ;;  %v7996_v7 = vld [vmem:[%s16450_s0 + $0x108] sm:$0xff] }
 0x215   :  { %10191 = vmatmul.mubr.f32.gmra.mxu0 %v12832_v40  ;;  %10253 = vmatprep.subr.mxu0 %v12980_v23  ;;  %v7987_v40 = vld [vmem:[%s16450_s0 + $0xc0] sm:$0xff] }
 0x216   :  { %10193 = vmatprep.mubr.f32.mxu0 %v12848_v51  ;;  %10254 = vmatpush3.msra.mxu0 %v12980_v23  ;;  %v7990_v51 = vld [vmem:[%s16450_s0 + $0xd8] sm:$0xff] }
 0x217   :  { %10235 = vmatmul.mubr.f32.gmra.mxu1 %v12861_v63  ;;  %10255 = vmatprep.subr.mxu0 %v12989_v30  ;;  %v7994_v63 = vld [vmem:[%s16450_s0 + $0xf8] sm:$0xff] }
 0x218   :  { %10237 = vmatprep.mubr.f32.mxu1 %v12874_v50  ;;  %10256 = vmatpush3.msra.mxu0 %v12989_v30  ;;  %v7998_v50 = vld [vmem:[%s16450_s0 + $0x118] sm:$0xff] }
 0x219   :  { %10194 = vmatmul.mubr.f32.gmra.mxu0 %v1010_v17  ;;  %10257 = vmatprep.subr.mxu0 %v13000_v41  ;;  %v8016_v17 = vld [vmem:[%s16452_s2 + $0x428] sm:$0xff] }
 0x21a   :  { %10258 = vmatpush3.msra.mxu0 %v13000_v41  ;;  %10259 = vmatprep.mubr.msk.f32.mxu0 %vm63_vm0, %v7987_v40  ;;  %v8015_v40 = vld [vmem:[%s16452_s2 + $0x420] sm:$0xff] }
 0x21b   :  { %10238 = vmatmul.mubr.f32.gmra.mxu1 %v12887_v5  ;;  %10277 = vmatprep.subr.mxu1 %v8026_v13  ;;  %v8042_v5 = vld [vmem:[%s16452_s2 + $0x4f8] sm:$0xff] }
 0x21c   :  { %10240 = vmatprep.mubr.f32.mxu1 %v1495_v48  ;;  %10278 = vmatpush3.msra.mxu1 %v8026_v13  ;;  %v8014_v48 = vld [vmem:[%s16452_s2 + $0x418] sm:$0xff]  ;;  %v8027_v13 = vld [vmem:[%s16452_s2 + $0x480] sm:$0xff] }
 0x21d   :  { %10260 = vmatmul.mubr.msk.f32.vlgmr.msra.gmra.mxu0 %vm63_vm0, %v7988_v47  ;;  %10324 = vmatprep.subr.mxu0 %v8042_v5  ;;  %v8034_v47 = vld [vmem:[%s16452_s2 + $0x4b8] sm:$0xff] }
 0x21e   :  { %10262 = vmatprep.mubr.msk.f32.mxu0 %vm63_vm0, %v7989_v49  ;;  %10279 = vmatprep.subr.mxu1 %v8025_v4  ;;  %v8033_v49 = vld [vmem:[%s16452_s2 + $0x4b0] sm:$0xff] }
 0x21f   :  { %10241 = vmatmul.mubr.f32.gmra.mxu1 %v1494_v24  ;;  %10325 = vmatpush3.msra.mxu0 %v8042_v5  ;;  %v8035_v24 = vld [vmem:[%s16452_s2 + $0x4c0] sm:$0xff]  ;;  %v13160_v5 = vpop.f32.mrf.mxu0 }
 0x220   :  { %10280 = vmatpush3.msra.mxu1 %v8025_v4  ;;  %10326 = vmatprep.subr.mxu0 %v8041_v16  ;;  %v13157_v4 = vld [vmem:[%s16452_s2 + $0x5f8] sm:$0xff]  ;;  %16494 = vst [vmem:[#allocation6_spill] sm:$0xff] %v13160_v5 }
 0x221   :  { %10263 = vmatmul.mubr.msk.f32.gmra.mxu0 %vm63_vm0, %v7990_v51  ;;  %10281 = vmatprep.subr.mxu1 %v8024_v8  ;;  %v8013_v51 = vld [vmem:[%s16452_s2 + $0x410] sm:$0xff] }
 0x222   :  { %10265 = vmatprep.mubr.msk.f32.mxu0 %vm63_vm0, %v7991_v52  ;;  %10282 = vmatpush3.msra.mxu1 %v8024_v8  ;;  %v8032_v52 = vld [vmem:[%s16452_s2 + $0x4a8] sm:$0xff] }
 0x223   :  { %10283 = vmatprep.subr.mxu1 %v8023_v45  ;;  %10327 = vmatpush3.msra.mxu0 %v8041_v16 }
 0x224   :  { %10284 = vmatpush3.msra.mxu1 %v8023_v45  ;;  %10328 = vmatprep.subr.mxu0 %v8040_v53 }
 0x225   :  { %10266 = vmatmul.mubr.msk.f32.gmra.mxu0 %vm63_vm0, %v7992_v57  ;;  %10285 = vmatprep.subr.mxu1 %v8022_v12  ;;  %v8012_v57 = vld [vmem:[%s16452_s2 + $0x408] sm:$0xff] }
 0x226   :  { %10268 = vmatprep.mubr.msk.f32.mxu0 %vm63_vm0, %v7993_v59  ;;  %10286 = vmatpush3.msra.mxu1 %v8022_v12  ;;  %v8031_v59 = vld [vmem:[%s16452_s2 + $0x4a0] sm:$0xff] }
 0x227   :  { %10287 = vmatprep.subr.mxu1 %v8021_v20  ;;  %10329 = vmatpush3.msra.mxu0 %v8040_v53 }
 0x228   :  { %10288 = vmatpush3.msra.mxu1 %v8021_v20  ;;  %10330 = vmatprep.subr.mxu0 %v8039_v29 }
 0x229   :  { %10269 = vmatmul.mubr.msk.f32.gmra.mxu0 %vm63_vm0, %v7994_v63  ;;  %10289 = vmatprep.subr.mxu1 %v8020_v25  ;;  %v8011_v63 = vld [vmem:[%s16452_s2 + $0x400] sm:$0xff] }
 0x22a   :  { %10271 = vmatprep.mubr.msk.f32.mxu0 %vm63_vm0, %v7995_v55  ;;  %10290 = vmatpush3.msra.mxu1 %v8020_v25  ;;  %v8030_v55 = vld [vmem:[%s16452_s2 + $0x498] sm:$0xff] }
 0x22b   :  { %10331 = vmatpush3.msra.mxu0 %v8039_v29  ;;  %10291 = vmatprep.subr.mxu1 %v8019_v33 }
 0x22c   :  { %10332 = vmatprep.subr.mxu0 %v8038_v0  ;;  %10292 = vmatpush3.msra.mxu1 %v8019_v33 }
 0x22d   :  { %10272 = vmatmul.mubr.msk.f32.gmra.mxu0 %vm63_vm0, %v7996_v7  ;;  %10293 = vmatprep.subr.mxu1 %v8018_v34  ;;  %v8029_v7 = vld [vmem:[%s16452_s2 + $0x490] sm:$0xff] }
 0x22e   :  { %10274 = vmatprep.mubr.msk.f32.mxu0 %vm63_vm0, %v7997_v9  ;;  %10333 = vmatpush3.msra.mxu0 %v8038_v0  ;;  %v13145_v9 = vld [vmem:[%s16452_s2 + $0x578] sm:$0xff] }
 0x22f   :  { %10334 = vmatprep.subr.mxu0 %v8037_v35  ;;  %10294 = vmatpush3.msra.mxu1 %v8018_v34 }
 0x230   :  { %10335 = vmatpush3.msra.mxu0 %v8037_v35  ;;  %10295 = vmatprep.subr.mxu1 %v8017_v58 }
 0x231   :  { %10275 = vmatmul.mubr.msk.f32.gmra.mxu0 %vm63_vm0, %v7998_v50  ;;  %10336 = vmatprep.subr.mxu0 %v8036_v46  ;;  %v8028_v50 = vld [vmem:[%s16452_s2 + $0x488] sm:$0xff] }
 0x232   :  { %10296 = vmatpush3.msra.mxu1 %v8017_v58  ;;  %10337 = vmatpush3.msra.mxu0 %v8036_v46 }
 0x233   :  { %10297 = vmatprep.subr.mxu1 %v8016_v17  ;;  %10338 = vmatprep.subr.mxu0 %v8035_v24 }
 0x234   :  { %10298 = vmatpush3.msra.mxu1 %v8016_v17  ;;  %10339 = vmatpush3.msra.mxu0 %v8035_v24 }
 0x235   :  { %10299 = vmatprep.subr.mxu1 %v8015_v40  ;;  %10340 = vmatprep.subr.mxu0 %v8034_v47 }
 0x236   :  { %10300 = vmatpush3.msra.mxu1 %v8015_v40  ;;  %10341 = vmatpush3.msra.mxu0 %v8034_v47 }
 0x237   :  { %10301 = vmatprep.subr.mxu1 %v8014_v48  ;;  %10342 = vmatprep.subr.mxu0 %v8033_v49 }
 0x238   :  { %10302 = vmatpush3.msra.mxu1 %v8014_v48  ;;  %10343 = vmatpush3.msra.mxu0 %v8033_v49 }
 0x239   :  { %10303 = vmatprep.subr.mxu1 %v8013_v51  ;;  %10344 = vmatprep.subr.mxu0 %v8032_v52 }
 0x23a   :  { %10304 = vmatpush3.msra.mxu1 %v8013_v51  ;;  %10345 = vmatpush3.msra.mxu0 %v8032_v52 }
 0x23b   :  { %10305 = vmatprep.subr.mxu1 %v8012_v57  ;;  %10346 = vmatprep.subr.mxu0 %v8031_v59 }
 0x23c   :  { %10306 = vmatpush3.msra.mxu1 %v8012_v57  ;;  %10347 = vmatpush3.msra.mxu0 %v8031_v59 }
 0x23d   :  { %10307 = vmatprep.subr.mxu1 %v8011_v63  ;;  %10348 = vmatprep.subr.mxu0 %v8030_v55 }
 0x23e   :  { %10308 = vmatpush3.msra.mxu1 %v8011_v63  ;;  %10349 = vmatpush3.msra.mxu0 %v8030_v55 }
 0x23f   :  { %10350 = vmatprep.subr.mxu0 %v8029_v7  ;;  %10371 = vmatprep.subr.mxu1 %v13145_v9 }
 0x240   :  { %10351 = vmatpush3.msra.mxu0 %v8029_v7 }
 0x241   :  { %10352 = vmatprep.subr.mxu0 %v8028_v50 }
 0x242   :  { %10353 = vmatpush3.msra.mxu0 %v8028_v50 }
 0x243   :  { %10354 = vmatprep.subr.mxu0 %v8027_v13 }
 0x244   :  { %10355 = vmatpush3.msra.mxu0 %v8027_v13 }
 0x245   :  { %10418 = vmatprep.subr.mxu0 %v13157_v4 }
 0x2a0   :  { %v10089_v8 = vpop.f32.mrf.mxu0 }
 0x2a1   :  { %v1144_v45 = vadd.f32 %v10089_v8, %v12742_v22 }
 0x2a2   :  { %v13163_v12 = vpop.f32.mrf.mxu0 }
 0x2a4   :  { %v10092_v16 = vpop.f32.mrf.mxu0 }
 0x2a5   :  { %v1146_v20 = vadd.f32 %v10092_v16, %v12746_v27 }
 0x2a6   :  { %v13166_v53 = vpop.f32.mrf.mxu0  ;;  %v10136_v25 = vpop.f32.mrf.mxu1 }
 0x2a7   :  { %v1325_v29 = vadd.f32 %v10136_v25, %v1144_v45 }
 0x2a8   :  { %v13168_v33 = vpop.f32.mrf.mxu1 }
 0x2a9   :  { %v10095_v0 = vpop.f32.mrf.mxu0 }
 0x2aa   :  { %v1148_v34 = vadd.f32 %v10095_v0, %v12752_v32 }
 0x2ab   :  { %v13171_v35 = vpop.f32.mrf.mxu0 }
 0x2ac   :  { %v10139_v58 = vpop.f32.mrf.mxu1 }
 0x2ad   :  { %v1327_v46 = vadd.f32 %v10139_v58, %v1146_v20 }
 0x2ae   :  { %v13173_v17 = vpop.f32.mrf.mxu1 }
 0x2af   :  { %v10098_v22 = vpop.f32.mrf.mxu0 }
 0x2b0   :  { %v1150_v24 = vadd.f32 %v10098_v22, %v12756_v37 }
 0x2b1   :  { %v13176_v40 = vpop.f32.mrf.mxu0 }
 0x2b2   :  { %16495 = vst [vmem:[#allocation7_spill] sm:$0xff] %v13176_v40  ;;  %v10142_v27 = vpop.f32.mrf.mxu1  ;;  %v8067_v40 = vld [vmem:[%s16452_s2 + $0x5c0] sm:$0xff] }
 0x2b3   :  { %v1329_v47 = vadd.f32 %v10142_v27, %v1148_v34 }
 0x2b4   :  { %v13178_v49 = vpop.f32.mrf.mxu1 }
 0x2b5   :  { %v10101_v48 = vpop.f32.mrf.mxu0  ;;  %16496 = vst [vmem:[#allocation8_spill] sm:$0xff] %v13178_v49 }
 0x2b6   :  { %v1152_v51 = vadd.f32 %v10101_v48, %v12762_v43 }
 0x2b7   :  { %v13183_v55 = vpop.f32.mrf.mxu0 }
 0x2b8   :  { %16498 = vst [vmem:[#allocation10_spill] sm:$0xff] %v13183_v55 }
 0x2b9   :  { %v10145_v52 = vpop.f32.mrf.mxu1 }
 0x2ba   :  { %v1331_v32 = vadd.f32 %v10145_v52, %v1150_v24 }
 0x2bb   :  { %v13181_v57 = vpop.f32.mrf.mxu1 }
 0x2bc   :  { %16497 = vst [vmem:[#allocation9_spill] sm:$0xff] %v13181_v57 }
 0x2be   :  { %v10148_v59 = vpop.f32.mrf.mxu1 }
 0x2bf   :  { %v1333_v63 = vadd.f32 %v10148_v59, %v1152_v51 }
 0x2c0   :  { %v13187_v8 = vpop.f32.mrf.mxu1 }
 0x2c1   :  { %16499 = vst [vmem:[#allocation11_spill] sm:$0xff] %v13187_v8 }
 0x2c8   :  { %v10183_v7 = vpop.f32.mrf.mxu0 }
 0x2c9   :  { %v1467_v50 = vadd.f32 %v10183_v7, %v1325_v29 }
 0x2ca   :  { %v13185_v37 = vpop.f32.mrf.mxu0 }
 0x2cc   :  { %v10186_v13 = vpop.f32.mrf.mxu0 }
 0x2cd   :  { %v1469_v45 = vadd.f32 %v10186_v13, %v1327_v46 }
 0x2ce   :  { %v13189_v16 = vpop.f32.mrf.mxu0 }
 0x2cf   :  { %16500 = vst [vmem:[#allocation12_spill] sm:$0xff] %v13189_v16  ;;  %v10230_v20 = vpop.f32.mrf.mxu1  ;;  %v8051_v16 = vld [vmem:[%s16452_s2 + $0x540] sm:$0xff] }
 0x2d0   :  { %v13191_v43 = vadd.f32 %v10230_v20, %v1467_v50 }
 0x2d1   :  { %v10189_v25 = vpop.f32.mrf.mxu0  ;;  %v13193_v0 = vpop.f32.mrf.mxu1 }
 0x2d2   :  { %v1471_v34 = vadd.f32 %v10189_v25, %v1329_v47 }
 0x2d3   :  { %v13195_v58 = vpop.f32.mrf.mxu0  ;;  %v10233_v22 = vpop.f32.mrf.mxu1 }
 0x2d4   :  { %16501 = vst [vmem:[#allocation13_spill] sm:$0xff] %v13195_v58  ;;  %v13197_v24 = vadd.f32 %v10233_v22, %v1469_v45 }
 0x2d5   :  { %v10192_v29 = vpop.f32.mrf.mxu0  ;;  %v13199_v27 = vpop.f32.mrf.mxu1 }
 0x2d6   :  { %16502 = vst [vmem:[#allocation14_spill] sm:$0xff] %v13199_v27  ;;  %v1473_v48 = vadd.f32 %v10192_v29, %v1331_v32 }
 0x2d7   :  { %v13201_v51 = vpop.f32.mrf.mxu0  ;;  %v10236_v46 = vpop.f32.mrf.mxu1 }
 0x2d8   :  { %16503 = vst [vmem:[#allocation15_spill] sm:$0xff] %v13201_v51  ;;  %v13203_v52 = vadd.f32 %v10236_v46, %v1471_v34 }
 0x2d9   :  { %v10195_v59 = vpop.f32.mrf.mxu0  ;;  %v13205_v7 = vpop.f32.mrf.mxu1 }
 0x2da   :  { %16504 = vst [vmem:[#allocation16_spill] sm:$0xff] %v13205_v7  ;;  %v1475_v50 = vadd.f32 %v10195_v59, %v1333_v63  ;;  %v8057_v63 = vld [vmem:[%s16452_s2 + $0x570] sm:$0xff] }
 0x2db   :  { %v13207_v13 = vpop.f32.mrf.mxu0  ;;  %v10239_v47 = vpop.f32.mrf.mxu1 }
 0x2dc   :  { %16505 = vst [vmem:[#allocation17_spill] sm:$0xff] %v13207_v13  ;;  %v13209_v20 = vadd.f32 %v10239_v47, %v1473_v48  ;;  %v8073_v13 = vld [vmem:[%s16452_s2 + $0x5f0] sm:$0xff] }
 0x2dd   :  { %v13211_v45 = vpop.f32.mrf.mxu1  ;;  %v10261_v25 = vpop.f32.mrf.mxu0 }
 0x2de   :  { %16506 = vst [vmem:[#allocation18_spill] sm:$0xff] %v13211_v45  ;;  %v13213_v22 = vmax.f32 %v10261_v25, 0.0  ;;  %v8056_v25 = vld [vmem:[%s16452_s2 + $0x568] sm:$0xff] }
 0x2df   :  { %v10242_v32 = vpop.f32.mrf.mxu1  ;;  %v1738_v29 = vpop.f32.mrf.mxu0 }
 0x2e0   :  { %v13215_v51 = vadd.f32 %v10242_v32, %v1475_v50  ;;  %v1796_v34 = vmax.f32 %v1738_v29, 0.0  ;;  %v1977_v8 = vrot.slane %v13213_v22, 1 }
 0x2e1   :  { %v10264_v46 = vpop.f32.mrf.mxu0 }
 0x2e2   :  { %v1976_v7 = vrot.slane %v1796_v34, 1  ;;  %10309 = vmatprep.mubr.f32.mxu1 %v1796_v34  ;;  %v13221_v48 = vmax.f32 %v10264_v46, 0.0  ;;  %v8055_v34 = vld [vmem:[%s16452_s2 + $0x560] sm:$0xff] }
 0x2e3   :  { %v1748_v59 = vpop.f32.mrf.mxu0  ;;  %10310 = vmatmul.mubr.f32.vlgmr.msra.gmra.mxu1 %v13213_v22 }
 0x2e4   :  { %v13224_v47 = vmax.f32 %v1748_v59, 0.0  ;;  %10372 = vmatpush3.msra.mxu1 %v13145_v9  ;;  %v1978_v50 = vsel %vm278_vm1, %v1976_v7, %v1977_v8  ;;  %v1981_v9 = vrot.slane %v13221_v48, 1 }
 0x2e5   :  { %10373 = vmatprep.subr.mxu1 %v8057_v63  ;;  %v10267_v32 = vpop.f32.mrf.mxu0  ;;  %10356 = vmatprep.mubr.f32.mxu0 %v1978_v50 }
 0x2e6   :  { %v1979_v29 = vrot.slane %v13224_v47, 1  ;;  %10374 = vmatpush3.msra.mxu1 %v8057_v63  ;;  %10312 = vmatprep.mubr.f32.mxu1 %v13224_v47  ;;  %v13238_v46 = vmax.f32 %v10267_v32, 0.0  ;;  %v8054_v63 = vld [vmem:[%s16452_s2 + $0x558] sm:$0xff] }
 0x2e7   :  { %10375 = vmatprep.subr.mxu1 %v8056_v25  ;;  %v1758_v7 = vpop.f32.mrf.mxu0  ;;  %10313 = vmatmul.mubr.f32.gmra.mxu1 %v13221_v48 }
 0x2e8   :  { %v13240_v59 = vmax.f32 %v1758_v7, 0.0  ;;  %10376 = vmatpush3.msra.mxu1 %v8056_v25  ;;  %v13243_v50 = vsel %vm278_vm1, %v1977_v8, %v1979_v29  ;;  %v13256_v32 = vsel %vm278_vm1, %v1979_v29, %v1981_v9  ;;  %v8053_v7 = vld [vmem:[%s16452_s2 + $0x550] sm:$0xff]  ;;  %v1985_v58 = vrot.slane %v13238_v46, 1 }
 0x2e9   :  { %10377 = vmatprep.subr.mxu1 %v8055_v34  ;;  %v10270_v45 = vpop.f32.mrf.mxu0  ;;  %10357 = vmatmul.mubr.f32.vlgmr.msra.gmra.mxu0 %v13243_v50 }
 0x2ea   :  { %10378 = vmatpush3.msra.mxu1 %v8055_v34  ;;  %10419 = vmatpush3.msra.mxu0 %v13157_v4  ;;  %v1983_v25 = vrot.slane %v13240_v59, 1  ;;  %v8072_v4 = vld [vmem:[%s16452_s2 + $0x5e8] sm:$0xff]  ;;  %v13271_v57 = vmax.f32 %v10270_v45, 0.0 }
 0x2eb   :  { %10315 = vmatprep.mubr.f32.mxu1 %v13240_v59  ;;  %10379 = vmatprep.subr.mxu1 %v8054_v63  ;;  %v1768_v8 = vpop.f32.mrf.mxu0 }
 0x2ec   :  { %10420 = vmatprep.subr.mxu0 %v8073_v13  ;;  %v13261_v27 = vmax.f32 %v1768_v8, 0.0  ;;  %10316 = vmatmul.mubr.f32.gmra.mxu1 %v13238_v46  ;;  %v13268_v34 = vsel %vm278_vm1, %v1981_v9, %v1983_v25  ;;  %v8052_v8 = vld [vmem:[%s16452_s2 + $0x548] sm:$0xff]  ;;  %v8071_v9 = vld [vmem:[%s16452_s2 + $0x5e0] sm:$0xff] }
 0x2ed   :  { %10380 = vmatpush3.msra.mxu1 %v8054_v63  ;;  %10421 = vmatpush3.msra.mxu0 %v8073_v13  ;;  %v10273_v29 = vpop.f32.mrf.mxu0  ;;  %v13286_v63 = vsel %vm278_vm1, %v1983_v25, %v1985_v58 }
 0x2ee   :  { %10359 = vmatprep.mubr.f32.mxu0 %v13256_v32  ;;  %10381 = vmatprep.subr.mxu1 %v8053_v7  ;;  %v1987_v55 = vrot.slane %v13261_v27, 1  ;;  %v13299_v25 = vmax.f32 %v10273_v29, 0.0 }
 0x2ef   :  { %10422 = vmatprep.subr.mxu0 %v8072_v4  ;;  %10360 = vmatmul.mubr.f32.gmra.mxu0 %v13268_v34  ;;  %v1778_v13 = vpop.f32.mrf.mxu0 }
 0x2f0   :  { %10382 = vmatpush3.msra.mxu1 %v8053_v7  ;;  %10423 = vmatpush3.msra.mxu0 %v8072_v4  ;;  %v13283_v45 = vmax.f32 %v1778_v13, 0.0  ;;  %v8070_v7 = vld [vmem:[%s16452_s2 + $0x5d8] sm:$0xff]  ;;  %v13296_v4 = vsel %vm278_vm1, %v1985_v58, %v1987_v55  ;;  %v1989_v13 = vrot.slane %v13271_v57, 1  ;;  %v8069_v58 = vld [vmem:[%s16452_s2 + $0x5d0] sm:$0xff] }
 0x2f1   :  { %10318 = vmatprep.mubr.f32.mxu1 %v13261_v27  ;;  %10383 = vmatprep.subr.mxu1 %v8052_v8  ;;  %v10276_v5 = vpop.f32.mrf.mxu0 }
 0x2f2   :  { %10424 = vmatprep.subr.mxu0 %v8071_v9  ;;  %10319 = vmatmul.mubr.f32.gmra.mxu1 %v13271_v57  ;;  %v8050_v5 = vld [vmem:[%s16452_s2 + $0x538] sm:$0xff]  ;;  %v1991_v49 = vrot.slane %v13283_v45, 1  ;;  %v13312_v29 = vsel %vm278_vm1, %v1987_v55, %v1989_v13  ;;  %v8048_v55 = vld [vmem:[%s16452_s2 + $0x528] sm:$0xff] }
 0x2f3   :  { %10384 = vmatpush3.msra.mxu1 %v8052_v8  ;;  %10425 = vmatpush3.msra.mxu0 %v8071_v9  ;;  %v8049_v8 = vld [vmem:[%s16452_s2 + $0x530] sm:$0xff]  ;;  %v13318_v9 = vrot.slane %v13299_v25, 1 }
 0x2f4   :  { %10362 = vmatprep.mubr.f32.mxu0 %v13286_v63  ;;  %10385 = vmatprep.subr.mxu1 %v8051_v16 }
 0x2f5   :  { %10426 = vmatprep.subr.mxu0 %v8070_v7  ;;  %10363 = vmatmul.mubr.f32.gmra.mxu0 %v13296_v4 }
 0x2f6   :  { %10386 = vmatpush3.msra.mxu1 %v8051_v16  ;;  %10427 = vmatpush3.msra.mxu0 %v8070_v7  ;;  %v8068_v16 = vld [vmem:[%s16452_s2 + $0x5c8] sm:$0xff]  ;;  %v13325_v7 = vsel %vm278_vm1, %v1989_v13, %v1991_v49  ;;  %v13338_v13 = vsel %vm278_vm1, %v1991_v49, %v13318_v9  ;;  %v8046_v49 = vld [vmem:[%s16452_s2 + $0x518] sm:$0xff] }
 0x2f7   :  { %10321 = vmatprep.mubr.f32.mxu1 %v13283_v45  ;;  %10387 = vmatprep.subr.mxu1 %v8050_v5 }
 0x2f8   :  { %10428 = vmatprep.subr.mxu0 %v8069_v58  ;;  %10322 = vmatmul.mubr.f32.gmra.mxu1 %v13299_v25 }
 0x2f9   :  { %10388 = vmatpush3.msra.mxu1 %v8050_v5  ;;  %10429 = vmatpush3.msra.mxu0 %v8069_v58  ;;  %v8047_v5 = vld [vmem:[%s16452_s2 + $0x520] sm:$0xff]  ;;  %v8065_v58 = vld [vmem:[%s16452_s2 + $0x5b0] sm:$0xff] }
 0x2fa   :  { %10365 = vmatprep.mubr.f32.mxu0 %v13312_v29  ;;  %10389 = vmatprep.subr.mxu1 %v8049_v8 }
 0x2fb   :  { %10403 = vmatprep.mubr.f32.mxu1 %v13213_v22  ;;  %10430 = vmatprep.subr.mxu0 %v8068_v16  ;;  %v8066_v22 = vld [vmem:[%s16452_s2 + $0x5b8] sm:$0xff] }
 0x2fc   :  { %10366 = vmatmul.mubr.f32.gmra.mxu0 %v13325_v7  ;;  %10390 = vmatpush3.msra.mxu1 %v8049_v8  ;;  %v8064_v8 = vld [vmem:[%s16452_s2 + $0x5a8] sm:$0xff] }
 0x2fd   :  { %10431 = vmatpush3.msra.mxu0 %v8068_v16  ;;  %10391 = vmatprep.subr.mxu1 %v8048_v55  ;;  %v8044_v16 = vld [vmem:[%s16452_s2 + $0x508] sm:$0xff] }
 0x2fe   :  { %10432 = vmatprep.subr.mxu0 %v8067_v40  ;;  %10392 = vmatpush3.msra.mxu1 %v8048_v55  ;;  %v8063_v55 = vld [vmem:[%s16452_s2 + $0x5a0] sm:$0xff] }
 0x2ff   :  { %10433 = vmatpush3.msra.mxu0 %v8067_v40  ;;  %10368 = vmatprep.mubr.f32.mxu0 %v13338_v13  ;;  %v8045_v40 = vld [vmem:[%s16452_s2 + $0x510] sm:$0xff] }
 0x300   :  { %10393 = vmatprep.subr.mxu1 %v8047_v5  ;;  %10434 = vmatprep.subr.mxu0 %v8066_v22 }
 0x301   :  { %10369 = vmatmul.mubr.f32.gmra.mxu0 %v13318_v9  ;;  %10394 = vmatpush3.msra.mxu1 %v8047_v5  ;;  %v8043_v5 = vld [vmem:[%s16452_s2 + $0x500] sm:$0xff] }
 0x302   :  { %10435 = vmatpush3.msra.mxu0 %v8066_v22  ;;  %10395 = vmatprep.subr.mxu1 %v8046_v49  ;;  %v8061_v22 = vld [vmem:[%s16452_s2 + $0x590] sm:$0xff] }
 0x303   :  { %10436 = vmatprep.subr.mxu0 %v8065_v58  ;;  %10450 = vmatprep.mubr.f32.mxu0 %v13243_v50  ;;  %v8062_v50 = vld [vmem:[%s16452_s2 + $0x598] sm:$0xff] }
 0x304   :  { %10396 = vmatpush3.msra.mxu1 %v8046_v49  ;;  %10437 = vmatpush3.msra.mxu0 %v8065_v58  ;;  %v8060_v49 = vld [vmem:[%s16452_s2 + $0x588] sm:$0xff]  ;;  %v8059_v58 = vld [vmem:[%s16452_s2 + $0x580] sm:$0xff] }
 0x305   :  { %10397 = vmatprep.subr.mxu1 %v8045_v40  ;;  %10438 = vmatprep.subr.mxu0 %v8064_v8 }
 0x306   :  { %10398 = vmatpush3.msra.mxu1 %v8045_v40  ;;  %10439 = vmatpush3.msra.mxu0 %v8064_v8  ;;  %v8128_v40 = vld [vmem:[%s16452_s2 + $0x6e8] sm:$0xff] }
 0x307   :  { %10399 = vmatprep.subr.mxu1 %v8044_v16  ;;  %10440 = vmatprep.subr.mxu0 %v8063_v55  ;;  %v8108_v8 = vld [vmem:[%s16452_s2 + $0x648] sm:$0xff] }
 0x308   :  { %10400 = vmatpush3.msra.mxu1 %v8044_v16  ;;  %10441 = vmatpush3.msra.mxu0 %v8063_v55  ;;  %v8127_v16 = vld [vmem:[%s16452_s2 + $0x6e0] sm:$0xff] }
 0x309   :  { %10401 = vmatprep.subr.mxu1 %v8043_v5  ;;  %10442 = vmatprep.subr.mxu0 %v8062_v50  ;;  %v8107_v55 = vld [vmem:[%s16452_s2 + $0x640] sm:$0xff] }
 0x30a   :  { %10402 = vmatpush3.msra.mxu1 %v8043_v5  ;;  %10443 = vmatpush3.msra.mxu0 %v8062_v50  ;;  %v8126_v5 = vld [vmem:[%s16452_s2 + $0x6d8] sm:$0xff] }
 0x30b   :  { %10404 = vmatmul.mubr.f32.vlgmr.msra.gmra.mxu1 %v13224_v47  ;;  %10444 = vmatprep.subr.mxu0 %v8061_v22  ;;  %v8082_v47 = vld [vmem:[%s16450_s0 + $0x158] sm:$0xff] }
 0x30c   :  { %10465 = vmatprep.subr.mxu1 %v12932_v39  ;;  %10406 = vmatprep.mubr.f32.mxu1 %v13221_v48  ;;  %v8081_v48 = vld [vmem:[%s16450_s0 + $0x150] sm:$0xff]  ;;  %v8106_v50 = vld [vmem:[%s16452_s2 + $0x638] sm:$0xff] }
 0x30d   :  { %10445 = vmatpush3.msra.mxu0 %v8061_v22  ;;  %10466 = vmatpush3.msra.mxu1 %v12932_v39  ;;  %v1788_v39 = vpop.f32.mrf.mxu0  ;;  %v8125_v22 = vld [vmem:[%s16452_s2 + $0x6d0] sm:$0xff] }
 0x30e   :  { %10446 = vmatprep.subr.mxu0 %v8060_v49  ;;  %10467 = vmatprep.subr.mxu1 %v12943_v44 }
 0x30f   :  { %10447 = vmatpush3.msra.mxu0 %v8060_v49  ;;  %10407 = vmatmul.mubr.f32.gmra.mxu1 %v13240_v59  ;;  %v8084_v59 = vld [vmem:[%s16450_s0 + $0x168] sm:$0xff]  ;;  %v8105_v49 = vld [vmem:[%s16452_s2 + $0x630] sm:$0xff] }
 0x310   :  { %10448 = vmatprep.subr.mxu0 %v8059_v58  ;;  %10468 = vmatpush3.msra.mxu1 %v12943_v44  ;;  %v1806_v44 = vmax.f32 %v1788_v39, 0.0  ;;  %v8104_v39 = vld [vmem:[%s16452_s2 + $0x628] sm:$0xff] }
 0x311   :  { %10409 = vmatprep.mubr.f32.mxu1 %v13238_v46  ;;  %10449 = vmatpush3.msra.mxu0 %v8059_v58  ;;  %v8083_v46 = vld [vmem:[%s16450_s0 + $0x160] sm:$0xff]  ;;  %v8124_v58 = vld [vmem:[%s16452_s2 + $0x6c8] sm:$0xff] }
 0x312   :  { %10469 = vmatprep.subr.mxu1 %v12952_v54  ;;  %10451 = vmatmul.mubr.f32.vlgmr.msra.gmra.mxu0 %v13256_v32  ;;  %v8085_v32 = vld [vmem:[%s16450_s0 + $0x170] sm:$0xff] }
 0x313   :  { %10470 = vmatpush3.msra.mxu1 %v12952_v54  ;;  %10453 = vmatprep.mubr.f32.mxu0 %v13268_v34  ;;  %v2290_v54 = vrot.slane %v1806_v44, 1  ;;  %v8086_v34 = vld [vmem:[%s16450_s0 + $0x178] sm:$0xff] }
 0x314   :  { %10410 = vmatmul.mubr.f32.gmra.mxu1 %v13261_v27  ;;  %10471 = vmatprep.subr.mxu1 %v12962_v15  ;;  %v8080_v27 = vld [vmem:[%s16450_s0 + $0x148] sm:$0xff] }
 0x315   :  { %10412 = vmatprep.mubr.f32.mxu1 %v13271_v57  ;;  %10472 = vmatpush3.msra.mxu1 %v12962_v15  ;;  %v8075_v15 = vld [vmem:[%s16450_s0 + $0x120] sm:$0xff] }
 0x316   :  { %10454 = vmatmul.mubr.f32.gmra.mxu0 %v13286_v63  ;;  %10473 = vmatprep.subr.mxu1 %v12971_v18  ;;  %v8079_v57 = vld [vmem:[%s16450_s0 + $0x140] sm:$0xff]  ;;  %v8113_v63 = vld [vmem:[%s16452_s2 + $0x670] sm:$0xff] }
 0x317   :  { %10456 = vmatprep.mubr.f32.mxu0 %v13296_v4  ;;  %10474 = vmatpush3.msra.mxu1 %v12971_v18  ;;  %v8076_v18 = vld [vmem:[%s16450_s0 + $0x128] sm:$0xff]  ;;  %v8130_v4 = vld [vmem:[%s16452_s2 + $0x6f8] sm:$0xff] }
 0x318   :  { %10413 = vmatmul.mubr.f32.gmra.mxu1 %v13283_v45  ;;  %10475 = vmatprep.subr.mxu1 %v12980_v23  ;;  %v8114_v45 = vld [vmem:[%s16452_s2 + $0x678] sm:$0xff] }
 0x319   :  { %10415 = vmatprep.mubr.f32.mxu1 %v13299_v25  ;;  %10476 = vmatpush3.msra.mxu1 %v12980_v23  ;;  %v2291_v23 = vsel %vm278_vm1, %v13318_v9, %v2290_v54  ;;  %v8112_v25 = vld [vmem:[%s16452_s2 + $0x668] sm:$0xff]  ;;  %v8110_v9 = vld [vmem:[%s16452_s2 + $0x658] sm:$0xff] }
 0x31a   :  { %10457 = vmatmul.mubr.f32.gmra.mxu0 %v13312_v29  ;;  %10477 = vmatprep.subr.mxu1 %v12989_v30  ;;  %v8111_v29 = vld [vmem:[%s16452_s2 + $0x660] sm:$0xff] }
 0x31b   :  { %10459 = vmatprep.mubr.f32.mxu0 %v13325_v7  ;;  %10478 = vmatpush3.msra.mxu1 %v12989_v30  ;;  %v8077_v30 = vld [vmem:[%s16450_s0 + $0x130] sm:$0xff] }
 0x31c   :  { %10416 = vmatmul.mubr.f32.gmra.mxu1 %v1806_v44  ;;  %10479 = vmatprep.subr.mxu1 %v13000_v41  ;;  %v8129_v7 = vld [vmem:[%s16452_s2 + $0x6f0] sm:$0xff]  ;;  %v8123_v44 = vld [vmem:[%s16452_s2 + $0x6c0] sm:$0xff] }
 0x31d   :  { %10480 = vmatpush3.msra.mxu1 %v13000_v41  ;;  %10481 = vmatprep.mubr.msk.f32.mxu1 %vm63_vm0, %v8075_v15  ;;  %v8078_v41 = vld [vmem:[%s16450_s0 + $0x138] sm:$0xff] }
 0x31e   :  { %10460 = vmatmul.mubr.f32.gmra.mxu0 %v13338_v13  ;;  %10499 = vmatprep.subr.mxu0 %v8114_v45  ;;  %v8109_v13 = vld [vmem:[%s16452_s2 + $0x650] sm:$0xff]  ;;  %v8122_v15 = vld [vmem:[%s16452_s2 + $0x6b8] sm:$0xff] }
 0x31f   :  { %10462 = vmatprep.mubr.f32.mxu0 %v2291_v23  ;;  %10500 = vmatpush3.msra.mxu0 %v8114_v45  ;;  %v8121_v23 = vld [vmem:[%s16452_s2 + $0x6b0] sm:$0xff]  ;;  %v13568_v45 = vld [vmem:[%s16452_s2 + $0x7f8] sm:$0xff] }
 0x320   :  { %10482 = vmatmul.mubr.msk.f32.vlgmr.msra.gmra.mxu1 %vm63_vm0, %v8076_v18  ;;  %10546 = vmatprep.subr.mxu1 %v8130_v4  ;;  %v8102_v18 = vld [vmem:[%s16452_s2 + $0x618] sm:$0xff] }
 0x321   :  { %10484 = vmatprep.mubr.msk.f32.mxu1 %vm63_vm0, %v8077_v30  ;;  %10501 = vmatprep.subr.mxu0 %v8113_v63  ;;  %v8101_v30 = vld [vmem:[%s16452_s2 + $0x610] sm:$0xff] }
 0x322   :  { %10463 = vmatmul.mubr.f32.gmra.mxu0 %v2290_v54  ;;  %10547 = vmatpush3.msra.mxu1 %v8130_v4  ;;  %v8103_v54 = vld [vmem:[%s16452_s2 + $0x620] sm:$0xff] }
 0x323   :  { %10502 = vmatpush3.msra.mxu0 %v8113_v63  ;;  %10548 = vmatprep.subr.mxu1 %v8129_v7  ;;  %v13571_v63 = vpop.f32.mrf.mxu1 }
 0x324   :  { %10485 = vmatmul.mubr.msk.f32.gmra.mxu1 %vm63_vm0, %v8078_v41  ;;  %10503 = vmatprep.subr.mxu0 %v8112_v25  ;;  %v8120_v41 = vld [vmem:[%s16452_s2 + $0x6a8] sm:$0xff] }
 0x325   :  { %10487 = vmatprep.mubr.msk.f32.mxu1 %vm63_vm0, %v8079_v57  ;;  %10504 = vmatpush3.msra.mxu0 %v8112_v25  ;;  %v8100_v57 = vld [vmem:[%s16452_s2 + $0x608] sm:$0xff] }
 0x326   :  { %10505 = vmatprep.subr.mxu0 %v8111_v29  ;;  %10549 = vmatpush3.msra.mxu1 %v8129_v7  ;;  %v12101_v7 = vmov 0  }
 0x327   :  { %10506 = vmatpush3.msra.mxu0 %v8111_v29  ;;  %10550 = vmatprep.subr.mxu1 %v8128_v40  ;;  %v33_v29 = vld [vmem:[%s16458_s8] sm:$0xff] }
 0x328   :  { %10488 = vmatmul.mubr.msk.f32.gmra.mxu1 %vm63_vm0, %v8080_v27  ;;  %10507 = vmatprep.subr.mxu0 %v8110_v9  ;;  %v8119_v27 = vld [vmem:[%s16452_s2 + $0x6a0] sm:$0xff] }
 0x329   :  { %10490 = vmatprep.mubr.msk.f32.mxu1 %vm63_vm0, %v8081_v48  ;;  %10508 = vmatpush3.msra.mxu0 %v8110_v9  ;;  %v8099_v48 = vld [vmem:[%s16452_s2 + $0x600] sm:$0xff] }
 0x32a   :  { %10509 = vmatprep.subr.mxu0 %v8109_v13  ;;  %10551 = vmatpush3.msra.mxu1 %v8128_v40 }
 0x32b   :  { %10510 = vmatpush3.msra.mxu0 %v8109_v13  ;;  %10552 = vmatprep.subr.mxu1 %v8127_v16  ;;  %v35_v13 = vld [vmem:[%s16458_s8 + $0x10] sm:$0xff] }
 0x32c   :  { %10491 = vmatmul.mubr.msk.f32.gmra.mxu1 %vm63_vm0, %v8082_v47  ;;  %10511 = vmatprep.subr.mxu0 %v8108_v8  ;;  %v8118_v47 = vld [vmem:[%s16452_s2 + $0x698] sm:$0xff] }
 0x32d   :  { %10493 = vmatprep.mubr.msk.f32.mxu1 %vm63_vm0, %v8083_v46  ;;  %10512 = vmatpush3.msra.mxu0 %v8108_v8  ;;  %v8117_v46 = vld [vmem:[%s16452_s2 + $0x690] sm:$0xff]  ;;  %v36_v8 = vld [vmem:[%s16458_s8 + $0x18] sm:$0xff] }
 0x32e   :  { %10553 = vmatpush3.msra.mxu1 %v8127_v16  ;;  %10513 = vmatprep.subr.mxu0 %v8107_v55 }
 0x32f   :  { %10554 = vmatprep.subr.mxu1 %v8126_v5  ;;  %10514 = vmatpush3.msra.mxu0 %v8107_v55 }
 0x330   :  { %10494 = vmatmul.mubr.msk.f32.gmra.mxu1 %vm63_vm0, %v8084_v59  ;;  %10515 = vmatprep.subr.mxu0 %v8106_v50  ;;  %v13556_v59 = vld [vmem:[%s16452_s2 + $0x778] sm:$0xff] }
 0x331   :  { %10496 = vmatprep.mubr.msk.f32.mxu1 %vm63_vm0, %v8085_v32  ;;  %10555 = vmatpush3.msra.mxu1 %v8126_v5  ;;  %v8116_v32 = vld [vmem:[%s16452_s2 + $0x688] sm:$0xff]  ;;  %v37_v5 = vld [vmem:[%s16458_s8 + $0x20] sm:$0xff] }
 0x332   :  { %10556 = vmatprep.subr.mxu1 %v8125_v22  ;;  %10516 = vmatpush3.msra.mxu0 %v8106_v50  ;;  %v38_v50 = vld [vmem:[%s16458_s8 + $0x28] sm:$0xff] }
 0x333   :  { %10557 = vmatpush3.msra.mxu1 %v8125_v22  ;;  %10517 = vmatprep.subr.mxu0 %v8105_v49 }
 0x334   :  { %10497 = vmatmul.mubr.msk.f32.gmra.mxu1 %vm63_vm0, %v8086_v34  ;;  %10558 = vmatprep.subr.mxu1 %v8124_v58  ;;  %v8115_v34 = vld [vmem:[%s16452_s2 + $0x680] sm:$0xff] }
 0x335   :  { %10518 = vmatpush3.msra.mxu0 %v8105_v49  ;;  %10559 = vmatpush3.msra.mxu1 %v8124_v58 }
 0x336   :  { %10519 = vmatprep.subr.mxu0 %v8104_v39  ;;  %10560 = vmatprep.subr.mxu1 %v8123_v44 }
 0x337   :  { %10520 = vmatpush3.msra.mxu0 %v8104_v39  ;;  %10561 = vmatpush3.msra.mxu1 %v8123_v44  ;;  %v40_v39 = vld [vmem:[%s16458_s8 + $0x38] sm:$0xff] }
 0x338   :  { %10521 = vmatprep.subr.mxu0 %v8103_v54  ;;  %10562 = vmatprep.subr.mxu1 %v8122_v15 }
 0x339   :  { %10522 = vmatpush3.msra.mxu0 %v8103_v54  ;;  %10563 = vmatpush3.msra.mxu1 %v8122_v15  ;;  %v42_v15 = vld [vmem:[%s16458_s8 + $0x48] sm:$0xf] }
 0x33a   :  { %10523 = vmatprep.subr.mxu0 %v8102_v18  ;;  %10564 = vmatprep.subr.mxu1 %v8121_v23 }
 0x33b   :  { %10524 = vmatpush3.msra.mxu0 %v8102_v18  ;;  %10565 = vmatpush3.msra.mxu1 %v8121_v23 }
 0x33c   :  { %10525 = vmatprep.subr.mxu0 %v8101_v30  ;;  %10566 = vmatprep.subr.mxu1 %v8120_v41 }
 0x33d   :  { %10526 = vmatpush3.msra.mxu0 %v8101_v30  ;;  %10567 = vmatpush3.msra.mxu1 %v8120_v41 }
 0x33e   :  { %10527 = vmatprep.subr.mxu0 %v8100_v57  ;;  %10568 = vmatprep.subr.mxu1 %v8119_v27 }
 0x33f   :  { %10528 = vmatpush3.msra.mxu0 %v8100_v57  ;;  %10569 = vmatpush3.msra.mxu1 %v8119_v27 }
 0x340   :  { %10529 = vmatprep.subr.mxu0 %v8099_v48  ;;  %10570 = vmatprep.subr.mxu1 %v8118_v47 }
 0x341   :  { %10530 = vmatpush3.msra.mxu0 %v8099_v48  ;;  %10571 = vmatpush3.msra.mxu1 %v8118_v47 }
 0x342   :  { %10572 = vmatprep.subr.mxu1 %v8117_v46  ;;  %10593 = vmatprep.subr.mxu0 %v13556_v59 }
 0x343   :  { %10573 = vmatpush3.msra.mxu1 %v8117_v46  ;;  %12055 = vset.pattern.permute.xlu0 %v12101_v7 }
 0x344   :  { %10574 = vmatprep.subr.mxu1 %v8116_v32  ;;  %12056 = vset.pattern.permute.xlu1 %v12101_v7 }
 0x345   :  { %10575 = vmatpush3.msra.mxu1 %v8116_v32  ;;  %3244 = vperm.xlu0 %12055, %v33_v29  }
 0x346   :  { %10576 = vmatprep.subr.mxu1 %v8115_v34  ;;  %3254 = vperm.xlu1 %12056, %v35_v13  }
 0x347   :  { %10577 = vmatpush3.msra.mxu1 %v8115_v34 }
 0x348   :  { %10640 = vmatprep.subr.mxu1 %v13568_v45 }
 0x34a   :  { %3259 = vperm.xlu1 %12056, %v36_v8  }
 0x34e   :  { %3269 = vperm.xlu1 %12056, %v38_v50  }
 0x352   :  { %3279 = vperm.xlu1 %12056, %v40_v39  }
 0x356   :  { %3289 = vperm.xlu1 %12056, %v42_v15  }
 0x3a3   :  { %v10311_v4 = vpop.f32.mrf.mxu1 }
 0x3a4   :  { %v1940_v25 = vadd.f32 %v10311_v4, %v13191_v43  ;;  %v34_v43 = vld [vmem:[%s16458_s8 + $0x8] sm:$0xff] }
 0x3a5   :  { %v13577_v9 = vpop.f32.mrf.mxu1  ;;  %3249 = vperm.xlu0 %12055, %v34_v43  }
 0x3a7   :  { %v10314_v40 = vpop.f32.mrf.mxu1 }
 0x3a8   :  { %v1942_v16 = vadd.f32 %v10314_v40, %v13197_v24  ;;  %v39_v24 = vld [vmem:[%s16458_s8 + $0x30] sm:$0xff] }
 0x3a9   :  { %v13589_v55 = vpop.f32.mrf.mxu1  ;;  %3264 = vperm.xlu0 %12055, %v37_v5   ;;  %v10358_v23 = vpop.f32.mrf.mxu0 }
 0x3aa   :  { %v2121_v46 = vadd.f32 %v10358_v23, %v1940_v25 }
 0x3ab   :  { %v13616_v57 = vpop.f32.mrf.mxu0 }
 0x3ac   :  { %v10317_v22 = vpop.f32.mrf.mxu1 }
 0x3ad   :  { %v1944_v49 = vadd.f32 %v10317_v22, %v13203_v52  ;;  %3274 = vperm.xlu0 %12055, %v39_v24   ;;  %v41_v52 = vld [vmem:[%s16458_s8 + $0x40] sm:$0xff] }
 0x3ae   :  { %v13598_v58 = vpop.f32.mrf.mxu1 }
 0x3af   :  { %v10361_v27 = vpop.f32.mrf.mxu0 }
 0x3b0   :  { %v2123_v7 = vadd.f32 %v10361_v27, %v1942_v16 }
 0x3b1   :  { %3284 = vperm.xlu0 %12055, %v41_v52  }
 0x3b2   :  { %v10320_v44 = vpop.f32.mrf.mxu1 }
 0x3b3   :  { %v1946_v54 = vadd.f32 %v10320_v44, %v13209_v20  ;;  %v13618_v20 = vpop.f32.mrf.mxu0 }
 0x3b4   :  { %v13613_v18 = vpop.f32.mrf.mxu1 }
 0x3b5   :  { %v10364_v48 = vpop.f32.mrf.mxu0 }
 0x3b6   :  { %v2125_v8 = vadd.f32 %v10364_v48, %v1944_v49 }
 0x3b7   :  { %v13622_v34 = vpop.f32.mrf.mxu0 }
 0x3b8   :  { %v10323_v30 = vpop.f32.mrf.mxu1 }
 0x3b9   :  { %v1948_v41 = vadd.f32 %v10323_v30, %v13215_v51 }
 0x3ba   :  { %v13620_v47 = vpop.f32.mrf.mxu1 }
 0x3bc   :  { %v10367_v40 = vpop.f32.mrf.mxu0 }
 0x3bd   :  { %v2127_v24 = vadd.f32 %v10367_v40, %v1946_v54 }
 0x3be   :  { %v13632_v5 = vpop.f32.mrf.mxu0 }
 0x3bf   :  { %16507 = vst [vmem:[#allocation19_spill] sm:$0xff] %v13632_v5  ;;  %v8155_v5 = vld [vmem:[%s16452_s2 + $0x7c0] sm:$0xff] }
 0x3c1   :  { %v10370_v39 = vpop.f32.mrf.mxu0 }
 0x3c2   :  { %v2129_v15 = vadd.f32 %v10370_v39, %v1948_v41  ;;  %v8145_v41 = vld [vmem:[%s16452_s2 + $0x770] sm:$0xff]  ;;  %v8144_v39 = vld [vmem:[%s16452_s2 + $0x768] sm:$0xff] }
 0x3cb   :  { %v10405_v32 = vpop.f32.mrf.mxu1 }
 0x3cc   :  { %v13624_v4 = vadd.f32 %v10405_v32, %v2121_v46 }
 0x3cd   :  { %v13626_v29 = vpop.f32.mrf.mxu1 }
 0x3cf   :  { %v10408_v13 = vpop.f32.mrf.mxu1 }
 0x3d0   :  { %v13628_v51 = vadd.f32 %v10408_v13, %v2123_v7 }
 0x3d1   :  { %v13630_v43 = vpop.f32.mrf.mxu1 }
 0x3d4   :  { %v10411_v50 = vpop.f32.mrf.mxu1 }
 0x3d5   :  { %v13634_v22 = vadd.f32 %v10411_v50, %v2125_v8 }
 0x3d6   :  { %v13636_v25 = vpop.f32.mrf.mxu1 }
 0x3d7   :  { %16508 = vst [vmem:[#allocation20_spill] sm:$0xff] %v13634_v22  ;;  %16509 = vst [vmem:[#allocation21_spill] sm:$0xff] %v13636_v25 }
 0x3d8   :  { %v10414_v44 = vpop.f32.mrf.mxu1 }
 0x3d9   :  { %v13638_v52 = vadd.f32 %v10414_v44, %v2127_v24 }
 0x3da   :  { %v13640_v16 = vpop.f32.mrf.mxu1 }
 0x3db   :  { %16510 = vst [vmem:[#allocation22_spill] sm:$0xff] %v13638_v52  ;;  %16511 = vst [vmem:[#allocation23_spill] sm:$0xff] %v13640_v16 }
 0x3dc   :  { %v10417_v23 = vpop.f32.mrf.mxu1 }
 0x3dd   :  { %v13642_v30 = vadd.f32 %v10417_v23, %v2129_v15 }
 0x3de   :  { %v13644_v27 = vpop.f32.mrf.mxu1 }
 0x3df   :  { %16512 = vst [vmem:[#allocation24_spill] sm:$0xff] %v13642_v30  ;;  %16513 = vst [vmem:[#allocation25_spill] sm:$0xff] %v13644_v27 }
 0x3e0   :  { %v10483_v49 = vpop.f32.mrf.mxu1 }
 0x3e1   :  { %v13646_v48 = vmax.f32 %v10483_v49, 0.0 }
 0x3e2   :  { %v2534_v46 = vpop.f32.mrf.mxu1 }
 0x3e3   :  { %v2592_v32 = vmax.f32 %v2534_v46, 0.0  ;;  %v2773_v54 = vrot.slane %v13646_v48, 1 }
 0x3e4   :  { %v10486_v7 = vpop.f32.mrf.mxu1 }
 0x3e5   :  { %v2772_v13 = vrot.slane %v2592_v32, 1  ;;  %v13649_v40 = vmax.f32 %v10486_v7, 0.0  ;;  %10531 = vmatprep.mubr.f32.mxu0 %v2592_v32 }
 0x3e6   :  { %v2544_v8 = vpop.f32.mrf.mxu1  ;;  %10532 = vmatmul.mubr.f32.vlgmr.msra.gmra.mxu0 %v13646_v48 }
 0x3e7   :  { %v13655_v50 = vmax.f32 %v2544_v8, 0.0  ;;  %10594 = vmatpush3.msra.mxu0 %v13556_v59  ;;  %v2774_v24 = vsel %vm278_vm1, %v2772_v13, %v2773_v54  ;;  %v2777_v15 = vrot.slane %v13649_v40, 1  ;;  %v8143_v59 = vld [vmem:[%s16452_s2 + $0x760] sm:$0xff]  ;;  %v8142_v8 = vld [vmem:[%s16452_s2 + $0x758] sm:$0xff] }
 0x3e8   :  { %10595 = vmatprep.subr.mxu0 %v8145_v41  ;;  %v10489_v44 = vpop.f32.mrf.mxu1  ;;  %10578 = vmatprep.mubr.f32.mxu1 %v2774_v24  ;;  %v8161_v24 = vld [vmem:[%s16452_s2 + $0x7f0] sm:$0xff] }
 0x3e9   :  { %v2775_v23 = vrot.slane %v13655_v50, 1  ;;  %10596 = vmatpush3.msra.mxu0 %v8145_v41  ;;  %10534 = vmatprep.mubr.f32.mxu0 %v13655_v50  ;;  %v13677_v13 = vmax.f32 %v10489_v44, 0.0  ;;  %v8160_v44 = vld [vmem:[%s16452_s2 + $0x7e8] sm:$0xff] }
 0x3ea   :  { %10597 = vmatprep.subr.mxu0 %v8144_v39  ;;  %v2554_v49 = vpop.f32.mrf.mxu1  ;;  %10535 = vmatmul.mubr.f32.gmra.mxu0 %v13649_v40 }
 0x3eb   :  { %v13669_v46 = vmax.f32 %v2554_v49, 0.0  ;;  %10598 = vmatpush3.msra.mxu0 %v8144_v39  ;;  %v13672_v32 = vsel %vm278_vm1, %v2773_v54, %v2775_v23  ;;  %v13675_v7 = vsel %vm278_vm1, %v2775_v23, %v2777_v15  ;;  %v2781_v49 = vrot.slane %v13677_v13, 1 }
 0x3ec   :  { %10599 = vmatprep.subr.mxu0 %v8143_v59  ;;  %v10492_v41 = vpop.f32.mrf.mxu1  ;;  %10579 = vmatmul.mubr.f32.vlgmr.msra.gmra.mxu1 %v13672_v32 }
 0x3ed   :  { %10600 = vmatpush3.msra.mxu0 %v8143_v59  ;;  %10641 = vmatpush3.msra.mxu1 %v13568_v45  ;;  %v2779_v54 = vrot.slane %v13669_v46, 1  ;;  %v8141_v59 = vld [vmem:[%s16452_s2 + $0x750] sm:$0xff]  ;;  %v13703_v52 = vmax.f32 %v10492_v41, 0.0 }
 0x3ee   :  { %10537 = vmatprep.mubr.f32.mxu0 %v13669_v46  ;;  %10581 = vmatprep.mubr.f32.mxu1 %v13675_v7  ;;  %v2564_v39 = vpop.f32.mrf.mxu1 }
 0x3ef   :  { %10601 = vmatprep.subr.mxu0 %v8142_v8  ;;  %10642 = vmatprep.subr.mxu1 %v8161_v24  ;;  %v13693_v23 = vmax.f32 %v2564_v39, 0.0  ;;  %v13699_v45 = vsel %vm278_vm1, %v2777_v15, %v2779_v54  ;;  %v8140_v39 = vld [vmem:[%s16452_s2 + $0x748] sm:$0xff]  ;;  %v8159_v15 = vld [vmem:[%s16452_s2 + $0x7e0] sm:$0xff] }
 0x3f0   :  { %10538 = vmatmul.mubr.f32.gmra.mxu0 %v13677_v13  ;;  %10643 = vmatpush3.msra.mxu1 %v8161_v24  ;;  %v10495_v30 = vpop.f32.mrf.mxu1  ;;  %v8139_v24 = vld [vmem:[%s16452_s2 + $0x740] sm:$0xff] }
 0x3f1   :  { %10602 = vmatpush3.msra.mxu0 %v8142_v8  ;;  %10644 = vmatprep.subr.mxu1 %v8160_v44  ;;  %v2783_v27 = vrot.slane %v13693_v23, 1  ;;  %v13717_v8 = vsel %vm278_vm1, %v2779_v54, %v2781_v49  ;;  %v13730_v54 = vmax.f32 %v10495_v30, 0.0 }
 0x3f2   :  { %10603 = vmatprep.subr.mxu0 %v8141_v59  ;;  %10582 = vmatmul.mubr.f32.gmra.mxu1 %v13699_v45  ;;  %v2574_v16 = vpop.f32.mrf.mxu1 }
 0x3f3   :  { %10604 = vmatpush3.msra.mxu0 %v8141_v59  ;;  %10645 = vmatpush3.msra.mxu1 %v8160_v44  ;;  %v13714_v41 = vmax.f32 %v2574_v16, 0.0  ;;  %v8158_v44 = vld [vmem:[%s16452_s2 + $0x7d8] sm:$0xff]  ;;  %v13727_v59 = vsel %vm278_vm1, %v2781_v49, %v2783_v27  ;;  %v2785_v16 = vrot.slane %v13703_v52, 1  ;;  %v8157_v49 = vld [vmem:[%s16452_s2 + $0x7d0] sm:$0xff] }
 0x3f4   :  { %10540 = vmatprep.mubr.f32.mxu0 %v13693_v23  ;;  %10605 = vmatprep.subr.mxu0 %v8140_v39  ;;  %v10498_v22 = vpop.f32.mrf.mxu1 }
 0x3f5   :  { %10646 = vmatprep.subr.mxu1 %v8159_v15  ;;  %10541 = vmatmul.mubr.f32.gmra.mxu0 %v13703_v52  ;;  %v8138_v22 = vld [vmem:[%s16452_s2 + $0x738] sm:$0xff]  ;;  %v2787_v25 = vrot.slane %v13714_v41, 1  ;;  %v13743_v30 = vsel %vm278_vm1, %v2783_v27, %v2785_v16  ;;  %v8136_v27 = vld [vmem:[%s16452_s2 + $0x728] sm:$0xff] }
 0x3f6   :  { %10606 = vmatpush3.msra.mxu0 %v8140_v39  ;;  %10647 = vmatpush3.msra.mxu1 %v8159_v15  ;;  %v8137_v39 = vld [vmem:[%s16452_s2 + $0x730] sm:$0xff]  ;;  %v13749_v15 = vrot.slane %v13730_v54, 1 }
 0x3f7   :  { %10584 = vmatprep.mubr.f32.mxu1 %v13717_v8  ;;  %10607 = vmatprep.subr.mxu0 %v8139_v24 }
 0x3f8   :  { %10648 = vmatprep.subr.mxu1 %v8158_v44  ;;  %10585 = vmatmul.mubr.f32.gmra.mxu1 %v13727_v59 }
 0x3f9   :  { %10608 = vmatpush3.msra.mxu0 %v8139_v24  ;;  %10649 = vmatpush3.msra.mxu1 %v8158_v44  ;;  %v8156_v24 = vld [vmem:[%s16452_s2 + $0x7c8] sm:$0xff]  ;;  %v13756_v44 = vsel %vm278_vm1, %v2785_v16, %v2787_v25  ;;  %v13769_v16 = vsel %vm278_vm1, %v2787_v25, %v13749_v15  ;;  %v8134_v25 = vld [vmem:[%s16452_s2 + $0x718] sm:$0xff] }
 0x3fa   :  { %10543 = vmatprep.mubr.f32.mxu0 %v13714_v41  ;;  %10609 = vmatprep.subr.mxu0 %v8138_v22 }
 0x3fb   :  { %10650 = vmatprep.subr.mxu1 %v8157_v49  ;;  %10544 = vmatmul.mubr.f32.gmra.mxu0 %v13730_v54 }
 0x3fc   :  { %10610 = vmatpush3.msra.mxu0 %v8138_v22  ;;  %10651 = vmatpush3.msra.mxu1 %v8157_v49  ;;  %v8135_v22 = vld [vmem:[%s16452_s2 + $0x720] sm:$0xff]  ;;  %v8153_v49 = vld [vmem:[%s16452_s2 + $0x7b0] sm:$0xff] }
 0x3fd   :  { %10587 = vmatprep.mubr.f32.mxu1 %v13743_v30  ;;  %10611 = vmatprep.subr.mxu0 %v8137_v39 }
 0x3fe   :  { %10625 = vmatprep.mubr.f32.mxu0 %v13646_v48  ;;  %10652 = vmatprep.subr.mxu1 %v8156_v24  ;;  %v8154_v48 = vld [vmem:[%s16452_s2 + $0x7b8] sm:$0xff] }
 0x3ff   :  { %10588 = vmatmul.mubr.f32.gmra.mxu1 %v13756_v44  ;;  %10612 = vmatpush3.msra.mxu0 %v8137_v39  ;;  %v8152_v39 = vld [vmem:[%s16452_s2 + $0x7a8] sm:$0xff] }
 0x400   :  { %10653 = vmatpush3.msra.mxu1 %v8156_v24  ;;  %10613 = vmatprep.subr.mxu0 %v8136_v27  ;;  %v8132_v24 = vld [vmem:[%s16452_s2 + $0x708] sm:$0xff] }
 0x401   :  { %10654 = vmatprep.subr.mxu1 %v8155_v5  ;;  %10614 = vmatpush3.msra.mxu0 %v8136_v27  ;;  %v8151_v27 = vld [vmem:[%s16452_s2 + $0x7a0] sm:$0xff] }
 0x402   :  { %10655 = vmatpush3.msra.mxu1 %v8155_v5  ;;  %10590 = vmatprep.mubr.f32.mxu1 %v13769_v16  ;;  %v8133_v5 = vld [vmem:[%s16452_s2 + $0x710] sm:$0xff] }
 0x403   :  { %10615 = vmatprep.subr.mxu0 %v8135_v22  ;;  %10656 = vmatprep.subr.mxu1 %v8154_v48 }
 0x404   :  { %10591 = vmatmul.mubr.f32.gmra.mxu1 %v13749_v15  ;;  %10616 = vmatpush3.msra.mxu0 %v8135_v22  ;;  %v8131_v22 = vld [vmem:[%s16452_s2 + $0x700] sm:$0xff] }
 0x405   :  { %10657 = vmatpush3.msra.mxu1 %v8154_v48  ;;  %10617 = vmatprep.subr.mxu0 %v8134_v25  ;;  %v8149_v48 = vld [vmem:[%s16452_s2 + $0x790] sm:$0xff] }
 0x406   :  { %10658 = vmatprep.subr.mxu1 %v8153_v49  ;;  %10672 = vmatprep.mubr.f32.mxu1 %v13672_v32  ;;  %v8150_v32 = vld [vmem:[%s16452_s2 + $0x798] sm:$0xff] }
 0x407   :  { %10618 = vmatpush3.msra.mxu0 %v8134_v25  ;;  %10659 = vmatpush3.msra.mxu1 %v8153_v49  ;;  %v8148_v25 = vld [vmem:[%s16452_s2 + $0x788] sm:$0xff]  ;;  %v8147_v49 = vld [vmem:[%s16452_s2 + $0x780] sm:$0xff] }
 0x408   :  { %10619 = vmatprep.subr.mxu0 %v8133_v5  ;;  %10660 = vmatprep.subr.mxu1 %v8152_v39 }
 0x409   :  { %10620 = vmatpush3.msra.mxu0 %v8133_v5  ;;  %10661 = vmatpush3.msra.mxu1 %v8152_v39  ;;  %v2584_v5 = vpop.f32.mrf.mxu1  ;;  %v3348_v39 = vld [vmem:[%s16454_s4 + $0x40] sm:$0xff] }
 0x40a   :  { %10621 = vmatprep.subr.mxu0 %v8132_v24  ;;  %10662 = vmatprep.subr.mxu1 %v8151_v27 }
 0x40b   :  { %10622 = vmatpush3.msra.mxu0 %v8132_v24  ;;  %10663 = vmatpush3.msra.mxu1 %v8151_v27  ;;  %v8173_v24 = vld [vmem:[%s16454_s4 + $0xc8] sm:$0xff]  ;;  %v3347_v27 = vld [vmem:[%s16454_s4 + $0x38] sm:$0xff] }
 0x40c   :  { %10623 = vmatprep.subr.mxu0 %v8131_v22  ;;  %10664 = vmatprep.subr.mxu1 %v8150_v32 }
 0x40d   :  { %10624 = vmatpush3.msra.mxu0 %v8131_v22  ;;  %10665 = vmatpush3.msra.mxu1 %v8150_v32  ;;  %v8172_v22 = vld [vmem:[%s16454_s4 + $0xc0] sm:$0xff]  ;;  %v3346_v32 = vld [vmem:[%s16454_s4 + $0x30] sm:$0xff] }
 0x40e   :  { %10626 = vmatmul.mubr.f32.vlgmr.msra.gmra.mxu0 %v13655_v50  ;;  %10666 = vmatprep.subr.mxu1 %v8149_v48 }
 0x40f   :  { %10628 = vmatprep.mubr.f32.mxu0 %v13649_v40  ;;  %10667 = vmatpush3.msra.mxu1 %v8149_v48  ;;  %v2602_v40 = vmax.f32 %v2584_v5, 0.0  ;;  %v8171_v48 = vld [vmem:[%s16454_s4 + $0xb8] sm:$0xff]  ;;  %v3344_v5 = vld [vmem:[%s16454_s4 + $0x20] sm:$0xff] }
 0x410   :  { %10668 = vmatprep.subr.mxu1 %v8148_v25 }
 0x411   :  { %10669 = vmatpush3.msra.mxu1 %v8148_v25  ;;  %v3086_v50 = vrot.slane %v2602_v40, 1  ;;  %v3345_v25 = vld [vmem:[%s16454_s4 + $0x28] sm:$0xff] }
 0x412   :  { %10629 = vmatmul.mubr.f32.gmra.mxu0 %v13669_v46  ;;  %10670 = vmatprep.subr.mxu1 %v8147_v49  ;;  %v3355_v46 = vld [vmem:[%s16454_s4 + $0x78] sm:$0xff] }
 0x413   :  { %10631 = vmatprep.mubr.f32.mxu0 %v13677_v13  ;;  %10671 = vmatpush3.msra.mxu1 %v8147_v49  ;;  %v8179_v13 = vld [vmem:[%s16454_s4 + $0xf8] sm:$0xff]  ;;  %v8170_v49 = vld [vmem:[%s16454_s4 + $0xb0] sm:$0xff] }
 0x414   :  { %10673 = vmatmul.mubr.f32.vlgmr.msra.gmra.mxu1 %v13675_v7  ;;  %v3354_v7 = vld [vmem:[%s16454_s4 + $0x70] sm:$0xff]  ;;  %10734 = vmatprep.subr.mxu1 %v3355_v46 }
 0x415   :  { %10675 = vmatprep.mubr.f32.mxu1 %v13699_v45  ;;  %10687 = vmatprep.subr.mxu0 %v8179_v13  ;;  %v8178_v45 = vld [vmem:[%s16454_s4 + $0xf0] sm:$0xff] }
 0x416   :  { %10632 = vmatmul.mubr.f32.gmra.mxu0 %v13693_v23  ;;  %10735 = vmatpush3.msra.mxu1 %v3355_v46  ;;  %v3353_v23 = vld [vmem:[%s16454_s4 + $0x68] sm:$0xff]  ;;  %v8168_v46 = vld [vmem:[%s16454_s4 + $0xa0] sm:$0xff] }
 0x417   :  { %10634 = vmatprep.mubr.f32.mxu0 %v13703_v52  ;;  %v3087_v52 = vsel %vm278_vm1, %v13749_v15, %v3086_v50  ;;  %10688 = vmatpush3.msra.mxu0 %v8179_v13  ;;  %v8175_v15 = vld [vmem:[%s16454_s4 + $0xd8] sm:$0xff] }
 0x418   :  { %10676 = vmatmul.mubr.f32.gmra.mxu1 %v13717_v8  ;;  %10736 = vmatprep.subr.mxu1 %v3354_v7  ;;  %v8177_v8 = vld [vmem:[%s16454_s4 + $0xe8] sm:$0xff]  ;;  %v8167_v13 = vld [vmem:[%s16454_s4 + $0x98] sm:$0xff] }
 0x419   :  { %10678 = vmatprep.mubr.f32.mxu1 %v13727_v59  ;;  %10737 = vmatpush3.msra.mxu1 %v3354_v7  ;;  %v3351_v59 = vld [vmem:[%s16454_s4 + $0x58] sm:$0xff]  ;;  %v3342_v7 = vld [vmem:[%s16454_s4 + $0x10] sm:$0xff] }
 0x41a   :  { %10635 = vmatmul.mubr.f32.gmra.mxu0 %v13714_v41  ;;  %10738 = vmatprep.subr.mxu1 %v3353_v23  ;;  %v3352_v41 = vld [vmem:[%s16454_s4 + $0x60] sm:$0xff] }
 0x41b   :  { %10637 = vmatprep.mubr.f32.mxu0 %v13730_v54  ;;  %10739 = vmatpush3.msra.mxu1 %v3353_v23  ;;  %v8176_v54 = vld [vmem:[%s16454_s4 + $0xe0] sm:$0xff]  ;;  %v3341_v23 = vld [vmem:[%s16454_s4 + $0x8] sm:$0xff] }
 0x41c   :  { %10679 = vmatmul.mubr.f32.gmra.mxu1 %v13743_v30  ;;  %10689 = vmatprep.subr.mxu0 %v8178_v45  ;;  %v3350_v30 = vld [vmem:[%s16454_s4 + $0x50] sm:$0xff] }
 0x41d   :  { %10681 = vmatprep.mubr.f32.mxu1 %v13756_v44  ;;  %10740 = vmatprep.subr.mxu1 %v3352_v41  ;;  %v3349_v44 = vld [vmem:[%s16454_s4 + $0x48] sm:$0xff] }
 0x41e   :  { %10638 = vmatmul.mubr.f32.gmra.mxu0 %v2602_v40  ;;  %10741 = vmatpush3.msra.mxu1 %v3352_v41  ;;  %v8169_v40 = vld [vmem:[%s16454_s4 + $0xa8] sm:$0xff]  ;;  %v3340_v41 = vld [vmem:[%s16454_s4] sm:$0xff] }
 0x41f   :  { %10690 = vmatpush3.msra.mxu0 %v8178_v45  ;;  %10742 = vmatprep.subr.mxu1 %v3351_v59  ;;  %v8166_v45 = vld [vmem:[%s16454_s4 + $0x90] sm:$0xff] }
 0x420   :  { %10682 = vmatmul.mubr.f32.gmra.mxu1 %v13769_v16  ;;  %10691 = vmatprep.subr.mxu0 %v8177_v8  ;;  %v8174_v16 = vld [vmem:[%s16454_s4 + $0xd0] sm:$0xff] }
 0x421   :  { %10684 = vmatprep.mubr.f32.mxu1 %v3087_v52  ;;  %10692 = vmatpush3.msra.mxu0 %v8177_v8  ;;  %v16460_v52 = vmov 0.0   ;;  %v8165_v8 = vld [vmem:[%s16454_s4 + $0x88] sm:$0xff] }
 0x422   :  { %10743 = vmatpush3.msra.mxu1 %v3351_v59  ;;  %10693 = vmatprep.subr.mxu0 %v8176_v54  ;;  %3302 = vst [vmem:[#allocation2] sm:$0xff] %v16460_v52  ;;  %3303 = vst [vmem:[#allocation2 + $0x8] sm:$0x1] %v16460_v52  ;;  %v13930_v59 = vld [vmem:[%s16454_s4 + $0x1f8] sm:$0xff] }
 0x423   :  { %10744 = vmatprep.subr.mxu1 %v3350_v30  ;;  %10694 = vmatpush3.msra.mxu0 %v8176_v54  ;;  %3314 = vst [vmem:[#allocation2 + $0x55] sm:$0xff] %v16460_v52  ;;  %3315 = vst [vmem:[#allocation2 + $0x5d] sm:$0x7] %v16460_v52  ;;  %v8164_v54 = vld [vmem:[%s16454_s4 + $0x80] sm:$0xff] }
 0x424   :  { %10685 = vmatmul.mubr.f32.gmra.mxu1 %v3086_v50  ;;  %10695 = vmatprep.subr.mxu0 %v8175_v15  ;;  %v3343_v50 = vld [vmem:[%s16454_s4 + $0x18] sm:$0xff]  ;;  %16514 = vst [vmem:[#allocation26_spill] sm:$0xff] %v13930_v59 }
 0x425   :  { %10745 = vmatpush3.msra.mxu1 %v3350_v30  ;;  %10696 = vmatpush3.msra.mxu0 %v8175_v15  ;;  %v13940_v30 = vld [vmem:[%s16454_s4 + $0x178] sm:$0xff]  ;;  %v13943_v15 = vpop.f32.mrf.mxu0 }
 0x426   :  { %10746 = vmatprep.subr.mxu1 %v3349_v44  ;;  %10697 = vmatprep.subr.mxu0 %v8174_v16  ;;  %16515 = vst [vmem:[#allocation27_spill] sm:$0xff] %v13940_v30 }
 0x427   :  { %10747 = vmatpush3.msra.mxu1 %v3349_v44  ;;  %10698 = vmatpush3.msra.mxu0 %v8174_v16  ;;  %v10452_v44 = vpop.f32.mrf.mxu0 }
 0x428   :  { %10748 = vmatprep.subr.mxu1 %v3348_v39  ;;  %10699 = vmatprep.subr.mxu0 %v8173_v24 }
 0x429   :  { %10749 = vmatpush3.msra.mxu1 %v3348_v39  ;;  %10700 = vmatpush3.msra.mxu0 %v8173_v24  ;;  %v13945_v16 = vpop.f32.mrf.mxu0 }
 0x42a   :  { %10750 = vmatprep.subr.mxu1 %v3347_v27  ;;  %10701 = vmatprep.subr.mxu0 %v8172_v22 }
 0x42b   :  { %10751 = vmatpush3.msra.mxu1 %v3347_v27  ;;  %10702 = vmatpush3.msra.mxu0 %v8172_v22  ;;  %v13947_v39 = vpop.f32.mrf.mxu0 }
 0x42c   :  { %10752 = vmatprep.subr.mxu1 %v3346_v32  ;;  %10703 = vmatprep.subr.mxu0 %v8171_v48 }
 0x42d   :  { %10753 = vmatpush3.msra.mxu1 %v3346_v32  ;;  %10704 = vmatpush3.msra.mxu0 %v8171_v48  ;;  %v13949_v24 = vpop.f32.mrf.mxu0 }
 0x42e   :  { %10754 = vmatprep.subr.mxu1 %v3345_v25  ;;  %10705 = vmatprep.subr.mxu0 %v8170_v49 }
 0x42f   :  { %10755 = vmatpush3.msra.mxu1 %v3345_v25  ;;  %10706 = vmatpush3.msra.mxu0 %v8170_v49  ;;  %v13951_v27 = vpop.f32.mrf.mxu0 }
 0x430   :  { %10756 = vmatprep.subr.mxu1 %v3344_v5  ;;  %10707 = vmatprep.subr.mxu0 %v8169_v40 }
 0x431   :  { %10757 = vmatpush3.msra.mxu1 %v3344_v5  ;;  %10708 = vmatpush3.msra.mxu0 %v8169_v40  ;;  %v13953_v22 = vpop.f32.mrf.mxu0 }
 0x432   :  { %10758 = vmatprep.subr.mxu1 %v3343_v50  ;;  %10709 = vmatprep.subr.mxu0 %v8168_v46 }
 0x433   :  { %10759 = vmatpush3.msra.mxu1 %v3343_v50  ;;  %10710 = vmatpush3.msra.mxu0 %v8168_v46  ;;  %v13955_v32 = vpop.f32.mrf.mxu0 }
 0x434   :  { %10760 = vmatprep.subr.mxu1 %v3342_v7  ;;  %10711 = vmatprep.subr.mxu0 %v8167_v13  ;;  %16516 = vst [vmem:[#allocation28_spill] sm:$0xff] %v13955_v32 }
 0x435   :  { %10761 = vmatpush3.msra.mxu1 %v3342_v7  ;;  %10712 = vmatpush3.msra.mxu0 %v8167_v13  ;;  %v13957_v48 = vpop.f32.mrf.mxu0 }
 0x436   :  { %10762 = vmatprep.subr.mxu1 %v3341_v23  ;;  %10713 = vmatprep.subr.mxu0 %v8166_v45  ;;  %16517 = vst [vmem:[#allocation29_spill] sm:$0xff] %v13957_v48 }
 0x437   :  { %10763 = vmatpush3.msra.mxu1 %v3341_v23  ;;  %10714 = vmatpush3.msra.mxu0 %v8166_v45  ;;  %v13959_v25 = vpop.f32.mrf.mxu0 }
 0x438   :  { %10764 = vmatprep.subr.mxu1 %v3340_v41  ;;  %10715 = vmatprep.subr.mxu0 %v8165_v8  ;;  %16518 = vst [vmem:[#allocation30_spill] sm:$0xff] %v13959_v25  ;;  %v510_v25 = vadd.f32 %v12724_v11, %v12726_v14 }
 0x439   :  { %10765 = vmatpush3.msra.mxu1 %v3340_v41  ;;  %10766 = vmatprep.mubr.f32.mxu1 %v16460_v52  ;;  %v13961_v49 = vpop.f32.mrf.mxu0  ;;  %v490_v41 = vadd.f32 %v12716_v56, %v12718_v61  ;;  %v520_v61 = vadd.f32 %v12728_v1, %v12730_v2 }
 0x43a   :  { %10828 = vmatprep.subr.mxu1 %v13930_v59  ;;  %10716 = vmatpush3.msra.mxu0 %v8165_v8  ;;  %16519 = vst [vmem:[#allocation31_spill] sm:$0xff] %v13961_v49 }
 0x43b   :  { %10717 = vmatprep.subr.mxu0 %v8164_v54  ;;  %v676_v11 = vadd.f32 %v12754_v36, %v520_v61  ;;  %v16525_v61 = vld [vmem:[#allocation9_spill] sm:$0xff] }
 0x43c   :  { %10718 = vmatpush3.msra.mxu0 %v8164_v54  ;;  %v670_v54 = vadd.f32 %v12740_v21, %v490_v41  ;;  %v674_v21 = vadd.f32 %v12750_v31, %v510_v25  ;;  %v16522_v25 = vld [vmem:[#allocation6_spill] sm:$0xff] }
 0x43d   :  { %10781 = vmatprep.subr.mxu0 %v13940_v30  ;;  %v500_v30 = vadd.f32 %v12720_v62, %v12722_v6  ;;  %v530_v6 = vadd.f32 %v12732_v10, %v12736_v3 }
 0x43e   :  { %v817_v49 = vadd.f32 %v12734_v60, %v670_v54  ;;  %v821_v2 = vadd.f32 %v12748_v28, %v674_v21  ;;  %v16526_v21 = vld [vmem:[#allocation13_spill] sm:$0xff] }
 0x43f   :  { %v672_v48 = vadd.f32 %v12744_v26, %v500_v30  ;;  %v16520_v30 = vld [vmem:[#allocation7_spill] sm:$0xff] }
 0x440   :  { %v1143_v56 = vadd.f32 %v13163_v12, %v817_v49  ;;  %v678_v12 = vadd.f32 %v12760_v42, %v530_v6  ;;  %v1147_v10 = vadd.f32 %v13171_v35, %v821_v2  ;;  %v16523_v49 = vld [vmem:[#allocation12_spill] sm:$0xff]  ;;  %v16527_v6 = vld [vmem:[#allocation14_spill] sm:$0xff]  ;;  %v16529_v2 = vld [vmem:[#allocation15_spill] sm:$0xff] }
 0x441   :  { %v819_v14 = vadd.f32 %v12738_v19, %v672_v48  ;;  %v823_v19 = vadd.f32 %v12758_v38, %v676_v11  ;;  %v16521_v48 = vld [vmem:[#allocation8_spill] sm:$0xff] }
 0x442   :  { %v1324_v62 = vadd.f32 %v13168_v33, %v1143_v56  ;;  %v825_v28 = vadd.f32 %v16522_v25, %v678_v12  ;;  %v16528_v12 = vld [vmem:[#allocation11_spill] sm:$0xff]  ;;  %v16533_v25 = vld [vmem:[#allocation18_spill] sm:$0xff] }
 0x443   :  { %v1145_v1 = vadd.f32 %v13166_v53, %v819_v14  ;;  %v1149_v42 = vadd.f32 %v16520_v30, %v823_v19  ;;  %v1328_v53 = vadd.f32 %v16521_v48, %v1147_v10  ;;  %v16530_v10 = vld [vmem:[#allocation16_spill] sm:$0xff]  ;;  %v14042_v48 = vpop.permute.xlu1 %3254 }
 0x444   :  { %v1466_v26 = vadd.f32 %v13185_v37, %v1324_v62  ;;  %16531 = vst [vmem:[#allocation7_spill] sm:$0xff] %v14042_v48 }
 0x445   :  { %v1326_v3 = vadd.f32 %v13173_v17, %v1145_v1  ;;  %v1330_v38 = vadd.f32 %v16525_v61, %v1149_v42  ;;  %v1470_v62 = vadd.f32 %v16526_v21, %v1328_v53  ;;  %v16532_v53 = vld [vmem:[#allocation17_spill] sm:$0xff] }
 0x446   :  { %v1613_v33 = vadd.f32 %v13193_v0, %v1466_v26  ;;  %v16524_v0 = vld [vmem:[#allocation10_spill] sm:$0xff]  ;;  %v2410_v26 = vadd.f32 %v10452_v44, %v13624_v4  ;;  %v16536_v21 = vld [vmem:[#allocation21_spill] sm:$0xff] }
 0x447   :  { %v1468_v54 = vadd.f32 %v16523_v49, %v1326_v3  ;;  %v1151_v17 = vadd.f32 %v16524_v0, %v825_v28 }
 0x448   :  { %v1939_v37 = vadd.f32 %v13577_v9, %v1613_v33  ;;  %v1472_v33 = vadd.f32 %v16529_v2, %v1330_v38 }
 0x449   :  { %v1615_v9 = vadd.f32 %v16527_v6, %v1468_v54  ;;  %v1332_v1 = vadd.f32 %v16528_v12, %v1151_v17  ;;  %v14069_v6 = vld [vmem:[%s16453_s3] ss:$0 sm:$0xff] }
 0x44a   :  { %v2120_v35 = vadd.f32 %v13616_v57, %v1939_v37  ;;  %v1617_v57 = vadd.f32 %v16530_v10, %v1470_v62  ;;  %v1619_v4 = vadd.f32 %v16533_v25, %v1472_v33 }
 0x44b   :  { %v1941_v3 = vadd.f32 %v13589_v55, %v1615_v9  ;;  %v2412_v55 = vadd.f32 %v13947_v39, %v13628_v51  ;;  %v14060_v51 = vpop.permute.xlu0 %3244 }
 0x44c   :  { %v2262_v14 = vadd.f32 %v13626_v29, %v2120_v35  ;;  %v1474_v29 = vadd.f32 %v16532_v53, %v1332_v1  ;;  %v1943_v44 = vadd.f32 %v13598_v58, %v1617_v57  ;;  %16534 = vst [vmem:[#allocation8_spill] sm:$0xff] %v14060_v51  ;;  %v16539_v1 = vld [vmem:[#allocation23_spill] sm:$0xff]  ;;  %v16541_v53 = vld [vmem:[#allocation22_spill] sm:$0xff] }
 0x44d   :  { %v2122_v28 = vadd.f32 %v13618_v20, %v1941_v3 }
 0x44e   :  { %v2409_v30 = vadd.f32 %v13945_v16, %v2262_v14  ;;  %v1621_v16 = vadd.f32 %v13571_v63, %v1474_v29  ;;  %v2124_v0 = vadd.f32 %v13622_v34, %v1943_v44  ;;  %v16542_v29 = vld [vmem:[#allocation28_spill] sm:$0xff] }
 0x44f   :  { %v2264_v17 = vadd.f32 %v13630_v43, %v2122_v28  ;;  %v2416_v25 = vadd.f32 %v16542_v29, %v16541_v53  ;;  %v14088_v28 = vpop.permute.xlu0 %3249 }
 0x450   :  { %16543 = vst [vmem:[#allocation12_spill] sm:$0xff] %v14088_v28 }
 0x451   :  { %v2411_v34 = vadd.f32 %v13949_v24, %v2264_v17 }
 0x4a6   :  { %v10533_v5 = vpop.f32.mrf.mxu0 }
 0x4a7   :  { %v2736_v42 = vadd.f32 %v10533_v5, %v2410_v26  ;;  %v1945_v5 = vadd.f32 %v13613_v18, %v1619_v4  ;;  %v2266_v18 = vadd.f32 %v16536_v21, %v2124_v0  ;;  %v14074_v26 = vpop.permute.xlu1 %3259 }
 0x4a8   :  { %v13963_v40 = vpop.f32.mrf.mxu0  ;;  %16538 = vst [vmem:[#allocation6_spill] sm:$0xff] %v14074_v26 }
 0x4a9   :  { %v2735_v54 = vadd.f32 %v13963_v40, %v2409_v30  ;;  %v1947_v40 = vadd.f32 %v13620_v47, %v1621_v16  ;;  %v2413_v2 = vadd.f32 %v13953_v22, %v2266_v18  ;;  %v16540_v30 = vld [vmem:[#allocation25_spill] sm:$0xff] }
 0x4aa   :  { %v13967_v46 = vpop.f32.mrf.mxu0 }
 0x4ab   :  { %v2738_v20 = vadd.f32 %v13967_v46, %v2412_v55  ;;  %v16537_v46 = vld [vmem:[#allocation20_spill] sm:$0xff]  ;;  %v2128_v12 = vadd.f32 %v13943_v15, %v1947_v40  ;;  %v16547_v40 = vld [vmem:[#allocation30_spill] sm:$0xff] }
 0x4ac   :  { %v13965_v50 = vpop.f32.mrf.mxu1  ;;  %v13971_v13 = vpop.f32.mrf.mxu0 }
 0x4ad   :  { %v2917_v35 = vadd.f32 %v13965_v50, %v2736_v42  ;;  %v16535_v50 = vld [vmem:[#allocation19_spill] sm:$0xff]  ;;  %v2737_v33 = vadd.f32 %v13971_v13, %v2411_v34  ;;  %v2270_v42 = vadd.f32 %v16540_v30, %v2128_v12 }
 0x4ae   :  { %v13969_v7 = vpop.f32.mrf.mxu1  ;;  %v2126_v63 = vadd.f32 %v16535_v50, %v1945_v5 }
 0x4af   :  { %v2916_v38 = vadd.f32 %v13969_v7, %v2735_v54  ;;  %v2414_v7 = vadd.f32 %v13951_v27, %v16537_v46  ;;  %v16544_v54 = vld [vmem:[#allocation29_spill] sm:$0xff] }
 0x4b0   :  { %v13975_v45 = vpop.f32.mrf.mxu0  ;;  %v2268_v24 = vadd.f32 %v16539_v1, %v2126_v63 }
 0x4b1   :  { %v2740_v3 = vadd.f32 %v13975_v45, %v2414_v7  ;;  %v16548_v7 = vld [vmem:[#allocation31_spill] sm:$0xff] }
 0x4b2   :  { %v13973_v23 = vpop.f32.mrf.mxu1  ;;  %v13982_v52 = vpop.f32.mrf.mxu0 }
 0x4b3   :  { %v2919_v9 = vadd.f32 %v13973_v23, %v2738_v20  ;;  %v2739_v15 = vadd.f32 %v13982_v52, %v2413_v2 }
 0x4b4   :  { %v13979_v8 = vpop.f32.mrf.mxu1 }
 0x4b5   :  { %v13992_v32 = vpop.f32.mrf.mxu0  ;;  %v2918_v4 = vadd.f32 %v13979_v8, %v2737_v33 }
 0x4b6   :  { %v2742_v16 = vadd.f32 %v13992_v32, %v2416_v25 }
 0x4b7   :  { %v14005_v60 = vpop.f32.mrf.mxu0 }
 0x4b8   :  { %v13986_v59 = vpop.f32.mrf.mxu1 }
 0x4b9   :  { %v2921_v13 = vadd.f32 %v13986_v59, %v2740_v3  ;;  %v14111_v3 = vpop.permute.xlu0 %3264 }
 0x4ba   :  { %v13998_v41 = vpop.f32.mrf.mxu1  ;;  %16549 = vst [vmem:[#allocation9_spill] sm:$0xff] %v14111_v3 }
 0x4bb   :  { %v14017_v36 = vpop.f32.mrf.mxu0  ;;  %v2920_v5 = vadd.f32 %v13998_v41, %v2739_v15 }
 0x4bd   :  { %v14031_v11 = vpop.f32.mrf.mxu0 }
 0x4bf   :  { %v14011_v31 = vpop.f32.mrf.mxu1 }
 0x4c0   :  { %v2923_v32 = vadd.f32 %v14011_v31, %v2742_v16 }
 0x4c1   :  { %v14024_v56 = vpop.f32.mrf.mxu1 }
 0x4c4   :  { %v14039_v19 = vpop.f32.mrf.mxu1 }
 0x4c6   :  { %v14056_v61 = vpop.f32.mrf.mxu1 }
 0x4ce   :  { %v10627_v37 = vpop.f32.mrf.mxu0 }
 0x4cf   :  { %v3059_v39 = vadd.f32 %v10627_v37, %v2917_v35  ;;  %v2415_v35 = vadd.f32 %v16544_v54, %v2268_v24 }
 0x4d0   :  { %v3009_v49 = vpop.f32.mrf.mxu0 }
 0x4d1   :  { %v3058_v14 = vadd.f32 %v3009_v49, %v2916_v38  ;;  %v14096_v38 = vpop.permute.xlu1 %3269  ;;  %v2741_v63 = vadd.f32 %v14005_v60, %v2415_v35  ;;  %v14122_v35 = vpop.permute.xlu0 %3274 }
 0x4d2   :  { %v10630_v58 = vpop.f32.mrf.mxu0  ;;  %16545 = vst [vmem:[#allocation10_spill] sm:$0xff] %v14096_v38  ;;  %16551 = vst [vmem:[#allocation14_spill] sm:$0xff] %v14122_v35 }
 0x4d3   :  { %v3061_v37 = vadd.f32 %v10630_v58, %v2919_v9  ;;  %v2417_v9 = vadd.f32 %v16548_v7, %v2270_v42 }
 0x4d4   :  { %v3019_v62 = vpop.f32.mrf.mxu0  ;;  %v10674_v43 = vpop.f32.mrf.mxu1 }
 0x4d5   :  { %v3206_v47 = vadd.f32 %v10674_v43, %v3059_v39  ;;  %v3060_v0 = vadd.f32 %v3019_v62, %v2918_v4  ;;  %v16546_v39 = vld [vmem:[#allocation24_spill] sm:$0xff] }
 0x4d6   :  { %v10633_v10 = vpop.f32.mrf.mxu0  ;;  %v3156_v57 = vpop.f32.mrf.mxu1  ;;  %v2418_v50 = vadd.f32 %v16547_v40, %v16546_v39  ;;  %v16553_v40 = vmov 0.0  }
 0x4d7   :  { %v3223_v27 = vadd.f32 %v14069_v6, %v3206_v47  ;;  %v3205_v23 = vadd.f32 %v3156_v57, %v3058_v14  ;;  %v3063_v58 = vadd.f32 %v10633_v10, %v2921_v13  ;;  %v2922_v47 = vadd.f32 %v14024_v56, %v2741_v63 }
 0x4d8   :  { %v3029_v22 = vpop.f32.mrf.mxu0  ;;  %v10677_v44 = vpop.f32.mrf.mxu1  ;;  %v2744_v14 = vadd.f32 %v14017_v36, %v2418_v50  ;;  %v2743_v10 = vadd.f32 %v14031_v11, %v2417_v9  ;;  %v3383_v50 = vrot.slane %v16553_v40, 1 }
 0x4d9   :  { %v3233_v45 = vmax.f32 %v3223_v27, 0.0  ;;  %v3222_v49 = vadd.f32 %v14069_v6, %v3205_v23  ;;  %v3208_v55 = vadd.f32 %v10677_v44, %v3061_v37  ;;  %v3062_v62 = vadd.f32 %v3029_v22, %v2920_v5  ;;  %v14116_v11 = vpop.permute.xlu1 %3279 }
 0x4da   :  { %v10636_v52 = vpop.f32.mrf.mxu0  ;;  %v3166_v17 = vpop.f32.mrf.mxu1  ;;  %v2925_v57 = vadd.f32 %v14039_v19, %v2744_v14  ;;  %v2924_v53 = vadd.f32 %v14056_v61, %v2743_v10  ;;  %16550 = vst [vmem:[#allocation13_spill] sm:$0xff] %v14116_v11 }
 0x4db   :  { %v3293_v8 = vmul.f32 %v14088_v28, %v3233_v45  ;;  %v3232_v20 = vmax.f32 %v3222_v49, 0.0  ;;  %v3225_v59 = vadd.f32 %v14069_v6, %v3208_v55  ;;  %v3207_v21 = vadd.f32 %v3166_v17, %v3060_v0  ;;  %v14147_v14 = vpop.permute.xlu0 %3284 }
 0x4dc   :  { %v3039_v41 = vpop.f32.mrf.mxu0  ;;  %v10680_v18 = vpop.f32.mrf.mxu1  ;;  %v3065_v31 = vadd.f32 %v10636_v52, %v2923_v32  ;;  %16555 = vst [vmem:[#allocation15_spill] sm:$0xff] %v14147_v14 }
 0x4dd   :  { %3305 = vst [vmem:[#allocation2 + $0x11] sm:$0xff] %v3293_v8  ;;  %v3292_v34 = vmul.f32 %v14060_v51, %v3232_v20  ;;  %v3235_v43 = vmax.f32 %v3225_v59, 0.0  ;;  %v3210_v46 = vadd.f32 %v10680_v18, %v3063_v58  ;;  %v3224_v12 = vadd.f32 %v14069_v6, %v3207_v21  ;;  %v14128_v59 = vpop.permute.xlu1 %3289 }
 0x4de   :  { %v10639_v60 = vpop.f32.mrf.mxu0  ;;  %v3176_v1 = vpop.f32.mrf.mxu1  ;;  %v3064_v56 = vadd.f32 %v3039_v41, %v2922_v47  ;;  %16552 = vst [vmem:[#allocation11_spill] sm:$0xff] %v14128_v59  ;;  %v8210_v41 = vld [vmem:[%s16454_s4 + $0x1f0] sm:$0xff] }
 0x4df   :  { %3304 = vst [vmem:[#allocation2 + $0x9] sm:$0xff] %v3292_v34  ;;  %v3227_v24 = vadd.f32 %v14069_v6, %v3210_v46  ;;  %v3209_v2 = vadd.f32 %v3176_v1, %v3062_v62  ;;  %v3295_v33 = vmul.f32 %v14074_v26, %v3235_v43  ;;  %v3234_v36 = vmax.f32 %v3224_v12, 0.0  ;;  %v16554_v43 = vld [vmem:[#allocation26_spill] sm:$0xff] }
 0x4e0   :  { %v10683_v37 = vpop.f32.mrf.mxu1  ;;  %v3049_v30 = vpop.f32.mrf.mxu0  ;;  %v3067_v25 = vadd.f32 %v10639_v60, %v2925_v57 }
 0x4e1   :  { %v3237_v27 = vmax.f32 %v3227_v24, 0.0  ;;  %v3226_v23 = vadd.f32 %v14069_v6, %v3209_v2  ;;  %3307 = vst [vmem:[#allocation2 + $0x21] sm:$0xff] %v3295_v33  ;;  %v3212_v42 = vadd.f32 %v10683_v37, %v3065_v31  ;;  %v3294_v29 = vmul.f32 %v14042_v48, %v3234_v36  ;;  %v8194_v24 = vld [vmem:[%s16454_s4 + $0x170] sm:$0xff]  ;;  %v8208_v2 = vld [vmem:[%s16454_s4 + $0x1e0] sm:$0xff]  ;;  %v16556_v37 = vld [vmem:[#allocation27_spill] sm:$0xff] }
 0x4e2   :  { %v3186_v15 = vpop.f32.mrf.mxu1  ;;  %v3066_v13 = vadd.f32 %v3049_v30, %v2924_v53  ;;  %v8193_v30 = vld [vmem:[%s16454_s4 + $0x168] sm:$0xff] }
 0x4e3   :  { %v3236_v19 = vmax.f32 %v3226_v23, 0.0  ;;  %v3229_v4 = vadd.f32 %v14069_v6, %v3212_v42  ;;  %v3211_v22 = vadd.f32 %v3186_v15, %v3064_v56  ;;  %v3297_v44 = vmul.f32 %v14096_v38, %v3237_v27  ;;  %3306 = vst [vmem:[#allocation2 + $0x19] sm:$0xff] %v3294_v29  ;;  %v8207_v42 = vld [vmem:[%s16454_s4 + $0x1d8] sm:$0xff] }
 0x4e4   :  { %v10686_v45 = vpop.f32.mrf.mxu1 }
 0x4e5   :  { %v3296_v49 = vmul.f32 %v14111_v3, %v3236_v19  ;;  %v3239_v55 = vmax.f32 %v3229_v4, 0.0  ;;  %v3228_v61 = vadd.f32 %v14069_v6, %v3211_v22  ;;  %3309 = vst [vmem:[#allocation2 + $0x31] sm:$0xff] %v3297_v44  ;;  %v3214_v54 = vadd.f32 %v10686_v45, %v3067_v25  ;;  %v8192_v4 = vld [vmem:[%s16454_s4 + $0x160] sm:$0xff]  ;;  %v8206_v22 = vld [vmem:[%s16454_s4 + $0x1d0] sm:$0xff] }
 0x4e6   :  { %v3196_v16 = vpop.f32.mrf.mxu1  ;;  %v3317_v5 = vld [vmem:[#allocation2 + $0x8] sm:$0xff]  ;;  %v3318_v0 = vld [vmem:[#allocation2 + $0x10] sm:$0xff] }
 0x4e7   :  { %3308 = vst [vmem:[#allocation2 + $0x29] sm:$0xff] %v3296_v49  ;;  %v3238_v52 = vmax.f32 %v3228_v61, 0.0  ;;  %v3231_v17 = vadd.f32 %v14069_v6, %v3214_v54  ;;  %v3213_v8 = vadd.f32 %v3196_v16, %v3066_v13  ;;  %v3299_v58 = vmul.f32 %v14116_v11, %v3239_v55  ;;  %v8191_v49 = vld [vmem:[%s16454_s4 + $0x158] sm:$0xff]  ;;  %v8205_v55 = vld [vmem:[%s16454_s4 + $0x1c8] sm:$0xff] }
 0x4e8   :  { %v14126_v20 = vmax.f32 %v3317_v5, 0.0  ;;  %v14130_v39 = vmax.f32 %v3318_v0, 0.0  ;;  %v8190_v0 = vld [vmem:[%s16454_s4 + $0x150] sm:$0xff] }
 0x4e9   :  { %v3298_v63 = vmul.f32 %v14122_v35, %v3238_v52  ;;  %v3241_v32 = vmax.f32 %v3231_v17, 0.0  ;;  %v3230_v21 = vadd.f32 %v14069_v6, %v3213_v8  ;;  %3311 = vst [vmem:[#allocation2 + $0x41] sm:$0xff] %v3299_v58  ;;  %v8209_v6 = vld [vmem:[%s16454_s4 + $0x1e8] sm:$0xff]  ;;  %v8204_v52 = vld [vmem:[%s16454_s4 + $0x1c0] sm:$0xff] }
 0x4ea   :  { %10767 = vmatmul.mubr.f32.vlgmr.msra.gmra.mxu1 %v14126_v20  ;;  %v3384_v18 = vrot.slane %v14126_v20, 1  ;;  %v3386_v34 = vrot.slane %v14130_v39, 1  ;;  %v3319_v7 = vld [vmem:[#allocation2 + $0x18] sm:$0xff]  ;;  %v3320_v9 = vld [vmem:[#allocation2 + $0x20] sm:$0xff]  ;;  %v8189_v58 = vld [vmem:[%s16454_s4 + $0x148] sm:$0xff] }
 0x4eb   :  { %3310 = vst [vmem:[#allocation2 + $0x39] sm:$0xff] %v3298_v63  ;;  %v3240_v62 = vmax.f32 %v3230_v21, 0.0  ;;  %10829 = vmatpush3.msra.mxu1 %v16554_v43  ;;  %v3301_v46 = vmul.f32 %v14128_v59, %v3241_v32  ;;  %10769 = vmatprep.mubr.f32.mxu1 %v14130_v39  ;;  %v14153_v60 = vmax.f32 %v3319_v7, 0.0  ;;  %v14155_v1 = vmax.f32 %v3320_v9, 0.0  ;;  %v8188_v21 = vld [vmem:[%s16454_s4 + $0x140] sm:$0xff]  ;;  %v8199_v9 = vld [vmem:[%s16454_s4 + $0x198] sm:$0xff] }
 0x4ec   :  { %10830 = vmatprep.subr.mxu1 %v8210_v41  ;;  %v3385_v47 = vsel %vm278_vm1, %v3383_v50, %v3384_v18  ;;  %v14151_v12 = vsel %vm278_vm1, %v3384_v18, %v3386_v34  ;;  %v8203_v50 = vld [vmem:[%s16454_s4 + $0x1b8] sm:$0xff]  ;;  %v3660_v43 = vrot.slane %v16553_v40, 2  ;;  %v8200_v7 = vld [vmem:[%s16454_s4 + $0x1a0] sm:$0xff]  ;;  %v8185_v40 = vld [vmem:[%s16454_s4 + $0x128] sm:$0xff] }
 0x4ed   :  { %v3300_v31 = vmul.f32 %v14147_v14, %v3240_v62  ;;  %3313 = vst [vmem:[#allocation2 + $0x51] sm:$0xf] %v3301_v46  ;;  %10831 = vmatpush3.msra.mxu1 %v8210_v41  ;;  %10719 = vmatprep.mubr.f32.mxu0 %v3385_v47  ;;  %v3388_v33 = vrot.slane %v14153_v60, 1  ;;  %v3390_v10 = vrot.slane %v14155_v1, 1  ;;  %v8202_v41 = vld [vmem:[%s16454_s4 + $0x1b0] sm:$0xff]  ;;  %v8201_v62 = vld [vmem:[%s16454_s4 + $0x1a8] sm:$0xff] }
 0x4ee   :  { %10832 = vmatprep.subr.mxu1 %v8209_v6  ;;  %10720 = vmatmul.mubr.f32.vlgmr.msra.gmra.mxu0 %v14151_v12  ;;  %v3321_v57 = vld [vmem:[#allocation2 + $0x28] sm:$0xff]  ;;  %v3322_v36 = vld [vmem:[#allocation2 + $0x30] sm:$0xff]  ;;  %v3661_v46 = vrot.slane %v14126_v20, 2  ;;  %v8184_v47 = vld [vmem:[%s16454_s4 + $0x120] sm:$0xff] }
 0x4ef   :  { %3312 = vst [vmem:[#allocation2 + $0x49] sm:$0xff] %v3300_v31  ;;  %10770 = vmatmul.mubr.f32.gmra.mxu1 %v14153_v60  ;;  %10782 = vmatpush3.msra.mxu0 %v16556_v37  ;;  %v14169_v56 = vmax.f32 %v3321_v57, 0.0  ;;  %v14171_v27 = vmax.f32 %v3322_v36, 0.0  ;;  %v14175_v23 = vsel %vm278_vm1, %v3386_v34, %v3388_v33  ;;  %v14184_v53 = vsel %vm278_vm1, %v3388_v33, %v3390_v10  ;;  %v8187_v34 = vld [vmem:[%s16454_s4 + $0x138] sm:$0xff]  ;;  %v8198_v31 = vld [vmem:[%s16454_s4 + $0x190] sm:$0xff]  ;;  %v8181_v57 = vld [vmem:[%s16454_s4 + $0x108] sm:$0xff] }
 0x4f0   :  { %10833 = vmatpush3.msra.mxu1 %v8209_v6  ;;  %10772 = vmatprep.mubr.f32.mxu1 %v14155_v1  ;;  %v8186_v6 = vld [vmem:[%s16454_s4 + $0x130] sm:$0xff]  ;;  %v8243_v36 = vld [vmem:[%s16454_s4 + $0x2f8] sm:$0xff]  ;;  %v8180_v37 = vld [vmem:[%s16454_s4 + $0x100] sm:$0xff] }
 0x4f1   :  { %10783 = vmatprep.subr.mxu0 %v8194_v24  ;;  %10834 = vmatprep.subr.mxu1 %v8208_v2  ;;  %v3392_v29 = vrot.slane %v14169_v56, 1  ;;  %v3394_v19 = vrot.slane %v14171_v27, 1  ;;  %v8182_v33 = vld [vmem:[%s16454_s4 + $0x110] sm:$0xff] }
 0x4f2   :  { %10784 = vmatpush3.msra.mxu0 %v8194_v24  ;;  %10835 = vmatpush3.msra.mxu1 %v8208_v2  ;;  %v3323_v25 = vld [vmem:[#allocation2 + $0x38] sm:$0xff]  ;;  %v3324_v15 = vld [vmem:[#allocation2 + $0x40] sm:$0xff]  ;;  %v8197_v2 = vld [vmem:[%s16454_s4 + $0x188] sm:$0xff] }
 0x4f3   :  { %10722 = vmatprep.mubr.f32.mxu0 %v14175_v23  ;;  %10785 = vmatprep.subr.mxu0 %v8193_v30  ;;  %v14196_v44 = vmax.f32 %v3323_v25, 0.0  ;;  %v14199_v13 = vmax.f32 %v3324_v15, 0.0  ;;  %v14203_v45 = vsel %vm278_vm1, %v3390_v10, %v3392_v29  ;;  %v14212_v61 = vsel %vm278_vm1, %v3392_v29, %v3394_v19  ;;  %v8183_v24 = vld [vmem:[%s16454_s4 + $0x118] sm:$0xff]  ;;  %v8196_v10 = vld [vmem:[%s16454_s4 + $0x180] sm:$0xff] }
 0x4f4   :  { %10836 = vmatprep.subr.mxu1 %v8207_v42  ;;  %10723 = vmatmul.mubr.f32.gmra.mxu0 %v14184_v53  ;;  %v3665_v29 = vrot.slane %v14153_v60, 2  ;;  %v8227_v25 = vld [vmem:[%s16454_s4 + $0x278] sm:$0xff] }
 0x4f5   :  { %10773 = vmatmul.mubr.f32.gmra.mxu1 %v14169_v56  ;;  %10786 = vmatpush3.msra.mxu0 %v8193_v30  ;;  %v3396_v16 = vrot.slane %v14196_v44, 1  ;;  %v3398_v5 = vrot.slane %v14199_v13, 1  ;;  %v3663_v30 = vrot.slane %v14130_v39, 2 }
 0x4f6   :  { %10837 = vmatpush3.msra.mxu1 %v8207_v42  ;;  %10775 = vmatprep.mubr.f32.mxu1 %v14171_v27  ;;  %v3325_v54 = vld [vmem:[#allocation2 + $0x48] sm:$0xff]  ;;  %v8242_v42 = vld [vmem:[%s16454_s4 + $0x2f0] sm:$0xff] }
 0x4f7   :  { %10787 = vmatprep.subr.mxu0 %v8192_v4  ;;  %10838 = vmatprep.subr.mxu1 %v8206_v22  ;;  %v14224_v17 = vmax.f32 %v3325_v54, 0.0  ;;  %v14229_v8 = vsel %vm278_vm1, %v3394_v19, %v3396_v16  ;;  %v14238_v63 = vsel %vm278_vm1, %v3396_v16, %v3398_v5  ;;  %v14318_v15 = vsel %vm3659_vm2, %v3661_v46, %v3663_v30  ;;  %v8241_v19 = vld [vmem:[%s16454_s4 + $0x2e8] sm:$0xff] }
 0x4f8   :  { %10788 = vmatpush3.msra.mxu0 %v8192_v4  ;;  %10839 = vmatpush3.msra.mxu1 %v8206_v22  ;;  %v14326_v4 = vsel %vm3659_vm2, %v3663_v30, %v3665_v29  ;;  %v8226_v22 = vld [vmem:[%s16454_s4 + $0x270] sm:$0xff]  ;;  %v3669_v54 = vrot.slane %v14169_v56, 2  ;;  %v8225_v16 = vld [vmem:[%s16454_s4 + $0x268] sm:$0xff] }
 0x4f9   :  { %10725 = vmatprep.mubr.f32.mxu0 %v14203_v45  ;;  %10789 = vmatprep.subr.mxu0 %v8191_v49  ;;  %v14241_v32 = vrot.slane %v14224_v17, 1  ;;  %v8218_v30 = vld [vmem:[%s16454_s4 + $0x230] sm:$0xff] }
 0x4fa   :  { %10840 = vmatprep.subr.mxu1 %v8205_v55  ;;  %10726 = vmatmul.mubr.f32.gmra.mxu0 %v14212_v61 }
 0x4fb   :  { %10776 = vmatmul.mubr.f32.gmra.mxu1 %v14196_v44  ;;  %10790 = vmatpush3.msra.mxu0 %v8191_v49  ;;  %v14254_v18 = vsel %vm278_vm1, %v3398_v5, %v14241_v32  ;;  %v3667_v49 = vrot.slane %v14155_v1, 2 }
 0x4fc   :  { %10841 = vmatpush3.msra.mxu1 %v8205_v55  ;;  %10778 = vmatprep.mubr.f32.mxu1 %v14199_v13  ;;  %v8240_v55 = vld [vmem:[%s16454_s4 + $0x2e0] sm:$0xff] }
 0x4fd   :  { %10791 = vmatprep.subr.mxu0 %v8190_v0  ;;  %10842 = vmatprep.subr.mxu1 %v8204_v52  ;;  %v14342_v5 = vsel %vm3659_vm2, %v3665_v29, %v3667_v49  ;;  %v8217_v29 = vld [vmem:[%s16454_s4 + $0x228] sm:$0xff] }
 0x4fe   :  { %10792 = vmatpush3.msra.mxu0 %v8190_v0  ;;  %10843 = vmatpush3.msra.mxu1 %v8204_v52  ;;  %v8239_v0 = vld [vmem:[%s16454_s4 + $0x2d8] sm:$0xff]  ;;  %v14350_v52 = vsel %vm3659_vm2, %v3667_v49, %v3669_v54  ;;  %v8214_v49 = vld [vmem:[%s16454_s4 + $0x210] sm:$0xff] }
 0x4ff   :  { %10728 = vmatprep.mubr.f32.mxu0 %v14229_v8  ;;  %10793 = vmatprep.subr.mxu0 %v8189_v58 }
 0x500   :  { %10844 = vmatprep.subr.mxu1 %v8203_v50  ;;  %10729 = vmatmul.mubr.f32.gmra.mxu0 %v14238_v63 }
 0x501   :  { %10779 = vmatmul.mubr.f32.gmra.mxu1 %v14224_v17  ;;  %10794 = vmatpush3.msra.mxu0 %v8189_v58  ;;  %v8224_v58 = vld [vmem:[%s16454_s4 + $0x260] sm:$0xff] }
 0x502   :  { %10845 = vmatpush3.msra.mxu1 %v8203_v50  ;;  %10795 = vmatprep.subr.mxu0 %v8188_v21  ;;  %v3671_v50 = vrot.slane %v14171_v27, 2 }
 0x503   :  { %10846 = vmatprep.subr.mxu1 %v8202_v41  ;;  %10860 = vmatprep.mubr.f32.mxu1 %v14126_v20  ;;  %v3662_v20 = vsel %vm3659_vm2, %v3660_v43, %v3661_v46  ;;  %v8237_v43 = vld [vmem:[%s16454_s4 + $0x2c8] sm:$0xff] }
 0x504   :  { %10796 = vmatpush3.msra.mxu0 %v8188_v21  ;;  %10847 = vmatpush3.msra.mxu1 %v8202_v41  ;;  %v8238_v21 = vld [vmem:[%s16454_s4 + $0x2d0] sm:$0xff]  ;;  %v3673_v41 = vrot.slane %v14196_v44, 2 }
 0x505   :  { %10731 = vmatprep.mubr.f32.mxu0 %v14254_v18  ;;  %10797 = vmatprep.subr.mxu0 %v8187_v34 }
 0x506   :  { %10848 = vmatprep.subr.mxu1 %v8201_v62  ;;  %10732 = vmatmul.mubr.f32.gmra.mxu0 %v14241_v32  ;;  %v14374_v46 = vsel %vm3659_vm2, %v3671_v50, %v3673_v41 }
 0x507   :  { %10798 = vmatpush3.msra.mxu0 %v8187_v34  ;;  %10849 = vmatpush3.msra.mxu1 %v8201_v62  ;;  %v8223_v34 = vld [vmem:[%s16454_s4 + $0x258] sm:$0xff]  ;;  %v14366_v62 = vsel %vm3659_vm2, %v3669_v54, %v3671_v50  ;;  %v8213_v54 = vld [vmem:[%s16454_s4 + $0x208] sm:$0xff] }
 0x508   :  { %10799 = vmatprep.subr.mxu0 %v8186_v6  ;;  %10813 = vmatprep.mubr.f32.mxu0 %v3662_v20  ;;  %v8236_v20 = vld [vmem:[%s16454_s4 + $0x2c0] sm:$0xff]  ;;  %v8259_v50 = vld [vmem:[%s16454_s4 + $0x378] sm:$0xff] }
 0x509   :  { %10850 = vmatprep.subr.mxu1 %v8200_v7  ;;  %10800 = vmatpush3.msra.mxu0 %v8186_v6  ;;  %v8222_v6 = vld [vmem:[%s16454_s4 + $0x250] sm:$0xff] }
 0x50a   :  { %10851 = vmatpush3.msra.mxu1 %v8200_v7  ;;  %10801 = vmatprep.subr.mxu0 %v8185_v40  ;;  %v3675_v7 = vrot.slane %v14199_v13, 2 }
 0x50b   :  { %10852 = vmatprep.subr.mxu1 %v8199_v9  ;;  %10802 = vmatpush3.msra.mxu0 %v8185_v40  ;;  %v3326_v40 = vld [vmem:[#allocation2 + $0x50] sm:$0xff] }
 0x50c   :  { %10853 = vmatpush3.msra.mxu1 %v8199_v9  ;;  %10803 = vmatprep.subr.mxu0 %v8184_v47  ;;  %v14386_v9 = vrot.slane %v14224_v17, 2 }
 0x50d   :  { %10854 = vmatprep.subr.mxu1 %v8198_v31  ;;  %10804 = vmatpush3.msra.mxu0 %v8184_v47  ;;  %v8221_v47 = vld [vmem:[%s16454_s4 + $0x248] sm:$0xff] }
 0x50e   :  { %10855 = vmatpush3.msra.mxu1 %v8198_v31  ;;  %10805 = vmatprep.subr.mxu0 %v8183_v24  ;;  %v14392_v31 = vsel %vm3659_vm2, %v3673_v41, %v3675_v7  ;;  %v8258_v41 = vld [vmem:[%s16454_s4 + $0x370] sm:$0xff] }
 0x50f   :  { %10856 = vmatprep.subr.mxu1 %v8197_v2  ;;  %10806 = vmatpush3.msra.mxu0 %v8183_v24  ;;  %v14394_v24 = vmax.f32 %v3326_v40, 0.0  ;;  %v8255_v40 = vld [vmem:[%s16454_s4 + $0x358] sm:$0xff] }
 0x510   :  { %10857 = vmatpush3.msra.mxu1 %v8197_v2  ;;  %10807 = vmatprep.subr.mxu0 %v8182_v33  ;;  %v8235_v2 = vld [vmem:[%s16454_s4 + $0x2b8] sm:$0xff] }
 0x511   :  { %10858 = vmatprep.subr.mxu1 %v8196_v10  ;;  %10808 = vmatpush3.msra.mxu0 %v8182_v33  ;;  %v14403_v33 = vsel %vm3659_vm2, %v3675_v7, %v14386_v9  ;;  %v8256_v7 = vld [vmem:[%s16454_s4 + $0x360] sm:$0xff] }
 0x512   :  { %10859 = vmatpush3.msra.mxu1 %v8196_v10  ;;  %10809 = vmatprep.subr.mxu0 %v8181_v57  ;;  %v8220_v10 = vld [vmem:[%s16454_s4 + $0x240] sm:$0xff] }
 0x513   :  { %10861 = vmatmul.mubr.f32.vlgmr.msra.gmra.mxu1 %v14130_v39  ;;  %10922 = vmatprep.subr.mxu1 %v8243_v36 }
 0x514   :  { %10810 = vmatpush3.msra.mxu0 %v8181_v57  ;;  %10863 = vmatprep.mubr.f32.mxu1 %v14153_v60  ;;  %v8234_v57 = vld [vmem:[%s16454_s4 + $0x2b0] sm:$0xff] }
 0x515   :  { %10923 = vmatpush3.msra.mxu1 %v8243_v36  ;;  %10811 = vmatprep.subr.mxu0 %v8180_v37  ;;  %v8219_v36 = vld [vmem:[%s16454_s4 + $0x238] sm:$0xff] }
 0x516   :  { %10924 = vmatprep.subr.mxu1 %v8242_v42  ;;  %10812 = vmatpush3.msra.mxu0 %v8180_v37  ;;  %v8233_v37 = vld [vmem:[%s16454_s4 + $0x2a8] sm:$0xff] }
 0x517   :  { %10925 = vmatpush3.msra.mxu1 %v8242_v42  ;;  %10814 = vmatmul.mubr.f32.vlgmr.msra.gmra.mxu0 %v14318_v15  ;;  %v8232_v42 = vld [vmem:[%s16454_s4 + $0x2a0] sm:$0xff] }
 0x518   :  { %10864 = vmatmul.mubr.f32.gmra.mxu1 %v14155_v1  ;;  %10875 = vmatprep.subr.mxu0 %v8227_v25 }
 0x519   :  { %10926 = vmatprep.subr.mxu1 %v8241_v19  ;;  %10816 = vmatprep.mubr.f32.mxu0 %v14326_v4 }
 0x51a   :  { %10866 = vmatprep.mubr.f32.mxu1 %v14169_v56  ;;  %10876 = vmatpush3.msra.mxu0 %v8227_v25  ;;  %v8231_v25 = vld [vmem:[%s16454_s4 + $0x298] sm:$0xff] }
 0x51b   :  { %10927 = vmatpush3.msra.mxu1 %v8241_v19  ;;  %10877 = vmatprep.subr.mxu0 %v8226_v22  ;;  %v8215_v19 = vld [vmem:[%s16454_s4 + $0x218] sm:$0xff] }
 0x51c   :  { %10928 = vmatprep.subr.mxu1 %v8240_v55  ;;  %10878 = vmatpush3.msra.mxu0 %v8226_v22  ;;  %v8229_v22 = vld [vmem:[%s16454_s4 + $0x288] sm:$0xff] }
 0x51d   :  { %10929 = vmatpush3.msra.mxu1 %v8240_v55  ;;  %10817 = vmatmul.mubr.f32.gmra.mxu0 %v14342_v5  ;;  %v8228_v55 = vld [vmem:[%s16454_s4 + $0x280] sm:$0xff] }
 0x51e   :  { %10867 = vmatmul.mubr.f32.gmra.mxu1 %v14171_v27  ;;  %10879 = vmatprep.subr.mxu0 %v8225_v16 }
 0x51f   :  { %10930 = vmatprep.subr.mxu1 %v8239_v0  ;;  %10819 = vmatprep.mubr.f32.mxu0 %v14350_v52 }
 0x520   :  { %10869 = vmatprep.mubr.f32.mxu1 %v14196_v44  ;;  %10880 = vmatpush3.msra.mxu0 %v8225_v16  ;;  %v8275_v16 = vld [vmem:[%s16454_s4 + $0x3f8] sm:$0xff] }
 0x521   :  { %10931 = vmatpush3.msra.mxu1 %v8239_v0  ;;  %10881 = vmatprep.subr.mxu0 %v8224_v58  ;;  %v8212_v0 = vld [vmem:[%s16454_s4 + $0x200] sm:$0xff] }
 0x522   :  { %10932 = vmatprep.subr.mxu1 %v8238_v21  ;;  %10882 = vmatpush3.msra.mxu0 %v8224_v58  ;;  %v8274_v58 = vld [vmem:[%s16454_s4 + $0x3f0] sm:$0xff] }
 0x523   :  { %10933 = vmatpush3.msra.mxu1 %v8238_v21  ;;  %10820 = vmatmul.mubr.f32.gmra.mxu0 %v14366_v62  ;;  %v8273_v21 = vld [vmem:[%s16454_s4 + $0x3e8] sm:$0xff] }
 0x524   :  { %10870 = vmatmul.mubr.f32.gmra.mxu1 %v14199_v13  ;;  %10883 = vmatprep.subr.mxu0 %v8223_v34 }
 0x525   :  { %10934 = vmatprep.subr.mxu1 %v8237_v43  ;;  %10822 = vmatprep.mubr.f32.mxu0 %v14374_v46 }
 0x526   :  { %10872 = vmatprep.mubr.f32.mxu1 %v14224_v17  ;;  %10884 = vmatpush3.msra.mxu0 %v8223_v34  ;;  %v8272_v34 = vld [vmem:[%s16454_s4 + $0x3e0] sm:$0xff] }
 0x527   :  { %10935 = vmatpush3.msra.mxu1 %v8237_v43  ;;  %10885 = vmatprep.subr.mxu0 %v8222_v6  ;;  %v8257_v43 = vld [vmem:[%s16454_s4 + $0x368] sm:$0xff] }
 0x528   :  { %10936 = vmatprep.subr.mxu1 %v8236_v20  ;;  %10886 = vmatpush3.msra.mxu0 %v8222_v6  ;;  %v8271_v6 = vld [vmem:[%s16454_s4 + $0x3d8] sm:$0xff] }
 0x529   :  { %10937 = vmatpush3.msra.mxu1 %v8236_v20  ;;  %10823 = vmatmul.mubr.f32.gmra.mxu0 %v14392_v31  ;;  %v8270_v20 = vld [vmem:[%s16454_s4 + $0x3d0] sm:$0xff] }
 0x52a   :  { %10873 = vmatmul.mubr.f32.gmra.mxu1 %v14394_v24  ;;  %10887 = vmatprep.subr.mxu0 %v8221_v47 }
 0x52b   :  { %10938 = vmatprep.subr.mxu1 %v8235_v2  ;;  %10825 = vmatprep.mubr.f32.mxu0 %v14403_v33 }
 0x52c   :  { %10888 = vmatpush3.msra.mxu0 %v8221_v47  ;;  %10939 = vmatpush3.msra.mxu1 %v8235_v2  ;;  %v14501_v47 = vrot.slane %v14394_v24, 2  ;;  %v8269_v2 = vld [vmem:[%s16454_s4 + $0x3c8] sm:$0xff] }
 0x52d   :  { %10954 = vmatprep.mubr.f32.mxu1 %v14318_v15  ;;  %10889 = vmatprep.subr.mxu0 %v8220_v10  ;;  %v8216_v15 = vld [vmem:[%s16454_s4 + $0x220] sm:$0xff] }
 0x52e   :  { %10940 = vmatprep.subr.mxu1 %v8234_v57  ;;  %10890 = vmatpush3.msra.mxu0 %v8220_v10  ;;  %v8254_v10 = vld [vmem:[%s16454_s4 + $0x350] sm:$0xff] }
 0x52f   :  { %10941 = vmatpush3.msra.mxu1 %v8234_v57  ;;  %10826 = vmatmul.mubr.f32.gmra.mxu0 %v14386_v9  ;;  %v14515_v57 = vsel %vm3659_vm2, %v14386_v9, %v14501_v47  ;;  %v8267_v9 = vld [vmem:[%s16454_s4 + $0x3b8] sm:$0xff] }
 0x530   :  { %10891 = vmatprep.subr.mxu0 %v8219_v36  ;;  %10942 = vmatprep.subr.mxu1 %v8233_v37 }
 0x531   :  { %10892 = vmatpush3.msra.mxu0 %v8219_v36  ;;  %10907 = vmatprep.mubr.f32.mxu0 %v14151_v12  ;;  %v8230_v12 = vld [vmem:[%s16454_s4 + $0x290] sm:$0xff]  ;;  %v8268_v36 = vld [vmem:[%s16454_s4 + $0x3c0] sm:$0xff] }
 0x532   :  { %10943 = vmatpush3.msra.mxu1 %v8233_v37  ;;  %10893 = vmatprep.subr.mxu0 %v8218_v30  ;;  %v14522_v37 = vrot.slane %v14394_v24, 1 }
 0x533   :  { %10944 = vmatprep.subr.mxu1 %v8232_v42  ;;  %10894 = vmatpush3.msra.mxu0 %v8218_v30  ;;  %v8253_v30 = vld [vmem:[%s16454_s4 + $0x348] sm:$0xff] }
 0x534   :  { %10945 = vmatpush3.msra.mxu1 %v8232_v42  ;;  %10895 = vmatprep.subr.mxu0 %v8217_v29  ;;  %v14535_v42 = vsel %vm278_vm1, %v14241_v32, %v14522_v37  ;;  %v8251_v32 = vld [vmem:[%s16454_s4 + $0x338] sm:$0xff] }
 0x535   :  { %10946 = vmatprep.subr.mxu1 %v8231_v25  ;;  %10896 = vmatpush3.msra.mxu0 %v8217_v29  ;;  %v8252_v29 = vld [vmem:[%s16454_s4 + $0x340] sm:$0xff] }
 0x536   :  { %10947 = vmatpush3.msra.mxu1 %v8231_v25  ;;  %10897 = vmatprep.subr.mxu0 %v8216_v15  ;;  %v8266_v25 = vld [vmem:[%s16454_s4 + $0x3b0] sm:$0xff] }
 0x537   :  { %10948 = vmatprep.subr.mxu1 %v8230_v12  ;;  %10898 = vmatpush3.msra.mxu0 %v8216_v15  ;;  %v8265_v15 = vld [vmem:[%s16454_s4 + $0x3a8] sm:$0xff] }
 0x538   :  { %10949 = vmatpush3.msra.mxu1 %v8230_v12  ;;  %10899 = vmatprep.subr.mxu0 %v8215_v19  ;;  %v8250_v12 = vld [vmem:[%s16454_s4 + $0x330] sm:$0xff] }
 0x539   :  { %10950 = vmatprep.subr.mxu1 %v8229_v22  ;;  %10900 = vmatpush3.msra.mxu0 %v8215_v19  ;;  %v8249_v19 = vld [vmem:[%s16454_s4 + $0x328] sm:$0xff] }
 0x53a   :  { %10951 = vmatpush3.msra.mxu1 %v8229_v22  ;;  %10901 = vmatprep.subr.mxu0 %v8214_v49  ;;  %v8263_v22 = vld [vmem:[%s16454_s4 + $0x398] sm:$0xff] }
 0x53b   :  { %10952 = vmatprep.subr.mxu1 %v8228_v55  ;;  %10902 = vmatpush3.msra.mxu0 %v8214_v49  ;;  %v8248_v49 = vld [vmem:[%s16454_s4 + $0x320] sm:$0xff] }
 0x53c   :  { %10953 = vmatpush3.msra.mxu1 %v8228_v55  ;;  %10903 = vmatprep.subr.mxu0 %v8213_v54  ;;  %v8247_v55 = vld [vmem:[%s16454_s4 + $0x318] sm:$0xff] }
 0x53d   :  { %10955 = vmatmul.mubr.f32.vlgmr.msra.gmra.mxu1 %v14326_v4  ;;  %11016 = vmatprep.subr.mxu1 %v8275_v16 }
 0x53e   :  { %10904 = vmatpush3.msra.mxu0 %v8213_v54  ;;  %10957 = vmatprep.mubr.f32.mxu1 %v14342_v5  ;;  %v8261_v54 = vld [vmem:[%s16454_s4 + $0x388] sm:$0xff] }
 0x53f   :  { %11017 = vmatpush3.msra.mxu1 %v8275_v16  ;;  %10905 = vmatprep.subr.mxu0 %v8212_v0  ;;  %v8246_v16 = vld [vmem:[%s16454_s4 + $0x310] sm:$0xff] }
 0x540   :  { %11018 = vmatprep.subr.mxu1 %v8274_v58  ;;  %10906 = vmatpush3.msra.mxu0 %v8212_v0  ;;  %v8260_v0 = vld [vmem:[%s16454_s4 + $0x380] sm:$0xff] }
 0x541   :  { %11019 = vmatpush3.msra.mxu1 %v8274_v58  ;;  %10908 = vmatmul.mubr.f32.vlgmr.msra.gmra.mxu0 %v14175_v23  ;;  %v8245_v58 = vld [vmem:[%s16454_s4 + $0x308] sm:$0xff] }
 0x542   :  { %10958 = vmatmul.mubr.f32.gmra.mxu1 %v14350_v52  ;;  %10969 = vmatprep.subr.mxu0 %v8259_v50 }
 0x543   :  { %11020 = vmatprep.subr.mxu1 %v8273_v21  ;;  %10910 = vmatprep.mubr.f32.mxu0 %v14184_v53 }
 0x544   :  { %10960 = vmatprep.mubr.f32.mxu1 %v14366_v62  ;;  %10970 = vmatpush3.msra.mxu0 %v8259_v50  ;;  %v8244_v50 = vld [vmem:[%s16454_s4 + $0x300] sm:$0xff] }
 0x545   :  { %11021 = vmatpush3.msra.mxu1 %v8273_v21  ;;  %10971 = vmatprep.subr.mxu0 %v8258_v41  ;;  %v8291_v21 = vld [vmem:[%s16454_s4 + $0x478] sm:$0xff] }
 0x546   :  { %11022 = vmatprep.subr.mxu1 %v8272_v34  ;;  %10972 = vmatpush3.msra.mxu0 %v8258_v41  ;;  %v3327_v41 = vld [vmem:[#allocation2 + $0x58] sm:$0xff] }
 0x547   :  { %11023 = vmatpush3.msra.mxu1 %v8272_v34  ;;  %10911 = vmatmul.mubr.f32.gmra.mxu0 %v14203_v45  ;;  %v8290_v34 = vld [vmem:[%s16454_s4 + $0x470] sm:$0xff] }
 0x548   :  { %10961 = vmatmul.mubr.f32.gmra.mxu1 %v14374_v46  ;;  %10973 = vmatprep.subr.mxu0 %v8257_v43 }
 0x549   :  { %11024 = vmatprep.subr.mxu1 %v8271_v6  ;;  %10913 = vmatprep.mubr.f32.mxu0 %v14212_v61 }
 0x54a   :  { %10963 = vmatprep.mubr.f32.mxu1 %v14392_v31  ;;  %10974 = vmatpush3.msra.mxu0 %v8257_v43  ;;  %v8277_v43 = vld [vmem:[%s16454_s4 + $0x408] sm:$0xff] }
 0x54b   :  { %11025 = vmatpush3.msra.mxu1 %v8271_v6  ;;  %10975 = vmatprep.subr.mxu0 %v8256_v7  ;;  %v8276_v6 = vld [vmem:[%s16454_s4 + $0x400] sm:$0xff] }
 0x54c   :  { %11026 = vmatprep.subr.mxu1 %v8270_v20  ;;  %10976 = vmatpush3.msra.mxu0 %v8256_v7 }
 0x54d   :  { %11027 = vmatpush3.msra.mxu1 %v8270_v20  ;;  %10914 = vmatmul.mubr.f32.gmra.mxu0 %v14229_v8 }
 0x54e   :  { %10964 = vmatmul.mubr.f32.gmra.mxu1 %v14403_v33  ;;  %10977 = vmatprep.subr.mxu0 %v8255_v40 }
 0x54f   :  { %11028 = vmatprep.subr.mxu1 %v8269_v2  ;;  %10916 = vmatprep.mubr.f32.mxu0 %v14238_v63 }
 0x550   :  { %10966 = vmatprep.mubr.f32.mxu1 %v14515_v57  ;;  %10978 = vmatpush3.msra.mxu0 %v8255_v40  ;;  %v4705_v40 = vld [vmem:[%s16455_s5 + $0x58] sm:$0xff] }
 0x551   :  { %11029 = vmatpush3.msra.mxu1 %v8269_v2  ;;  %10979 = vmatprep.subr.mxu0 %v8254_v10 }
 0x552   :  { %11030 = vmatprep.subr.mxu1 %v8268_v36  ;;  %10980 = vmatpush3.msra.mxu0 %v8254_v10  ;;  %v4703_v10 = vld [vmem:[%s16455_s5 + $0x48] sm:$0xff] }
 0x553   :  { %11031 = vmatpush3.msra.mxu1 %v8268_v36  ;;  %10917 = vmatmul.mubr.f32.gmra.mxu0 %v14254_v18  ;;  %v4701_v36 = vld [vmem:[%s16455_s5 + $0x38] sm:$0xff] }
 0x554   :  { %10967 = vmatmul.mubr.f32.gmra.mxu1 %v14501_v47  ;;  %10981 = vmatprep.subr.mxu0 %v8253_v30 }
 0x555   :  { %11032 = vmatprep.subr.mxu1 %v8267_v9  ;;  %10919 = vmatprep.mubr.f32.mxu0 %v14535_v42 }
 0x556   :  { %10982 = vmatpush3.msra.mxu0 %v8253_v30  ;;  %11033 = vmatpush3.msra.mxu1 %v8267_v9  ;;  %v4700_v30 = vld [vmem:[%s16455_s5 + $0x30] sm:$0xff]  ;;  %v4699_v9 = vld [vmem:[%s16455_s5 + $0x28] sm:$0xff] }
 0x557   :  { %11048 = vmatprep.mubr.f32.mxu1 %v14175_v23  ;;  %10983 = vmatprep.subr.mxu0 %v8252_v29  ;;  %v8264_v23 = vld [vmem:[%s16454_s4 + $0x3a0] sm:$0xff] }
 0x558   :  { %11034 = vmatprep.subr.mxu1 %v8266_v25  ;;  %10984 = vmatpush3.msra.mxu0 %v8252_v29 }
 0x559   :  { %11035 = vmatpush3.msra.mxu1 %v8266_v25  ;;  %10920 = vmatmul.mubr.f32.gmra.mxu0 %v14522_v37  ;;  %v4698_v25 = vld [vmem:[%s16455_s5 + $0x20] sm:$0xff] }
 0x55a   :  { %10985 = vmatprep.subr.mxu0 %v8251_v32  ;;  %11036 = vmatprep.subr.mxu1 %v8265_v15 }
 0x55b   :  { %10986 = vmatpush3.msra.mxu0 %v8251_v32  ;;  %11001 = vmatprep.mubr.f32.mxu0 %v14130_v39  ;;  %v8262_v39 = vld [vmem:[%s16454_s4 + $0x390] sm:$0xff] }
 0x55c   :  { %11037 = vmatpush3.msra.mxu1 %v8265_v15  ;;  %10987 = vmatprep.subr.mxu0 %v8250_v12 }
 0x55d   :  { %11038 = vmatprep.subr.mxu1 %v8264_v23  ;;  %10988 = vmatpush3.msra.mxu0 %v8250_v12  ;;  %v4697_v12 = vld [vmem:[%s16455_s5 + $0x18] sm:$0xff] }
 0x55e   :  { %11039 = vmatpush3.msra.mxu1 %v8264_v23  ;;  %10989 = vmatprep.subr.mxu0 %v8249_v19  ;;  %v4696_v23 = vld [vmem:[%s16455_s5 + $0x10] sm:$0xff] }
 0x55f   :  { %11040 = vmatprep.subr.mxu1 %v8263_v22  ;;  %10990 = vmatpush3.msra.mxu0 %v8249_v19 }
 0x560   :  { %11041 = vmatpush3.msra.mxu1 %v8263_v22  ;;  %10991 = vmatprep.subr.mxu0 %v8248_v49 }
 0x561   :  { %11042 = vmatprep.subr.mxu1 %v8262_v39  ;;  %10992 = vmatpush3.msra.mxu0 %v8248_v49  ;;  %v4695_v49 = vld [vmem:[%s16455_s5 + $0x8] sm:$0xff] }
 0x562   :  { %11043 = vmatpush3.msra.mxu1 %v8262_v39  ;;  %10993 = vmatprep.subr.mxu0 %v8247_v55  ;;  %v4694_v39 = vld [vmem:[%s16455_s5] sm:$0xff] }
 0x563   :  { %11044 = vmatprep.subr.mxu1 %v8261_v54  ;;  %10994 = vmatpush3.msra.mxu0 %v8247_v55 }
 0x564   :  { %11045 = vmatpush3.msra.mxu1 %v8261_v54  ;;  %10995 = vmatprep.subr.mxu0 %v8246_v16 }
 0x565   :  { %11046 = vmatprep.subr.mxu1 %v8260_v0  ;;  %10996 = vmatpush3.msra.mxu0 %v8246_v16 }
 0x566   :  { %11047 = vmatpush3.msra.mxu1 %v8260_v0  ;;  %10997 = vmatprep.subr.mxu0 %v8245_v58 }
 0x567   :  { %11049 = vmatmul.mubr.f32.vlgmr.msra.gmra.mxu1 %v14184_v53  ;;  %10998 = vmatpush3.msra.mxu0 %v8245_v58  ;;  %v14601_v53 = vmax.f32 %v3327_v41, 0.0 }
 0x568   :  { %11051 = vmatprep.mubr.f32.mxu1 %v14203_v45  ;;  %10999 = vmatprep.subr.mxu0 %v8244_v50  ;;  %v8289_v45 = vld [vmem:[%s16454_s4 + $0x468] sm:$0xff] }
 0x569   :  { %11000 = vmatpush3.msra.mxu0 %v8244_v50  ;;  %v4555_v7 = vrot.slane %v14601_v53, 2 }
 0x56a   :  { %11002 = vmatmul.mubr.f32.vlgmr.msra.gmra.mxu0 %v14153_v60  ;;  %11063 = vmatprep.subr.mxu0 %v8291_v21  ;;  %v8288_v60 = vld [vmem:[%s16454_s4 + $0x460] sm:$0xff] }
 0x56b   :  { %11052 = vmatmul.mubr.f32.gmra.mxu1 %v14212_v61  ;;  %11004 = vmatprep.mubr.f32.mxu0 %v14155_v1  ;;  %v4409_v1 = vrot.slane %v14601_v53, 1  ;;  %v8287_v61 = vld [vmem:[%s16454_s4 + $0x458] sm:$0xff]  ;;  %v4556_v20 = vsel %vm3659_vm2, %v14501_v47, %v4555_v7  ;;  %v4704_v47 = vld [vmem:[%s16455_s5 + $0x50] sm:$0xff] }
 0x56c   :  { %11054 = vmatprep.mubr.f32.mxu1 %v14229_v8  ;;  %11064 = vmatpush3.msra.mxu0 %v8291_v21  ;;  %v8285_v8 = vld [vmem:[%s16454_s4 + $0x448] sm:$0xff] }
 0x56d   :  { %11065 = vmatprep.subr.mxu0 %v8290_v34 }
 0x56e   :  { %11066 = vmatpush3.msra.mxu0 %v8290_v34 }
 0x56f   :  { %11005 = vmatmul.mubr.f32.gmra.mxu0 %v14169_v56  ;;  %11055 = vmatmul.mubr.f32.gmra.mxu1 %v14238_v63  ;;  %v4410_v56 = vsel %vm278_vm1, %v14522_v37, %v4409_v1  ;;  %v8282_v63 = vld [vmem:[%s16454_s4 + $0x430] sm:$0xff] }
 0x570   :  { %11067 = vmatprep.subr.mxu0 %v8289_v45  ;;  %11007 = vmatprep.mubr.f32.mxu0 %v14171_v27  ;;  %v8286_v27 = vld [vmem:[%s16454_s4 + $0x450] sm:$0xff] }
 0x571   :  { %11057 = vmatprep.mubr.f32.mxu1 %v14254_v18  ;;  %11068 = vmatpush3.msra.mxu0 %v8289_v45  ;;  %v8280_v18 = vld [vmem:[%s16454_s4 + $0x420] sm:$0xff]  ;;  %v14760_v45 = vld [vmem:[%s16454_s4 + $0x78] sm:$0xff] }
 0x572   :  { %11069 = vmatprep.subr.mxu0 %v8288_v60  ;;  %16557 = vst [vmem:[#allocation16_spill] sm:$0xff] %v14760_v45 }
 0x573   :  { %11070 = vmatpush3.msra.mxu0 %v8288_v60  ;;  %11058 = vmatmul.mubr.f32.gmra.mxu1 %v14535_v42  ;;  %v8307_v60 = vld [vmem:[%s16454_s4 + $0xf8] sm:$0xff] }
 0x574   :  { %11008 = vmatmul.mubr.f32.gmra.mxu0 %v14196_v44  ;;  %11071 = vmatprep.subr.mxu0 %v8287_v61  ;;  %v8284_v44 = vld [vmem:[%s16454_s4 + $0x440] sm:$0xff] }
 0x575   :  { %11010 = vmatprep.mubr.f32.mxu0 %v14199_v13  ;;  %11060 = vmatprep.mubr.f32.mxu1 %v4410_v56  ;;  %v8283_v13 = vld [vmem:[%s16454_s4 + $0x438] sm:$0xff] }
 0x576   :  { %11072 = vmatpush3.msra.mxu0 %v8287_v61  ;;  %v8306_v61 = vld [vmem:[%s16454_s4 + $0xf0] sm:$0xff] }
 0x577   :  { %11073 = vmatprep.subr.mxu0 %v8286_v27  ;;  %11061 = vmatmul.mubr.f32.gmra.mxu1 %v4409_v1 }
 0x578   :  { %11074 = vmatpush3.msra.mxu0 %v8286_v27  ;;  %v8305_v27 = vld [vmem:[%s16454_s4 + $0xe8] sm:$0xff] }
 0x579   :  { %11011 = vmatmul.mubr.f32.gmra.mxu0 %v14224_v17  ;;  %11075 = vmatprep.subr.mxu0 %v8285_v8  ;;  %v8281_v17 = vld [vmem:[%s16454_s4 + $0x428] sm:$0xff] }
 0x57a   :  { %11013 = vmatprep.mubr.f32.mxu0 %v14394_v24  ;;  %11076 = vmatpush3.msra.mxu0 %v8285_v8  ;;  %v8279_v24 = vld [vmem:[%s16454_s4 + $0x418] sm:$0xff]  ;;  %v8304_v8 = vld [vmem:[%s16454_s4 + $0xe0] sm:$0xff] }
 0x57b   :  { %11077 = vmatprep.subr.mxu0 %v8284_v44 }
 0x57c   :  { %11078 = vmatpush3.msra.mxu0 %v8284_v44 }
 0x57d   :  { %11014 = vmatmul.mubr.f32.gmra.mxu0 %v14601_v53  ;;  %11079 = vmatprep.subr.mxu0 %v8283_v13 }
 0x57e   :  { %11080 = vmatpush3.msra.mxu0 %v8283_v13  ;;  %11095 = vmatprep.mubr.f32.mxu0 %v14326_v4  ;;  %v8278_v4 = vld [vmem:[%s16454_s4 + $0x410] sm:$0xff] }
 0x57f   :  { %11081 = vmatprep.subr.mxu0 %v8282_v63 }
 0x580   :  { %11082 = vmatpush3.msra.mxu0 %v8282_v63  ;;  %v8303_v63 = vld [vmem:[%s16454_s4 + $0xd8] sm:$0xff] }
 0x581   :  { %11083 = vmatprep.subr.mxu0 %v8281_v17 }
 0x582   :  { %11084 = vmatpush3.msra.mxu0 %v8281_v17 }
 0x583   :  { %11085 = vmatprep.subr.mxu0 %v8280_v18 }
 0x584   :  { %11086 = vmatpush3.msra.mxu0 %v8280_v18 }
 0x585   :  { %11087 = vmatprep.subr.mxu0 %v8279_v24 }
 0x586   :  { %11088 = vmatpush3.msra.mxu0 %v8279_v24 }
 0x587   :  { %11089 = vmatprep.subr.mxu0 %v8278_v4 }
 0x588   :  { %11090 = vmatpush3.msra.mxu0 %v8278_v4 }
 0x589   :  { %11091 = vmatprep.subr.mxu0 %v8277_v43 }
 0x58a   :  { %11092 = vmatpush3.msra.mxu0 %v8277_v43 }
 0x58b   :  { %11093 = vmatprep.subr.mxu0 %v8276_v6 }
 0x58c   :  { %11094 = vmatpush3.msra.mxu0 %v8276_v6 }
 0x58d   :  { %11096 = vmatmul.mubr.f32.vlgmr.msra.gmra.mxu0 %v14342_v5  ;;  %v4709_v5 = vld [vmem:[%s16455_s5 + $0x78] sm:$0xff]  ;;  %11157 = vmatprep.subr.mxu0 %v8307_v60 }
 0x58e   :  { %11098 = vmatprep.mubr.f32.mxu0 %v14350_v52  ;;  %11110 = vmatprep.subr.mxu1 %v4709_v5  ;;  %v4708_v52 = vld [vmem:[%s16455_s5 + $0x70] sm:$0xff] }
 0x58f   :  { %11111 = vmatpush3.msra.mxu1 %v4709_v5  ;;  %11158 = vmatpush3.msra.mxu0 %v8307_v60 }
 0x590   :  { %11112 = vmatprep.subr.mxu1 %v4708_v52  ;;  %11159 = vmatprep.subr.mxu0 %v8306_v61 }
 0x591   :  { %11099 = vmatmul.mubr.f32.gmra.mxu0 %v14366_v62  ;;  %11113 = vmatpush3.msra.mxu1 %v4708_v52 }
 0x592   :  { %11101 = vmatprep.mubr.f32.mxu0 %v14374_v46  ;;  %v4707_v46 = vld [vmem:[%s16455_s5 + $0x68] sm:$0xff]  ;;  %11160 = vmatpush3.msra.mxu0 %v8306_v61 }
 0x593   :  { %11114 = vmatprep.subr.mxu1 %v4707_v46  ;;  %11161 = vmatprep.subr.mxu0 %v8305_v27 }
 0x594   :  { %11115 = vmatpush3.msra.mxu1 %v4707_v46  ;;  %11162 = vmatpush3.msra.mxu0 %v8305_v27 }
 0x595   :  { %11102 = vmatmul.mubr.f32.gmra.mxu0 %v14392_v31  ;;  %v4706_v31 = vld [vmem:[%s16455_s5 + $0x60] sm:$0xff]  ;;  %11163 = vmatprep.subr.mxu0 %v8304_v8 }
 0x596   :  { %11104 = vmatprep.mubr.f32.mxu0 %v14403_v33  ;;  %11116 = vmatprep.subr.mxu1 %v4706_v31 }
 0x597   :  { %11117 = vmatpush3.msra.mxu1 %v4706_v31  ;;  %11164 = vmatpush3.msra.mxu0 %v8304_v8 }
 0x598   :  { %11118 = vmatprep.subr.mxu1 %v4705_v40  ;;  %11165 = vmatprep.subr.mxu0 %v8303_v63 }
 0x599   :  { %11105 = vmatmul.mubr.f32.gmra.mxu0 %v14515_v57  ;;  %11119 = vmatpush3.msra.mxu1 %v4705_v40  ;;  %v4702_v57 = vld [vmem:[%s16455_s5 + $0x40] sm:$0xff] }
 0x59a   :  { %11107 = vmatprep.mubr.f32.mxu0 %v4556_v20  ;;  %11120 = vmatprep.subr.mxu1 %v4704_v47 }
 0x59b   :  { %11121 = vmatpush3.msra.mxu1 %v4704_v47  ;;  %11166 = vmatpush3.msra.mxu0 %v8303_v63 }
 0x59c   :  { %11122 = vmatprep.subr.mxu1 %v4703_v10 }
 0x59d   :  { %11108 = vmatmul.mubr.f32.gmra.mxu0 %v4555_v7  ;;  %11123 = vmatpush3.msra.mxu1 %v4703_v10 }
 0x59e   :  { %11124 = vmatprep.subr.mxu1 %v4702_v57 }
 0x59f   :  { %11125 = vmatpush3.msra.mxu1 %v4702_v57 }
 0x5a0   :  { %11126 = vmatprep.subr.mxu1 %v4701_v36 }
 0x5a1   :  { %11127 = vmatpush3.msra.mxu1 %v4701_v36 }
 0x5a2   :  { %11128 = vmatprep.subr.mxu1 %v4700_v30 }
 0x5a3   :  { %11129 = vmatpush3.msra.mxu1 %v4700_v30 }
 0x5a4   :  { %11130 = vmatprep.subr.mxu1 %v4699_v9 }
 0x5a5   :  { %11131 = vmatpush3.msra.mxu1 %v4699_v9 }
 0x5a6   :  { %11132 = vmatprep.subr.mxu1 %v4698_v25 }
 0x5a7   :  { %11133 = vmatpush3.msra.mxu1 %v4698_v25 }
 0x5a8   :  { %11134 = vmatprep.subr.mxu1 %v4697_v12 }
 0x5a9   :  { %11135 = vmatpush3.msra.mxu1 %v4697_v12 }
 0x5aa   :  { %v14710_v42 = vpop.f32.mrf.mxu1  ;;  %11136 = vmatprep.subr.mxu1 %v4696_v23 }
 0x5ab   :  { %11137 = vmatpush3.msra.mxu1 %v4696_v23 }
 0x5ac   :  { %v14717_v32 = vpop.f32.mrf.mxu1  ;;  %11138 = vmatprep.subr.mxu1 %v4695_v49 }
 0x5ad   :  { %11139 = vmatpush3.msra.mxu1 %v4695_v49 }
 0x5ae   :  { %v14675_v62 = vpop.f32.mrf.mxu0  ;;  %11140 = vmatprep.subr.mxu1 %v4694_v39 }
 0x5af   :  { %v14727_v19 = vpop.f32.mrf.mxu1  ;;  %11141 = vmatpush3.msra.mxu1 %v4694_v39 }
 0x5b0   :  { %v14683_v33 = vpop.f32.mrf.mxu0  ;;  %11204 = vmatprep.subr.mxu1 %v14760_v45 }
 0x5b1   :  { %v14737_v55 = vpop.f32.mrf.mxu1 }
 0x5b4   :  { %v14691_v2 = vpop.f32.mrf.mxu0 }
 0x5b5   :  { %v14741_v16 = vpop.f32.mrf.mxu1 }
 0x5b6   :  { %v14702_v37 = vpop.f32.mrf.mxu0 }
 0x5b7   :  { %v14745_v58 = vpop.f32.mrf.mxu1 }
 0x5ba   :  { %v14712_v29 = vpop.f32.mrf.mxu0 }
 0x5bb   :  { %v14751_v41 = vpop.f32.mrf.mxu1 }
 0x5bc   :  { %v14719_v15 = vpop.f32.mrf.mxu0 }
 0x5bd   :  { %v14755_v53 = vpop.f32.mrf.mxu1 }
 0x5c0   :  { %v14729_v22 = vpop.f32.mrf.mxu0 }
 0x5c1   :  { %v14771_v56 = vpop.f32.mrf.mxu1 }
 0x5c2   :  { %v14739_v54 = vpop.f32.mrf.mxu0 }
 0x5c3   :  { %v14781_v13 = vpop.f32.mrf.mxu1 }
 0x5c6   :  { %v14743_v0 = vpop.f32.mrf.mxu0 }
 0x5c8   :  { %v14747_v50 = vpop.f32.mrf.mxu0 }
 0x5d3   :  { %v10862_v17 = vpop.f32.mrf.mxu1 }
 0x5d5   :  { %v3897_v24 = vpop.f32.mrf.mxu1 }
 0x5d7   :  { %v14749_v21 = vpop.f32.mrf.mxu0 }
 0x5d8   :  { %v10865_v43 = vpop.f32.mrf.mxu1 }
 0x5d9   :  { %v14753_v34 = vpop.f32.mrf.mxu0 }
 0x5da   :  { %v3907_v7 = vpop.f32.mrf.mxu1 }
 0x5dd   :  { %v14765_v1 = vpop.f32.mrf.mxu0 }
 0x5de   :  { %v14790_v5 = vpop.f32.mrf.mxu1 }
 0x5df   :  { %v14779_v44 = vpop.f32.mrf.mxu0 }
 0x5e0   :  { %v14794_v46 = vpop.f32.mrf.mxu1 }
 0x5e3   :  { %v10821_v18 = vpop.f32.mrf.mxu0 }
 0x5e4   :  { %v14798_v47 = vpop.f32.mrf.mxu1 }
 0x5e5   :  { %v3775_v4 = vpop.f32.mrf.mxu0 }
 0x5e6   :  { %v14800_v57 = vpop.f32.mrf.mxu1 }
 0x5e9   :  { %v14786_v6 = vpop.f32.mrf.mxu0 }
 0x5ea   :  { %v14802_v30 = vpop.f32.mrf.mxu1 }
 0x5eb   :  { %v14788_v20 = vpop.f32.mrf.mxu0  ;;  %16558 = vst [vmem:[#allocation17_spill] sm:$0xff] %v14802_v30 }
 0x5ec   :  { %v14804_v25 = vpop.f32.mrf.mxu1 }
 0x5ed   :  { %16559 = vst [vmem:[#allocation18_spill] sm:$0xff] %v14804_v25 }
 0x5ef   :  { %v14792_v52 = vpop.f32.mrf.mxu0 }
 0x5f1   :  { %v14796_v31 = vpop.f32.mrf.mxu0 }
 0x5fd   :  { %v10956_v12 = vpop.f32.mrf.mxu1 }
 0x5ff   :  { %v4190_v49 = vpop.f32.mrf.mxu1 }
 0x601   :  { %v10909_v40 = vpop.f32.mrf.mxu0 }
 0x602   :  { %v10959_v60 = vpop.f32.mrf.mxu1 }
 0x603   :  { %v4044_v10 = vpop.f32.mrf.mxu0 }
 0x604   :  { %v4200_v27 = vpop.f32.mrf.mxu1 }
 0x607   :  { %v10912_v36 = vpop.f32.mrf.mxu0 }
 0x608   :  { %v14810_v63 = vpop.f32.mrf.mxu1 }
 0x609   :  { %v4054_v9 = vpop.f32.mrf.mxu0  ;;  %16561 = vst [vmem:[#allocation21_spill] sm:$0xff] %v14810_v63 }
 0x60a   :  { %v14814_v14 = vpop.f32.mrf.mxu1 }
 0x60b   :  { %16563 = vst [vmem:[#allocation23_spill] sm:$0xff] %v14814_v14 }
 0x60d   :  { %v10915_v23 = vpop.f32.mrf.mxu0 }
 0x60e   :  { %v14818_v38 = vpop.f32.mrf.mxu1 }
 0x60f   :  { %v4064_v39 = vpop.f32.mrf.mxu0  ;;  %16565 = vst [vmem:[#allocation22_spill] sm:$0xff] %v14818_v38 }
 0x610   :  { %v14820_v26 = vpop.f32.mrf.mxu1 }
 0x611   :  { %16566 = vst [vmem:[#allocation28_spill] sm:$0xff] %v14820_v26 }
 0x613   :  { %v14806_v61 = vpop.f32.mrf.mxu0 }
 0x614   :  { %v14822_v51 = vpop.f32.mrf.mxu1 }
 0x615   :  { %v14808_v8 = vpop.f32.mrf.mxu0  ;;  %16567 = vst [vmem:[#allocation29_spill] sm:$0xff] %v14822_v51  ;;  %v3609_v51 = vadd.f32 %v14727_v19, %v14691_v2  ;;  %v3614_v2 = vadd.f32 %v14745_v58, %v14719_v15 }
 0x616   :  { %16560 = vst [vmem:[#allocation19_spill] sm:$0xff] %v14808_v8  ;;  %v14824_v45 = vpop.f32.mrf.mxu1 }
 0x617   :  { %16568 = vst [vmem:[#allocation24_spill] sm:$0xff] %v14824_v45 }
 0x619   :  { %v14812_v11 = vpop.f32.mrf.mxu0 }
 0x61a   :  { %16562 = vst [vmem:[#allocation20_spill] sm:$0xff] %v14812_v11  ;;  %v3599_v11 = vadd.f32 %v14710_v42, %v14675_v62  ;;  %v3807_v62 = vadd.f32 %v14765_v1, %v3609_v51 }
 0x61b   :  { %v14816_v59 = vpop.f32.mrf.mxu0 }
 0x61c   :  { %16564 = vst [vmem:[#allocation25_spill] sm:$0xff] %v14816_v59  ;;  %v3594_v59 = vadd.f32 %v14717_v32, %v14683_v33  ;;  %v3805_v38 = vadd.f32 %v14749_v21, %v3599_v11  ;;  %v3619_v11 = vadd.f32 %v14741_v16, %v14712_v29  ;;  %v3624_v29 = vadd.f32 %v14755_v53, %v14739_v54 }
 0x61d   :  { %v3634_v54 = vadd.f32 %v14781_v13, %v14747_v50 }
 0x61e   :  { %v3804_v8 = vadd.f32 %v14753_v34, %v3594_v59  ;;  %v3947_v42 = vadd.f32 %v10862_v17, %v3805_v38  ;;  %v3809_v21 = vadd.f32 %v10821_v18, %v3619_v11  ;;  %v3949_v34 = vadd.f32 %v10865_v43, %v3807_v62 }
 0x61f   :  { %v3629_v38 = vadd.f32 %v14751_v41, %v14729_v22  ;;  %v3639_v41 = vadd.f32 %v14771_v56, %v14743_v0 }
 0x620   :  { %v3946_v33 = vadd.f32 %v3897_v24, %v3804_v8  ;;  %v4094_v32 = vadd.f32 %v10909_v40, %v3947_v42  ;;  %v4096_v1 = vadd.f32 %v10912_v36, %v3949_v34  ;;  %v3951_v58 = vadd.f32 %v14790_v5, %v3809_v21  ;;  %v16574_v8 = vld [vmem:[#allocation17_spill] sm:$0xff]  ;;  %v16579_v21 = vld [vmem:[#allocation22_spill] sm:$0xff] }
 0x621   :  { %v3811_v15 = vadd.f32 %v14786_v6, %v3629_v38 }
 0x622   :  { %v4093_v19 = vadd.f32 %v4044_v10, %v3946_v33  ;;  %v4098_v40 = vadd.f32 %v10915_v23, %v3951_v58  ;;  %v4242_v10 = vadd.f32 %v10959_v60, %v4096_v1  ;;  %v16572_v60 = vld [vmem:[#allocation19_spill] sm:$0xff] }
 0x623   :  { %v3953_v5 = vadd.f32 %v14798_v47, %v3811_v15  ;;  %v16580_v1 = vld [vmem:[#allocation25_spill] sm:$0xff] }
 0x624   :  { %v4239_v24 = vadd.f32 %v4190_v49, %v4093_v19  ;;  %v16571_v49 = vld [vmem:[#allocation21_spill] sm:$0xff] }
 0x625   :  { %v4100_v23 = vadd.f32 %v14806_v61, %v3953_v5  ;;  %v4244_v50 = vadd.f32 %v16571_v49, %v4098_v40  ;;  %v4932_v40 = vld [vmem:[%s16454_s4 + $0x68] sm:$0xff] }
 0x627   :  { %v11050_v30 = vpop.f32.mrf.mxu1  ;;  %v4246_v34 = vadd.f32 %v16579_v21, %v4100_v23  ;;  %v8297_v21 = vld [vmem:[%s16454_s4 + $0xa8] sm:$0xff] }
 0x629   :  { %v4479_v26 = vpop.f32.mrf.mxu1 }
 0x62a   :  { %v11003_v35 = vpop.f32.mrf.mxu0 }
 0x62c   :  { %v4332_v3 = vpop.f32.mrf.mxu0 }
 0x62d   :  { %v4381_v22 = vadd.f32 %v4332_v3, %v4239_v24 }
 0x62f   :  { %v11006_v48 = vpop.f32.mrf.mxu0 }
 0x631   :  { %v4342_v28 = vpop.f32.mrf.mxu0 }
 0x634   :  { %v14826_v25 = vpop.f32.mrf.mxu0 }
 0x635   :  { %16569 = vst [vmem:[#allocation30_spill] sm:$0xff] %v14826_v25  ;;  %v3604_v25 = vadd.f32 %v14737_v55, %v14702_v37  ;;  %v3808_v55 = vadd.f32 %v3775_v4, %v3614_v2  ;;  %v3810_v4 = vadd.f32 %v14788_v20, %v3624_v29  ;;  %v4384_v20 = vadd.f32 %v11006_v48, %v4242_v10  ;;  %v16578_v2 = vld [vmem:[#allocation20_spill] sm:$0xff]  ;;  %v16583_v10 = vld [vmem:[#allocation29_spill] sm:$0xff] }
 0x636   :  { %v14830_v14 = vpop.f32.mrf.mxu0  ;;  %v16581_v29 = vld [vmem:[#allocation28_spill] sm:$0xff] }
 0x637   :  { %16570 = vst [vmem:[#allocation31_spill] sm:$0xff] %v14830_v14  ;;  %v11053_v14 = vpop.f32.mrf.mxu1  ;;  %v3806_v63 = vadd.f32 %v14779_v44, %v3604_v25  ;;  %v4240_v44 = vadd.f32 %v10956_v12, %v4094_v32  ;;  %v3812_v25 = vadd.f32 %v14796_v31, %v3634_v54  ;;  %v3952_v0 = vadd.f32 %v14800_v57, %v3810_v4 }
 0x638   :  { %v4528_v12 = vadd.f32 %v4479_v26, %v4381_v22  ;;  %v4531_v42 = vadd.f32 %v11053_v14, %v4384_v20  ;;  %v4933_v14 = vld [vmem:[%s16454_s4 + $0x70] sm:$0xff] }
 0x639   :  { %v14838_v45 = vpop.f32.mrf.mxu0  ;;  %v4489_v37 = vpop.f32.mrf.mxu1  ;;  %v3948_v51 = vadd.f32 %v3907_v7, %v3806_v63  ;;  %v4382_v18 = vadd.f32 %v11003_v35, %v4240_v44  ;;  %v3950_v7 = vadd.f32 %v14794_v46, %v3808_v55  ;;  %v3813_v35 = vadd.f32 %v14792_v52, %v3639_v41  ;;  %v16582_v41 = vld [vmem:[#allocation16_spill] sm:$0xff] }
 0x63a   :  { %v4099_v52 = vadd.f32 %v16572_v60, %v3952_v0 }
 0x63b   :  { %v14846_v59 = vpop.f32.mrf.mxu0  ;;  %v4095_v16 = vadd.f32 %v4054_v9, %v3948_v51  ;;  %v11056_v43 = vpop.f32.mrf.mxu1  ;;  %v4097_v53 = vadd.f32 %v4064_v39, %v3950_v7  ;;  %v4529_v46 = vadd.f32 %v11050_v30, %v4382_v18  ;;  %v3955_v30 = vadd.f32 %v16574_v8, %v3813_v35 }
 0x63c   :  { %v16575_v63 = vld [vmem:[#allocation30_spill] sm:$0xff] }
 0x63d   :  { %v14852_v17 = vpop.f32.mrf.mxu0  ;;  %v4241_v6 = vadd.f32 %v4200_v27, %v4095_v16  ;;  %v4499_v9 = vpop.f32.mrf.mxu1  ;;  %v16573_v27 = vld [vmem:[#allocation23_spill] sm:$0xff]  ;;  %v4386_v62 = vadd.f32 %v16575_v63, %v4244_v50  ;;  %v4102_v19 = vadd.f32 %v16578_v2, %v3955_v30  ;;  %v4245_v16 = vadd.f32 %v16581_v29, %v4099_v52  ;;  %v8298_v2 = vld [vmem:[%s16454_s4 + $0xb0] sm:$0xff]  ;;  %v4919_v29 = vld [vmem:[%s16454_s4] sm:$0xff] }
 0x63e   :  { %v4243_v47 = vadd.f32 %v16573_v27, %v4097_v53  ;;  %v16577_v33 = vld [vmem:[#allocation31_spill] sm:$0xff] }
 0x63f   :  { %v14862_v36 = vpop.f32.mrf.mxu0  ;;  %v4383_v56 = vadd.f32 %v4342_v28, %v4241_v6  ;;  %v11059_v31 = vpop.f32.mrf.mxu1  ;;  %v16576_v28 = vld [vmem:[#allocation18_spill] sm:$0xff]  ;;  %v4533_v58 = vadd.f32 %v11056_v43, %v4386_v62  ;;  %v4387_v4 = vadd.f32 %v14846_v59, %v4245_v16  ;;  %v4248_v54 = vadd.f32 %v16583_v10, %v4102_v19 }
 0x640   :  { %v3954_v26 = vadd.f32 %v16576_v28, %v3812_v25  ;;  %v4385_v61 = vadd.f32 %v16577_v33, %v4243_v47  ;;  %v4931_v59 = vld [vmem:[%s16454_s4 + $0x60] sm:$0xff]  ;;  %v4928_v47 = vld [vmem:[%s16454_s4 + $0x48] sm:$0xff] }
 0x641   :  { %v4530_v32 = vadd.f32 %v4489_v37, %v4383_v56  ;;  %v4509_v15 = vpop.f32.mrf.mxu1  ;;  %v4388_v37 = vadd.f32 %v14838_v45, %v4246_v34  ;;  %v16584_v45 = vld [vmem:[#allocation24_spill] sm:$0xff]  ;;  %v8301_v28 = vld [vmem:[%s16454_s4 + $0xc8] sm:$0xff]  ;;  %v8300_v33 = vld [vmem:[%s16454_s4 + $0xc0] sm:$0xff] }
 0x642   :  { %v4101_v44 = vadd.f32 %v16580_v1, %v3954_v26  ;;  %v4532_v22 = vadd.f32 %v4499_v9, %v4385_v61  ;;  %v4390_v9 = vadd.f32 %v14852_v17, %v4248_v54  ;;  %v4534_v56 = vadd.f32 %v4509_v15, %v4387_v4  ;;  %v4929_v17 = vld [vmem:[%s16454_s4 + $0x50] sm:$0xff]  ;;  %v4926_v26 = vld [vmem:[%s16454_s4 + $0x38] sm:$0xff]  ;;  %v4923_v19 = vld [vmem:[%s16454_s4 + $0x20] sm:$0xff] }
 0x643   :  { %v11062_v53 = vpop.f32.mrf.mxu1  ;;  %v4925_v61 = vld [vmem:[%s16454_s4 + $0x30] sm:$0xff]  ;;  %v4922_v34 = vld [vmem:[%s16454_s4 + $0x18] sm:$0xff]  ;;  %v4920_v1 = vld [vmem:[%s16454_s4 + $0x8] sm:$0xff] }
 0x644   :  { %v4247_v43 = vadd.f32 %v16584_v45, %v4101_v44  ;;  %v8294_v44 = vld [vmem:[%s16454_s4 + $0x90] sm:$0xff]  ;;  %v12065_v16 = vld [vmem:[#allocation2] sm:$0xff]  ;;  %v8339_v15 = vld [vmem:[%s16454_s4 + $0x1f8] sm:$0xff] }
 0x645   :  { %v4519_v23 = vpop.f32.mrf.mxu1  ;;  %v16587_v45 = vld [vmem:[#allocation7_spill] sm:$0xff] }
 0x646   :  { %v4389_v25 = vadd.f32 %v14862_v36, %v4247_v43  ;;  %v4537_v36 = vadd.f32 %v11062_v53, %v4390_v9  ;;  %v16588_v9 = vld [vmem:[#allocation6_spill] sm:$0xff] }
 0x648   :  { %v4536_v52 = vadd.f32 %v4519_v23, %v4389_v25 }
 0x64d   :  { %v11097_v3 = vpop.f32.mrf.mxu0 }
 0x64e   :  { %v4675_v13 = vadd.f32 %v11097_v3, %v4529_v46  ;;  %v4535_v46 = vadd.f32 %v11059_v31, %v4388_v37  ;;  %v8292_v37 = vld [vmem:[%s16454_s4 + $0x80] sm:$0xff] }
 0x64f   :  { %v4625_v39 = vpop.f32.mrf.mxu0 }
 0x650   :  { %v4674_v48 = vadd.f32 %v4625_v39, %v4528_v12  ;;  %v4685_v55 = vmax.f32 %v4675_v13, 0.0  ;;  %v4930_v12 = vld [vmem:[%s16454_s4 + $0x58] sm:$0xff] }
 0x651   :  { %v11100_v57 = vpop.f32.mrf.mxu0 }
 0x652   :  { %v4684_v11 = vmax.f32 %v4674_v48, 0.0  ;;  %v4677_v51 = vadd.f32 %v11100_v57, %v4531_v42  ;;  %v8302_v42 = vld [vmem:[%s16454_s4 + $0xd0] sm:$0xff]  ;;  %v4927_v57 = vld [vmem:[%s16454_s4 + $0x40] sm:$0xff] }
 0x653   :  { %v4635_v38 = vpop.f32.mrf.mxu0  ;;  %11167 = vmatprep.subr.mxu0 %v8302_v42 }
 0x654   :  { %v4676_v24 = vadd.f32 %v4635_v38, %v4530_v32  ;;  %11142 = vmatprep.mubr.f32.mxu1 %v4684_v11  ;;  %v4687_v6 = vmax.f32 %v4677_v51, 0.0  ;;  %11168 = vmatpush3.msra.mxu0 %v8302_v42  ;;  %v8299_v11 = vld [vmem:[%s16454_s4 + $0xb8] sm:$0xff]  ;;  %v4924_v32 = vld [vmem:[%s16454_s4 + $0x28] sm:$0xff]  ;;  %v4921_v51 = vld [vmem:[%s16454_s4 + $0x10] sm:$0xff] }
 0x655   :  { %v11103_v18 = vpop.f32.mrf.mxu0  ;;  %11143 = vmatmul.mubr.f32.vlgmr.msra.gmra.mxu1 %v4685_v55  ;;  %11169 = vmatprep.subr.mxu0 %v8301_v28  ;;  %v8296_v55 = vld [vmem:[%s16454_s4 + $0xa0] sm:$0xff]  ;;  %v8295_v38 = vld [vmem:[%s16454_s4 + $0x98] sm:$0xff] }
 0x656   :  { %v4686_v7 = vmax.f32 %v4676_v24, 0.0  ;;  %11205 = vmatpush3.msra.mxu1 %v16582_v41  ;;  %v4679_v35 = vadd.f32 %v11103_v18, %v4533_v58  ;;  %11170 = vmatpush3.msra.mxu0 %v8301_v28  ;;  %v14961_v24 = vmax.f32 %v12065_v16, 0.0  ;;  %v14976_v58 = vld [vmem:[%s16454_s4 + $0x178] sm:$0xff]  ;;  %v16586_v41 = vld [vmem:[#allocation8_spill] sm:$0xff]  ;;  %v12069_v28 = vld [vmem:[#allocation2 + $0x20] sm:$0xff] }
 0x657   :  { %v4645_v5 = vpop.f32.mrf.mxu0  ;;  %11206 = vmatprep.subr.mxu1 %v4933_v14  ;;  %11171 = vmatprep.subr.mxu0 %v8300_v33 }
 0x658   :  { %v4678_v20 = vadd.f32 %v4645_v5, %v4532_v22  ;;  %11145 = vmatprep.mubr.f32.mxu1 %v4686_v7  ;;  %11207 = vmatpush3.msra.mxu1 %v4933_v14  ;;  %v4689_v49 = vmax.f32 %v4679_v35, 0.0  ;;  %v8293_v14 = vld [vmem:[%s16454_s4 + $0x88] sm:$0xff]  ;;  %v16585_v7 = vld [vmem:[#allocation12_spill] sm:$0xff] }
 0x659   :  { %v11106_v3 = vpop.f32.mrf.mxu0  ;;  %11146 = vmatmul.mubr.f32.gmra.mxu1 %v4687_v6  ;;  %11208 = vmatprep.subr.mxu1 %v4932_v40  ;;  %v12066_v35 = vld [vmem:[#allocation2 + $0x8] sm:$0xff] }
 0x65a   :  { %v4688_v0 = vmax.f32 %v4678_v20, 0.0  ;;  %11209 = vmatpush3.msra.mxu1 %v4932_v40  ;;  %v4681_v50 = vadd.f32 %v11106_v3, %v4535_v46  ;;  %11172 = vmatpush3.msra.mxu0 %v8300_v33 }
 0x65b   :  { %v4655_v13 = vpop.f32.mrf.mxu0  ;;  %11210 = vmatprep.subr.mxu1 %v4931_v59  ;;  %11173 = vmatprep.subr.mxu0 %v8299_v11 }
 0x65c   :  { %v4680_v39 = vadd.f32 %v4655_v13, %v4534_v56  ;;  %11148 = vmatprep.mubr.f32.mxu1 %v4688_v0  ;;  %11211 = vmatpush3.msra.mxu1 %v4931_v59  ;;  %v4691_v48 = vmax.f32 %v4681_v50, 0.0  ;;  %v16589_v0 = vld [vmem:[#allocation9_spill] sm:$0xff] }
 0x65d   :  { %v11109_v60 = vpop.f32.mrf.mxu0  ;;  %11149 = vmatmul.mubr.f32.gmra.mxu1 %v4689_v49  ;;  %11212 = vmatprep.subr.mxu1 %v4930_v12 }
 0x65e   :  { %v4690_v27 = vmax.f32 %v4680_v39, 0.0  ;;  %11213 = vmatpush3.msra.mxu1 %v4930_v12  ;;  %v4683_v8 = vadd.f32 %v11109_v60, %v4537_v36  ;;  %11174 = vmatpush3.msra.mxu0 %v8299_v11  ;;  %v12067_v12 = vld [vmem:[#allocation2 + $0x10] sm:$0xff]  ;;  %v16591_v36 = vld [vmem:[#allocation10_spill] sm:$0xff]  ;;  %v4961_v11 = vrot.slane %v14961_v24, 1 }
 0x65f   :  { %v4665_v30 = vpop.f32.mrf.mxu0  ;;  %11214 = vmatprep.subr.mxu1 %v4929_v17  ;;  %11175 = vmatprep.subr.mxu0 %v8298_v2 }
 0x660   :  { %v4682_v63 = vadd.f32 %v4665_v30, %v4536_v52  ;;  %11151 = vmatprep.mubr.f32.mxu1 %v4690_v27  ;;  %11215 = vmatpush3.msra.mxu1 %v4929_v17  ;;  %v4693_v31 = vmax.f32 %v4683_v8, 0.0  ;;  %v12068_v27 = vld [vmem:[#allocation2 + $0x18] sm:$0xff] }
 0x661   :  { %11152 = vmatmul.mubr.f32.gmra.mxu1 %v4691_v48  ;;  %11216 = vmatprep.subr.mxu1 %v4928_v47 }
 0x662   :  { %v4692_v62 = vmax.f32 %v4682_v63, 0.0  ;;  %11217 = vmatpush3.msra.mxu1 %v4928_v47  ;;  %11176 = vmatpush3.msra.mxu0 %v8298_v2  ;;  %v16593_v63 = vld [vmem:[#allocation14_spill] sm:$0xff] }
 0x663   :  { %11218 = vmatprep.subr.mxu1 %v4927_v57  ;;  %11177 = vmatprep.subr.mxu0 %v8297_v21 }
 0x664   :  { %11154 = vmatprep.mubr.f32.mxu1 %v4692_v62  ;;  %11219 = vmatpush3.msra.mxu1 %v4927_v57 }
 0x665   :  { %11155 = vmatmul.mubr.f32.gmra.mxu1 %v4693_v31  ;;  %11220 = vmatprep.subr.mxu1 %v4926_v26  ;;  %v16594_v31 = vld [vmem:[#allocation11_spill] sm:$0xff] }
 0x666   :  { %11221 = vmatpush3.msra.mxu1 %v4926_v26  ;;  %11178 = vmatpush3.msra.mxu0 %v8297_v21 }
 0x667   :  { %11222 = vmatprep.subr.mxu1 %v4925_v61  ;;  %11179 = vmatprep.subr.mxu0 %v8296_v55 }
 0x668   :  { %11223 = vmatpush3.msra.mxu1 %v4925_v61  ;;  %11180 = vmatpush3.msra.mxu0 %v8296_v55  ;;  %v8338_v61 = vld [vmem:[%s16454_s4 + $0x1f0] sm:$0xff] }
 0x669   :  { %11224 = vmatprep.subr.mxu1 %v4924_v32  ;;  %11181 = vmatprep.subr.mxu0 %v8295_v38 }
 0x66a   :  { %11225 = vmatpush3.msra.mxu1 %v4924_v32  ;;  %11182 = vmatpush3.msra.mxu0 %v8295_v38  ;;  %v8337_v38 = vld [vmem:[%s16454_s4 + $0x1e8] sm:$0xff] }
 0x66b   :  { %11226 = vmatprep.subr.mxu1 %v4923_v19  ;;  %11183 = vmatprep.subr.mxu0 %v8294_v44 }
 0x66c   :  { %11227 = vmatpush3.msra.mxu1 %v4923_v19  ;;  %11184 = vmatpush3.msra.mxu0 %v8294_v44  ;;  %v16596_v19 = vld [vmem:[#allocation15_spill] sm:$0xff] }
 0x66d   :  { %11228 = vmatprep.subr.mxu1 %v4922_v34  ;;  %11185 = vmatprep.subr.mxu0 %v8293_v14 }
 0x66e   :  { %11229 = vmatpush3.msra.mxu1 %v4922_v34  ;;  %11236 = vmatprep.mubr.f32.mxu1 %v14961_v24  ;;  %v16597_v34 = vld [vmem:[#allocation13_spill] sm:$0xff] }
 0x66f   :  { %11230 = vmatprep.subr.mxu1 %v4921_v51  ;;  %11186 = vmatpush3.msra.mxu0 %v8293_v14 }
 0x670   :  { %11231 = vmatpush3.msra.mxu1 %v4921_v51  ;;  %11187 = vmatprep.subr.mxu0 %v8292_v37 }
 0x671   :  { %11232 = vmatprep.subr.mxu1 %v4920_v1  ;;  %11188 = vmatpush3.msra.mxu0 %v8292_v37 }
 0x672   :  { %11233 = vmatpush3.msra.mxu1 %v4920_v1  ;;  %11251 = vmatprep.subr.mxu0 %v14976_v58 }
 0x673   :  { %11234 = vmatprep.subr.mxu1 %v4919_v29 }
 0x674   :  { %11235 = vmatpush3.msra.mxu1 %v4919_v29 }
 0x675   :  { %11298 = vmatprep.subr.mxu1 %v8339_v15 }
 0x715   :  { %v11144_v18 = vpop.f32.mrf.mxu1 }
 0x716   :  { %v4826_v22 = vmul.f32 %v11144_v18, %v16585_v7 }
 0x717   :  { %v4776_v4 = vpop.f32.mrf.mxu1 }
 0x718   :  { %v4825_v40 = vmul.f32 %v4776_v4, %v16586_v41  ;;  %v4847_v6 = vrot.slane %v4826_v22, 7 }
 0x719   :  { %v11147_v10 = vpop.f32.mrf.mxu1 }
 0x71a   :  { %v4846_v54 = vrot.slane %v4825_v40, 7  ;;  %v4828_v46 = vmul.f32 %v11147_v10, %v16588_v9 }
 0x71b   :  { %v4786_v53 = vpop.f32.mrf.mxu1 }
 0x71c   :  { %v4875_v5 = vadd.f32 %v12066_v35, %v4846_v54  ;;  %v4827_v43 = vmul.f32 %v4786_v53, %v16587_v45  ;;  %v4848_v59 = vsel %vm4845_vm3, %v4846_v54, %v4847_v6  ;;  %v4851_v50 = vrot.slane %v4828_v46, 7  ;;  %v8322_v54 = vld [vmem:[%s16454_s4 + $0x170] sm:$0xff]  ;;  %v8336_v53 = vld [vmem:[%s16454_s4 + $0x1e0] sm:$0xff] }
 0x71d   :  { %v11150_v20 = vpop.f32.mrf.mxu1  ;;  %v14985_v23 = vadd.f32 %v12067_v12, %v4848_v59 }
 0x71e   :  { %4885 = vst [vmem:[#allocation2 + $0x8] sm:$0xfe] %v4875_v5  ;;  %v4849_v3 = vrot.slane %v4827_v43, 7  ;;  %v4830_v60 = vmul.f32 %v11150_v20, %v16591_v36  ;;  %v12072_v5 = vld [vmem:[#allocation2 + $0x50] sm:$0xff] }
 0x71f   :  { %v4796_v25 = vpop.f32.mrf.mxu1  ;;  %16590 = vst [vmem:[#allocation26_spill] sm:$0xff] %v14985_v23  ;;  %v14993_v30 = vmax.f32 %v14985_v23, 0.0 }
 0x720   :  { %v4829_v56 = vmul.f32 %v4796_v25, %v16589_v0  ;;  %v4850_v13 = vsel %vm4845_vm3, %v4847_v6, %v4849_v3  ;;  %v4852_v17 = vsel %vm4845_vm3, %v4849_v3, %v4851_v50  ;;  %v4855_v32 = vrot.slane %v4830_v60, 7  ;;  %v12071_v6 = vld [vmem:[#allocation2 + $0x30] sm:$0xff]  ;;  %v8321_v3 = vld [vmem:[%s16454_s4 + $0x168] sm:$0xff]  ;;  %v8335_v25 = vld [vmem:[%s16454_s4 + $0x1d8] sm:$0xff] }
 0x721   :  { %v11153_v49 = vpop.f32.mrf.mxu1  ;;  %v14990_v47 = vadd.f32 %v12068_v27, %v4850_v13  ;;  %v14999_v26 = vadd.f32 %v12069_v28, %v4852_v17  ;;  %v4964_v1 = vrot.slane %v14993_v30, 1  ;;  %v8320_v17 = vld [vmem:[%s16454_s4 + $0x160] sm:$0xff]  ;;  %v8334_v60 = vld [vmem:[%s16454_s4 + $0x1d0] sm:$0xff]  ;;  %v8333_v28 = vld [vmem:[%s16454_s4 + $0x1c8] sm:$0xff] }
 0x722   :  { %v4853_v52 = vrot.slane %v4829_v56, 7  ;;  %v4832_v55 = vmul.f32 %v11153_v49, %v16597_v34  ;;  %v12073_v49 = vld [vmem:[#allocation2 + $0x38] sm:$0xff] }
 0x723   :  { %v4806_v39 = vpop.f32.mrf.mxu1  ;;  %16592 = vst [vmem:[#allocation27_spill] sm:$0xff] %v14990_v47  ;;  %16595 = vst [vmem:[#allocation21_spill] sm:$0xff] %v14999_v26  ;;  %v15018_v44 = vmax.f32 %v14990_v47, 0.0  ;;  %v15029_v40 = vmax.f32 %v14999_v26, 0.0 }
 0x724   :  { %v4831_v62 = vmul.f32 %v4806_v39, %v16593_v63  ;;  %v4854_v2 = vsel %vm4845_vm3, %v4851_v50, %v4853_v52  ;;  %v4856_v29 = vsel %vm4845_vm3, %v4853_v52, %v4855_v32  ;;  %v4859_v59 = vrot.slane %v4832_v55, 7  ;;  %v12074_v52 = vld [vmem:[#allocation2 + $0x40] sm:$0xff]  ;;  %v8318_v55 = vld [vmem:[%s16454_s4 + $0x150] sm:$0xff] }
 0x725   :  { %v11156_v48 = vpop.f32.mrf.mxu1  ;;  %v4896_v8 = vld [vmem:[#allocation2 + $0x8] sm:$0xff]  ;;  %v15038_v35 = vadd.f32 %v12071_v6, %v4856_v29  ;;  %v4966_v20 = vrot.slane %v15018_v44, 1  ;;  %v4968_v56 = vrot.slane %v15029_v40, 1  ;;  %v8315_v6 = vld [vmem:[%s16454_s4 + $0x138] sm:$0xff] }
 0x726   :  { %v4834_v42 = vmul.f32 %v11156_v48, %v16594_v31  ;;  %v14997_v57 = vmax.f32 %v4896_v8, 0.0  ;;  %v4857_v16 = vrot.slane %v4831_v62, 7  ;;  %v8317_v29 = vld [vmem:[%s16454_s4 + $0x148] sm:$0xff] }
 0x727   :  { %v4816_v33 = vpop.f32.mrf.mxu1  ;;  %16599 = vst [vmem:[#allocation23_spill] sm:$0xff] %v15038_v35  ;;  %v15060_v13 = vsel %vm278_vm1, %v4964_v1, %v4966_v20  ;;  %v15063_v39 = vmax.f32 %v15038_v35, 0.0  ;;  %v15075_v48 = vsel %vm278_vm1, %v4966_v20, %v4968_v56  ;;  %v8314_v20 = vld [vmem:[%s16454_s4 + $0x130] sm:$0xff] }
 0x728   :  { %v15007_v21 = vmul.f32 %v4816_v33, %v16596_v19  ;;  %11237 = vmatmul.mubr.f32.vlgmr.msra.gmra.mxu1 %v14997_v57  ;;  %v4962_v51 = vrot.slane %v14997_v57, 1  ;;  %v4863_v14 = vrot.slane %v4834_v42, 7  ;;  %v4858_v46 = vsel %vm4845_vm3, %v4855_v32, %v4857_v16  ;;  %v8319_v42 = vld [vmem:[%s16454_s4 + $0x158] sm:$0xff] }
 0x729   :  { %11299 = vmatpush3.msra.mxu1 %v8339_v15  ;;  %11239 = vmatprep.mubr.f32.mxu1 %v14993_v30  ;;  %v12070_v15 = vld [vmem:[#allocation2 + $0x28] sm:$0xff]  ;;  %v15057_v50 = vadd.f32 %v12073_v49, %v4858_v46  ;;  %v4972_v33 = vrot.slane %v15063_v39, 1  ;;  %v5237_v46 = vrot.slane %v14997_v57, 2  ;;  %v8311_v49 = vld [vmem:[%s16454_s4 + $0x118] sm:$0xff] }
 0x72a   :  { %v4861_v37 = vrot.slane %v15007_v21, 7  ;;  %11300 = vmatprep.subr.mxu1 %v8338_v61  ;;  %v15022_v18 = vadd.f32 %v12070_v15, %v4854_v2  ;;  %v4963_v4 = vsel %vm278_vm1, %v4961_v11, %v4962_v51  ;;  %v15026_v22 = vsel %vm278_vm1, %v4962_v51, %v4964_v1  ;;  %v12075_v11 = vld [vmem:[#allocation2 + $0x48] sm:$0xff]  ;;  %v8332_v51 = vld [vmem:[%s16454_s4 + $0x1c0] sm:$0xff] }
 0x72b   :  { %11301 = vmatpush3.msra.mxu1 %v8338_v61  ;;  %11189 = vmatprep.mubr.f32.mxu0 %v4963_v4  ;;  %16600 = vst [vmem:[#allocation17_spill] sm:$0xff] %v15057_v50  ;;  %v15089_v61 = vmax.f32 %v15057_v50, 0.0  ;;  %v8316_v4 = vld [vmem:[%s16454_s4 + $0x140] sm:$0xff] }
 0x72c   :  { %16598 = vst [vmem:[#allocation19_spill] sm:$0xff] %v15022_v18  ;;  %v4864_v10 = vsel %vm4845_vm3, %v4861_v37, %v4863_v14  ;;  %11302 = vmatprep.subr.mxu1 %v8337_v38  ;;  %11190 = vmatmul.mubr.f32.vlgmr.msra.gmra.mxu0 %v15026_v22  ;;  %v15053_v12 = vmax.f32 %v15022_v18, 0.0  ;;  %v4862_v62 = vsel %vm4845_vm3, %v4859_v59, %v4861_v37 }
 0x72d   :  { %v4884_v43 = vadd.f32 %v12072_v5, %v4864_v10  ;;  %11303 = vmatpush3.msra.mxu1 %v8337_v38  ;;  %11252 = vmatpush3.msra.mxu0 %v14976_v58  ;;  %v4860_v58 = vsel %vm4845_vm3, %v4857_v16, %v4859_v59  ;;  %v15092_v32 = vadd.f32 %v12075_v11, %v4862_v62  ;;  %v4974_v1 = vrot.slane %v15089_v61, 1  ;;  %v8331_v16 = vld [vmem:[%s16454_s4 + $0x1b8] sm:$0xff]  ;;  %v8330_v10 = vld [vmem:[%s16454_s4 + $0x1b0] sm:$0xff]  ;;  %v8329_v5 = vld [vmem:[%s16454_s4 + $0x1a8] sm:$0xff] }
 0x72e   :  { %11240 = vmatmul.mubr.f32.gmra.mxu1 %v15018_v44  ;;  %11253 = vmatprep.subr.mxu0 %v8322_v54  ;;  %v15072_v27 = vadd.f32 %v12074_v52, %v4860_v58  ;;  %v4970_v8 = vrot.slane %v15053_v12, 1  ;;  %v5236_v59 = vrot.slane %v14961_v24, 2  ;;  %v8327_v24 = vld [vmem:[%s16454_s4 + $0x198] sm:$0xff]  ;;  %v8326_v58 = vld [vmem:[%s16454_s4 + $0x190] sm:$0xff]  ;;  %v8324_v52 = vld [vmem:[%s16454_s4 + $0x180] sm:$0xff]  ;;  %v5241_v11 = vrot.slane %v15018_v44, 2 }
 0x72f   :  { %4894 = vst [vmem:[#allocation2 + $0x50] sm:$0x1f] %v4884_v43  ;;  %11304 = vmatprep.subr.mxu1 %v8336_v53  ;;  %11242 = vmatprep.mubr.f32.mxu1 %v15029_v40  ;;  %16602 = vst [vmem:[#allocation18_spill] sm:$0xff] %v15092_v32  ;;  %v15121_v37 = vmax.f32 %v15092_v32, 0.0  ;;  %v15125_v15 = vsel %vm278_vm1, %v4972_v33, %v4974_v1  ;;  %v8371_v62 = vld [vmem:[%s16454_s4 + $0x2f8] sm:$0xff] }
 0x730   :  { %11254 = vmatpush3.msra.mxu0 %v8322_v54  ;;  %11305 = vmatpush3.msra.mxu1 %v8336_v53  ;;  %16601 = vst [vmem:[#allocation30_spill] sm:$0xff] %v15072_v27  ;;  %v15095_v2 = vsel %vm278_vm1, %v4968_v56, %v4970_v8  ;;  %v15098_v21 = vmax.f32 %v15072_v27, 0.0  ;;  %v15108_v38 = vsel %vm278_vm1, %v4970_v8, %v4972_v33  ;;  %v8312_v56 = vld [vmem:[%s16454_s4 + $0x120] sm:$0xff]  ;;  %v8309_v8 = vld [vmem:[%s16454_s4 + $0x108] sm:$0xff]  ;;  %v5239_v33 = vrot.slane %v14993_v30, 2 }
 0x731   :  { %11255 = vmatprep.subr.mxu0 %v8321_v3  ;;  %11306 = vmatprep.subr.mxu1 %v8335_v25  ;;  %v15138_v53 = vrot.slane %v15121_v37, 1 }
 0x732   :  { %11192 = vmatprep.mubr.f32.mxu0 %v15060_v13  ;;  %11256 = vmatpush3.msra.mxu0 %v8321_v3  ;;  %v4976_v14 = vrot.slane %v15098_v21, 1  ;;  %v8328_v3 = vld [vmem:[%s16454_s4 + $0x1a0] sm:$0xff] }
 0x733   :  { %11307 = vmatpush3.msra.mxu1 %v8335_v25  ;;  %11193 = vmatmul.mubr.f32.gmra.mxu0 %v15075_v48  ;;  %v8313_v25 = vld [vmem:[%s16454_s4 + $0x128] sm:$0xff] }
 0x734   :  { %11243 = vmatmul.mubr.f32.gmra.mxu1 %v15053_v12  ;;  %11257 = vmatprep.subr.mxu0 %v8320_v17  ;;  %v15135_v54 = vsel %vm278_vm1, %v4974_v1, %v4976_v14  ;;  %v15151_v43 = vsel %vm278_vm1, %v4976_v14, %v15138_v53  ;;  %v15211_v1 = vsel %vm3659_vm2, %v5237_v46, %v5239_v33  ;;  %v8368_v14 = vld [vmem:[%s16454_s4 + $0x2e0] sm:$0xff] }
 0x735   :  { %11308 = vmatprep.subr.mxu1 %v8334_v60  ;;  %11245 = vmatprep.mubr.f32.mxu1 %v15063_v39 }
 0x736   :  { %11258 = vmatpush3.msra.mxu0 %v8320_v17  ;;  %11309 = vmatpush3.msra.mxu1 %v8334_v60  ;;  %v8325_v17 = vld [vmem:[%s16454_s4 + $0x188] sm:$0xff]  ;;  %v8310_v60 = vld [vmem:[%s16454_s4 + $0x110] sm:$0xff] }
 0x737   :  { %11259 = vmatprep.subr.mxu0 %v8319_v42  ;;  %11310 = vmatprep.subr.mxu1 %v8333_v28 }
 0x738   :  { %11195 = vmatprep.mubr.f32.mxu0 %v15095_v2  ;;  %11260 = vmatpush3.msra.mxu0 %v8319_v42  ;;  %v8308_v42 = vld [vmem:[%s16454_s4 + $0x100] sm:$0xff] }
 0x739   :  { %11311 = vmatpush3.msra.mxu1 %v8333_v28  ;;  %11196 = vmatmul.mubr.f32.gmra.mxu0 %v15108_v38  ;;  %v8370_v28 = vld [vmem:[%s16454_s4 + $0x2f0] sm:$0xff] }
 0x73a   :  { %11246 = vmatmul.mubr.f32.gmra.mxu1 %v15089_v61  ;;  %11261 = vmatprep.subr.mxu0 %v8318_v55 }
 0x73b   :  { %11312 = vmatprep.subr.mxu1 %v8332_v51  ;;  %11248 = vmatprep.mubr.f32.mxu1 %v15098_v21 }
 0x73c   :  { %11262 = vmatpush3.msra.mxu0 %v8318_v55  ;;  %11313 = vmatpush3.msra.mxu1 %v8332_v51  ;;  %v8355_v55 = vld [vmem:[%s16454_s4 + $0x278] sm:$0xff]  ;;  %v8369_v51 = vld [vmem:[%s16454_s4 + $0x2e8] sm:$0xff] }
 0x73d   :  { %11263 = vmatprep.subr.mxu0 %v8317_v29  ;;  %11314 = vmatprep.subr.mxu1 %v8331_v16 }
 0x73e   :  { %11198 = vmatprep.mubr.f32.mxu0 %v15125_v15  ;;  %11264 = vmatpush3.msra.mxu0 %v8317_v29  ;;  %v15216_v29 = vsel %vm3659_vm2, %v5239_v33, %v5241_v11  ;;  %v8363_v33 = vld [vmem:[%s16454_s4 + $0x2b8] sm:$0xff] }
 0x73f   :  { %11315 = vmatpush3.msra.mxu1 %v8331_v16  ;;  %11199 = vmatmul.mubr.f32.gmra.mxu0 %v15135_v54  ;;  %v8354_v16 = vld [vmem:[%s16454_s4 + $0x270] sm:$0xff] }
 0x740   :  { %11249 = vmatmul.mubr.f32.gmra.mxu1 %v15121_v37  ;;  %11265 = vmatprep.subr.mxu0 %v8316_v4 }
 0x741   :  { %11316 = vmatprep.subr.mxu1 %v8330_v10  ;;  %11266 = vmatpush3.msra.mxu0 %v8316_v4  ;;  %v5243_v4 = vrot.slane %v15029_v40, 2 }
 0x742   :  { %11317 = vmatpush3.msra.mxu1 %v8330_v10  ;;  %11330 = vmatprep.mubr.f32.mxu1 %v14997_v57  ;;  %v5238_v57 = vsel %vm3659_vm2, %v5236_v59, %v5237_v46  ;;  %v5245_v10 = vrot.slane %v15053_v12, 2  ;;  %v8352_v46 = vld [vmem:[%s16454_s4 + $0x260] sm:$0xff] }
 0x743   :  { %11267 = vmatprep.subr.mxu0 %v8315_v6  ;;  %11318 = vmatprep.subr.mxu1 %v8329_v5 }
 0x744   :  { %11201 = vmatprep.mubr.f32.mxu0 %v15151_v43  ;;  %11268 = vmatpush3.msra.mxu0 %v8315_v6  ;;  %v8353_v6 = vld [vmem:[%s16454_s4 + $0x268] sm:$0xff]  ;;  %v15240_v59 = vsel %vm3659_vm2, %v5243_v4, %v5245_v10 }
 0x745   :  { %11319 = vmatpush3.msra.mxu1 %v8329_v5  ;;  %11202 = vmatmul.mubr.f32.gmra.mxu0 %v15138_v53  ;;  %v8367_v5 = vld [vmem:[%s16454_s4 + $0x2d8] sm:$0xff] }
 0x746   :  { %11269 = vmatprep.subr.mxu0 %v8314_v20  ;;  %11320 = vmatprep.subr.mxu1 %v8328_v3 }
 0x747   :  { %11270 = vmatpush3.msra.mxu0 %v8314_v20  ;;  %11283 = vmatprep.mubr.f32.mxu0 %v5238_v57  ;;  %v15235_v20 = vsel %vm3659_vm2, %v5241_v11, %v5243_v4  ;;  %v8351_v57 = vld [vmem:[%s16454_s4 + $0x258] sm:$0xff]  ;;  %v8361_v4 = vld [vmem:[%s16454_s4 + $0x2a8] sm:$0xff] }
 0x748   :  { %11321 = vmatpush3.msra.mxu1 %v8328_v3  ;;  %11271 = vmatprep.subr.mxu0 %v8313_v25  ;;  %v8366_v3 = vld [vmem:[%s16454_s4 + $0x2d0] sm:$0xff] }
 0x749   :  { %11322 = vmatprep.subr.mxu1 %v8327_v24  ;;  %11272 = vmatpush3.msra.mxu0 %v8313_v25  ;;  %v5247_v25 = vrot.slane %v15063_v39, 2 }
 0x74a   :  { %11323 = vmatpush3.msra.mxu1 %v8327_v24  ;;  %11273 = vmatprep.subr.mxu0 %v8312_v56  ;;  %v5249_v24 = vrot.slane %v15089_v61, 2 }
 0x74b   :  { %11324 = vmatprep.subr.mxu1 %v8326_v58  ;;  %11274 = vmatpush3.msra.mxu0 %v8312_v56  ;;  %v8365_v56 = vld [vmem:[%s16454_s4 + $0x2c8] sm:$0xff] }
 0x74c   :  { %11325 = vmatpush3.msra.mxu1 %v8326_v58  ;;  %11275 = vmatprep.subr.mxu0 %v8311_v49  ;;  %v15259_v58 = vsel %vm3659_vm2, %v5245_v10, %v5247_v25  ;;  %v8346_v10 = vld [vmem:[%s16454_s4 + $0x230] sm:$0xff] }
 0x74d   :  { %11326 = vmatprep.subr.mxu1 %v8325_v17  ;;  %11276 = vmatpush3.msra.mxu0 %v8311_v49  ;;  %v15264_v49 = vsel %vm3659_vm2, %v5247_v25, %v5249_v24  ;;  %v8357_v25 = vld [vmem:[%s16454_s4 + $0x288] sm:$0xff] }
 0x74e   :  { %11327 = vmatpush3.msra.mxu1 %v8325_v17  ;;  %11277 = vmatprep.subr.mxu0 %v8310_v60  ;;  %v8350_v17 = vld [vmem:[%s16454_s4 + $0x250] sm:$0xff] }
 0x74f   :  { %11328 = vmatprep.subr.mxu1 %v8324_v52  ;;  %11278 = vmatpush3.msra.mxu0 %v8310_v60  ;;  %v8364_v60 = vld [vmem:[%s16454_s4 + $0x2c0] sm:$0xff] }
 0x750   :  { %11329 = vmatpush3.msra.mxu1 %v8324_v52  ;;  %11279 = vmatprep.subr.mxu0 %v8309_v8  ;;  %v5251_v52 = vrot.slane %v15098_v21, 2 }
 0x751   :  { %11331 = vmatmul.mubr.f32.vlgmr.msra.gmra.mxu1 %v14993_v30  ;;  %11392 = vmatprep.subr.mxu1 %v8371_v62 }
 0x752   :  { %11280 = vmatpush3.msra.mxu0 %v8309_v8  ;;  %11333 = vmatprep.mubr.f32.mxu1 %v15018_v44  ;;  %v4905_v8 = vld [vmem:[#allocation2 + $0x50] sm:$0xff]  ;;  %v15287_v11 = vsel %vm3659_vm2, %v5249_v24, %v5251_v52 }
 0x753   :  { %11393 = vmatpush3.msra.mxu1 %v8371_v62  ;;  %11281 = vmatprep.subr.mxu0 %v8308_v42  ;;  %v15276_v62 = vrot.slane %v15121_v37, 2  ;;  %v8342_v24 = vld [vmem:[%s16454_s4 + $0x210] sm:$0xff] }
 0x754   :  { %11394 = vmatprep.subr.mxu1 %v8370_v28  ;;  %11282 = vmatpush3.msra.mxu0 %v8308_v42  ;;  %v15278_v42 = vmax.f32 %v4905_v8, 0.0  ;;  %v8387_v8 = vld [vmem:[%s16454_s4 + $0x378] sm:$0xff] }
 0x755   :  { %11395 = vmatpush3.msra.mxu1 %v8370_v28  ;;  %11284 = vmatmul.mubr.f32.vlgmr.msra.gmra.mxu0 %v15211_v1  ;;  %v8349_v28 = vld [vmem:[%s16454_s4 + $0x248] sm:$0xff] }
 0x756   :  { %11334 = vmatmul.mubr.f32.gmra.mxu1 %v15029_v40  ;;  %11345 = vmatprep.subr.mxu0 %v8355_v55 }
 0x757   :  { %11396 = vmatprep.subr.mxu1 %v8369_v51  ;;  %11286 = vmatprep.mubr.f32.mxu0 %v15216_v29 }
 0x758   :  { %11336 = vmatprep.mubr.f32.mxu1 %v15053_v12  ;;  %11346 = vmatpush3.msra.mxu0 %v8355_v55  ;;  %v15293_v55 = vsel %vm3659_vm2, %v5251_v52, %v15276_v62  ;;  %v8402_v52 = vld [vmem:[%s16454_s4 + $0x3f0] sm:$0xff] }
 0x759   :  { %11397 = vmatpush3.msra.mxu1 %v8369_v51  ;;  %11347 = vmatprep.subr.mxu0 %v8354_v16  ;;  %v8348_v51 = vld [vmem:[%s16454_s4 + $0x240] sm:$0xff] }
 0x75a   :  { %11398 = vmatprep.subr.mxu1 %v8368_v14  ;;  %11348 = vmatpush3.msra.mxu0 %v8354_v16  ;;  %v8362_v16 = vld [vmem:[%s16454_s4 + $0x2b0] sm:$0xff] }
 0x75b   :  { %11399 = vmatpush3.msra.mxu1 %v8368_v14  ;;  %11287 = vmatmul.mubr.f32.gmra.mxu0 %v15235_v20  ;;  %v8347_v14 = vld [vmem:[%s16454_s4 + $0x238] sm:$0xff] }
 0x75c   :  { %11337 = vmatmul.mubr.f32.gmra.mxu1 %v15063_v39  ;;  %11349 = vmatprep.subr.mxu0 %v8353_v6 }
 0x75d   :  { %11400 = vmatprep.subr.mxu1 %v8367_v5  ;;  %11289 = vmatprep.mubr.f32.mxu0 %v15240_v59 }
 0x75e   :  { %11339 = vmatprep.mubr.f32.mxu1 %v15089_v61  ;;  %11350 = vmatpush3.msra.mxu0 %v8353_v6  ;;  %v8345_v6 = vld [vmem:[%s16454_s4 + $0x228] sm:$0xff] }
 0x75f   :  { %11401 = vmatpush3.msra.mxu1 %v8367_v5  ;;  %11351 = vmatprep.subr.mxu0 %v8352_v46  ;;  %v8359_v5 = vld [vmem:[%s16454_s4 + $0x298] sm:$0xff] }
 0x760   :  { %11402 = vmatprep.subr.mxu1 %v8366_v3  ;;  %11352 = vmatpush3.msra.mxu0 %v8352_v46  ;;  %v8344_v46 = vld [vmem:[%s16454_s4 + $0x220] sm:$0xff] }
 0x761   :  { %11403 = vmatpush3.msra.mxu1 %v8366_v3  ;;  %11290 = vmatmul.mubr.f32.gmra.mxu0 %v15259_v58  ;;  %v8343_v3 = vld [vmem:[%s16454_s4 + $0x218] sm:$0xff] }
 0x762   :  { %11340 = vmatmul.mubr.f32.gmra.mxu1 %v15098_v21  ;;  %11353 = vmatprep.subr.mxu0 %v8351_v57 }
 0x763   :  { %11404 = vmatprep.subr.mxu1 %v8365_v56  ;;  %11292 = vmatprep.mubr.f32.mxu0 %v15264_v49 }
 0x764   :  { %11342 = vmatprep.mubr.f32.mxu1 %v15121_v37  ;;  %11354 = vmatpush3.msra.mxu0 %v8351_v57  ;;  %v8356_v57 = vld [vmem:[%s16454_s4 + $0x280] sm:$0xff] }
 0x765   :  { %11405 = vmatpush3.msra.mxu1 %v8365_v56  ;;  %11355 = vmatprep.subr.mxu0 %v8350_v17  ;;  %v8341_v56 = vld [vmem:[%s16454_s4 + $0x208] sm:$0xff] }
 0x766   :  { %11406 = vmatprep.subr.mxu1 %v8364_v60  ;;  %11356 = vmatpush3.msra.mxu0 %v8350_v17  ;;  %v8403_v17 = vld [vmem:[%s16454_s4 + $0x3f8] sm:$0xff] }
 0x767   :  { %11407 = vmatpush3.msra.mxu1 %v8364_v60  ;;  %11293 = vmatmul.mubr.f32.gmra.mxu0 %v15287_v11  ;;  %v8340_v60 = vld [vmem:[%s16454_s4 + $0x200] sm:$0xff] }
 0x768   :  { %11343 = vmatmul.mubr.f32.gmra.mxu1 %v15278_v42  ;;  %11357 = vmatprep.subr.mxu0 %v8349_v28 }
 0x769   :  { %11408 = vmatprep.subr.mxu1 %v8363_v33  ;;  %11295 = vmatprep.mubr.f32.mxu0 %v15293_v55 }
 0x76a   :  { %11358 = vmatpush3.msra.mxu0 %v8349_v28  ;;  %11409 = vmatpush3.msra.mxu1 %v8363_v33  ;;  %v8401_v28 = vld [vmem:[%s16454_s4 + $0x3e8] sm:$0xff]  ;;  %v8386_v33 = vld [vmem:[%s16454_s4 + $0x370] sm:$0xff] }
 0x76b   :  { %11424 = vmatprep.mubr.f32.mxu1 %v15211_v1  ;;  %11359 = vmatprep.subr.mxu0 %v8348_v51  ;;  %v8360_v1 = vld [vmem:[%s16454_s4 + $0x2a0] sm:$0xff] }
 0x76c   :  { %11410 = vmatprep.subr.mxu1 %v8362_v16  ;;  %11360 = vmatpush3.msra.mxu0 %v8348_v51  ;;  %v8400_v51 = vld [vmem:[%s16454_s4 + $0x3e0] sm:$0xff] }
 0x76d   :  { %11411 = vmatpush3.msra.mxu1 %v8362_v16  ;;  %11296 = vmatmul.mubr.f32.gmra.mxu0 %v15276_v62  ;;  %v8385_v16 = vld [vmem:[%s16454_s4 + $0x368] sm:$0xff] }
 0x76e   :  { %11361 = vmatprep.subr.mxu0 %v8347_v14  ;;  %11412 = vmatprep.subr.mxu1 %v8361_v4 }
 0x76f   :  { %11362 = vmatpush3.msra.mxu0 %v8347_v14  ;;  %11377 = vmatprep.mubr.f32.mxu0 %v15026_v22  ;;  %v8358_v22 = vld [vmem:[%s16454_s4 + $0x290] sm:$0xff]  ;;  %v8399_v14 = vld [vmem:[%s16454_s4 + $0x3d8] sm:$0xff] }
 0x770   :  { %11413 = vmatpush3.msra.mxu1 %v8361_v4  ;;  %11363 = vmatprep.subr.mxu0 %v8346_v10  ;;  %v8384_v4 = vld [vmem:[%s16454_s4 + $0x360] sm:$0xff] }
 0x771   :  { %11414 = vmatprep.subr.mxu1 %v8360_v1  ;;  %11364 = vmatpush3.msra.mxu0 %v8346_v10  ;;  %v8398_v10 = vld [vmem:[%s16454_s4 + $0x3d0] sm:$0xff] }
 0x772   :  { %11415 = vmatpush3.msra.mxu1 %v8360_v1  ;;  %11365 = vmatprep.subr.mxu0 %v8345_v6  ;;  %v15388_v1 = vrot.slane %v15278_v42, 2 }
 0x773   :  { %11416 = vmatprep.subr.mxu1 %v8359_v5  ;;  %11366 = vmatpush3.msra.mxu0 %v8345_v6  ;;  %v8383_v6 = vld [vmem:[%s16454_s4 + $0x358] sm:$0xff] }
 0x774   :  { %11417 = vmatpush3.msra.mxu1 %v8359_v5  ;;  %11367 = vmatprep.subr.mxu0 %v8344_v46  ;;  %v8397_v5 = vld [vmem:[%s16454_s4 + $0x3c8] sm:$0xff] }
 0x775   :  { %11418 = vmatprep.subr.mxu1 %v8358_v22  ;;  %11368 = vmatpush3.msra.mxu0 %v8344_v46  ;;  %v15401_v46 = vsel %vm3659_vm2, %v15276_v62, %v15388_v1  ;;  %v8381_v62 = vld [vmem:[%s16454_s4 + $0x348] sm:$0xff] }
 0x776   :  { %11419 = vmatpush3.msra.mxu1 %v8358_v22  ;;  %11369 = vmatprep.subr.mxu0 %v8343_v3  ;;  %v8382_v22 = vld [vmem:[%s16454_s4 + $0x350] sm:$0xff] }
 0x777   :  { %11420 = vmatprep.subr.mxu1 %v8357_v25  ;;  %11370 = vmatpush3.msra.mxu0 %v8343_v3  ;;  %v8396_v3 = vld [vmem:[%s16454_s4 + $0x3c0] sm:$0xff] }
 0x778   :  { %11421 = vmatpush3.msra.mxu1 %v8357_v25  ;;  %11371 = vmatprep.subr.mxu0 %v8342_v24  ;;  %v15412_v25 = vrot.slane %v15278_v42, 1 }
 0x779   :  { %11422 = vmatprep.subr.mxu1 %v8356_v57  ;;  %11372 = vmatpush3.msra.mxu0 %v8342_v24  ;;  %v8395_v24 = vld [vmem:[%s16454_s4 + $0x3b8] sm:$0xff] }
 0x77a   :  { %11423 = vmatpush3.msra.mxu1 %v8356_v57  ;;  %11373 = vmatprep.subr.mxu0 %v8341_v56  ;;  %v15425_v57 = vsel %vm278_vm1, %v15138_v53, %v15412_v25  ;;  %v8393_v53 = vld [vmem:[%s16454_s4 + $0x3a8] sm:$0xff] }
 0x77b   :  { %11425 = vmatmul.mubr.f32.vlgmr.msra.gmra.mxu1 %v15216_v29  ;;  %11486 = vmatprep.subr.mxu1 %v8403_v17 }
 0x77c   :  { %11374 = vmatpush3.msra.mxu0 %v8341_v56  ;;  %11427 = vmatprep.mubr.f32.mxu1 %v15235_v20  ;;  %v8380_v56 = vld [vmem:[%s16454_s4 + $0x340] sm:$0xff] }
 0x77d   :  { %11487 = vmatpush3.msra.mxu1 %v8403_v17  ;;  %11375 = vmatprep.subr.mxu0 %v8340_v60  ;;  %v8394_v17 = vld [vmem:[%s16454_s4 + $0x3b0] sm:$0xff] }
 0x77e   :  { %11488 = vmatprep.subr.mxu1 %v8402_v52  ;;  %11376 = vmatpush3.msra.mxu0 %v8340_v60  ;;  %v8379_v60 = vld [vmem:[%s16454_s4 + $0x338] sm:$0xff] }
 0x77f   :  { %11489 = vmatpush3.msra.mxu1 %v8402_v52  ;;  %11378 = vmatmul.mubr.f32.vlgmr.msra.gmra.mxu0 %v15060_v13  ;;  %v8378_v52 = vld [vmem:[%s16454_s4 + $0x330] sm:$0xff] }
 0x780   :  { %11428 = vmatmul.mubr.f32.gmra.mxu1 %v15240_v59  ;;  %11439 = vmatprep.subr.mxu0 %v8387_v8 }
 0x781   :  { %11490 = vmatprep.subr.mxu1 %v8401_v28  ;;  %11380 = vmatprep.mubr.f32.mxu0 %v15075_v48 }
 0x782   :  { %11430 = vmatprep.mubr.f32.mxu1 %v15259_v58  ;;  %11440 = vmatpush3.msra.mxu0 %v8387_v8  ;;  %v8377_v8 = vld [vmem:[%s16454_s4 + $0x328] sm:$0xff] }
 0x783   :  { %11491 = vmatpush3.msra.mxu1 %v8401_v28  ;;  %11441 = vmatprep.subr.mxu0 %v8386_v33  ;;  %v8391_v28 = vld [vmem:[%s16454_s4 + $0x398] sm:$0xff] }
 0x784   :  { %11492 = vmatprep.subr.mxu1 %v8400_v51  ;;  %11442 = vmatpush3.msra.mxu0 %v8386_v33  ;;  %v8376_v33 = vld [vmem:[%s16454_s4 + $0x320] sm:$0xff] }
 0x785   :  { %11493 = vmatpush3.msra.mxu1 %v8400_v51  ;;  %11381 = vmatmul.mubr.f32.gmra.mxu0 %v15095_v2  ;;  %v8375_v51 = vld [vmem:[%s16454_s4 + $0x318] sm:$0xff] }
 0x786   :  { %11431 = vmatmul.mubr.f32.gmra.mxu1 %v15264_v49  ;;  %11443 = vmatprep.subr.mxu0 %v8385_v16 }
 0x787   :  { %11494 = vmatprep.subr.mxu1 %v8399_v14  ;;  %11383 = vmatprep.mubr.f32.mxu0 %v15108_v38 }
 0x788   :  { %11433 = vmatprep.mubr.f32.mxu1 %v15287_v11  ;;  %11444 = vmatpush3.msra.mxu0 %v8385_v16  ;;  %v8389_v16 = vld [vmem:[%s16454_s4 + $0x388] sm:$0xff] }
 0x789   :  { %11495 = vmatpush3.msra.mxu1 %v8399_v14  ;;  %11445 = vmatprep.subr.mxu0 %v8384_v4  ;;  %v8374_v14 = vld [vmem:[%s16454_s4 + $0x310] sm:$0xff] }
 0x78a   :  { %11496 = vmatprep.subr.mxu1 %v8398_v10  ;;  %11446 = vmatpush3.msra.mxu0 %v8384_v4  ;;  %v8388_v4 = vld [vmem:[%s16454_s4 + $0x380] sm:$0xff] }
 0x78b   :  { %11497 = vmatpush3.msra.mxu1 %v8398_v10  ;;  %11384 = vmatmul.mubr.f32.gmra.mxu0 %v15125_v15  ;;  %v8373_v10 = vld [vmem:[%s16454_s4 + $0x308] sm:$0xff] }
 0x78c   :  { %11434 = vmatmul.mubr.f32.gmra.mxu1 %v15293_v55  ;;  %11447 = vmatprep.subr.mxu0 %v8383_v6 }
 0x78d   :  { %11498 = vmatprep.subr.mxu1 %v8397_v5  ;;  %11386 = vmatprep.mubr.f32.mxu0 %v15135_v54 }
 0x78e   :  { %11436 = vmatprep.mubr.f32.mxu1 %v15401_v46  ;;  %11448 = vmatpush3.msra.mxu0 %v8383_v6  ;;  %v8372_v6 = vld [vmem:[%s16454_s4 + $0x300] sm:$0xff] }
 0x78f   :  { %11499 = vmatpush3.msra.mxu1 %v8397_v5  ;;  %11449 = vmatprep.subr.mxu0 %v8382_v22  ;;  %v4906_v5 = vld [vmem:[#allocation2 + $0x58] sm:$0xff] }
 0x790   :  { %11500 = vmatprep.subr.mxu1 %v8396_v3  ;;  %11450 = vmatpush3.msra.mxu0 %v8382_v22  ;;  %v8419_v22 = vld [vmem:[%s16454_s4 + $0x478] sm:$0xff] }
 0x791   :  { %11501 = vmatpush3.msra.mxu1 %v8396_v3  ;;  %11387 = vmatmul.mubr.f32.gmra.mxu0 %v15151_v43  ;;  %v8418_v3 = vld [vmem:[%s16454_s4 + $0x470] sm:$0xff] }
 0x792   :  { %11437 = vmatmul.mubr.f32.gmra.mxu1 %v15388_v1  ;;  %11451 = vmatprep.subr.mxu0 %v8381_v62 }
 0x793   :  { %11502 = vmatprep.subr.mxu1 %v8395_v24  ;;  %11389 = vmatprep.mubr.f32.mxu0 %v15425_v57 }
 0x794   :  { %11452 = vmatpush3.msra.mxu0 %v8381_v62  ;;  %11503 = vmatpush3.msra.mxu1 %v8395_v24  ;;  %v15489_v62 = vmax.f32 %v4906_v5, 0.0 }
 0x795   :  { %11518 = vmatprep.mubr.f32.mxu1 %v15060_v13  ;;  %11453 = vmatprep.subr.mxu0 %v8380_v56  ;;  %v8392_v13 = vld [vmem:[%s16454_s4 + $0x3a0] sm:$0xff] }
 0x796   :  { %11504 = vmatprep.subr.mxu1 %v8394_v17  ;;  %11454 = vmatpush3.msra.mxu0 %v8380_v56  ;;  %v6125_v24 = vrot.slane %v15489_v62, 2  ;;  %v6273_v56 = vld [vmem:[%s16455_s5 + $0x48] sm:$0xff] }
 0x797   :  { %11505 = vmatpush3.msra.mxu1 %v8394_v17  ;;  %11390 = vmatmul.mubr.f32.gmra.mxu0 %v15412_v25 }
 0x798   :  { %11455 = vmatprep.subr.mxu0 %v8379_v60  ;;  %11506 = vmatprep.subr.mxu1 %v8393_v53 }
 0x799   :  { %11456 = vmatpush3.msra.mxu0 %v8379_v60  ;;  %11471 = vmatprep.mubr.f32.mxu0 %v14993_v30  ;;  %v8390_v30 = vld [vmem:[%s16454_s4 + $0x390] sm:$0xff]  ;;  %v6272_v60 = vld [vmem:[%s16455_s5 + $0x40] sm:$0xff] }
 0x79a   :  { %11507 = vmatpush3.msra.mxu1 %v8393_v53  ;;  %11457 = vmatprep.subr.mxu0 %v8378_v52  ;;  %v6271_v53 = vld [vmem:[%s16455_s5 + $0x38] sm:$0xff] }
 0x79b   :  { %11508 = vmatprep.subr.mxu1 %v8392_v13  ;;  %11458 = vmatpush3.msra.mxu0 %v8378_v52  ;;  %v6270_v52 = vld [vmem:[%s16455_s5 + $0x30] sm:$0xff] }
 0x79c   :  { %11509 = vmatpush3.msra.mxu1 %v8392_v13  ;;  %11459 = vmatprep.subr.mxu0 %v8377_v8 }
 0x79d   :  { %11510 = vmatprep.subr.mxu1 %v8391_v28  ;;  %11460 = vmatpush3.msra.mxu0 %v8377_v8  ;;  %v6269_v8 = vld [vmem:[%s16455_s5 + $0x28] sm:$0xff] }
 0x79e   :  { %11511 = vmatpush3.msra.mxu1 %v8391_v28  ;;  %11461 = vmatprep.subr.mxu0 %v8376_v33 }
 0x79f   :  { %11512 = vmatprep.subr.mxu1 %v8390_v30  ;;  %11462 = vmatpush3.msra.mxu0 %v8376_v33  ;;  %v6268_v33 = vld [vmem:[%s16455_s5 + $0x20] sm:$0xff] }
 0x7a0   :  { %11513 = vmatpush3.msra.mxu1 %v8390_v30  ;;  %11463 = vmatprep.subr.mxu0 %v8375_v51 }
 0x7a1   :  { %11514 = vmatprep.subr.mxu1 %v8389_v16  ;;  %11464 = vmatpush3.msra.mxu0 %v8375_v51 }
 0x7a2   :  { %11515 = vmatpush3.msra.mxu1 %v8389_v16  ;;  %11465 = vmatprep.subr.mxu0 %v8374_v14  ;;  %v6267_v16 = vld [vmem:[%s16455_s5 + $0x18] sm:$0xff] }
 0x7a3   :  { %11516 = vmatprep.subr.mxu1 %v8388_v4  ;;  %11466 = vmatpush3.msra.mxu0 %v8374_v14 }
 0x7a4   :  { %11517 = vmatpush3.msra.mxu1 %v8388_v4  ;;  %11467 = vmatprep.subr.mxu0 %v8373_v10  ;;  %v6266_v4 = vld [vmem:[%s16455_s5 + $0x10] sm:$0xff] }
 0x7a5   :  { %11519 = vmatmul.mubr.f32.vlgmr.msra.gmra.mxu1 %v15075_v48  ;;  %11468 = vmatpush3.msra.mxu0 %v8373_v10  ;;  %v8417_v48 = vld [vmem:[%s16454_s4 + $0x468] sm:$0xff] }
 0x7a6   :  { %11521 = vmatprep.mubr.f32.mxu1 %v15095_v2  ;;  %11469 = vmatprep.subr.mxu0 %v8372_v6  ;;  %v8415_v2 = vld [vmem:[%s16454_s4 + $0x458] sm:$0xff] }
 0x7a7   :  { %11470 = vmatpush3.msra.mxu0 %v8372_v6  ;;  %v6265_v6 = vld [vmem:[%s16455_s5 + $0x8] sm:$0xff] }
 0x7a8   :  { %11472 = vmatmul.mubr.f32.vlgmr.msra.gmra.mxu0 %v15018_v44  ;;  %11533 = vmatprep.subr.mxu0 %v8419_v22  ;;  %v5980_v44 = vrot.slane %v15489_v62, 1 }
 0x7a9   :  { %11522 = vmatmul.mubr.f32.gmra.mxu1 %v15108_v38  ;;  %11474 = vmatprep.mubr.f32.mxu0 %v15029_v40  ;;  %v8416_v40 = vld [vmem:[%s16454_s4 + $0x460] sm:$0xff]  ;;  %v8414_v38 = vld [vmem:[%s16454_s4 + $0x450] sm:$0xff] }
 0x7aa   :  { %11524 = vmatprep.mubr.f32.mxu1 %v15125_v15  ;;  %11534 = vmatpush3.msra.mxu0 %v8419_v22  ;;  %v8412_v15 = vld [vmem:[%s16454_s4 + $0x440] sm:$0xff] }
 0x7ab   :  { %11535 = vmatprep.subr.mxu0 %v8418_v3  ;;  %v6264_v22 = vld [vmem:[%s16455_s5] sm:$0xff] }
 0x7ac   :  { %11536 = vmatpush3.msra.mxu0 %v8418_v3 }
 0x7ad   :  { %11525 = vmatmul.mubr.f32.gmra.mxu1 %v15135_v54  ;;  %11475 = vmatmul.mubr.f32.gmra.mxu0 %v15053_v12  ;;  %v5981_v12 = vsel %vm278_vm1, %v15412_v25, %v5980_v44  ;;  %v8408_v54 = vld [vmem:[%s16454_s4 + $0x420] sm:$0xff] }
 0x7ae   :  { %11537 = vmatprep.subr.mxu0 %v8417_v48  ;;  %11477 = vmatprep.mubr.f32.mxu0 %v15063_v39  ;;  %v8413_v39 = vld [vmem:[%s16454_s4 + $0x448] sm:$0xff]  ;;  %v8404_v25 = vld [vmem:[%s16454_s4 + $0x400] sm:$0xff] }
 0x7af   :  { %11527 = vmatprep.mubr.f32.mxu1 %v15151_v43  ;;  %11538 = vmatpush3.msra.mxu0 %v8417_v48  ;;  %v8407_v43 = vld [vmem:[%s16454_s4 + $0x418] sm:$0xff] }
 0x7b0   :  { %11539 = vmatprep.subr.mxu0 %v8416_v40 }
 0x7b1   :  { %11528 = vmatmul.mubr.f32.gmra.mxu1 %v15425_v57  ;;  %11540 = vmatpush3.msra.mxu0 %v8416_v40  ;;  %v6126_v57 = vsel %vm3659_vm2, %v15388_v1, %v6125_v24 }
 0x7b2   :  { %11530 = vmatprep.mubr.f32.mxu1 %v5981_v12  ;;  %11478 = vmatmul.mubr.f32.gmra.mxu0 %v15089_v61  ;;  %v8411_v61 = vld [vmem:[%s16454_s4 + $0x438] sm:$0xff] }
 0x7b3   :  { %11541 = vmatprep.subr.mxu0 %v8415_v2  ;;  %11480 = vmatprep.mubr.f32.mxu0 %v15098_v21  ;;  %v8410_v21 = vld [vmem:[%s16454_s4 + $0x430] sm:$0xff] }
 0x7b4   :  { %11542 = vmatpush3.msra.mxu0 %v8415_v2 }
 0x7b5   :  { %11543 = vmatprep.subr.mxu0 %v8414_v38  ;;  %11531 = vmatmul.mubr.f32.gmra.mxu1 %v5980_v44 }
 0x7b6   :  { %11544 = vmatpush3.msra.mxu0 %v8414_v38 }
 0x7b7   :  { %11481 = vmatmul.mubr.f32.gmra.mxu0 %v15121_v37  ;;  %11545 = vmatprep.subr.mxu0 %v8413_v39  ;;  %v8409_v37 = vld [vmem:[%s16454_s4 + $0x428] sm:$0xff] }
 0x7b8   :  { %11483 = vmatprep.mubr.f32.mxu0 %v15278_v42  ;;  %11546 = vmatpush3.msra.mxu0 %v8413_v39  ;;  %v8405_v42 = vld [vmem:[%s16454_s4 + $0x408] sm:$0xff] }
 0x7b9   :  { %11547 = vmatprep.subr.mxu0 %v8412_v15 }
 0x7ba   :  { %11548 = vmatpush3.msra.mxu0 %v8412_v15 }
 0x7bb   :  { %11484 = vmatmul.mubr.f32.gmra.mxu0 %v15489_v62  ;;  %11549 = vmatprep.subr.mxu0 %v8411_v61 }
 0x7bc   :  { %11550 = vmatpush3.msra.mxu0 %v8411_v61  ;;  %11565 = vmatprep.mubr.f32.mxu0 %v15216_v29  ;;  %v8406_v29 = vld [vmem:[%s16454_s4 + $0x410] sm:$0xff]  ;;  %v15650_v61 = vld [vmem:[%s16456_s6 + $0x78] sm:$0xff] }
 0x7bd   :  { %11551 = vmatprep.subr.mxu0 %v8410_v21  ;;  %16603 = vst [vmem:[#allocation31_spill] sm:$0xff] %v15650_v61 }
 0x7be   :  { %11552 = vmatpush3.msra.mxu0 %v8410_v21  ;;  %v8435_v21 = vld [vmem:[%s16456_s6 + $0xf8] sm:$0xff] }
 0x7bf   :  { %11553 = vmatprep.subr.mxu0 %v8409_v37 }
 0x7c0   :  { %11554 = vmatpush3.msra.mxu0 %v8409_v37  ;;  %v8434_v37 = vld [vmem:[%s16456_s6 + $0xf0] sm:$0xff] }
 0x7c1   :  { %11555 = vmatprep.subr.mxu0 %v8408_v54 }
 0x7c2   :  { %11556 = vmatpush3.msra.mxu0 %v8408_v54 }
 0x7c3   :  { %11557 = vmatprep.subr.mxu0 %v8407_v43 }
 0x7c4   :  { %11558 = vmatpush3.msra.mxu0 %v8407_v43 }
 0x7c5   :  { %11559 = vmatprep.subr.mxu0 %v8406_v29 }
 0x7c6   :  { %11560 = vmatpush3.msra.mxu0 %v8406_v29  ;;  %v8433_v29 = vld [vmem:[%s16456_s6 + $0xe8] sm:$0xff] }
 0x7c7   :  { %11561 = vmatprep.subr.mxu0 %v8405_v42 }
 0x7c8   :  { %11562 = vmatpush3.msra.mxu0 %v8405_v42  ;;  %v8432_v42 = vld [vmem:[%s16456_s6 + $0xe0] sm:$0xff] }
 0x7c9   :  { %11563 = vmatprep.subr.mxu0 %v8404_v25 }
 0x7ca   :  { %11564 = vmatpush3.msra.mxu0 %v8404_v25 }
 0x7cb   :  { %11566 = vmatmul.mubr.f32.vlgmr.msra.gmra.mxu0 %v15235_v20  ;;  %v6279_v20 = vld [vmem:[%s16455_s5 + $0x78] sm:$0xff]  ;;  %11627 = vmatprep.subr.mxu0 %v8435_v21 }
 0x7cc   :  { %11568 = vmatprep.mubr.f32.mxu0 %v15240_v59  ;;  %11580 = vmatprep.subr.mxu1 %v6279_v20  ;;  %v6278_v59 = vld [vmem:[%s16455_s5 + $0x70] sm:$0xff] }
 0x7cd   :  { %11581 = vmatpush3.msra.mxu1 %v6279_v20  ;;  %11628 = vmatpush3.msra.mxu0 %v8435_v21 }
 0x7ce   :  { %11582 = vmatprep.subr.mxu1 %v6278_v59  ;;  %11629 = vmatprep.subr.mxu0 %v8434_v37 }
 0x7cf   :  { %11569 = vmatmul.mubr.f32.gmra.mxu0 %v15259_v58  ;;  %11583 = vmatpush3.msra.mxu1 %v6278_v59  ;;  %v6277_v58 = vld [vmem:[%s16455_s5 + $0x68] sm:$0xff] }
 0x7d0   :  { %11571 = vmatprep.mubr.f32.mxu0 %v15264_v49  ;;  %11584 = vmatprep.subr.mxu1 %v6277_v58 }
 0x7d1   :  { %11585 = vmatpush3.msra.mxu1 %v6277_v58  ;;  %11630 = vmatpush3.msra.mxu0 %v8434_v37 }
 0x7d2   :  { %11631 = vmatprep.subr.mxu0 %v8433_v29 }
 0x7d3   :  { %11572 = vmatmul.mubr.f32.gmra.mxu0 %v15287_v11  ;;  %v6276_v11 = vld [vmem:[%s16455_s5 + $0x60] sm:$0xff] }
 0x7d4   :  { %11574 = vmatprep.mubr.f32.mxu0 %v15293_v55  ;;  %11586 = vmatprep.subr.mxu1 %v6276_v11  ;;  %v6275_v55 = vld [vmem:[%s16455_s5 + $0x58] sm:$0xff] }
 0x7d5   :  { %11587 = vmatpush3.msra.mxu1 %v6276_v11  ;;  %11632 = vmatpush3.msra.mxu0 %v8433_v29 }
 0x7d6   :  { %11588 = vmatprep.subr.mxu1 %v6275_v55  ;;  %11633 = vmatprep.subr.mxu0 %v8432_v42 }
 0x7d7   :  { %11575 = vmatmul.mubr.f32.gmra.mxu0 %v15401_v46  ;;  %11589 = vmatpush3.msra.mxu1 %v6275_v55  ;;  %v6274_v46 = vld [vmem:[%s16455_s5 + $0x50] sm:$0xff] }
 0x7d8   :  { %11577 = vmatprep.mubr.f32.mxu0 %v6126_v57  ;;  %11590 = vmatprep.subr.mxu1 %v6274_v46  ;;  %v8431_v57 = vld [vmem:[%s16456_s6 + $0xd8] sm:$0xff] }
 0x7d9   :  { %11591 = vmatpush3.msra.mxu1 %v6274_v46  ;;  %11634 = vmatpush3.msra.mxu0 %v8432_v42 }
 0x7da   :  { %11592 = vmatprep.subr.mxu1 %v6273_v56  ;;  %11635 = vmatprep.subr.mxu0 %v8431_v57 }
 0x7db   :  { %11578 = vmatmul.mubr.f32.gmra.mxu0 %v6125_v24  ;;  %11593 = vmatpush3.msra.mxu1 %v6273_v56 }
 0x7dc   :  { %11594 = vmatprep.subr.mxu1 %v6272_v60  ;;  %11636 = vmatpush3.msra.mxu0 %v8431_v57 }
 0x7dd   :  { %11595 = vmatpush3.msra.mxu1 %v6272_v60 }
 0x7de   :  { %11596 = vmatprep.subr.mxu1 %v6271_v53 }
 0x7df   :  { %11597 = vmatpush3.msra.mxu1 %v6271_v53 }
 0x7e0   :  { %11598 = vmatprep.subr.mxu1 %v6270_v52 }
 0x7e1   :  { %11599 = vmatpush3.msra.mxu1 %v6270_v52 }
 0x7e2   :  { %11600 = vmatprep.subr.mxu1 %v6269_v8 }
 0x7e3   :  { %11601 = vmatpush3.msra.mxu1 %v6269_v8 }
 0x7e4   :  { %11602 = vmatprep.subr.mxu1 %v6268_v33 }
 0x7e5   :  { %11603 = vmatpush3.msra.mxu1 %v6268_v33 }
 0x7e6   :  { %11604 = vmatprep.subr.mxu1 %v6267_v16 }
 0x7e7   :  { %11605 = vmatpush3.msra.mxu1 %v6267_v16 }
 0x7e8   :  { %v15600_v28 = vpop.f32.mrf.mxu1  ;;  %11606 = vmatprep.subr.mxu1 %v6266_v4 }
 0x7e9   :  { %11607 = vmatpush3.msra.mxu1 %v6266_v4 }
 0x7ea   :  { %v15607_v51 = vpop.f32.mrf.mxu1  ;;  %11608 = vmatprep.subr.mxu1 %v6265_v6 }
 0x7eb   :  { %11609 = vmatpush3.msra.mxu1 %v6265_v6 }
 0x7ec   :  { %v15568_v49 = vpop.f32.mrf.mxu0  ;;  %11610 = vmatprep.subr.mxu1 %v6264_v22 }
 0x7ed   :  { %11611 = vmatpush3.msra.mxu1 %v6264_v22 }
 0x7ee   :  { %v15576_v1 = vpop.f32.mrf.mxu0  ;;  %v15617_v10 = vpop.f32.mrf.mxu1  ;;  %11674 = vmatprep.subr.mxu1 %v15650_v61 }
 0x7f0   :  { %v15627_v3 = vpop.f32.mrf.mxu1 }
 0x7f3   :  { %v15584_v17 = vpop.f32.mrf.mxu0 }
 0x7f4   :  { %v15631_v48 = vpop.f32.mrf.mxu1 }
 0x7f5   :  { %v15595_v13 = vpop.f32.mrf.mxu0 }
 0x7f6   :  { %v15635_v40 = vpop.f32.mrf.mxu1 }
 0x7f9   :  { %v15605_v30 = vpop.f32.mrf.mxu0 }
 0x7fa   :  { %v15639_v12 = vpop.f32.mrf.mxu1 }
 0x7fb   :  { %v15612_v14 = vpop.f32.mrf.mxu0 }
 0x7fc   :  { %v15643_v39 = vpop.f32.mrf.mxu1 }
 0x7ff   :  { %v15622_v5 = vpop.f32.mrf.mxu0 }
 0x800   :  { %v15659_v54 = vpop.f32.mrf.mxu1 }
 0x801   :  { %v15629_v62 = vpop.f32.mrf.mxu0 }
 0x802   :  { %v15669_v25 = vpop.f32.mrf.mxu1 }
 0x805   :  { %v15633_v44 = vpop.f32.mrf.mxu0 }
 0x807   :  { %v15637_v2 = vpop.f32.mrf.mxu0 }
 0x811   :  { %v11332_v20 = vpop.f32.mrf.mxu1 }
 0x813   :  { %v5472_v58 = vpop.f32.mrf.mxu1 }
 0x815   :  { %v15641_v38 = vpop.f32.mrf.mxu0 }
 0x816   :  { %v11335_v55 = vpop.f32.mrf.mxu1 }
 0x817   :  { %v15645_v15 = vpop.f32.mrf.mxu0 }
 0x818   :  { %v5482_v56 = vpop.f32.mrf.mxu1 }
 0x81b   :  { %v15661_v43 = vpop.f32.mrf.mxu0 }
 0x81c   :  { %v15678_v53 = vpop.f32.mrf.mxu1 }
 0x81d   :  { %v5341_v24 = vpop.f32.mrf.mxu0 }
 0x81e   :  { %v15682_v8 = vpop.f32.mrf.mxu1 }
 0x821   :  { %v11291_v59 = vpop.f32.mrf.mxu0 }
 0x822   :  { %v15686_v16 = vpop.f32.mrf.mxu1 }
 0x823   :  { %v5351_v11 = vpop.f32.mrf.mxu0 }
 0x824   :  { %v15688_v6 = vpop.f32.mrf.mxu1 }
 0x827   :  { %v15674_v46 = vpop.f32.mrf.mxu0 }
 0x828   :  { %v15690_v21 = vpop.f32.mrf.mxu1 }
 0x829   :  { %v15676_v60 = vpop.f32.mrf.mxu0  ;;  %16604 = vst [vmem:[#allocation20_spill] sm:$0xff] %v15690_v21 }
 0x82a   :  { %v15692_v29 = vpop.f32.mrf.mxu1 }
 0x82b   :  { %16605 = vst [vmem:[#allocation22_spill] sm:$0xff] %v15692_v29 }
 0x82d   :  { %v15680_v52 = vpop.f32.mrf.mxu0 }
 0x82f   :  { %v15684_v33 = vpop.f32.mrf.mxu0 }
 0x83b   :  { %v11426_v57 = vpop.f32.mrf.mxu1 }
 0x83d   :  { %v5763_v27 = vpop.f32.mrf.mxu1 }
 0x83f   :  { %v11379_v4 = vpop.f32.mrf.mxu0 }
 0x840   :  { %v11429_v19 = vpop.f32.mrf.mxu1 }
 0x841   :  { %v5618_v22 = vpop.f32.mrf.mxu0 }
 0x842   :  { %v5773_v35 = vpop.f32.mrf.mxu1 }
 0x845   :  { %v11382_v37 = vpop.f32.mrf.mxu0 }
 0x846   :  { %v15698_v63 = vpop.f32.mrf.mxu1 }
 0x847   :  { %v5628_v42 = vpop.f32.mrf.mxu0  ;;  %16608 = vst [vmem:[#allocation16_spill] sm:$0xff] %v15698_v63 }
 0x848   :  { %v15702_v26 = vpop.f32.mrf.mxu1 }
 0x849   :  { %16610 = vst [vmem:[#allocation24_spill] sm:$0xff] %v15702_v26 }
 0x84b   :  { %v11385_v32 = vpop.f32.mrf.mxu0 }
 0x84c   :  { %v15706_v0 = vpop.f32.mrf.mxu1 }
 0x84d   :  { %v5638_v50 = vpop.f32.mrf.mxu0  ;;  %16612 = vst [vmem:[#allocation33_spill] sm:$0xff] %v15706_v0 }
 0x84e   :  { %v15708_v45 = vpop.f32.mrf.mxu1 }
 0x84f   :  { %16613 = vst [vmem:[#allocation34_spill] sm:$0xff] %v15708_v45 }
 0x851   :  { %v15694_v31 = vpop.f32.mrf.mxu0 }
 0x852   :  { %16606 = vst [vmem:[#allocation25_spill] sm:$0xff] %v15694_v31  ;;  %v15710_v41 = vpop.f32.mrf.mxu1 }
 0x853   :  { %v15696_v18 = vpop.f32.mrf.mxu0  ;;  %16614 = vst [vmem:[#allocation35_spill] sm:$0xff] %v15710_v41  ;;  %v5187_v41 = vadd.f32 %v15617_v10, %v15584_v17 }
 0x854   :  { %16607 = vst [vmem:[#allocation28_spill] sm:$0xff] %v15696_v18  ;;  %v15712_v61 = vpop.f32.mrf.mxu1 }
 0x855   :  { %16615 = vst [vmem:[#allocation36_spill] sm:$0xff] %v15712_v61 }
 0x857   :  { %v15700_v34 = vpop.f32.mrf.mxu0 }
 0x858   :  { %16609 = vst [vmem:[#allocation29_spill] sm:$0xff] %v15700_v34  ;;  %v5177_v34 = vadd.f32 %v15600_v28, %v15568_v49  ;;  %v5383_v49 = vadd.f32 %v15661_v43, %v5187_v41  ;;  %v5207_v41 = vadd.f32 %v15639_v12, %v15622_v5  ;;  %v5217_v12 = vadd.f32 %v15659_v54, %v15633_v44 }
 0x859   :  { %v15704_v47 = vpop.f32.mrf.mxu0  ;;  %v16618_v54 = vld [vmem:[#allocation25_spill] sm:$0xff] }
 0x85a   :  { %16611 = vst [vmem:[#allocation32_spill] sm:$0xff] %v15704_v47  ;;  %v5172_v47 = vadd.f32 %v15607_v51, %v15576_v1  ;;  %v5381_v0 = vadd.f32 %v15641_v38, %v5177_v34  ;;  %v5197_v34 = vadd.f32 %v15631_v48, %v15605_v30  ;;  %v5524_v38 = vadd.f32 %v11335_v55, %v5383_v49 }
 0x85b   :  { %v5202_v30 = vadd.f32 %v15643_v39, %v15629_v62 }
 0x85c   :  { %v5380_v18 = vadd.f32 %v15645_v15, %v5172_v47  ;;  %v5522_v28 = vadd.f32 %v11332_v20, %v5381_v0  ;;  %v5192_v47 = vadd.f32 %v15635_v40, %v15612_v14  ;;  %v5385_v10 = vadd.f32 %v11291_v59, %v5197_v34 }
 0x85d   :  { %v5670_v0 = vadd.f32 %v11382_v37, %v5524_v38  ;;  %v5387_v14 = vadd.f32 %v15674_v46, %v5207_v41  ;;  %v16621_v37 = vld [vmem:[#allocation24_spill] sm:$0xff]  ;;  %v16627_v38 = vld [vmem:[#allocation33_spill] sm:$0xff] }
 0x85e   :  { %v5521_v31 = vadd.f32 %v5472_v58, %v5380_v18  ;;  %v5668_v1 = vadd.f32 %v11379_v4, %v5522_v28 }
 0x85f   :  { %v5528_v46 = vadd.f32 %v15686_v16, %v5387_v14 }
 0x860   :  { %v5667_v17 = vadd.f32 %v5618_v22, %v5521_v31  ;;  %v5813_v18 = vadd.f32 %v11426_v57, %v5668_v1  ;;  %v5526_v31 = vadd.f32 %v15678_v53, %v5385_v10  ;;  %v16619_v22 = vld [vmem:[#allocation16_spill] sm:$0xff] }
 0x861   :  { %v5674_v4 = vadd.f32 %v16618_v54, %v5528_v46  ;;  %v6499_v54 = vld [vmem:[%s16456_s6 + $0x58] sm:$0xff] }
 0x862   :  { %v5672_v58 = vadd.f32 %v11385_v32, %v5526_v31 }
 0x865   :  { %v11520_v21 = vpop.f32.mrf.mxu1 }
 0x867   :  { %v6050_v45 = vpop.f32.mrf.mxu1 }
 0x868   :  { %v11473_v36 = vpop.f32.mrf.mxu0 }
 0x869   :  { %v5954_v40 = vadd.f32 %v11473_v36, %v5813_v18  ;;  %v5389_v36 = vadd.f32 %v15680_v52, %v5217_v12  ;;  %v16628_v18 = vld [vmem:[#allocation32_spill] sm:$0xff] }
 0x86a   :  { %v5904_v23 = vpop.f32.mrf.mxu0 }
 0x86b   :  { %v6100_v53 = vadd.f32 %v11520_v21, %v5954_v40 }
 0x86d   :  { %v11476_v9 = vpop.f32.mrf.mxu0 }
 0x86f   :  { %v5914_v7 = vpop.f32.mrf.mxu0 }
 0x872   :  { %v15714_v29 = vpop.f32.mrf.mxu0 }
 0x873   :  { %16616 = vst [vmem:[#allocation37_spill] sm:$0xff] %v15714_v29  ;;  %v5182_v29 = vadd.f32 %v15627_v3, %v15595_v13  ;;  %v5384_v13 = vadd.f32 %v5351_v11, %v5192_v47  ;;  %v5815_v11 = vadd.f32 %v11429_v19, %v5670_v0 }
 0x874   :  { %v15718_v26 = vpop.f32.mrf.mxu0 }
 0x875   :  { %16617 = vst [vmem:[#allocation38_spill] sm:$0xff] %v15718_v26  ;;  %v11523_v26 = vpop.f32.mrf.mxu1  ;;  %v5382_v63 = vadd.f32 %v5341_v24, %v5182_v29  ;;  %v5812_v24 = vadd.f32 %v5763_v27, %v5667_v17  ;;  %v5525_v59 = vadd.f32 %v15682_v8, %v5384_v13  ;;  %v5212_v27 = vadd.f32 %v15669_v25, %v15637_v2  ;;  %v16620_v25 = vld [vmem:[#allocation28_spill] sm:$0xff]  ;;  %v16626_v17 = vld [vmem:[#allocation29_spill] sm:$0xff] }
 0x876   :  { %v5817_v2 = vadd.f32 %v16619_v22, %v5672_v58  ;;  %v16622_v29 = vld [vmem:[#allocation20_spill] sm:$0xff]  ;;  %v5819_v13 = vadd.f32 %v16627_v38, %v5674_v4  ;;  %v16630_v58 = vld [vmem:[#allocation31_spill] sm:$0xff] }
 0x877   :  { %v15726_v61 = vpop.f32.mrf.mxu0  ;;  %v6060_v15 = vpop.f32.mrf.mxu1  ;;  %v5523_v3 = vadd.f32 %v5482_v56, %v5382_v63  ;;  %v5386_v63 = vadd.f32 %v15676_v60, %v5202_v30  ;;  %v5953_v5 = vadd.f32 %v5904_v23, %v5812_v24  ;;  %v5671_v62 = vadd.f32 %v5638_v50, %v5525_v59  ;;  %v8425_v38 = vld [vmem:[%s16456_s6 + $0xa8] sm:$0xff] }
 0x878   :  { %v5956_v56 = vadd.f32 %v11476_v9, %v5815_v11  ;;  %v5388_v8 = vadd.f32 %v15684_v33, %v5212_v27  ;;  %v5530_v21 = vadd.f32 %v16622_v29, %v5389_v36  ;;  %v6501_v11 = vld [vmem:[%s16456_s6 + $0x68] sm:$0xff] }
 0x879   :  { %v15733_v51 = vpop.f32.mrf.mxu0  ;;  %v5669_v48 = vadd.f32 %v5628_v42, %v5523_v3  ;;  %v11526_v20 = vpop.f32.mrf.mxu1  ;;  %v5527_v32 = vadd.f32 %v15688_v6, %v5386_v63  ;;  %v6099_v44 = vadd.f32 %v6050_v45, %v5953_v5  ;;  %v5816_v16 = vadd.f32 %v16621_v37, %v5671_v62  ;;  %v16631_v27 = vld [vmem:[#allocation35_spill] sm:$0xff] }
 0x87a   :  { %v16623_v42 = vld [vmem:[#allocation37_spill] sm:$0xff]  ;;  %v6102_v49 = vadd.f32 %v11523_v26, %v5956_v56  ;;  %v5676_v10 = vadd.f32 %v16626_v17, %v5530_v21  ;;  %v6502_v26 = vld [vmem:[%s16456_s6 + $0x70] sm:$0xff] }
 0x87b   :  { %v15739_v43 = vpop.f32.mrf.mxu0  ;;  %v5814_v39 = vadd.f32 %v5773_v35, %v5669_v48  ;;  %v6070_v60 = vpop.f32.mrf.mxu1  ;;  %v5673_v52 = vadd.f32 %v16620_v25, %v5527_v32  ;;  %v5958_v57 = vadd.f32 %v16623_v42, %v5817_v2  ;;  %v16629_v48 = vld [vmem:[#allocation34_spill] sm:$0xff]  ;;  %v8426_v17 = vld [vmem:[%s16456_s6 + $0xb0] sm:$0xff] }
 0x87c   :  { %v16625_v28 = vld [vmem:[#allocation38_spill] sm:$0xff]  ;;  %v5821_v62 = vadd.f32 %v16631_v27, %v5676_v10 }
 0x87d   :  { %v15749_v55 = vpop.f32.mrf.mxu0  ;;  %v5955_v19 = vadd.f32 %v5914_v7, %v5814_v39  ;;  %v11529_v33 = vpop.f32.mrf.mxu1  ;;  %v16624_v7 = vld [vmem:[#allocation22_spill] sm:$0xff]  ;;  %v5957_v34 = vadd.f32 %v16625_v28, %v5816_v16  ;;  %v5818_v24 = vadd.f32 %v16629_v48, %v5673_v52  ;;  %v6104_v40 = vadd.f32 %v11526_v20, %v5958_v57  ;;  %v6497_v16 = vld [vmem:[%s16456_s6 + $0x48] sm:$0xff] }
 0x87e   :  { %v5529_v45 = vadd.f32 %v16624_v7, %v5388_v8  ;;  %v8429_v7 = vld [vmem:[%s16456_s6 + $0xc8] sm:$0xff]  ;;  %v8428_v28 = vld [vmem:[%s16456_s6 + $0xc0] sm:$0xff] }
 0x87f   :  { %v6101_v47 = vadd.f32 %v6060_v15, %v5955_v19  ;;  %v6080_v31 = vpop.f32.mrf.mxu1  ;;  %v5960_v15 = vadd.f32 %v15726_v61, %v5819_v13  ;;  %v5959_v59 = vadd.f32 %v15733_v51, %v5818_v24  ;;  %v6103_v12 = vadd.f32 %v6070_v60, %v5957_v34  ;;  %v16632_v61 = vld [vmem:[#allocation36_spill] sm:$0xff]  ;;  %v6500_v51 = vld [vmem:[%s16456_s6 + $0x60] sm:$0xff]  ;;  %v6491_v13 = vld [vmem:[%s16456_s6 + $0x18] sm:$0xff] }
 0x880   :  { %v5675_v30 = vadd.f32 %v16628_v18, %v5529_v45  ;;  %v5962_v60 = vadd.f32 %v15739_v43, %v5821_v62  ;;  %v6498_v43 = vld [vmem:[%s16456_s6 + $0x50] sm:$0xff]  ;;  %v6495_v45 = vld [vmem:[%s16456_s6 + $0x38] sm:$0xff]  ;;  %v6492_v10 = vld [vmem:[%s16456_s6 + $0x20] sm:$0xff] }
 0x881   :  { %v11532_v39 = vpop.f32.mrf.mxu1  ;;  %v6494_v34 = vld [vmem:[%s16456_s6 + $0x30] sm:$0xff]  ;;  %v6489_v18 = vld [vmem:[%s16456_s6 + $0x8] sm:$0xff]  ;;  %v6488_v48 = vld [vmem:[%s16456_s6] sm:$0xff] }
 0x882   :  { %v5820_v20 = vadd.f32 %v16632_v61, %v5675_v30  ;;  %v8422_v30 = vld [vmem:[%s16456_s6 + $0x90] sm:$0xff]  ;;  %v12076_v24 = vld [vmem:[#allocation2] sm:$0xff] }
 0x883   :  { %v6090_v4 = vpop.f32.mrf.mxu1 }
 0x884   :  { %v5961_v32 = vadd.f32 %v15749_v55, %v5820_v20  ;;  %v6108_v55 = vadd.f32 %v11532_v39, %v5962_v60  ;;  %v12077_v20 = vld [vmem:[#allocation2 + $0x8] sm:$0xff] }
 0x886   :  { %v6107_v52 = vadd.f32 %v6090_v4, %v5961_v32 }
 0x88b   :  { %v11567_v23 = vpop.f32.mrf.mxu0 }
 0x88c   :  { %v6245_v50 = vadd.f32 %v11567_v23, %v6100_v53  ;;  %v6106_v23 = vadd.f32 %v11529_v33, %v5960_v15  ;;  %v8420_v15 = vld [vmem:[%s16456_s6 + $0x80] sm:$0xff] }
 0x88d   :  { %v6195_v35 = vpop.f32.mrf.mxu0 }
 0x88e   :  { %v6244_v9 = vadd.f32 %v6195_v35, %v6099_v44  ;;  %v6255_v3 = vmax.f32 %v6245_v50, 0.0  ;;  %v6105_v44 = vadd.f32 %v6080_v31, %v5959_v59  ;;  %v15856_v31 = vld [vmem:[%s16456_s6 + $0x1f8] sm:$0xff]  ;;  %v16633_v59 = vld [vmem:[#allocation12_spill] sm:$0xff] }
 0x88f   :  { %v11570_v6 = vpop.f32.mrf.mxu0 }
 0x890   :  { %v6254_v1 = vmax.f32 %v6244_v9, 0.0  ;;  %v6247_v41 = vadd.f32 %v11570_v6, %v6102_v49  ;;  %v8430_v49 = vld [vmem:[%s16456_s6 + $0xd0] sm:$0xff]  ;;  %v6496_v6 = vld [vmem:[%s16456_s6 + $0x40] sm:$0xff] }
 0x891   :  { %v6205_v0 = vpop.f32.mrf.mxu0  ;;  %11637 = vmatprep.subr.mxu0 %v8430_v49 }
 0x892   :  { %v6246_v14 = vadd.f32 %v6205_v0, %v6101_v47  ;;  %11612 = vmatprep.mubr.f32.mxu1 %v6254_v1  ;;  %v6257_v36 = vmax.f32 %v6247_v41, 0.0  ;;  %11638 = vmatpush3.msra.mxu0 %v8430_v49  ;;  %v8427_v1 = vld [vmem:[%s16456_s6 + $0xb8] sm:$0xff]  ;;  %v6493_v47 = vld [vmem:[%s16456_s6 + $0x28] sm:$0xff]  ;;  %v6490_v41 = vld [vmem:[%s16456_s6 + $0x10] sm:$0xff] }
 0x893   :  { %v11573_v63 = vpop.f32.mrf.mxu0  ;;  %11613 = vmatmul.mubr.f32.vlgmr.msra.gmra.mxu1 %v6255_v3  ;;  %11639 = vmatprep.subr.mxu0 %v8429_v7  ;;  %v8424_v3 = vld [vmem:[%s16456_s6 + $0xa0] sm:$0xff]  ;;  %v8423_v0 = vld [vmem:[%s16456_s6 + $0x98] sm:$0xff] }
 0x894   :  { %v6256_v5 = vmax.f32 %v6246_v14, 0.0  ;;  %11675 = vmatpush3.msra.mxu1 %v16630_v58  ;;  %v6249_v46 = vadd.f32 %v11573_v63, %v6104_v40  ;;  %11640 = vmatpush3.msra.mxu0 %v8429_v7  ;;  %v15848_v14 = vmax.f32 %v12076_v24, 0.0  ;;  %v15866_v40 = vld [vmem:[%s16456_s6 + $0x178] sm:$0xff]  ;;  %v16634_v58 = vld [vmem:[#allocation8_spill] sm:$0xff] }
 0x895   :  { %v6215_v56 = vpop.f32.mrf.mxu0  ;;  %11676 = vmatprep.subr.mxu1 %v6502_v26  ;;  %11641 = vmatprep.subr.mxu0 %v8428_v28 }
 0x896   :  { %v6248_v53 = vadd.f32 %v6215_v56, %v6103_v12  ;;  %11615 = vmatprep.mubr.f32.mxu1 %v6256_v5  ;;  %11677 = vmatpush3.msra.mxu1 %v6502_v26  ;;  %v6259_v22 = vmax.f32 %v6249_v46, 0.0  ;;  %v8421_v26 = vld [vmem:[%s16456_s6 + $0x88] sm:$0xff] }
 0x897   :  { %v11576_v8 = vpop.f32.mrf.mxu0  ;;  %11616 = vmatmul.mubr.f32.gmra.mxu1 %v6257_v36  ;;  %11678 = vmatprep.subr.mxu1 %v6501_v11  ;;  %v16635_v36 = vld [vmem:[#allocation6_spill] sm:$0xff] }
 0x898   :  { %v6258_v19 = vmax.f32 %v6248_v53, 0.0  ;;  %11679 = vmatpush3.msra.mxu1 %v6501_v11  ;;  %v6251_v2 = vadd.f32 %v11576_v8, %v6106_v23  ;;  %11642 = vmatpush3.msra.mxu0 %v8428_v28  ;;  %v16637_v23 = vld [vmem:[#allocation26_spill] sm:$0xff]  ;;  %v16644_v28 = vld [vmem:[#allocation19_spill] sm:$0xff] }
 0x899   :  { %v6225_v50 = vpop.f32.mrf.mxu0  ;;  %11680 = vmatprep.subr.mxu1 %v6500_v51  ;;  %11643 = vmatprep.subr.mxu0 %v8427_v1 }
 0x89a   :  { %v6250_v35 = vadd.f32 %v6225_v50, %v6105_v44  ;;  %11618 = vmatprep.mubr.f32.mxu1 %v6258_v19  ;;  %11681 = vmatpush3.msra.mxu1 %v6500_v51  ;;  %v6261_v9 = vmax.f32 %v6251_v2, 0.0  ;;  %v16636_v51 = vld [vmem:[#allocation7_spill] sm:$0xff] }
 0x89b   :  { %v11579_v25 = vpop.f32.mrf.mxu0  ;;  %11619 = vmatmul.mubr.f32.gmra.mxu1 %v6259_v22  ;;  %11682 = vmatprep.subr.mxu1 %v6499_v54 }
 0x89c   :  { %v6260_v37 = vmax.f32 %v6250_v35, 0.0  ;;  %11683 = vmatpush3.msra.mxu1 %v6499_v54  ;;  %v6253_v29 = vadd.f32 %v11579_v25, %v6108_v55  ;;  %11644 = vmatpush3.msra.mxu0 %v8427_v1  ;;  %v16638_v54 = vld [vmem:[#allocation10_spill] sm:$0xff]  ;;  %v16639_v35 = vld [vmem:[#allocation9_spill] sm:$0xff]  ;;  %v16640_v55 = vld [vmem:[#allocation27_spill] sm:$0xff] }
 0x89d   :  { %v6235_v21 = vpop.f32.mrf.mxu0  ;;  %11684 = vmatprep.subr.mxu1 %v6498_v43  ;;  %11645 = vmatprep.subr.mxu0 %v8426_v17  ;;  %v16645_v1 = vld [vmem:[#allocation23_spill] sm:$0xff] }
 0x89e   :  { %v6252_v42 = vadd.f32 %v6235_v21, %v6107_v52  ;;  %11621 = vmatprep.mubr.f32.mxu1 %v6260_v37  ;;  %11685 = vmatpush3.msra.mxu1 %v6498_v43  ;;  %v6263_v33 = vmax.f32 %v6253_v29, 0.0  ;;  %v16641_v52 = vld [vmem:[#allocation21_spill] sm:$0xff] }
 0x89f   :  { %11622 = vmatmul.mubr.f32.gmra.mxu1 %v6261_v9  ;;  %11686 = vmatprep.subr.mxu1 %v6497_v16  ;;  %v16642_v21 = vld [vmem:[#allocation13_spill] sm:$0xff] }
 0x8a0   :  { %v6262_v57 = vmax.f32 %v6252_v42, 0.0  ;;  %11687 = vmatpush3.msra.mxu1 %v6497_v16  ;;  %11646 = vmatpush3.msra.mxu0 %v8426_v17 }
 0x8a1   :  { %11688 = vmatprep.subr.mxu1 %v6496_v6  ;;  %11647 = vmatprep.subr.mxu0 %v8425_v38 }
 0x8a2   :  { %11624 = vmatprep.mubr.f32.mxu1 %v6262_v57  ;;  %11689 = vmatpush3.msra.mxu1 %v6496_v6  ;;  %v16643_v6 = vld [vmem:[#allocation14_spill] sm:$0xff] }
 0x8a3   :  { %11625 = vmatmul.mubr.f32.gmra.mxu1 %v6263_v33  ;;  %11690 = vmatprep.subr.mxu1 %v6495_v45 }
 0x8a4   :  { %11691 = vmatpush3.msra.mxu1 %v6495_v45  ;;  %11648 = vmatpush3.msra.mxu0 %v8425_v38 }
 0x8a5   :  { %11692 = vmatprep.subr.mxu1 %v6494_v34  ;;  %11649 = vmatprep.subr.mxu0 %v8424_v3 }
 0x8a6   :  { %11693 = vmatpush3.msra.mxu1 %v6494_v34  ;;  %11650 = vmatpush3.msra.mxu0 %v8424_v3  ;;  %v16646_v3 = vld [vmem:[#allocation11_spill] sm:$0xff] }
 0x8a7   :  { %11694 = vmatprep.subr.mxu1 %v6493_v47  ;;  %11651 = vmatprep.subr.mxu0 %v8423_v0 }
 0x8a8   :  { %11695 = vmatpush3.msra.mxu1 %v6493_v47  ;;  %11652 = vmatpush3.msra.mxu0 %v8423_v0 }
 0x8a9   :  { %11696 = vmatprep.subr.mxu1 %v6492_v10  ;;  %11653 = vmatprep.subr.mxu0 %v8422_v30 }
 0x8aa   :  { %11697 = vmatpush3.msra.mxu1 %v6492_v10  ;;  %11654 = vmatpush3.msra.mxu0 %v8422_v30  ;;  %v8466_v30 = vld [vmem:[%s16456_s6 + $0x1f0] sm:$0xff] }
 0x8ab   :  { %11698 = vmatprep.subr.mxu1 %v6491_v13  ;;  %11655 = vmatprep.subr.mxu0 %v8421_v26 }
 0x8ac   :  { %11699 = vmatpush3.msra.mxu1 %v6491_v13  ;;  %11706 = vmatprep.mubr.f32.mxu1 %v15848_v14 }
 0x8ad   :  { %11700 = vmatprep.subr.mxu1 %v6490_v41  ;;  %11656 = vmatpush3.msra.mxu0 %v8421_v26 }
 0x8ae   :  { %11701 = vmatpush3.msra.mxu1 %v6490_v41  ;;  %11657 = vmatprep.subr.mxu0 %v8420_v15 }
 0x8af   :  { %11702 = vmatprep.subr.mxu1 %v6489_v18  ;;  %11658 = vmatpush3.msra.mxu0 %v8420_v15  ;;  %v16647_v15 = vld [vmem:[#allocation15_spill] sm:$0xff] }
 0x8b0   :  { %11703 = vmatpush3.msra.mxu1 %v6489_v18  ;;  %11721 = vmatprep.subr.mxu0 %v15866_v40 }
 0x8b1   :  { %11704 = vmatprep.subr.mxu1 %v6488_v48 }
 0x8b2   :  { %11705 = vmatpush3.msra.mxu1 %v6488_v48  ;;  %v6531_v48 = vrot.slane %v15848_v14, 1 }
 0x8b3   :  { %11768 = vmatprep.subr.mxu1 %v15856_v31 }
 0x953   :  { %v11614_v63 = vpop.f32.mrf.mxu1 }
 0x954   :  { %v6396_v5 = vmul.f32 %v11614_v63, %v16633_v59 }
 0x955   :  { %v6346_v12 = vpop.f32.mrf.mxu1 }
 0x956   :  { %v6395_v11 = vmul.f32 %v6346_v12, %v16634_v58  ;;  %v6416_v62 = vrot.slane %v6396_v5, 7  ;;  %v16648_v5 = vld [vmem:[#allocation17_spill] sm:$0xff]  ;;  %v16649_v58 = vld [vmem:[#allocation30_spill] sm:$0xff] }
 0x957   :  { %v11617_v27 = vpop.f32.mrf.mxu1 }
 0x958   :  { %v6415_v39 = vrot.slane %v6395_v11, 7  ;;  %v6398_v46 = vmul.f32 %v11617_v27, %v16635_v36 }
 0x959   :  { %v6356_v56 = vpop.f32.mrf.mxu1 }
 0x95a   :  { %v6417_v61 = vsel %vm4845_vm3, %v6415_v39, %v6416_v62  ;;  %v6444_v53 = vadd.f32 %v12077_v20, %v6415_v39  ;;  %v6397_v60 = vmul.f32 %v6356_v56, %v16636_v51  ;;  %v6420_v19 = vrot.slane %v6398_v46, 7  ;;  %v8450_v51 = vld [vmem:[%s16456_s6 + $0x170] sm:$0xff] }
 0x95b   :  { %v6445_v8 = vadd.f32 %v6417_v61, %v16637_v23  ;;  %v11620_v32 = vpop.f32.mrf.mxu1  ;;  %v16650_v23 = vld [vmem:[#allocation18_spill] sm:$0xff] }
 0x95c   :  { %6454 = vst [vmem:[#allocation2 + $0x8] sm:$0xfe] %v6444_v53  ;;  %v6418_v44 = vrot.slane %v6397_v60, 7  ;;  %v6400_v4 = vmul.f32 %v11620_v32, %v16638_v54  ;;  %v8464_v60 = vld [vmem:[%s16456_s6 + $0x1e0] sm:$0xff]  ;;  %v12078_v32 = vld [vmem:[#allocation2 + $0x50] sm:$0xff]  ;;  %v8449_v54 = vld [vmem:[%s16456_s6 + $0x168] sm:$0xff] }
 0x95d   :  { %6455 = vst [vmem:[#allocation2 + $0x10] sm:$0xff] %v6445_v8  ;;  %v6366_v22 = vpop.f32.mrf.mxu1  ;;  %v15885_v45 = vmax.f32 %v6445_v8, 0.0 }
 0x95e   :  { %v6419_v2 = vsel %vm4845_vm3, %v6416_v62, %v6418_v44  ;;  %v6421_v50 = vsel %vm4845_vm3, %v6418_v44, %v6420_v19  ;;  %v6399_v43 = vmul.f32 %v6366_v22, %v16639_v35  ;;  %v6424_v9 = vrot.slane %v6400_v4, 7  ;;  %v8465_v62 = vld [vmem:[%s16456_s6 + $0x1e8] sm:$0xff]  ;;  %v8463_v4 = vld [vmem:[%s16456_s6 + $0x1d8] sm:$0xff]  ;;  %v8448_v35 = vld [vmem:[%s16456_s6 + $0x160] sm:$0xff] }
 0x95f   :  { %v6446_v25 = vadd.f32 %v6419_v2, %v16640_v55  ;;  %v6447_v37 = vadd.f32 %v6421_v50, %v16641_v52  ;;  %v11623_v16 = vpop.f32.mrf.mxu1  ;;  %v6534_v59 = vrot.slane %v15885_v45, 1  ;;  %v8447_v52 = vld [vmem:[%s16456_s6 + $0x158] sm:$0xff] }
 0x960   :  { %v6422_v29 = vrot.slane %v6399_v43, 7  ;;  %v6402_v42 = vmul.f32 %v11623_v16, %v16642_v21  ;;  %v8462_v43 = vld [vmem:[%s16456_s6 + $0x1d0] sm:$0xff] }
 0x961   :  { %6456 = vst [vmem:[#allocation2 + $0x18] sm:$0xff] %v6446_v25  ;;  %6457 = vst [vmem:[#allocation2 + $0x20] sm:$0xff] %v6447_v37  ;;  %v6376_v57 = vpop.f32.mrf.mxu1  ;;  %v15911_v39 = vmax.f32 %v6446_v25, 0.0  ;;  %v15918_v61 = vmax.f32 %v6447_v37, 0.0  ;;  %v8461_v37 = vld [vmem:[%s16456_s6 + $0x1c8] sm:$0xff] }
 0x962   :  { %v6423_v33 = vsel %vm4845_vm3, %v6420_v19, %v6422_v29  ;;  %v6425_v49 = vsel %vm4845_vm3, %v6422_v29, %v6424_v9  ;;  %v6401_v7 = vmul.f32 %v6376_v57, %v16643_v6  ;;  %v6428_v38 = vrot.slane %v6402_v42, 7  ;;  %v8446_v42 = vld [vmem:[%s16456_s6 + $0x150] sm:$0xff]  ;;  %v8460_v57 = vld [vmem:[%s16456_s6 + $0x1c0] sm:$0xff]  ;;  %v8445_v6 = vld [vmem:[%s16456_s6 + $0x148] sm:$0xff] }
 0x963   :  { %v6448_v34 = vadd.f32 %v6423_v33, %v16644_v28  ;;  %v6449_v47 = vadd.f32 %v6425_v49, %v16645_v1  ;;  %v11626_v17 = vpop.f32.mrf.mxu1  ;;  %v6465_v10 = vld [vmem:[#allocation2 + $0x8] sm:$0xff]  ;;  %v6536_v44 = vrot.slane %v15911_v39, 1  ;;  %v6538_v22 = vrot.slane %v15918_v61, 1 }
 0x964   :  { %v6426_v13 = vrot.slane %v6401_v7, 7  ;;  %v6404_v41 = vmul.f32 %v11626_v17, %v16646_v3  ;;  %v15890_v0 = vmax.f32 %v6465_v10, 0.0  ;;  %v8459_v7 = vld [vmem:[%s16456_s6 + $0x1b8] sm:$0xff]  ;;  %v8458_v17 = vld [vmem:[%s16456_s6 + $0x1b0] sm:$0xff]  ;;  %v8457_v3 = vld [vmem:[%s16456_s6 + $0x1a8] sm:$0xff] }
 0x965   :  { %6458 = vst [vmem:[#allocation2 + $0x28] sm:$0xff] %v6448_v34  ;;  %6459 = vst [vmem:[#allocation2 + $0x30] sm:$0xff] %v6449_v47  ;;  %v6386_v18 = vpop.f32.mrf.mxu1  ;;  %v15940_v2 = vmax.f32 %v6448_v34, 0.0  ;;  %v15946_v50 = vmax.f32 %v6449_v47, 0.0  ;;  %v15956_v55 = vsel %vm278_vm1, %v6536_v44, %v6538_v22  ;;  %v8444_v47 = vld [vmem:[%s16456_s6 + $0x140] sm:$0xff] }
 0x966   :  { %v6427_v24 = vsel %vm4845_vm3, %v6424_v9, %v6426_v13  ;;  %v6429_v26 = vsel %vm4845_vm3, %v6426_v13, %v6428_v38  ;;  %v6403_v63 = vmul.f32 %v6386_v18, %v16647_v15  ;;  %11707 = vmatmul.mubr.f32.vlgmr.msra.gmra.mxu1 %v15890_v0  ;;  %v6532_v27 = vrot.slane %v15890_v0, 1  ;;  %v8443_v13 = vld [vmem:[%s16456_s6 + $0x138] sm:$0xff]  ;;  %v8442_v18 = vld [vmem:[%s16456_s6 + $0x130] sm:$0xff]  ;;  %v8440_v15 = vld [vmem:[%s16456_s6 + $0x120] sm:$0xff] }
 0x967   :  { %v6450_v12 = vadd.f32 %v6427_v24, %v16648_v5  ;;  %v15903_v11 = vadd.f32 %v6429_v26, %v16649_v58  ;;  %11769 = vmatpush3.msra.mxu1 %v15856_v31  ;;  %11709 = vmatprep.mubr.f32.mxu1 %v15885_v45  ;;  %v6432_v36 = vrot.slane %v6404_v41, 7  ;;  %v6540_v25 = vrot.slane %v15940_v2, 1  ;;  %v8456_v24 = vld [vmem:[%s16456_s6 + $0x1a0] sm:$0xff]  ;;  %v8441_v26 = vld [vmem:[%s16456_s6 + $0x128] sm:$0xff] }
 0x968   :  { %v6430_v46 = vrot.slane %v6403_v63, 7  ;;  %11770 = vmatprep.subr.mxu1 %v8466_v30  ;;  %v6533_v56 = vsel %vm278_vm1, %v6531_v48, %v6532_v27  ;;  %v15916_v31 = vsel %vm278_vm1, %v6532_v27, %v6534_v59  ;;  %v6542_v16 = vrot.slane %v15946_v50, 1  ;;  %v8454_v63 = vld [vmem:[%s16456_s6 + $0x190] sm:$0xff]  ;;  %v8453_v5 = vld [vmem:[%s16456_s6 + $0x188] sm:$0xff]  ;;  %v8452_v58 = vld [vmem:[%s16456_s6 + $0x180] sm:$0xff] }
 0x969   :  { %6460 = vst [vmem:[#allocation2 + $0x38] sm:$0xff] %v6450_v12  ;;  %6461 = vst [vmem:[#allocation2 + $0x40] sm:$0xff] %v15903_v11  ;;  %11771 = vmatpush3.msra.mxu1 %v8466_v30  ;;  %11659 = vmatprep.mubr.f32.mxu0 %v6533_v56  ;;  %v15968_v9 = vmax.f32 %v6450_v12, 0.0  ;;  %v15972_v29 = vsel %vm278_vm1, %v6538_v22, %v6540_v25  ;;  %v15975_v21 = vmax.f32 %v15903_v11, 0.0  ;;  %v6803_v30 = vrot.slane %v15848_v14, 2  ;;  %v8455_v14 = vld [vmem:[%s16456_s6 + $0x198] sm:$0xff] }
 0x96a   :  { %v6431_v20 = vsel %vm4845_vm3, %v6428_v38, %v6430_v46  ;;  %v6433_v53 = vsel %vm4845_vm3, %v6430_v46, %v6432_v36  ;;  %11772 = vmatprep.subr.mxu1 %v8465_v62  ;;  %11660 = vmatmul.mubr.f32.vlgmr.msra.gmra.mxu0 %v15916_v31  ;;  %v15985_v33 = vsel %vm278_vm1, %v6540_v25, %v6542_v16  ;;  %v6804_v48 = vrot.slane %v15890_v0, 2  ;;  %v8438_v12 = vld [vmem:[%s16456_s6 + $0x110] sm:$0xff]  ;;  %v8437_v11 = vld [vmem:[%s16456_s6 + $0x108] sm:$0xff]  ;;  %v8499_v27 = vld [vmem:[%s16456_s6 + $0x2f8] sm:$0xff] }
 0x96b   :  { %v6452_v8 = vadd.f32 %v6431_v20, %v16650_v23  ;;  %v6453_v19 = vadd.f32 %v12078_v32, %v6433_v53  ;;  %11773 = vmatpush3.msra.mxu1 %v8465_v62  ;;  %11722 = vmatpush3.msra.mxu0 %v15866_v40  ;;  %v15944_v40 = vsel %vm278_vm1, %v6534_v59, %v6536_v44  ;;  %v6544_v49 = vrot.slane %v15968_v9, 1  ;;  %v8439_v59 = vld [vmem:[%s16456_s6 + $0x118] sm:$0xff]  ;;  %v8436_v62 = vld [vmem:[%s16456_s6 + $0x100] sm:$0xff]  ;;  %v8498_v36 = vld [vmem:[%s16456_s6 + $0x2f0] sm:$0xff] }
 0x96c   :  { %11710 = vmatmul.mubr.f32.gmra.mxu1 %v15911_v39  ;;  %11723 = vmatprep.subr.mxu0 %v8450_v51  ;;  %v6546_v28 = vrot.slane %v15975_v21, 1  ;;  %v6806_v46 = vrot.slane %v15885_v45, 2  ;;  %v6808_v56 = vrot.slane %v15911_v39, 2  ;;  %v8483_v20 = vld [vmem:[%s16456_s6 + $0x278] sm:$0xff]  ;;  %v8497_v53 = vld [vmem:[%s16456_s6 + $0x2e8] sm:$0xff]  ;;  %v8482_v23 = vld [vmem:[%s16456_s6 + $0x270] sm:$0xff] }
 0x96d   :  { %6462 = vst [vmem:[#allocation2 + $0x48] sm:$0xff] %v6452_v8  ;;  %6463 = vst [vmem:[#allocation2 + $0x50] sm:$0x1f] %v6453_v19  ;;  %11774 = vmatprep.subr.mxu1 %v8464_v60  ;;  %11712 = vmatprep.mubr.f32.mxu1 %v15918_v61  ;;  %v15997_v34 = vmax.f32 %v6452_v8, 0.0  ;;  %v16001_v1 = vsel %vm278_vm1, %v6542_v16, %v6544_v49  ;;  %v8496_v8 = vld [vmem:[%s16456_s6 + $0x2e0] sm:$0xff]  ;;  %v6810_v32 = vrot.slane %v15918_v61, 2 }
 0x96e   :  { %11724 = vmatpush3.msra.mxu0 %v8450_v51  ;;  %11775 = vmatpush3.msra.mxu1 %v8464_v60  ;;  %v16011_v10 = vsel %vm278_vm1, %v6544_v49, %v6546_v28  ;;  %v16087_v51 = vsel %vm3659_vm2, %v6804_v48, %v6806_v46  ;;  %v16092_v60 = vsel %vm3659_vm2, %v6806_v46, %v6808_v56  ;;  %v6812_v19 = vrot.slane %v15940_v2, 2  ;;  %v8481_v44 = vld [vmem:[%s16456_s6 + $0x268] sm:$0xff]  ;;  %v8478_v49 = vld [vmem:[%s16456_s6 + $0x250] sm:$0xff]  ;;  %v8468_v46 = vld [vmem:[%s16456_s6 + $0x200] sm:$0xff] }
 0x96f   :  { %11725 = vmatprep.subr.mxu0 %v8449_v54  ;;  %11776 = vmatprep.subr.mxu1 %v8463_v4  ;;  %v16014_v38 = vrot.slane %v15997_v34, 1  ;;  %v6814_v25 = vrot.slane %v15946_v50, 2  ;;  %v8493_v16 = vld [vmem:[%s16456_s6 + $0x2c8] sm:$0xff] }
 0x970   :  { %11662 = vmatprep.mubr.f32.mxu0 %v15944_v40  ;;  %11726 = vmatpush3.msra.mxu0 %v8449_v54  ;;  %v8495_v54 = vld [vmem:[%s16456_s6 + $0x2d8] sm:$0xff]  ;;  %v16116_v22 = vsel %vm3659_vm2, %v6810_v32, %v6812_v19 }
 0x971   :  { %11777 = vmatpush3.msra.mxu1 %v8463_v4  ;;  %11663 = vmatmul.mubr.f32.gmra.mxu0 %v15956_v55  ;;  %v16027_v41 = vsel %vm278_vm1, %v6546_v28, %v16014_v38  ;;  %v16111_v4 = vsel %vm3659_vm2, %v6808_v56, %v6810_v32  ;;  %v8530_v56 = vld [vmem:[%s16456_s6 + $0x3f0] sm:$0xff]  ;;  %v8527_v32 = vld [vmem:[%s16456_s6 + $0x3d8] sm:$0xff] }
 0x972   :  { %11713 = vmatmul.mubr.f32.gmra.mxu1 %v15940_v2  ;;  %11727 = vmatprep.subr.mxu0 %v8448_v35 }
 0x973   :  { %11778 = vmatprep.subr.mxu1 %v8462_v43  ;;  %11715 = vmatprep.mubr.f32.mxu1 %v15946_v50 }
 0x974   :  { %11728 = vmatpush3.msra.mxu0 %v8448_v35  ;;  %11779 = vmatpush3.msra.mxu1 %v8462_v43  ;;  %v8480_v35 = vld [vmem:[%s16456_s6 + $0x260] sm:$0xff]  ;;  %v8494_v43 = vld [vmem:[%s16456_s6 + $0x2d0] sm:$0xff] }
 0x975   :  { %11729 = vmatprep.subr.mxu0 %v8447_v52  ;;  %11780 = vmatprep.subr.mxu1 %v8461_v37  ;;  %v6474_v28 = vld [vmem:[#allocation2 + $0x50] sm:$0xff] }
 0x976   :  { %11665 = vmatprep.mubr.f32.mxu0 %v15972_v29  ;;  %11730 = vmatpush3.msra.mxu0 %v8447_v52  ;;  %v6816_v52 = vrot.slane %v15968_v9, 2 }
 0x977   :  { %11781 = vmatpush3.msra.mxu1 %v8461_v37  ;;  %11666 = vmatmul.mubr.f32.gmra.mxu0 %v15985_v33  ;;  %v8479_v37 = vld [vmem:[%s16456_s6 + $0x258] sm:$0xff] }
 0x978   :  { %11716 = vmatmul.mubr.f32.gmra.mxu1 %v15968_v9  ;;  %11731 = vmatprep.subr.mxu0 %v8446_v42 }
 0x979   :  { %11782 = vmatprep.subr.mxu1 %v8460_v57  ;;  %11718 = vmatprep.mubr.f32.mxu1 %v15975_v21 }
 0x97a   :  { %11732 = vmatpush3.msra.mxu0 %v8446_v42  ;;  %11783 = vmatpush3.msra.mxu1 %v8460_v57  ;;  %v16135_v42 = vsel %vm3659_vm2, %v6812_v19, %v6814_v25  ;;  %v16140_v57 = vsel %vm3659_vm2, %v6814_v25, %v6816_v52  ;;  %v8512_v19 = vld [vmem:[%s16456_s6 + $0x360] sm:$0xff] }
 0x97b   :  { %11733 = vmatprep.subr.mxu0 %v8445_v6  ;;  %11784 = vmatprep.subr.mxu1 %v8459_v7 }
 0x97c   :  { %11668 = vmatprep.mubr.f32.mxu0 %v16001_v1  ;;  %11734 = vmatpush3.msra.mxu0 %v8445_v6  ;;  %v8492_v6 = vld [vmem:[%s16456_s6 + $0x2c0] sm:$0xff] }
 0x97d   :  { %11785 = vmatpush3.msra.mxu1 %v8459_v7  ;;  %11669 = vmatmul.mubr.f32.gmra.mxu0 %v16011_v10  ;;  %v6818_v7 = vrot.slane %v15975_v21, 2 }
 0x97e   :  { %11719 = vmatmul.mubr.f32.gmra.mxu1 %v15997_v34  ;;  %11735 = vmatprep.subr.mxu0 %v8444_v47 }
 0x97f   :  { %11786 = vmatprep.subr.mxu1 %v8458_v17  ;;  %11736 = vmatpush3.msra.mxu0 %v8444_v47  ;;  %v16152_v47 = vrot.slane %v15997_v34, 2 }
 0x980   :  { %11787 = vmatpush3.msra.mxu1 %v8458_v17  ;;  %11800 = vmatprep.mubr.f32.mxu1 %v15890_v0  ;;  %v6805_v0 = vsel %vm3659_vm2, %v6803_v30, %v6804_v48  ;;  %v16154_v17 = vmax.f32 %v6474_v28, 0.0  ;;  %v8476_v48 = vld [vmem:[%s16456_s6 + $0x240] sm:$0xff] }
 0x981   :  { %11737 = vmatprep.subr.mxu0 %v8443_v13  ;;  %11788 = vmatprep.subr.mxu1 %v8457_v3  ;;  %v16169_v30 = vsel %vm3659_vm2, %v6818_v7, %v16152_v47  ;;  %v8508_v28 = vld [vmem:[%s16456_s6 + $0x340] sm:$0xff] }
 0x982   :  { %11671 = vmatprep.mubr.f32.mxu0 %v16027_v41  ;;  %11738 = vmatpush3.msra.mxu0 %v8443_v13  ;;  %v8477_v13 = vld [vmem:[%s16456_s6 + $0x248] sm:$0xff] }
 0x983   :  { %11789 = vmatpush3.msra.mxu1 %v8457_v3  ;;  %11672 = vmatmul.mubr.f32.gmra.mxu0 %v16014_v38  ;;  %v8491_v3 = vld [vmem:[%s16456_s6 + $0x2b8] sm:$0xff] }
 0x984   :  { %11739 = vmatprep.subr.mxu0 %v8442_v18  ;;  %11790 = vmatprep.subr.mxu1 %v8456_v24 }
 0x985   :  { %11740 = vmatpush3.msra.mxu0 %v8442_v18  ;;  %11753 = vmatprep.mubr.f32.mxu0 %v6805_v0  ;;  %v16163_v18 = vsel %vm3659_vm2, %v6816_v52, %v6818_v7  ;;  %v8474_v0 = vld [vmem:[%s16456_s6 + $0x230] sm:$0xff] }
 0x986   :  { %11791 = vmatpush3.msra.mxu1 %v8456_v24  ;;  %11741 = vmatprep.subr.mxu0 %v8441_v26  ;;  %v8490_v24 = vld [vmem:[%s16456_s6 + $0x2b0] sm:$0xff] }
 0x987   :  { %11792 = vmatprep.subr.mxu1 %v8455_v14  ;;  %11742 = vmatpush3.msra.mxu0 %v8441_v26  ;;  %v8475_v26 = vld [vmem:[%s16456_s6 + $0x238] sm:$0xff]  ;;  %v8510_v52 = vld [vmem:[%s16456_s6 + $0x350] sm:$0xff] }
 0x988   :  { %11793 = vmatpush3.msra.mxu1 %v8455_v14  ;;  %11743 = vmatprep.subr.mxu0 %v8440_v15  ;;  %v8489_v14 = vld [vmem:[%s16456_s6 + $0x2a8] sm:$0xff] }
 0x989   :  { %11794 = vmatprep.subr.mxu1 %v8454_v63  ;;  %11744 = vmatpush3.msra.mxu0 %v8440_v15  ;;  %v8488_v15 = vld [vmem:[%s16456_s6 + $0x2a0] sm:$0xff] }
 0x98a   :  { %11795 = vmatpush3.msra.mxu1 %v8454_v63  ;;  %11745 = vmatprep.subr.mxu0 %v8439_v59  ;;  %v8473_v63 = vld [vmem:[%s16456_s6 + $0x228] sm:$0xff] }
 0x98b   :  { %11796 = vmatprep.subr.mxu1 %v8453_v5  ;;  %11746 = vmatpush3.msra.mxu0 %v8439_v59  ;;  %v8487_v59 = vld [vmem:[%s16456_s6 + $0x298] sm:$0xff] }
 0x98c   :  { %11797 = vmatpush3.msra.mxu1 %v8453_v5  ;;  %11747 = vmatprep.subr.mxu0 %v8438_v12  ;;  %v8472_v5 = vld [vmem:[%s16456_s6 + $0x220] sm:$0xff] }
 0x98d   :  { %11798 = vmatprep.subr.mxu1 %v8452_v58  ;;  %11748 = vmatpush3.msra.mxu0 %v8438_v12  ;;  %v8471_v12 = vld [vmem:[%s16456_s6 + $0x218] sm:$0xff] }
 0x98e   :  { %11799 = vmatpush3.msra.mxu1 %v8452_v58  ;;  %11749 = vmatprep.subr.mxu0 %v8437_v11  ;;  %v8485_v58 = vld [vmem:[%s16456_s6 + $0x288] sm:$0xff] }
 0x98f   :  { %11801 = vmatmul.mubr.f32.vlgmr.msra.gmra.mxu1 %v15885_v45  ;;  %11862 = vmatprep.subr.mxu1 %v8499_v27 }
 0x990   :  { %11750 = vmatpush3.msra.mxu0 %v8437_v11  ;;  %11803 = vmatprep.mubr.f32.mxu1 %v15911_v39  ;;  %v8470_v11 = vld [vmem:[%s16456_s6 + $0x210] sm:$0xff] }
 0x991   :  { %11863 = vmatpush3.msra.mxu1 %v8499_v27  ;;  %11751 = vmatprep.subr.mxu0 %v8436_v62  ;;  %v8484_v27 = vld [vmem:[%s16456_s6 + $0x280] sm:$0xff] }
 0x992   :  { %11864 = vmatprep.subr.mxu1 %v8498_v36  ;;  %11752 = vmatpush3.msra.mxu0 %v8436_v62  ;;  %v8469_v62 = vld [vmem:[%s16456_s6 + $0x208] sm:$0xff] }
 0x993   :  { %11865 = vmatpush3.msra.mxu1 %v8498_v36  ;;  %11754 = vmatmul.mubr.f32.vlgmr.msra.gmra.mxu0 %v16087_v51  ;;  %v8531_v36 = vld [vmem:[%s16456_s6 + $0x3f8] sm:$0xff] }
 0x994   :  { %11804 = vmatmul.mubr.f32.gmra.mxu1 %v15918_v61  ;;  %11815 = vmatprep.subr.mxu0 %v8483_v20 }
 0x995   :  { %11866 = vmatprep.subr.mxu1 %v8497_v53  ;;  %11756 = vmatprep.mubr.f32.mxu0 %v16092_v60 }
 0x996   :  { %11806 = vmatprep.mubr.f32.mxu1 %v15940_v2  ;;  %11816 = vmatpush3.msra.mxu0 %v8483_v20  ;;  %v8515_v20 = vld [vmem:[%s16456_s6 + $0x378] sm:$0xff] }
 0x997   :  { %11867 = vmatpush3.msra.mxu1 %v8497_v53  ;;  %11817 = vmatprep.subr.mxu0 %v8482_v23  ;;  %v8529_v53 = vld [vmem:[%s16456_s6 + $0x3e8] sm:$0xff] }
 0x998   :  { %11868 = vmatprep.subr.mxu1 %v8496_v8  ;;  %11818 = vmatpush3.msra.mxu0 %v8482_v23  ;;  %v8528_v23 = vld [vmem:[%s16456_s6 + $0x3e0] sm:$0xff] }
 0x999   :  { %11869 = vmatpush3.msra.mxu1 %v8496_v8  ;;  %11757 = vmatmul.mubr.f32.gmra.mxu0 %v16111_v4  ;;  %v8513_v8 = vld [vmem:[%s16456_s6 + $0x368] sm:$0xff] }
 0x99a   :  { %11807 = vmatmul.mubr.f32.gmra.mxu1 %v15946_v50  ;;  %11819 = vmatprep.subr.mxu0 %v8481_v44 }
 0x99b   :  { %11870 = vmatprep.subr.mxu1 %v8495_v54  ;;  %11759 = vmatprep.mubr.f32.mxu0 %v16116_v22 }
 0x99c   :  { %11809 = vmatprep.mubr.f32.mxu1 %v15968_v9  ;;  %11820 = vmatpush3.msra.mxu0 %v8481_v44  ;;  %v8526_v44 = vld [vmem:[%s16456_s6 + $0x3d0] sm:$0xff] }
 0x99d   :  { %11871 = vmatpush3.msra.mxu1 %v8495_v54  ;;  %11821 = vmatprep.subr.mxu0 %v8480_v35  ;;  %v16264_v54 = vrot.slane %v16154_v17, 2 }
 0x99e   :  { %11872 = vmatprep.subr.mxu1 %v8494_v43  ;;  %11822 = vmatpush3.msra.mxu0 %v8480_v35  ;;  %v8511_v35 = vld [vmem:[%s16456_s6 + $0x358] sm:$0xff] }
 0x99f   :  { %11873 = vmatpush3.msra.mxu1 %v8494_v43  ;;  %11760 = vmatmul.mubr.f32.gmra.mxu0 %v16135_v42  ;;  %v8525_v43 = vld [vmem:[%s16456_s6 + $0x3c8] sm:$0xff]  ;;  %v16277_v25 = vsel %vm3659_vm2, %v16152_v47, %v16264_v54 }
 0x9a0   :  { %11810 = vmatmul.mubr.f32.gmra.mxu1 %v15975_v21  ;;  %11823 = vmatprep.subr.mxu0 %v8479_v37 }
 0x9a1   :  { %11874 = vmatprep.subr.mxu1 %v8493_v16  ;;  %11762 = vmatprep.mubr.f32.mxu0 %v16140_v57 }
 0x9a2   :  { %11812 = vmatprep.mubr.f32.mxu1 %v15997_v34  ;;  %11824 = vmatpush3.msra.mxu0 %v8479_v37  ;;  %v8524_v37 = vld [vmem:[%s16456_s6 + $0x3c0] sm:$0xff] }
 0x9a3   :  { %11875 = vmatpush3.msra.mxu1 %v8493_v16  ;;  %11825 = vmatprep.subr.mxu0 %v8478_v49  ;;  %v16288_v16 = vrot.slane %v16154_v17, 1 }
 0x9a4   :  { %11876 = vmatprep.subr.mxu1 %v8492_v6  ;;  %11826 = vmatpush3.msra.mxu0 %v8478_v49  ;;  %v8509_v49 = vld [vmem:[%s16456_s6 + $0x348] sm:$0xff] }
 0x9a5   :  { %11877 = vmatpush3.msra.mxu1 %v8492_v6  ;;  %11763 = vmatmul.mubr.f32.gmra.mxu0 %v16163_v18  ;;  %v8523_v6 = vld [vmem:[%s16456_s6 + $0x3b8] sm:$0xff]  ;;  %v16301_v7 = vsel %vm278_vm1, %v16014_v38, %v16288_v16  ;;  %v8521_v38 = vld [vmem:[%s16456_s6 + $0x3a8] sm:$0xff] }
 0x9a6   :  { %11813 = vmatmul.mubr.f32.gmra.mxu1 %v16154_v17  ;;  %11827 = vmatprep.subr.mxu0 %v8477_v13 }
 0x9a7   :  { %11878 = vmatprep.subr.mxu1 %v8491_v3  ;;  %11765 = vmatprep.mubr.f32.mxu0 %v16169_v30 }
 0x9a8   :  { %11828 = vmatpush3.msra.mxu0 %v8477_v13  ;;  %11879 = vmatpush3.msra.mxu1 %v8491_v3  ;;  %v8507_v13 = vld [vmem:[%s16456_s6 + $0x338] sm:$0xff]  ;;  %v8506_v3 = vld [vmem:[%s16456_s6 + $0x330] sm:$0xff] }
 0x9a9   :  { %11894 = vmatprep.mubr.f32.mxu1 %v16087_v51  ;;  %11829 = vmatprep.subr.mxu0 %v8476_v48  ;;  %v8514_v51 = vld [vmem:[%s16456_s6 + $0x370] sm:$0xff] }
 0x9aa   :  { %11880 = vmatprep.subr.mxu1 %v8490_v24  ;;  %11830 = vmatpush3.msra.mxu0 %v8476_v48  ;;  %v8505_v48 = vld [vmem:[%s16456_s6 + $0x328] sm:$0xff] }
 0x9ab   :  { %11881 = vmatpush3.msra.mxu1 %v8490_v24  ;;  %11766 = vmatmul.mubr.f32.gmra.mxu0 %v16152_v47  ;;  %v8522_v47 = vld [vmem:[%s16456_s6 + $0x3b0] sm:$0xff]  ;;  %v8519_v24 = vld [vmem:[%s16456_s6 + $0x398] sm:$0xff] }
 0x9ac   :  { %11831 = vmatprep.subr.mxu0 %v8475_v26  ;;  %11882 = vmatprep.subr.mxu1 %v8489_v14 }
 0x9ad   :  { %11832 = vmatpush3.msra.mxu0 %v8475_v26  ;;  %11847 = vmatprep.mubr.f32.mxu0 %v15916_v31  ;;  %v8486_v31 = vld [vmem:[%s16456_s6 + $0x290] sm:$0xff]  ;;  %v8504_v26 = vld [vmem:[%s16456_s6 + $0x320] sm:$0xff] }
 0x9ae   :  { %11883 = vmatpush3.msra.mxu1 %v8489_v14  ;;  %11833 = vmatprep.subr.mxu0 %v8474_v0  ;;  %v8503_v14 = vld [vmem:[%s16456_s6 + $0x318] sm:$0xff] }
 0x9af   :  { %11884 = vmatprep.subr.mxu1 %v8488_v15  ;;  %11834 = vmatpush3.msra.mxu0 %v8474_v0  ;;  %v8517_v0 = vld [vmem:[%s16456_s6 + $0x388] sm:$0xff] }
 0x9b0   :  { %11885 = vmatpush3.msra.mxu1 %v8488_v15  ;;  %11835 = vmatprep.subr.mxu0 %v8473_v63  ;;  %v8502_v15 = vld [vmem:[%s16456_s6 + $0x310] sm:$0xff] }
 0x9b1   :  { %11886 = vmatprep.subr.mxu1 %v8487_v59  ;;  %11836 = vmatpush3.msra.mxu0 %v8473_v63  ;;  %v8516_v63 = vld [vmem:[%s16456_s6 + $0x380] sm:$0xff] }
 0x9b2   :  { %11887 = vmatpush3.msra.mxu1 %v8487_v59  ;;  %11837 = vmatprep.subr.mxu0 %v8472_v5  ;;  %v8501_v59 = vld [vmem:[%s16456_s6 + $0x308] sm:$0xff] }
 0x9b3   :  { %11888 = vmatprep.subr.mxu1 %v8486_v31  ;;  %11838 = vmatpush3.msra.mxu0 %v8472_v5  ;;  %v8500_v5 = vld [vmem:[%s16456_s6 + $0x300] sm:$0xff] }
 0x9b4   :  { %11889 = vmatpush3.msra.mxu1 %v8486_v31  ;;  %11839 = vmatprep.subr.mxu0 %v8471_v12  ;;  %v6475_v31 = vld [vmem:[#allocation2 + $0x58] sm:$0xff] }
 0x9b5   :  { %11890 = vmatprep.subr.mxu1 %v8485_v58  ;;  %11840 = vmatpush3.msra.mxu0 %v8471_v12  ;;  %v8547_v12 = vld [vmem:[%s16456_s6 + $0x478] sm:$0xff] }
 0x9b6   :  { %11891 = vmatpush3.msra.mxu1 %v8485_v58  ;;  %11841 = vmatprep.subr.mxu0 %v8470_v11  ;;  %v8546_v58 = vld [vmem:[%s16456_s6 + $0x470] sm:$0xff] }
 0x9b7   :  { %11892 = vmatprep.subr.mxu1 %v8484_v27  ;;  %11842 = vmatpush3.msra.mxu0 %v8470_v11  ;;  %v16365_v11 = vmax.f32 %v6475_v31, 0.0 }
 0x9b8   :  { %11893 = vmatpush3.msra.mxu1 %v8484_v27  ;;  %11843 = vmatprep.subr.mxu0 %v8469_v62  ;;  %v8532_v27 = vld [vmem:[%s16456_s6 + $0x400] sm:$0xff] }
 0x9b9   :  { %11895 = vmatmul.mubr.f32.vlgmr.msra.gmra.mxu1 %v16092_v60  ;;  %11956 = vmatprep.subr.mxu1 %v8531_v36 }
 0x9ba   :  { %11844 = vmatpush3.msra.mxu0 %v8469_v62  ;;  %11897 = vmatprep.mubr.f32.mxu1 %v16111_v4  ;;  %v7674_v62 = vrot.slane %v16365_v11, 2 }
 0x9bb   :  { %11957 = vmatpush3.msra.mxu1 %v8531_v36  ;;  %11845 = vmatprep.subr.mxu0 %v8468_v46 }
 0x9bc   :  { %11958 = vmatprep.subr.mxu1 %v8530_v56  ;;  %11846 = vmatpush3.msra.mxu0 %v8468_v46  ;;  %v7675_v36 = vsel %vm3659_vm2, %v16264_v54, %v7674_v62 }
 0x9bd   :  { %11959 = vmatpush3.msra.mxu1 %v8530_v56  ;;  %11848 = vmatmul.mubr.f32.vlgmr.msra.gmra.mxu0 %v15944_v40 }
 0x9be   :  { %11898 = vmatmul.mubr.f32.gmra.mxu1 %v16116_v22  ;;  %11909 = vmatprep.subr.mxu0 %v8515_v20 }
 0x9bf   :  { %11960 = vmatprep.subr.mxu1 %v8529_v53  ;;  %11850 = vmatprep.mubr.f32.mxu0 %v15956_v55 }
 0x9c0   :  { %11900 = vmatprep.mubr.f32.mxu1 %v16135_v42  ;;  %11910 = vmatpush3.msra.mxu0 %v8515_v20 }
 0x9c1   :  { %11961 = vmatpush3.msra.mxu1 %v8529_v53  ;;  %11911 = vmatprep.subr.mxu0 %v8514_v51 }
 0x9c2   :  { %11962 = vmatprep.subr.mxu1 %v8528_v23  ;;  %11912 = vmatpush3.msra.mxu0 %v8514_v51 }
 0x9c3   :  { %11963 = vmatpush3.msra.mxu1 %v8528_v23  ;;  %11851 = vmatmul.mubr.f32.gmra.mxu0 %v15972_v29 }
 0x9c4   :  { %11901 = vmatmul.mubr.f32.gmra.mxu1 %v16140_v57  ;;  %11913 = vmatprep.subr.mxu0 %v8513_v8 }
 0x9c5   :  { %11964 = vmatprep.subr.mxu1 %v8527_v32  ;;  %11853 = vmatprep.mubr.f32.mxu0 %v15985_v33 }
 0x9c6   :  { %11903 = vmatprep.mubr.f32.mxu1 %v16163_v18  ;;  %11914 = vmatpush3.msra.mxu0 %v8513_v8 }
 0x9c7   :  { %11965 = vmatpush3.msra.mxu1 %v8527_v32  ;;  %11915 = vmatprep.subr.mxu0 %v8512_v19 }
 0x9c8   :  { %11966 = vmatprep.subr.mxu1 %v8526_v44  ;;  %11916 = vmatpush3.msra.mxu0 %v8512_v19 }
 0x9c9   :  { %11967 = vmatpush3.msra.mxu1 %v8526_v44  ;;  %11854 = vmatmul.mubr.f32.gmra.mxu0 %v16001_v1 }
 0x9ca   :  { %11904 = vmatmul.mubr.f32.gmra.mxu1 %v16169_v30  ;;  %11917 = vmatprep.subr.mxu0 %v8511_v35 }
 0x9cb   :  { %11968 = vmatprep.subr.mxu1 %v8525_v43  ;;  %11856 = vmatprep.mubr.f32.mxu0 %v16011_v10 }
 0x9cc   :  { %11906 = vmatprep.mubr.f32.mxu1 %v16277_v25  ;;  %11918 = vmatpush3.msra.mxu0 %v8511_v35 }
 0x9cd   :  { %11969 = vmatpush3.msra.mxu1 %v8525_v43  ;;  %11919 = vmatprep.subr.mxu0 %v8510_v52 }
 0x9ce   :  { %11970 = vmatprep.subr.mxu1 %v8524_v37  ;;  %11920 = vmatpush3.msra.mxu0 %v8510_v52 }
 0x9cf   :  { %11971 = vmatpush3.msra.mxu1 %v8524_v37  ;;  %11857 = vmatmul.mubr.f32.gmra.mxu0 %v16027_v41 }
 0x9d0   :  { %11907 = vmatmul.mubr.f32.gmra.mxu1 %v16264_v54  ;;  %11921 = vmatprep.subr.mxu0 %v8509_v49 }
 0x9d1   :  { %11972 = vmatprep.subr.mxu1 %v8523_v6  ;;  %11859 = vmatprep.mubr.f32.mxu0 %v16301_v7 }
 0x9d2   :  { %11922 = vmatpush3.msra.mxu0 %v8509_v49  ;;  %11973 = vmatpush3.msra.mxu1 %v8523_v6 }
 0x9d3   :  { %11988 = vmatprep.mubr.f32.mxu1 %v15944_v40  ;;  %11923 = vmatprep.subr.mxu0 %v8508_v28  ;;  %v8520_v40 = vld [vmem:[%s16456_s6 + $0x3a0] sm:$0xff] }
 0x9d4   :  { %11974 = vmatprep.subr.mxu1 %v8522_v47  ;;  %11924 = vmatpush3.msra.mxu0 %v8508_v28 }
 0x9d5   :  { %11975 = vmatpush3.msra.mxu1 %v8522_v47  ;;  %11860 = vmatmul.mubr.f32.gmra.mxu0 %v16288_v16 }
 0x9d6   :  { %11925 = vmatprep.subr.mxu0 %v8507_v13  ;;  %11976 = vmatprep.subr.mxu1 %v8521_v38 }
 0x9d7   :  { %11926 = vmatpush3.msra.mxu0 %v8507_v13  ;;  %11941 = vmatprep.mubr.f32.mxu0 %v15885_v45  ;;  %v8518_v45 = vld [vmem:[%s16456_s6 + $0x390] sm:$0xff] }
 0x9d8   :  { %11977 = vmatpush3.msra.mxu1 %v8521_v38  ;;  %11927 = vmatprep.subr.mxu0 %v8506_v3 }
 0x9d9   :  { %11978 = vmatprep.subr.mxu1 %v8520_v40  ;;  %11928 = vmatpush3.msra.mxu0 %v8506_v3 }
 0x9da   :  { %11979 = vmatpush3.msra.mxu1 %v8520_v40  ;;  %11929 = vmatprep.subr.mxu0 %v8505_v48 }
 0x9db   :  { %11980 = vmatprep.subr.mxu1 %v8519_v24  ;;  %11930 = vmatpush3.msra.mxu0 %v8505_v48 }
 0x9dc   :  { %11981 = vmatpush3.msra.mxu1 %v8519_v24  ;;  %11931 = vmatprep.subr.mxu0 %v8504_v26 }
 0x9dd   :  { %11982 = vmatprep.subr.mxu1 %v8518_v45  ;;  %11932 = vmatpush3.msra.mxu0 %v8504_v26 }
 0x9de   :  { %11983 = vmatpush3.msra.mxu1 %v8518_v45  ;;  %11933 = vmatprep.subr.mxu0 %v8503_v14 }
 0x9df   :  { %11984 = vmatprep.subr.mxu1 %v8517_v0  ;;  %11934 = vmatpush3.msra.mxu0 %v8503_v14 }
 0x9e0   :  { %11985 = vmatpush3.msra.mxu1 %v8517_v0  ;;  %11935 = vmatprep.subr.mxu0 %v8502_v15 }
 0x9e1   :  { %11986 = vmatprep.subr.mxu1 %v8516_v63  ;;  %11936 = vmatpush3.msra.mxu0 %v8502_v15 }
 0x9e2   :  { %11987 = vmatpush3.msra.mxu1 %v8516_v63  ;;  %11937 = vmatprep.subr.mxu0 %v8501_v59 }
 0x9e3   :  { %11989 = vmatmul.mubr.f32.vlgmr.msra.gmra.mxu1 %v15956_v55  ;;  %11938 = vmatpush3.msra.mxu0 %v8501_v59  ;;  %v8545_v55 = vld [vmem:[%s16456_s6 + $0x468] sm:$0xff] }
 0x9e4   :  { %11991 = vmatprep.mubr.f32.mxu1 %v15972_v29  ;;  %11939 = vmatprep.subr.mxu0 %v8500_v5  ;;  %v8543_v29 = vld [vmem:[%s16456_s6 + $0x458] sm:$0xff] }
 0x9e5   :  { %11940 = vmatpush3.msra.mxu0 %v8500_v5 }
 0x9e6   :  { %11942 = vmatmul.mubr.f32.vlgmr.msra.gmra.mxu0 %v15911_v39  ;;  %12003 = vmatprep.subr.mxu0 %v8547_v12  ;;  %v7532_v39 = vrot.slane %v16365_v11, 1 }
 0x9e7   :  { %11992 = vmatmul.mubr.f32.gmra.mxu1 %v15985_v33  ;;  %11944 = vmatprep.mubr.f32.mxu0 %v15918_v61  ;;  %v8544_v61 = vld [vmem:[%s16456_s6 + $0x460] sm:$0xff]  ;;  %v8542_v33 = vld [vmem:[%s16456_s6 + $0x450] sm:$0xff] }
 0x9e8   :  { %11994 = vmatprep.mubr.f32.mxu1 %v16001_v1  ;;  %12004 = vmatpush3.msra.mxu0 %v8547_v12  ;;  %v8540_v1 = vld [vmem:[%s16456_s6 + $0x440] sm:$0xff] }
 0x9e9   :  { %12005 = vmatprep.subr.mxu0 %v8546_v58 }
 0x9ea   :  { %12006 = vmatpush3.msra.mxu0 %v8546_v58 }
 0x9eb   :  { %11995 = vmatmul.mubr.f32.gmra.mxu1 %v16011_v10  ;;  %11945 = vmatmul.mubr.f32.gmra.mxu0 %v15940_v2  ;;  %v7533_v2 = vsel %vm278_vm1, %v16288_v16, %v7532_v39  ;;  %v8536_v10 = vld [vmem:[%s16456_s6 + $0x420] sm:$0xff] }
 0x9ec   :  { %12007 = vmatprep.subr.mxu0 %v8545_v55  ;;  %11947 = vmatprep.mubr.f32.mxu0 %v15946_v50  ;;  %v8541_v50 = vld [vmem:[%s16456_s6 + $0x448] sm:$0xff] }
 0x9ed   :  { %11997 = vmatprep.mubr.f32.mxu1 %v16027_v41  ;;  %12008 = vmatpush3.msra.mxu0 %v8545_v55  ;;  %v8535_v41 = vld [vmem:[%s16456_s6 + $0x418] sm:$0xff] }
 0x9ee   :  { %12009 = vmatprep.subr.mxu0 %v8544_v61 }
 0x9ef   :  { %11998 = vmatmul.mubr.f32.gmra.mxu1 %v16301_v7  ;;  %12010 = vmatpush3.msra.mxu0 %v8544_v61 }
 0x9f0   :  { %12000 = vmatprep.mubr.f32.mxu1 %v7533_v2  ;;  %11948 = vmatmul.mubr.f32.gmra.mxu0 %v15968_v9  ;;  %v8539_v9 = vld [vmem:[%s16456_s6 + $0x438] sm:$0xff] }
 0x9f1   :  { %12011 = vmatprep.subr.mxu0 %v8543_v29  ;;  %11950 = vmatprep.mubr.f32.mxu0 %v15975_v21  ;;  %v8538_v21 = vld [vmem:[%s16456_s6 + $0x430] sm:$0xff] }
 0x9f2   :  { %12012 = vmatpush3.msra.mxu0 %v8543_v29 }
 0x9f3   :  { %12013 = vmatprep.subr.mxu0 %v8542_v33  ;;  %12001 = vmatmul.mubr.f32.gmra.mxu1 %v7532_v39 }
 0x9f4   :  { %12014 = vmatpush3.msra.mxu0 %v8542_v33 }
 0x9f5   :  { %11951 = vmatmul.mubr.f32.gmra.mxu0 %v15997_v34  ;;  %12015 = vmatprep.subr.mxu0 %v8541_v50  ;;  %v8537_v34 = vld [vmem:[%s16456_s6 + $0x428] sm:$0xff] }
 0x9f6   :  { %11953 = vmatprep.mubr.f32.mxu0 %v16154_v17  ;;  %12016 = vmatpush3.msra.mxu0 %v8541_v50  ;;  %v8533_v17 = vld [vmem:[%s16456_s6 + $0x408] sm:$0xff] }
 0x9f7   :  { %12017 = vmatprep.subr.mxu0 %v8540_v1 }
 0x9f8   :  { %12018 = vmatpush3.msra.mxu0 %v8540_v1 }
 0x9f9   :  { %11954 = vmatmul.mubr.f32.gmra.mxu0 %v16365_v11  ;;  %12019 = vmatprep.subr.mxu0 %v8539_v9 }
 0x9fa   :  { %12020 = vmatpush3.msra.mxu0 %v8539_v9  ;;  %12035 = vmatprep.mubr.f32.mxu0 %v16092_v60  ;;  %v8534_v60 = vld [vmem:[%s16456_s6 + $0x410] sm:$0xff] }
 0x9fb   :  { %12021 = vmatprep.subr.mxu0 %v8538_v21 }
 0x9fc   :  { %12022 = vmatpush3.msra.mxu0 %v8538_v21 }
 0x9fd   :  { %12023 = vmatprep.subr.mxu0 %v8537_v34 }
 0x9fe   :  { %12024 = vmatpush3.msra.mxu0 %v8537_v34 }
 0x9ff   :  { %12025 = vmatprep.subr.mxu0 %v8536_v10 }
 0xa00   :  { %12026 = vmatpush3.msra.mxu0 %v8536_v10 }
 0xa01   :  { %12027 = vmatprep.subr.mxu0 %v8535_v41 }
 0xa02   :  { %12028 = vmatpush3.msra.mxu0 %v8535_v41 }
 0xa03   :  { %12029 = vmatprep.subr.mxu0 %v8534_v60 }
 0xa04   :  { %12030 = vmatpush3.msra.mxu0 %v8534_v60 }
 0xa05   :  { %12031 = vmatprep.subr.mxu0 %v8533_v17 }
 0xa06   :  { %12032 = vmatpush3.msra.mxu0 %v8533_v17 }
 0xa07   :  { %12033 = vmatprep.subr.mxu0 %v8532_v27 }
 0xa08   :  { %12034 = vmatpush3.msra.mxu0 %v8532_v27 }
 0xa09   :  { %12036 = vmatmul.mubr.f32.vlgmr.msra.gmra.mxu0 %v16111_v4 }
 0xa0a   :  { %12038 = vmatprep.mubr.f32.mxu0 %v16116_v22 }
 0xa0d   :  { %12039 = vmatmul.mubr.f32.gmra.mxu0 %v16135_v42 }
 0xa0e   :  { %12041 = vmatprep.mubr.f32.mxu0 %v16140_v57 }
 0xa11   :  { %12042 = vmatmul.mubr.f32.gmra.mxu0 %v16163_v18 }
 0xa12   :  { %12044 = vmatprep.mubr.f32.mxu0 %v16169_v30 }
 0xa15   :  { %12045 = vmatmul.mubr.f32.gmra.mxu0 %v16277_v25 }
 0xa16   :  { %12047 = vmatprep.mubr.f32.mxu0 %v7675_v36 }
 0xa19   :  { %12048 = vmatmul.mubr.f32.gmra.mxu0 %v7674_v62 }
 0xa26   :  { %v11708_v4 = vpop.f32.mrf.mxu1 }
 0xa28   :  { %v6739_v46 = vpop.f32.mrf.mxu1 }
 0xa2a   :  { %v11661_v22 = vpop.f32.mrf.mxu0 }
 0xa2b   :  { %v6745_v56 = vadd.f32 %v11708_v4, %v11661_v22 }
 0xa2c   :  { %v11711_v42 = vpop.f32.mrf.mxu1  ;;  %v6626_v20 = vpop.f32.mrf.mxu0 }
 0xa2d   :  { %v6740_v57 = vadd.f32 %v6739_v46, %v6626_v20 }
 0xa2e   :  { %v6749_v53 = vpop.f32.mrf.mxu1 }
 0xa31   :  { %v11664_v18 = vpop.f32.mrf.mxu0 }
 0xa32   :  { %v11714_v51 = vpop.f32.mrf.mxu1  ;;  %v6755_v23 = vadd.f32 %v11711_v42, %v11664_v18 }
 0xa33   :  { %v6636_v8 = vpop.f32.mrf.mxu0 }
 0xa34   :  { %v6759_v30 = vpop.f32.mrf.mxu1  ;;  %v6750_v32 = vadd.f32 %v6749_v53, %v6636_v8 }
 0xa37   :  { %v11667_v19 = vpop.f32.mrf.mxu0 }
 0xa38   :  { %v11717_v44 = vpop.f32.mrf.mxu1 }
 0xa39   :  { %v6646_v35 = vpop.f32.mrf.mxu0 }
 0xa3a   :  { %v6767_v54 = vpop.f32.mrf.mxu1 }
 0xa3d   :  { %v11670_v43 = vpop.f32.mrf.mxu0 }
 0xa3e   :  { %v6773_v25 = vadd.f32 %v11717_v44, %v11670_v43  ;;  %v11720_v16 = vpop.f32.mrf.mxu1 }
 0xa3f   :  { %v6654_v52 = vpop.f32.mrf.mxu0 }
 0xa40   :  { %v6768_v37 = vadd.f32 %v6767_v54, %v6654_v52  ;;  %v6777_v7 = vpop.f32.mrf.mxu1 }
 0xa43   :  { %v11673_v49 = vpop.f32.mrf.mxu0 }
 0xa44   :  { %v6783_v6 = vadd.f32 %v11720_v16, %v11673_v49 }
 0xa45   :  { %v6664_v28 = vpop.f32.mrf.mxu0 }
 0xa46   :  { %v6778_v47 = vadd.f32 %v6777_v7, %v6664_v28 }
 0xa4f   :  { %v11802_v13 = vpop.f32.mrf.mxu1 }
 0xa51   :  { %v7036_v38 = vpop.f32.mrf.mxu1 }
 0xa53   :  { %v11755_v3 = vpop.f32.mrf.mxu0 }
 0xa54   :  { %v11805_v40 = vpop.f32.mrf.mxu1  ;;  %v6946_v48 = vadd.f32 %v11755_v3, %v6745_v56 }
 0xa55   :  { %v6898_v24 = vpop.f32.mrf.mxu0 }
 0xa56   :  { %v7046_v26 = vpop.f32.mrf.mxu1  ;;  %v6945_v45 = vadd.f32 %v6898_v24, %v6740_v57  ;;  %v7084_v14 = vadd.f32 %v11802_v13, %v6946_v48 }
 0xa58   :  { %v7083_v0 = vadd.f32 %v7036_v38, %v6945_v45 }
 0xa59   :  { %v11758_v15 = vpop.f32.mrf.mxu0 }
 0xa5a   :  { %v11808_v63 = vpop.f32.mrf.mxu1  ;;  %v6948_v59 = vadd.f32 %v11758_v15, %v6755_v23 }
 0xa5b   :  { %v6908_v5 = vpop.f32.mrf.mxu0 }
 0xa5c   :  { %v7056_v31 = vpop.f32.mrf.mxu1  ;;  %v6947_v12 = vadd.f32 %v6908_v5, %v6750_v32  ;;  %v7086_v58 = vadd.f32 %v11805_v40, %v6948_v59 }
 0xa5e   :  { %v7085_v11 = vadd.f32 %v7046_v26, %v6947_v12 }
 0xa5f   :  { %v11761_v55 = vpop.f32.mrf.mxu0 }
 0xa60   :  { %v11811_v61 = vpop.f32.mrf.mxu1 }
 0xa61   :  { %v6918_v39 = vpop.f32.mrf.mxu0 }
 0xa62   :  { %v7064_v33 = vpop.f32.mrf.mxu1 }
 0xa65   :  { %v11764_v29 = vpop.f32.mrf.mxu0 }
 0xa66   :  { %v6950_v2 = vadd.f32 %v11764_v29, %v6773_v25  ;;  %v11814_v34 = vpop.f32.mrf.mxu1 }
 0xa67   :  { %v6926_v50 = vpop.f32.mrf.mxu0 }
 0xa68   :  { %v6949_v1 = vadd.f32 %v6926_v50, %v6768_v37  ;;  %v7088_v9 = vadd.f32 %v11811_v61, %v6950_v2  ;;  %v7074_v62 = vpop.f32.mrf.mxu1  ;;  %v8548_v2 = vld [vmem:[%s16457_s7] ss:$0 sm:$0xff]  ;;  %s12103_s7 = smov [#allocation3]  }
 0xa69   :  { %s7828_s2 = sshll.u32 %s12103_s7, 4  ;;  %s7829_s2 = int_to_ptr.vmem [resolvable:$true] %s7828_s2 }
 0xa6a   :  { %v16435_v21 = vadd.f32 %v7064_v33, %v6949_v1  ;;  %s12079_s15 = scalar_lea.vmem %s7829_s2, 512  ;;  %p12084_p1 = scmp.lt.s32.totalorder %s7829_s2, %s7829_s2 }
 0xa6b   :  { %v11767_v10 = vpop.f32.mrf.mxu0  ;;  %p12080_p0 = scmp.ne.s32.totalorder %s7829_s2, %s12079_s15  ;;  %p12085_p2 = scmp.lt.s32.totalorder %s12079_s15, %s12079_s15 }
 0xa6c   :  { %v6952_v41 = vadd.f32 %v11767_v10, %v6783_v6 }
 0xa6d   :  { %v6936_v60 = vpop.f32.mrf.mxu0  ;;  %p12086_p3 = por %p12085_p2, %p12084_p1 }
 0xa6e   :  { %v6951_v17 = vadd.f32 %v6936_v60, %v6778_v47  ;;  %v16437_v27 = vadd.f32 %v11814_v34, %v6952_v41 }
 0xa6f   :  { %p12087_p4 = pnand %p12086_p3, %p12080_p0 }
 0xa70   :  { %v16439_v36 = vadd.f32 %v7074_v62, %v6951_v17 }
 0xa79   :  { %v11896_v4 = vpop.f32.mrf.mxu1 }
 0xa7b   :  { %v7321_v46 = vpop.f32.mrf.mxu1 }
 0xa7d   :  { %v11849_v22 = vpop.f32.mrf.mxu0 }
 0xa7e   :  { %v11899_v56 = vpop.f32.mrf.mxu1  ;;  %v7227_v42 = vadd.f32 %v11849_v22, %v7084_v14 }
 0xa7f   :  { %v7179_v20 = vpop.f32.mrf.mxu0 }
 0xa80   :  { %v7331_v57 = vpop.f32.mrf.mxu1  ;;  %v7226_v53 = vadd.f32 %v7179_v20, %v7083_v0  ;;  %v7369_v18 = vadd.f32 %v11896_v4, %v7227_v42 }
 0xa82   :  { %v7368_v51 = vadd.f32 %v7321_v46, %v7226_v53 }
 0xa83   :  { %v11852_v23 = vpop.f32.mrf.mxu0 }
 0xa84   :  { %v11902_v8 = vpop.f32.mrf.mxu1  ;;  %v7229_v30 = vadd.f32 %v11852_v23, %v7086_v58 }
 0xa85   :  { %v7189_v32 = vpop.f32.mrf.mxu0 }
 0xa86   :  { %v7341_v19 = vpop.f32.mrf.mxu1  ;;  %v7228_v44 = vadd.f32 %v7189_v32, %v7085_v11  ;;  %v7371_v35 = vadd.f32 %v11899_v56, %v7229_v30 }
 0xa88   :  { %v7370_v54 = vadd.f32 %v7331_v57, %v7228_v44 }
 0xa89   :  { %v11855_v43 = vpop.f32.mrf.mxu0 }
 0xa8a   :  { %v11905_v52 = vpop.f32.mrf.mxu1 }
 0xa8b   :  { %v7199_v25 = vpop.f32.mrf.mxu0 }
 0xa8c   :  { %v7349_v37 = vpop.f32.mrf.mxu1 }
 0xa8f   :  { %v11858_v16 = vpop.f32.mrf.mxu0 }
 0xa90   :  { %v11908_v49 = vpop.f32.mrf.mxu1  ;;  %v7231_v61 = vadd.f32 %v11858_v16, %v7088_v9 }
 0xa91   :  { %v7207_v6 = vpop.f32.mrf.mxu0 }
 0xa92   :  { %v7359_v7 = vpop.f32.mrf.mxu1  ;;  %v7230_v34 = vadd.f32 %v7207_v6, %v16435_v21  ;;  %v7373_v4 = vadd.f32 %v11905_v52, %v7231_v61 }
 0xa94   :  { %v7372_v20 = vadd.f32 %v7349_v37, %v7230_v34 }
 0xa95   :  { %v11861_v28 = vpop.f32.mrf.mxu0 }
 0xa96   :  { %v7233_v22 = vadd.f32 %v11861_v28, %v16437_v27 }
 0xa97   :  { %v7217_v13 = vpop.f32.mrf.mxu0 }
 0xa98   :  { %v7232_v53 = vadd.f32 %v7217_v13, %v16439_v36  ;;  %v7375_v32 = vadd.f32 %v11908_v49, %v7233_v22 }
 0xaa3   :  { %v11990_v47 = vpop.f32.mrf.mxu1 }
 0xaa5   :  { %v7602_v38 = vpop.f32.mrf.mxu1 }
 0xaa6   :  { %v11943_v3 = vpop.f32.mrf.mxu0 }
 0xaa7   :  { %v11993_v40 = vpop.f32.mrf.mxu1  ;;  %v7507_v12 = vadd.f32 %v11943_v3, %v7369_v18 }
 0xaa8   :  { %v7459_v48 = vpop.f32.mrf.mxu0 }
 0xaa9   :  { %v7612_v24 = vpop.f32.mrf.mxu1  ;;  %v7506_v58 = vadd.f32 %v7459_v48, %v7368_v51  ;;  %v7650_v39 = vadd.f32 %v11990_v47, %v7507_v12 }
 0xaab   :  { %v11996_v26 = vpop.f32.mrf.mxu1  ;;  %v11946_v45 = vpop.f32.mrf.mxu0  ;;  %v7649_v1 = vadd.f32 %v7602_v38, %v7506_v58 }
 0xaac   :  { %v7509_v55 = vadd.f32 %v11946_v45, %v7371_v35 }
 0xaad   :  { %v7622_v14 = vpop.f32.mrf.mxu1  ;;  %v7469_v0 = vpop.f32.mrf.mxu0 }
 0xaae   :  { %v7508_v33 = vadd.f32 %v7469_v0, %v7370_v54  ;;  %v7652_v17 = vadd.f32 %v11993_v40, %v7509_v55  ;;  %v7374_v54 = vadd.f32 %v7359_v7, %v7232_v53 }
 0xaaf   :  { %v11999_v62 = vpop.f32.mrf.mxu1 }
 0xab0   :  { %v11949_v15 = vpop.f32.mrf.mxu0  ;;  %v7651_v42 = vadd.f32 %v7612_v24, %v7508_v33 }
 0xab1   :  { %v7630_v23 = vpop.f32.mrf.mxu1 }
 0xab2   :  { %v7479_v63 = vpop.f32.mrf.mxu0 }
 0xab3   :  { %v12002_v44 = vpop.f32.mrf.mxu1 }
 0xab5   :  { %v11952_v59 = vpop.f32.mrf.mxu0  ;;  %v7640_v16 = vpop.f32.mrf.mxu1 }
 0xab6   :  { %v7511_v18 = vadd.f32 %v11952_v59, %v7373_v4 }
 0xab7   :  { %v7487_v5 = vpop.f32.mrf.mxu0 }
 0xab8   :  { %v7510_v30 = vadd.f32 %v7487_v5, %v7372_v20  ;;  %v7654_v43 = vadd.f32 %v11999_v62, %v7511_v18 }
 0xab9   :  { %v11955_v31 = vpop.f32.mrf.mxu0 }
 0xaba   :  { %v7513_v35 = vadd.f32 %v11955_v31, %v7375_v32  ;;  %v7653_v36 = vadd.f32 %v7630_v23, %v7510_v30 }
 0xabb   :  { %v7497_v11 = vpop.f32.mrf.mxu0 }
 0xabc   :  { %v7512_v52 = vadd.f32 %v7497_v11, %v7374_v54  ;;  %v7656_v28 = vadd.f32 %v12002_v44, %v7513_v35 }
 0xabe   :  { %v7655_v3 = vadd.f32 %v7640_v16, %v7512_v52 }
 0xac9   :  { %v12037_v29 = vpop.f32.mrf.mxu0 }
 0xaca   :  { %v7792_v50 = vadd.f32 %v12037_v29, %v7650_v39 }
 0xacb   :  { %v7744_v10 = vpop.f32.mrf.mxu0 }
 0xacc   :  { %v7807_v41 = vadd.f32 %v8548_v2, %v7792_v50  ;;  %v7791_v60 = vadd.f32 %v7744_v10, %v7649_v1 }
 0xacd   :  { %v12040_v46 = vpop.f32.mrf.mxu0 }
 0xace   :  { %7815 = vst [vmem:[#allocation3 + $0x4] sm:$0xf] %v7807_v41  ;;  %v7806_v9 = vadd.f32 %v8548_v2, %v7791_v60  ;;  %v7794_v56 = vadd.f32 %v12040_v46, %v7652_v17 }
 0xacf   :  { %v7754_v57 = vpop.f32.mrf.mxu0 }
 0xad0   :  { %7814 = vst [vmem:[#allocation3] sm:$0xf] %v7806_v9  ;;  %v7809_v21 = vadd.f32 %v8548_v2, %v7794_v56  ;;  %v7793_v51 = vadd.f32 %v7754_v57, %v7651_v42 }
 0xad1   :  { %v12043_v8 = vpop.f32.mrf.mxu0 }
 0xad2   :  { %7817 = vst [vmem:[#allocation3 + $0xc] sm:$0xf] %v7809_v21  ;;  %v7808_v19 = vadd.f32 %v8548_v2, %v7793_v51 }
 0xad3   :  { %v7764_v27 = vpop.f32.mrf.mxu0 }
 0xad4   :  { %7816 = vst [vmem:[#allocation3 + $0x8] sm:$0xf] %v7808_v19 }
 0xad5   :  { %v12046_v25 = vpop.f32.mrf.mxu0 }
 0xad6   :  { %v7796_v37 = vadd.f32 %v12046_v25, %v7654_v43 }
 0xad7   :  { %v7772_v6 = vpop.f32.mrf.mxu0 }
 0xad8   :  { %v7811_v47 = vadd.f32 %v8548_v2, %v7796_v37  ;;  %v7795_v13 = vadd.f32 %v7772_v6, %v7653_v36 }
 0xad9   :  { %v12049_v38 = vpop.f32.mrf.mxu0 }
 0xada   :  { %7820 = vst [vmem:[#allocation3 + $0x14] sm:$0xf] %v7811_v47  ;;  %v7810_v49 = vadd.f32 %v8548_v2, %v7795_v13  ;;  %v7798_v40 = vadd.f32 %v12049_v38, %v7656_v28 }
 0xadb   :  { %v7782_v48 = vpop.f32.mrf.mxu0 }
 0xadc   :  { %7819 = vst [vmem:[#allocation3 + $0x10] sm:$0xf] %v7810_v49  ;;  %v7813_v7 = vadd.f32 %v8548_v2, %v7798_v40  ;;  %v7797_v24 = vadd.f32 %v7782_v48, %v7655_v3 }
 0xade   :  { %7822 = vst [vmem:[#allocation3 + $0x1c] sm:$0xf] %v7813_v7  ;;  %v7812_v26 = vadd.f32 %v8548_v2, %v7797_v24 }
 0xae0   :  { %7821 = vst [vmem:[#allocation3 + $0x18] sm:$0xf] %v7812_v26 }
 0xae1   :  { %12090 = shalt.err (!%p12087_p4)
}
 0xae2   :  { %s12104_s0 = smov 128   ;;  %s12105_s16 = smov 8  }
 0xae3   :  { %7834 = dma.vmem_to_hbm [thread:$0]  %s7829_s2, 512, %s16459_s9, [#allocation4], %s12104_s0, %s12104_s0, %s12105_s16  }
 0xae4   :  { %12099 = dma.done.wait [#allocation4], 512  }
 0xae5   :  { %12100 = vsyncadd [#allocation4], 4294966784 }
 0xae6   :  { %7838 = vsyncpa [#allocation4], 1 }

</bundles_post_ra>
